<compile_context>
chip_gen: v7x
topology: tpu7x:2x2x1
jax: 0.10.0
libtpu: 0.0.40
codegen_flags: <defaults>
</compile_context>

<pallas_src>
import jax
import jax.numpy as jnp
from jax import lax
from jax.experimental import pallas as pl
from jax.experimental.pallas import tpu as pltpu

PAD = 18                          # max dilation
DILATIONS = (6, 12, 18)
BN_EPS = 1e-5
LANE = 128                        # TPU lane width
OFF = ((PAD + 7) // 8) * 8        # sublane-aligned interior offset in the pad scratch (=24)


def _round_up(x, m):
    return ((x + m - 1) // m) * m


# --------------------------------------------------------------------------
# Kernel: one grid step per batch image.
# --------------------------------------------------------------------------
def _aspp_kernel(x_ref, w1_ref, w2_ref, w3_ref, w4_ref, w5_ref,
                 wcat_ref, scale_ref, shift_ref, out_ref, xpad_s):
    H, W = out_ref.shape[1], out_ref.shape[2]
    cop = out_ref.shape[3]            # lane-padded Cout
    cin = x_ref.shape[3]              # true Cin (HBM side)
    cp = xpad_s.shape[2]              # lane-padded Cin (VMEM side)
    S = H * W

    # ---- in-kernel zero padding (padded image never touches HBM) ----------
    # Zeroed every step: the scratch is per-core, and with the batch axis
    # marked "parallel" a program_id==0 gate would miss cores starting at n>0.
    xpad_s[...] = jnp.zeros(xpad_s.shape, xpad_s.dtype)
    xpad_s[OFF:OFF + H, OFF:OFF + W, :cin] = x_ref[0]

    scale = scale_ref[...]            # (6, cop) f32, loaded once
    shift = shift_ref[...]

    def affine_relu(y, i):            # folded eval-mode BatchNorm + ReLU
        return jnp.maximum(y * scale[i:i + 1, :] + shift[i:i + 1, :], 0.0)

    def window(oy, ox):               # shifted (S, cp) window, read from the ref
        return xpad_s[oy:oy + H, ox:ox + W, :].reshape(S, cp)

    # ---- branch 1: 1x1 conv + bn1 + relu -----------------------------------
    xc = window(OFF, OFF)
    y1 = affine_relu(
        jnp.dot(xc, w1_ref[...], preferred_element_type=jnp.float32), 0)
    # conv_cat fused into the branches:  cat([y1..y5]) @ Wcat == sum_i y_i @ Wcat[i]
    ycat = jnp.dot(y1.astype(wcat_ref.dtype), wcat_ref[0],
                   preferred_element_type=jnp.float32)

    # ---- branches 2-4: 3x3 dilated convs, one K=9*cp matmul each -----------
    def dilated_branch(wstack_ref, d, i, acc):
        taps = [window(OFF + (ky - 1) * d, OFF + (kx - 1) * d)
                for ky in range(3) for kx in range(3)]
        xcat = jnp.concatenate(taps, axis=-1)        # (S, 9*cp), 128-aligned pieces
        y = affine_relu(
            jnp.dot(xcat, wstack_ref[...], preferred_element_type=jnp.float32), i)
        return acc + jnp.dot(y.astype(wcat_ref.dtype), wcat_ref[i],
                             preferred_element_type=jnp.float32)

    ycat = dilated_branch(w2_ref, DILATIONS[0], 1, ycat)
    ycat = dilated_branch(w3_ref, DILATIONS[1], 2, ycat)
    ycat = dilated_branch(w4_ref, DILATIONS[2], 3, ycat)

    # ---- branch 5: global avg pool -> 1x1 conv -> bn -> relu ----------------
    # bilinear upsample from 1x1 (align_corners=True) == spatial broadcast, so
    # its conv_cat contribution is a constant row folded into the final shift.
    xm = jnp.mean(xc, axis=0, keepdims=True)                       # (1, cp)
    y5 = affine_relu(
        jnp.dot(xm, w5_ref[...], preferred_element_type=jnp.float32), 4)
    bias5 = jnp.dot(y5.astype(wcat_ref.dtype), wcat_ref[4],
                    preferred_element_type=jnp.float32)            # (1, cop)
    s5 = scale[5:6, :]
    shift_eff = shift[5:6, :] + s5 * bias5

    # TODO(synk): Dropout(0.5) and training-mode BatchNorm (batch statistics)
    # are not modeled; this kernel implements eval-mode forward semantics.
    y = jnp.maximum(ycat * s5 + shift_eff, 0.0)                    # (S, cop)
    out_ref[...] = y.reshape(1, H, W, cop).astype(out_ref.dtype)   # lane-dense store


# --------------------------------------------------------------------------
# Wrapper: channel padding / tap stacking + pallas_call.
# --------------------------------------------------------------------------
def _pad_io(w, cin_p, cout_p):
    cin, cout = w.shape
    return jnp.zeros((cin_p, cout_p), w.dtype).at[:cin, :cout].set(w)


def _stack_taps(w_hwio, cin_p, cout_p):
    kh, kw, cin, cout = w_hwio.shape
    wp = jnp.zeros((kh, kw, cin_p, cout_p), w_hwio.dtype)
    wp = wp.at[:, :, :cin, :cout].set(w_hwio)
    # tap order (ky, kx, cin) matches the kernel's lane-concat order
    return wp.reshape(kh * kw * cin_p, cout_p)


def aspp_forward(x_nhwc, params, *, compute_dtype=jnp.float32):
    """Eval-mode ASPP forward. x_nhwc: (N,H,W,Cin) f32 -> (N,H,W,Cout) f32."""
    N, H, W, cin = x_nhwc.shape
    cout = params["w1"].shape[-1]
    cin_p = _round_up(cin, LANE)      # lane-dense channels (VMEM / weights only;
    cout_p = _round_up(cout, LANE)    # the HBM input keeps its true Cin)

    cd = compute_dtype
    x = x_nhwc.astype(cd)
    w1p = _pad_io(params["w1"], cin_p, cout_p).astype(cd)
    w5p = _pad_io(params["w5"], cin_p, cout_p).astype(cd)
    w2s = _stack_taps(params["w2"], cin_p, cout_p).astype(cd)
    w3s = _stack_taps(params["w3"], cin_p, cout_p).astype(cd)
    w4s = _stack_taps(params["w4"], cin_p, cout_p).astype(cd)
    wcatp = jnp.zeros((5, cout_p, cout_p), cd).at[:, :cout, :cout].set(
        params["wcat"].astype(cd))
    scale_p = jnp.ones((6, cout_p), jnp.float32).at[:, :cout].set(params["scale"])
    shift_p = jnp.zeros((6, cout_p), jnp.float32).at[:, :cout].set(params["shift"])

    def full(shape):                  # grid-invariant weight block (not re-DMA'd per step)
        return pl.BlockSpec(shape, lambda n, _s=len(shape): (0,) * _s)

    grid_spec = pltpu.PrefetchScalarGridSpec(
        num_scalar_prefetch=0,
        grid=(N,),
        in_specs=[
            pl.BlockSpec((1, H, W, cin), lambda n: (n, 0, 0, 0)),
            full(w1p.shape), full(w2s.shape), full(w3s.shape), full(w4s.shape),
            full(w5p.shape), full(wcatp.shape),
            full(scale_p.shape), full(shift_p.shape),
        ],
        out_specs=pl.BlockSpec((1, H, W, cout_p), lambda n: (n, 0, 0, 0)),
        scratch_shapes=[pltpu.VMEM((H + 2 * OFF, W + 2 * OFF, cin_p), cd)],
    )
    out_p = pl.pallas_call(
        _aspp_kernel,
        out_shape=jax.ShapeDtypeStruct((N, H, W, cout_p), jnp.float32),
        grid_spec=grid_spec,
        compiler_params=pltpu.CompilerParams(
            dimension_semantics=("parallel",),
            vmem_limit_bytes=32 * 1024 * 1024),   # explicit; re-derive for prod shapes
    )(x, w1p, w2s, w3s, w4s, w5p, wcatp, scale_p, shift_p)
    return out_p[..., :cout]


# --------------------------------------------------------------------------
# Params + pure-JAX reference (eval-mode ASPP) for correctness checking.
# --------------------------------------------------------------------------
def init_params(key, cin, cout):
    ks = jax.random.split(key, 10)

    def w(k, shape):
        fan_in = 1
        for s in shape[:-1]:
            fan_in *= s
        return jax.random.normal(k, shape, jnp.float32) / jnp.sqrt(
            jnp.asarray(fan_in, jnp.float32))

    w1 = w(ks[0], (cin, cout))                    # conv1 (1x1)
    w2 = w(ks[1], (3, 3, cin, cout))              # conv2, dilation 6
    w3 = w(ks[2], (3, 3, cin, cout))              # conv3, dilation 12
    w4 = w(ks[3], (3, 3, cin, cout))              # conv4, dilation 18
    w5 = w(ks[4], (cin, cout))                    # global-pool branch 1x1
    wcat = w(ks[5], (5, cout, cout))              # 5 row-blocks of (5*Cout, Cout)

    gamma = 1.0 + 0.1 * jax.random.normal(ks[6], (6, cout), jnp.float32)
    beta = 0.1 * jax.random.normal(ks[7], (6, cout), jnp.float32)
    rmean = 0.1 * jax.random.normal(ks[8], (6, cout), jnp.float32)
    rvar = 1.0 + 0.2 * jax.random.uniform(ks[9], (6, cout), jnp.float32)
    scale = gamma / jnp.sqrt(rvar + BN_EPS)
    shift = beta - rmean * scale
    return dict(w1=w1, w2=w2, w3=w3, w4=w4, w5=w5, wcat=wcat,
                scale=scale, shift=shift)


def aspp_reference(x_nhwc, params):
    def dconv(x, w_hwio, d):
        return lax.conv_general_dilated(
            x, w_hwio, (1, 1), [(d, d), (d, d)], rhs_dilation=(d, d),
            dimension_numbers=("NHWC", "HWIO", "NHWC"))

    def affine_relu(y, i):
        return jnp.maximum(y * params["scale"][i] + params["shift"][i], 0.0)

    x1 = affine_relu(jnp.einsum("nhwc,cd->nhwd", x_nhwc, params["w1"]), 0)
    x2 = affine_relu(dconv(x_nhwc, params["w2"], 6), 1)
    x3 = affine_relu(dconv(x_nhwc, params["w3"], 12), 2)
    x4 = affine_relu(dconv(x_nhwc, params["w4"], 18), 3)
    xm = jnp.mean(x_nhwc, axis=(1, 2), keepdims=True)
    x5 = affine_relu(jnp.einsum("nhwc,cd->nhwd", xm, params["w5"]), 4)
    x5 = jnp.broadcast_to(x5, x4.shape)
    cat = jnp.concatenate([x1, x2, x3, x4, x5], axis=-1)
    cout = x1.shape[-1]
    wcat_full = params["wcat"].reshape(5 * cout, cout)
    return affine_relu(jnp.einsum("nhwc,cd->nhwd", cat, wcat_full), 5)


if __name__ == "__main__":
    key = jax.random.PRNGKey(0)
    kx, kp = jax.random.split(key)
    N, CIN, COUT, H, W = 2, 4, 8, 16, 16

    x_nchw = jax.random.normal(kx, (N, CIN, H, W), jnp.float32)   # PyTorch NCHW
    x_nhwc = jnp.transpose(x_nchw, (0, 2, 3, 1))                  # kernel layout
    params = init_params(kp, CIN, COUT)

    out = aspp_forward(x_nhwc, params)
    jax.block_until_ready(out)

    ref = aspp_reference(x_nhwc, params)
    assert out.shape == (N, H, W, COUT), out.shape
    max_err = float(jnp.max(jnp.abs(out - ref)))
    assert jnp.allclose(out, ref, atol=5e-3, rtol=5e-3), max_err
    print("KERNEL_OK")
</pallas_src>

<mosaic_0001>
module attributes {stable_mosaic.version = 11 : i64} {
  func.func @_aspp_kernel(%arg0: i32, %arg1: memref<1x16x16x4xf32, #tpu.memory_space<vmem>>, %arg2: memref<128x128xf32, #tpu.memory_space<vmem>>, %arg3: memref<1152x128xf32, #tpu.memory_space<vmem>>, %arg4: memref<1152x128xf32, #tpu.memory_space<vmem>>, %arg5: memref<1152x128xf32, #tpu.memory_space<vmem>>, %arg6: memref<128x128xf32, #tpu.memory_space<vmem>>, %arg7: memref<5x128x128xf32, #tpu.memory_space<vmem>>, %arg8: memref<6x128xf32, #tpu.memory_space<vmem>>, %arg9: memref<6x128xf32, #tpu.memory_space<vmem>>, %arg10: memref<1x16x16x128xf32, #tpu.memory_space<vmem>>, %arg11: memref<64x64x128xf32, #tpu.memory_space<vmem>>) attributes {dimension_semantics = [#tpu.dimension_semantics<parallel>], iteration_bounds = array<i64: 2>, scalar_prefetch = 0 : i64, scratch_operands = 1 : i64, tpu.core_type = #tpu.core_type<tc>, window_params = [{transform_indices = @transform_0, window_bounds = array<i64: 1, 16, 16, 4>}, {pipeline_mode = #tpu.pipeline_mode<synchronous>, transform_indices = @transform_1, window_bounds = array<i64: 128, 128>}, {pipeline_mode = #tpu.pipeline_mode<synchronous>, transform_indices = @transform_2, window_bounds = array<i64: 1152, 128>}, {pipeline_mode = #tpu.pipeline_mode<synchronous>, transform_indices = @transform_3, window_bounds = array<i64: 1152, 128>}, {pipeline_mode = #tpu.pipeline_mode<synchronous>, transform_indices = @transform_4, window_bounds = array<i64: 1152, 128>}, {pipeline_mode = #tpu.pipeline_mode<synchronous>, transform_indices = @transform_5, window_bounds = array<i64: 128, 128>}, {pipeline_mode = #tpu.pipeline_mode<synchronous>, transform_indices = @transform_6, window_bounds = array<i64: 5, 128, 128>}, {pipeline_mode = #tpu.pipeline_mode<synchronous>, transform_indices = @transform_7, window_bounds = array<i64: 6, 128>}, {pipeline_mode = #tpu.pipeline_mode<synchronous>, transform_indices = @transform_8, window_bounds = array<i64: 6, 128>}, {transform_indices = @transform_9, window_bounds = array<i64: 1, 16, 16, 128>}]} {
    %cst = arith.constant 0.000000e+00 : f32
    %0 = vector.broadcast %cst : f32 to vector<64x64x128xf32>
    %c0 = arith.constant 0 : index
    %c0_0 = arith.constant 0 : index
    %c0_1 = arith.constant 0 : index
    %1 = vector.load %arg11[%c0, %c0_0, %c0_1] : memref<64x64x128xf32, #tpu.memory_space<vmem>>, vector<64x64x128xf32>
    tpu.vector_store %arg11[%c0, %c0_0, %c0_1], %0 {strides = array<i32>} : memref<64x64x128xf32, #tpu.memory_space<vmem>>, vector<64x64x128xf32>,
    %c0_2 = arith.constant 0 : index
    %c0_3 = arith.constant 0 : index
    %c0_4 = arith.constant 0 : index
    %c0_5 = arith.constant 0 : index
    %2 = vector.load %arg1[%c0_2, %c0_3, %c0_4, %c0_5] : memref<1x16x16x4xf32, #tpu.memory_space<vmem>>, vector<1x16x16x4xf32>
    %3 = vector.shape_cast %2 : vector<1x16x16x4xf32> to vector<16x16x4xf32>
    %c24 = arith.constant 24 : index
    %c24_6 = arith.constant 24 : index
    %c0_7 = arith.constant 0 : index
    %4 = vector.load %arg11[%c24, %c24_6, %c0_7] : memref<64x64x128xf32, #tpu.memory_space<vmem>>, vector<16x16x4xf32>
    tpu.vector_store %arg11[%c24, %c24_6, %c0_7], %3 {strides = array<i32>} : memref<64x64x128xf32, #tpu.memory_space<vmem>>, vector<16x16x4xf32>,
    %c0_8 = arith.constant 0 : index
    %c0_9 = arith.constant 0 : index
    %5 = vector.load %arg8[%c0_8, %c0_9] : memref<6x128xf32, #tpu.memory_space<vmem>>, vector<6x128xf32>
    %c0_10 = arith.constant 0 : index
    %c0_11 = arith.constant 0 : index
    %6 = vector.load %arg9[%c0_10, %c0_11] : memref<6x128xf32, #tpu.memory_space<vmem>>, vector<6x128xf32>
    %c24_12 = arith.constant 24 : index
    %c24_13 = arith.constant 24 : index
    %c0_14 = arith.constant 0 : index
    %7 = vector.load %arg11[%c24_12, %c24_13, %c0_14] : memref<64x64x128xf32, #tpu.memory_space<vmem>>, vector<16x16x128xf32>
    %8 = vector.shape_cast %7 : vector<16x16x128xf32> to vector<256x128xf32>
    %c0_15 = arith.constant 0 : index
    %c0_16 = arith.constant 0 : index
    %9 = vector.load %arg2[%c0_15, %c0_16] : memref<128x128xf32, #tpu.memory_space<vmem>>, vector<128x128xf32>
    %cst_17 = arith.constant dense<0.000000e+00> : vector<256x128xf32>
    %10 = tpu.matmul %8, %9, %cst_17 {dimension_numbers = #tpu.dot_dimension_numbers<[1], [0], [0], [1], [0, 0, 1, 1], [], []>} : vector<256x128xf32>, vector<128x128xf32>, vector<256x128xf32> -> vector<256x128xf32>
    %11 = vector.extract_strided_slice %5 {offsets = [0, 0], sizes = [1, 128], strides = [1, 1]} : vector<6x128xf32> to vector<1x128xf32>
    %12 = vector.broadcast %11 : vector<1x128xf32> to vector<256x128xf32>
    %13 = arith.mulf %10, %12 : vector<256x128xf32>
    %14 = vector.extract_strided_slice %6 {offsets = [0, 0], sizes = [1, 128], strides = [1, 1]} : vector<6x128xf32> to vector<1x128xf32>
    %15 = vector.broadcast %14 : vector<1x128xf32> to vector<256x128xf32>
    %16 = arith.addf %13, %15 : vector<256x128xf32>
    %cst_18 = arith.constant 0.000000e+00 : f32
    %17 = vector.broadcast %cst_18 : f32 to vector<256x128xf32>
    %18 = arith.maximumf %16, %17 : vector<256x128xf32>
    %c0_19 = arith.constant 0 : index
    %c0_20 = arith.constant 0 : index
    %c0_21 = arith.constant 0 : index
    %19 = vector.load %arg7[%c0_19, %c0_20, %c0_21] : memref<5x128x128xf32, #tpu.memory_space<vmem>>, vector<1x128x128xf32>
    %20 = vector.shape_cast %19 : vector<1x128x128xf32> to vector<128x128xf32>
    %cst_22 = arith.constant dense<0.000000e+00> : vector<256x128xf32>
    %21 = tpu.matmul %18, %20, %cst_22 {dimension_numbers = #tpu.dot_dimension_numbers<[1], [0], [0], [1], [0, 0, 1, 1], [], []>} : vector<256x128xf32>, vector<128x128xf32>, vector<256x128xf32> -> vector<256x128xf32>
    %c18 = arith.constant 18 : index
    %c18_23 = arith.constant 18 : index
    %c0_24 = arith.constant 0 : index
    %22 = vector.load %arg11[%c18, %c18_23, %c0_24] : memref<64x64x128xf32, #tpu.memory_space<vmem>>, vector<16x16x128xf32>
    %23 = vector.shape_cast %22 : vector<16x16x128xf32> to vector<256x128xf32>
    %c18_25 = arith.constant 18 : index
    %c24_26 = arith.constant 24 : index
    %c0_27 = arith.constant 0 : index
    %24 = vector.load %arg11[%c18_25, %c24_26, %c0_27] : memref<64x64x128xf32, #tpu.memory_space<vmem>>, vector<16x16x128xf32>
    %25 = vector.shape_cast %24 : vector<16x16x128xf32> to vector<256x128xf32>
    %c18_28 = arith.constant 18 : index
    %c30 = arith.constant 30 : index
    %c0_29 = arith.constant 0 : index
    %26 = vector.load %arg11[%c18_28, %c30, %c0_29] : memref<64x64x128xf32, #tpu.memory_space<vmem>>, vector<16x16x128xf32>
    %27 = vector.shape_cast %26 : vector<16x16x128xf32> to vector<256x128xf32>
    %c24_30 = arith.constant 24 : index
    %c18_31 = arith.constant 18 : index
    %c0_32 = arith.constant 0 : index
    %28 = vector.load %arg11[%c24_30, %c18_31, %c0_32] : memref<64x64x128xf32, #tpu.memory_space<vmem>>, vector<16x16x128xf32>
    %29 = vector.shape_cast %28 : vector<16x16x128xf32> to vector<256x128xf32>
    %c24_33 = arith.constant 24 : index
    %c24_34 = arith.constant 24 : index
    %c0_35 = arith.constant 0 : index
    %30 = vector.load %arg11[%c24_33, %c24_34, %c0_35] : memref<64x64x128xf32, #tpu.memory_space<vmem>>, vector<16x16x128xf32>
    %31 = vector.shape_cast %30 : vector<16x16x128xf32> to vector<256x128xf32>
    %c24_36 = arith.constant 24 : index
    %c30_37 = arith.constant 30 : index
    %c0_38 = arith.constant 0 : index
    %32 = vector.load %arg11[%c24_36, %c30_37, %c0_38] : memref<64x64x128xf32, #tpu.memory_space<vmem>>, vector<16x16x128xf32>
    %33 = vector.shape_cast %32 : vector<16x16x128xf32> to vector<256x128xf32>
    %c30_39 = arith.constant 30 : index
    %c18_40 = arith.constant 18 : index
    %c0_41 = arith.constant 0 : index
    %34 = vector.load %arg11[%c30_39, %c18_40, %c0_41] : memref<64x64x128xf32, #tpu.memory_space<vmem>>, vector<16x16x128xf32>
    %35 = vector.shape_cast %34 : vector<16x16x128xf32> to vector<256x128xf32>
    %c30_42 = arith.constant 30 : index
    %c24_43 = arith.constant 24 : index
    %c0_44 = arith.constant 0 : index
    %36 = vector.load %arg11[%c30_42, %c24_43, %c0_44] : memref<64x64x128xf32, #tpu.memory_space<vmem>>, vector<16x16x128xf32>
    %37 = vector.shape_cast %36 : vector<16x16x128xf32> to vector<256x128xf32>
    %c30_45 = arith.constant 30 : index
    %c30_46 = arith.constant 30 : index
    %c0_47 = arith.constant 0 : index
    %38 = vector.load %arg11[%c30_45, %c30_46, %c0_47] : memref<64x64x128xf32, #tpu.memory_space<vmem>>, vector<16x16x128xf32>
    %39 = vector.shape_cast %38 : vector<16x16x128xf32> to vector<256x128xf32>
    %40 = tpu.concatenate %23, %25, %27, %29, %31, %33, %35, %37, %39 in 1 : vector<256x128xf32>, vector<256x128xf32>, vector<256x128xf32>, vector<256x128xf32>, vector<256x128xf32>, vector<256x128xf32>, vector<256x128xf32>, vector<256x128xf32>, vector<256x128xf32> -> vector<256x1152xf32>
    %c0_48 = arith.constant 0 : index
    %c0_49 = arith.constant 0 : index
    %41 = vector.load %arg3[%c0_48, %c0_49] : memref<1152x128xf32, #tpu.memory_space<vmem>>, vector<1152x128xf32>
    %cst_50 = arith.constant dense<0.000000e+00> : vector<256x128xf32>
    %42 = tpu.matmul %40, %41, %cst_50 {dimension_numbers = #tpu.dot_dimension_numbers<[1], [0], [0], [1], [0, 0, 1, 1], [], []>} : vector<256x1152xf32>, vector<1152x128xf32>, vector<256x128xf32> -> vector<256x128xf32>
    %43 = vector.extract_strided_slice %5 {offsets = [1, 0], sizes = [1, 128], strides = [1, 1]} : vector<6x128xf32> to vector<1x128xf32>
    %44 = vector.broadcast %43 : vector<1x128xf32> to vector<256x128xf32>
    %45 = arith.mulf %42, %44 : vector<256x128xf32>
    %46 = vector.extract_strided_slice %6 {offsets = [1, 0], sizes = [1, 128], strides = [1, 1]} : vector<6x128xf32> to vector<1x128xf32>
    %47 = vector.broadcast %46 : vector<1x128xf32> to vector<256x128xf32>
    %48 = arith.addf %45, %47 : vector<256x128xf32>
    %cst_51 = arith.constant 0.000000e+00 : f32
    %49 = vector.broadcast %cst_51 : f32 to vector<256x128xf32>
    %50 = arith.maximumf %48, %49 : vector<256x128xf32>
    %c1 = arith.constant 1 : index
    %c0_52 = arith.constant 0 : index
    %c0_53 = arith.constant 0 : index
    %51 = vector.load %arg7[%c1, %c0_52, %c0_53] : memref<5x128x128xf32, #tpu.memory_space<vmem>>, vector<1x128x128xf32>
    %52 = vector.shape_cast %51 : vector<1x128x128xf32> to vector<128x128xf32>
    %cst_54 = arith.constant dense<0.000000e+00> : vector<256x128xf32>
    %53 = tpu.matmul %50, %52, %cst_54 {dimension_numbers = #tpu.dot_dimension_numbers<[1], [0], [0], [1], [0, 0, 1, 1], [], []>} : vector<256x128xf32>, vector<128x128xf32>, vector<256x128xf32> -> vector<256x128xf32>
    %54 = arith.addf %21, %53 : vector<256x128xf32>
    %c12 = arith.constant 12 : index
    %c12_55 = arith.constant 12 : index
    %c0_56 = arith.constant 0 : index
    %55 = vector.load %arg11[%c12, %c12_55, %c0_56] : memref<64x64x128xf32, #tpu.memory_space<vmem>>, vector<16x16x128xf32>
    %56 = vector.shape_cast %55 : vector<16x16x128xf32> to vector<256x128xf32>
    %c12_57 = arith.constant 12 : index
    %c24_58 = arith.constant 24 : index
    %c0_59 = arith.constant 0 : index
    %57 = vector.load %arg11[%c12_57, %c24_58, %c0_59] : memref<64x64x128xf32, #tpu.memory_space<vmem>>, vector<16x16x128xf32>
    %58 = vector.shape_cast %57 : vector<16x16x128xf32> to vector<256x128xf32>
    %c12_60 = arith.constant 12 : index
    %c36 = arith.constant 36 : index
    %c0_61 = arith.constant 0 : index
    %59 = vector.load %arg11[%c12_60, %c36, %c0_61] : memref<64x64x128xf32, #tpu.memory_space<vmem>>, vector<16x16x128xf32>
    %60 = vector.shape_cast %59 : vector<16x16x128xf32> to vector<256x128xf32>
    %c24_62 = arith.constant 24 : index
    %c12_63 = arith.constant 12 : index
    %c0_64 = arith.constant 0 : index
    %61 = vector.load %arg11[%c24_62, %c12_63, %c0_64] : memref<64x64x128xf32, #tpu.memory_space<vmem>>, vector<16x16x128xf32>
    %62 = vector.shape_cast %61 : vector<16x16x128xf32> to vector<256x128xf32>
    %c24_65 = arith.constant 24 : index
    %c24_66 = arith.constant 24 : index
    %c0_67 = arith.constant 0 : index
    %63 = vector.load %arg11[%c24_65, %c24_66, %c0_67] : memref<64x64x128xf32, #tpu.memory_space<vmem>>, vector<16x16x128xf32>
    %64 = vector.shape_cast %63 : vector<16x16x128xf32> to vector<256x128xf32>
    %c24_68 = arith.constant 24 : index
    %c36_69 = arith.constant 36 : index
    %c0_70 = arith.constant 0 : index
    %65 = vector.load %arg11[%c24_68, %c36_69, %c0_70] : memref<64x64x128xf32, #tpu.memory_space<vmem>>, vector<16x16x128xf32>
    %66 = vector.shape_cast %65 : vector<16x16x128xf32> to vector<256x128xf32>
    %c36_71 = arith.constant 36 : index
    %c12_72 = arith.constant 12 : index
    %c0_73 = arith.constant 0 : index
    %67 = vector.load %arg11[%c36_71, %c12_72, %c0_73] : memref<64x64x128xf32, #tpu.memory_space<vmem>>, vector<16x16x128xf32>
    %68 = vector.shape_cast %67 : vector<16x16x128xf32> to vector<256x128xf32>
    %c36_74 = arith.constant 36 : index
    %c24_75 = arith.constant 24 : index
    %c0_76 = arith.constant 0 : index
    %69 = vector.load %arg11[%c36_74, %c24_75, %c0_76] : memref<64x64x128xf32, #tpu.memory_space<vmem>>, vector<16x16x128xf32>
    %70 = vector.shape_cast %69 : vector<16x16x128xf32> to vector<256x128xf32>
    %c36_77 = arith.constant 36 : index
    %c36_78 = arith.constant 36 : index
    %c0_79 = arith.constant 0 : index
    %71 = vector.load %arg11[%c36_77, %c36_78, %c0_79] : memref<64x64x128xf32, #tpu.memory_space<vmem>>, vector<16x16x128xf32>
    %72 = vector.shape_cast %71 : vector<16x16x128xf32> to vector<256x128xf32>
    %73 = tpu.concatenate %56, %58, %60, %62, %64, %66, %68, %70, %72 in 1 : vector<256x128xf32>, vector<256x128xf32>, vector<256x128xf32>, vector<256x128xf32>, vector<256x128xf32>, vector<256x128xf32>, vector<256x128xf32>, vector<256x128xf32>, vector<256x128xf32> -> vector<256x1152xf32>
    %c0_80 = arith.constant 0 : index
    %c0_81 = arith.constant 0 : index
    %74 = vector.load %arg4[%c0_80, %c0_81] : memref<1152x128xf32, #tpu.memory_space<vmem>>, vector<1152x128xf32>
    %cst_82 = arith.constant dense<0.000000e+00> : vector<256x128xf32>
    %75 = tpu.matmul %73, %74, %cst_82 {dimension_numbers = #tpu.dot_dimension_numbers<[1], [0], [0], [1], [0, 0, 1, 1], [], []>} : vector<256x1152xf32>, vector<1152x128xf32>, vector<256x128xf32> -> vector<256x128xf32>
    %76 = vector.extract_strided_slice %5 {offsets = [2, 0], sizes = [1, 128], strides = [1, 1]} : vector<6x128xf32> to vector<1x128xf32>
    %77 = vector.broadcast %76 : vector<1x128xf32> to vector<256x128xf32>
    %78 = arith.mulf %75, %77 : vector<256x128xf32>
    %79 = vector.extract_strided_slice %6 {offsets = [2, 0], sizes = [1, 128], strides = [1, 1]} : vector<6x128xf32> to vector<1x128xf32>
    %80 = vector.broadcast %79 : vector<1x128xf32> to vector<256x128xf32>
    %81 = arith.addf %78, %80 : vector<256x128xf32>
    %cst_83 = arith.constant 0.000000e+00 : f32
    %82 = vector.broadcast %cst_83 : f32 to vector<256x128xf32>
    %83 = arith.maximumf %81, %82 : vector<256x128xf32>
    %c2 = arith.constant 2 : index
    %c0_84 = arith.constant 0 : index
    %c0_85 = arith.constant 0 : index
    %84 = vector.load %arg7[%c2, %c0_84, %c0_85] : memref<5x128x128xf32, #tpu.memory_space<vmem>>, vector<1x128x128xf32>
    %85 = vector.shape_cast %84 : vector<1x128x128xf32> to vector<128x128xf32>
    %cst_86 = arith.constant dense<0.000000e+00> : vector<256x128xf32>
    %86 = tpu.matmul %83, %85, %cst_86 {dimension_numbers = #tpu.dot_dimension_numbers<[1], [0], [0], [1], [0, 0, 1, 1], [], []>} : vector<256x128xf32>, vector<128x128xf32>, vector<256x128xf32> -> vector<256x128xf32>
    %87 = arith.addf %54, %86 : vector<256x128xf32>
    %c6 = arith.constant 6 : index
    %c6_87 = arith.constant 6 : index
    %c0_88 = arith.constant 0 : index
    %88 = vector.load %arg11[%c6, %c6_87, %c0_88] : memref<64x64x128xf32, #tpu.memory_space<vmem>>, vector<16x16x128xf32>
    %89 = vector.shape_cast %88 : vector<16x16x128xf32> to vector<256x128xf32>
    %c6_89 = arith.constant 6 : index
    %c24_90 = arith.constant 24 : index
    %c0_91 = arith.constant 0 : index
    %90 = vector.load %arg11[%c6_89, %c24_90, %c0_91] : memref<64x64x128xf32, #tpu.memory_space<vmem>>, vector<16x16x128xf32>
    %91 = vector.shape_cast %90 : vector<16x16x128xf32> to vector<256x128xf32>
    %c6_92 = arith.constant 6 : index
    %c42 = arith.constant 42 : index
    %c0_93 = arith.constant 0 : index
    %92 = vector.load %arg11[%c6_92, %c42, %c0_93] : memref<64x64x128xf32, #tpu.memory_space<vmem>>, vector<16x16x128xf32>
    %93 = vector.shape_cast %92 : vector<16x16x128xf32> to vector<256x128xf32>
    %c24_94 = arith.constant 24 : index
    %c6_95 = arith.constant 6 : index
    %c0_96 = arith.constant 0 : index
    %94 = vector.load %arg11[%c24_94, %c6_95, %c0_96] : memref<64x64x128xf32, #tpu.memory_space<vmem>>, vector<16x16x128xf32>
    %95 = vector.shape_cast %94 : vector<16x16x128xf32> to vector<256x128xf32>
    %c24_97 = arith.constant 24 : index
    %c24_98 = arith.constant 24 : index
    %c0_99 = arith.constant 0 : index
    %96 = vector.load %arg11[%c24_97, %c24_98, %c0_99] : memref<64x64x128xf32, #tpu.memory_space<vmem>>, vector<16x16x128xf32>
    %97 = vector.shape_cast %96 : vector<16x16x128xf32> to vector<256x128xf32>
    %c24_100 = arith.constant 24 : index
    %c42_101 = arith.constant 42 : index
    %c0_102 = arith.constant 0 : index
    %98 = vector.load %arg11[%c24_100, %c42_101, %c0_102] : memref<64x64x128xf32, #tpu.memory_space<vmem>>, vector<16x16x128xf32>
    %99 = vector.shape_cast %98 : vector<16x16x128xf32> to vector<256x128xf32>
    %c42_103 = arith.constant 42 : index
    %c6_104 = arith.constant 6 : index
    %c0_105 = arith.constant 0 : index
    %100 = vector.load %arg11[%c42_103, %c6_104, %c0_105] : memref<64x64x128xf32, #tpu.memory_space<vmem>>, vector<16x16x128xf32>
    %101 = vector.shape_cast %100 : vector<16x16x128xf32> to vector<256x128xf32>
    %c42_106 = arith.constant 42 : index
    %c24_107 = arith.constant 24 : index
    %c0_108 = arith.constant 0 : index
    %102 = vector.load %arg11[%c42_106, %c24_107, %c0_108] : memref<64x64x128xf32, #tpu.memory_space<vmem>>, vector<16x16x128xf32>
    %103 = vector.shape_cast %102 : vector<16x16x128xf32> to vector<256x128xf32>
    %c42_109 = arith.constant 42 : index
    %c42_110 = arith.constant 42 : index
    %c0_111 = arith.constant 0 : index
    %104 = vector.load %arg11[%c42_109, %c42_110, %c0_111] : memref<64x64x128xf32, #tpu.memory_space<vmem>>, vector<16x16x128xf32>
    %105 = vector.shape_cast %104 : vector<16x16x128xf32> to vector<256x128xf32>
    %106 = tpu.concatenate %89, %91, %93, %95, %97, %99, %101, %103, %105 in 1 : vector<256x128xf32>, vector<256x128xf32>, vector<256x128xf32>, vector<256x128xf32>, vector<256x128xf32>, vector<256x128xf32>, vector<256x128xf32>, vector<256x128xf32>, vector<256x128xf32> -> vector<256x1152xf32>
    %c0_112 = arith.constant 0 : index
    %c0_113 = arith.constant 0 : index
    %107 = vector.load %arg5[%c0_112, %c0_113] : memref<1152x128xf32, #tpu.memory_space<vmem>>, vector<1152x128xf32>
    %cst_114 = arith.constant dense<0.000000e+00> : vector<256x128xf32>
    %108 = tpu.matmul %106, %107, %cst_114 {dimension_numbers = #tpu.dot_dimension_numbers<[1], [0], [0], [1], [0, 0, 1, 1], [], []>} : vector<256x1152xf32>, vector<1152x128xf32>, vector<256x128xf32> -> vector<256x128xf32>
    %109 = vector.extract_strided_slice %5 {offsets = [3, 0], sizes = [1, 128], strides = [1, 1]} : vector<6x128xf32> to vector<1x128xf32>
    %110 = vector.broadcast %109 : vector<1x128xf32> to vector<256x128xf32>
    %111 = arith.mulf %108, %110 : vector<256x128xf32>
    %112 = vector.extract_strided_slice %6 {offsets = [3, 0], sizes = [1, 128], strides = [1, 1]} : vector<6x128xf32> to vector<1x128xf32>
    %113 = vector.broadcast %112 : vector<1x128xf32> to vector<256x128xf32>
    %114 = arith.addf %111, %113 : vector<256x128xf32>
    %cst_115 = arith.constant 0.000000e+00 : f32
    %115 = vector.broadcast %cst_115 : f32 to vector<256x128xf32>
    %116 = arith.maximumf %114, %115 : vector<256x128xf32>
    %c3 = arith.constant 3 : index
    %c0_116 = arith.constant 0 : index
    %c0_117 = arith.constant 0 : index
    %117 = vector.load %arg7[%c3, %c0_116, %c0_117] : memref<5x128x128xf32, #tpu.memory_space<vmem>>, vector<1x128x128xf32>
    %118 = vector.shape_cast %117 : vector<1x128x128xf32> to vector<128x128xf32>
    %cst_118 = arith.constant dense<0.000000e+00> : vector<256x128xf32>
    %119 = tpu.matmul %116, %118, %cst_118 {dimension_numbers = #tpu.dot_dimension_numbers<[1], [0], [0], [1], [0, 0, 1, 1], [], []>} : vector<256x128xf32>, vector<128x128xf32>, vector<256x128xf32> -> vector<256x128xf32>
    %120 = arith.addf %87, %119 : vector<256x128xf32>
    %cst_119 = arith.constant dense<0.000000e+00> : vector<128xf32>
    %121 = vector.multi_reduction <add>, %8, %cst_119 [0] : vector<256x128xf32> to vector<128xf32>
    %122 = vector.shape_cast %121 : vector<128xf32> to vector<1x128xf32>
    %cst_120 = arith.constant 2.560000e+02 : f32
    %123 = vector.broadcast %cst_120 : f32 to vector<1x128xf32>
    %124 = arith.divf %122, %123 : vector<1x128xf32>
    %c0_121 = arith.constant 0 : index
    %c0_122 = arith.constant 0 : index
    %125 = vector.load %arg6[%c0_121, %c0_122] : memref<128x128xf32, #tpu.memory_space<vmem>>, vector<128x128xf32>
    %cst_123 = arith.constant dense<0.000000e+00> : vector<1x128xf32>
    %126 = tpu.matmul %124, %125, %cst_123 {dimension_numbers = #tpu.dot_dimension_numbers<[1], [0], [0], [1], [0, 0, 1, 1], [], []>} : vector<1x128xf32>, vector<128x128xf32>, vector<1x128xf32> -> vector<1x128xf32>
    %127 = vector.extract_strided_slice %5 {offsets = [4, 0], sizes = [1, 128], strides = [1, 1]} : vector<6x128xf32> to vector<1x128xf32>
    %128 = arith.mulf %126, %127 : vector<1x128xf32>
    %129 = vector.extract_strided_slice %6 {offsets = [4, 0], sizes = [1, 128], strides = [1, 1]} : vector<6x128xf32> to vector<1x128xf32>
    %130 = arith.addf %128, %129 : vector<1x128xf32>
    %cst_124 = arith.constant 0.000000e+00 : f32
    %131 = vector.broadcast %cst_124 : f32 to vector<1x128xf32>
    %132 = arith.maximumf %130, %131 : vector<1x128xf32>
    %c4 = arith.constant 4 : index
    %c0_125 = arith.constant 0 : index
    %c0_126 = arith.constant 0 : index
    %133 = vector.load %arg7[%c4, %c0_125, %c0_126] : memref<5x128x128xf32, #tpu.memory_space<vmem>>, vector<1x128x128xf32>
    %134 = vector.shape_cast %133 : vector<1x128x128xf32> to vector<128x128xf32>
    %cst_127 = arith.constant dense<0.000000e+00> : vector<1x128xf32>
    %135 = tpu.matmul %132, %134, %cst_127 {dimension_numbers = #tpu.dot_dimension_numbers<[1], [0], [0], [1], [0, 0, 1, 1], [], []>} : vector<1x128xf32>, vector<128x128xf32>, vector<1x128xf32> -> vector<1x128xf32>
    %136 = vector.extract_strided_slice %5 {offsets = [5, 0], sizes = [1, 128], strides = [1, 1]} : vector<6x128xf32> to vector<1x128xf32>
    %137 = vector.extract_strided_slice %6 {offsets = [5, 0], sizes = [1, 128], strides = [1, 1]} : vector<6x128xf32> to vector<1x128xf32>
    %138 = arith.mulf %136, %135 : vector<1x128xf32>
    %139 = arith.addf %137, %138 : vector<1x128xf32>
    %140 = vector.broadcast %136 : vector<1x128xf32> to vector<256x128xf32>
    %141 = arith.mulf %120, %140 : vector<256x128xf32>
    %142 = vector.broadcast %139 : vector<1x128xf32> to vector<256x128xf32>
    %143 = arith.addf %141, %142 : vector<256x128xf32>
    %cst_128 = arith.constant 0.000000e+00 : f32
    %144 = vector.broadcast %cst_128 : f32 to vector<256x128xf32>
    %145 = arith.maximumf %143, %144 : vector<256x128xf32>
    %146 = vector.shape_cast %145 : vector<256x128xf32> to vector<1x16x16x128xf32>
    %c0_129 = arith.constant 0 : index
    %c0_130 = arith.constant 0 : index
    %c0_131 = arith.constant 0 : index
    %c0_132 = arith.constant 0 : index
    %147 = vector.load %arg10[%c0_129, %c0_130, %c0_131, %c0_132] : memref<1x16x16x128xf32, #tpu.memory_space<vmem>>, vector<1x16x16x128xf32>
    tpu.vector_store %arg10[%c0_129, %c0_130, %c0_131, %c0_132], %146 {strides = array<i32>} : memref<1x16x16x128xf32, #tpu.memory_space<vmem>>, vector<1x16x16x128xf32>,
    return
  }
  func.func @transform_0(%arg0: i32) -> (i32, i32, i32, i32) {
    %c0_i32 = arith.constant 0 : i32
    %c0_i32_0 = arith.constant 0 : i32
    %c0_i32_1 = arith.constant 0 : i32
    %c0_i32_2 = arith.constant 0 : i32
    return %arg0, %c0_i32, %c0_i32_0, %c0_i32_1 : i32, i32, i32, i32
  }
  func.func @transform_1(%arg0: i32) -> (i32, i32) {
    %c0_i32 = arith.constant 0 : i32
    %c0_i32_0 = arith.constant 0 : i32
    %c0_i32_1 = arith.constant 0 : i32
    return %c0_i32, %c0_i32_0 : i32, i32
  }
  func.func @transform_2(%arg0: i32) -> (i32, i32) {
    %c0_i32 = arith.constant 0 : i32
    %c0_i32_0 = arith.constant 0 : i32
    %c0_i32_1 = arith.constant 0 : i32
    return %c0_i32, %c0_i32_0 : i32, i32
  }
  func.func @transform_3(%arg0: i32) -> (i32, i32) {
    %c0_i32 = arith.constant 0 : i32
    %c0_i32_0 = arith.constant 0 : i32
    %c0_i32_1 = arith.constant 0 : i32
    return %c0_i32, %c0_i32_0 : i32, i32
  }
  func.func @transform_4(%arg0: i32) -> (i32, i32) {
    %c0_i32 = arith.constant 0 : i32
    %c0_i32_0 = arith.constant 0 : i32
    %c0_i32_1 = arith.constant 0 : i32
    return %c0_i32, %c0_i32_0 : i32, i32
  }
  func.func @transform_5(%arg0: i32) -> (i32, i32) {
    %c0_i32 = arith.constant 0 : i32
    %c0_i32_0 = arith.constant 0 : i32
    %c0_i32_1 = arith.constant 0 : i32
    return %c0_i32, %c0_i32_0 : i32, i32
  }
  func.func @transform_6(%arg0: i32) -> (i32, i32, i32) {
    %c0_i32 = arith.constant 0 : i32
    %c0_i32_0 = arith.constant 0 : i32
    %c0_i32_1 = arith.constant 0 : i32
    %c0_i32_2 = arith.constant 0 : i32
    return %c0_i32, %c0_i32_0, %c0_i32_1 : i32, i32, i32
  }
  func.func @transform_7(%arg0: i32) -> (i32, i32) {
    %c0_i32 = arith.constant 0 : i32
    %c0_i32_0 = arith.constant 0 : i32
    %c0_i32_1 = arith.constant 0 : i32
    return %c0_i32, %c0_i32_0 : i32, i32
  }
  func.func @transform_8(%arg0: i32) -> (i32, i32) {
    %c0_i32 = arith.constant 0 : i32
    %c0_i32_0 = arith.constant 0 : i32
    %c0_i32_1 = arith.constant 0 : i32
    return %c0_i32, %c0_i32_0 : i32, i32
  }
  func.func @transform_9(%arg0: i32) -> (i32, i32, i32, i32) {
    %c0_i32 = arith.constant 0 : i32
    %c0_i32_0 = arith.constant 0 : i32
    %c0_i32_1 = arith.constant 0 : i32
    %c0_i32_2 = arith.constant 0 : i32
    return %arg0, %c0_i32, %c0_i32_0, %c0_i32_1 : i32, i32, i32, i32
  }
}

</mosaic_0001>

<bundles_post_ra>
// kernel: tpu_custom_call.1
= control target key start
LH: loop header
LB: loop body
LE: loop exit
PB: predicated region body
PF: predicated region fallthrough
CT: control target
= control target key end

     0   :  { %s13735_s0 = inlined_call_operand.vmem [shape: f32[2,16,16,4], index: 0, kind: input, shape index: {}]   ;;  %s13736_s1 = inlined_call_operand.hbm [shape: f32[128,128], index: 1, kind: input, shape index: {}]   ;;  %s13737_s2 = inlined_call_operand.hbm [shape: f32[1152,128], index: 2, kind: input, shape index: {}]   ;;  %s13738_s3 = inlined_call_operand.hbm [shape: f32[1152,128], index: 3, kind: input, shape index: {}]   ;;  %s13739_s4 = inlined_call_operand.hbm [shape: f32[1152,128], index: 4, kind: input, shape index: {}]   ;;  %s13740_s5 = inlined_call_operand.hbm [shape: f32[128,128], index: 5, kind: input, shape index: {}]   ;;  %s13741_s6 = inlined_call_operand.vmem [shape: f32[5,128,128], index: 6, kind: input, shape index: {}]   ;;  %s13742_s7 = inlined_call_operand.vmem [shape: f32[6,128], index: 7, kind: input, shape index: {}]   ;;  %s13743_s8 = inlined_call_operand.vmem [shape: f32[6,128], index: 8, kind: input, shape index: {}]   ;;  %s13744_s9 = inlined_call_operand.hbm [shape: f32[2,16,16,128], index: 9, kind: output, shape index: {}]  }
   0x1   :  { %13761 = sst [smem:[#allocation59_spill]] %s13737_s2 }
   0x2   :  { %14 = vsyncpa [#allocation4], 0 }
   0x3   :  { %15 = vsyncpa [#allocation7], 0 }
   0x4   :  { %16 = vsyncpa [#allocation10], 0 }
   0x5   :  { %17 = vsyncpa [#allocation5], 0 }
   0x6   :  { %19 = vsyncpa [#allocation5 + $0x1], 0  ;;  %s11058_s30 = smov 0   ;;  %s11060_s10 = smov 0  }
   0x7   :  { %s11062_s11 = smov 0   ;;  %s11064_s12 = smov 0  }
   0x8 LB: > { %13762 = sst [smem:[#allocation17_spill]] %s10981_s30  ;;  %s11079_s13 = sadd.s32 4294967295, %s10993_s12   ;;  %s10993_s12 = sphi %s11064_s12, %s13905_s12   ;;  %s10989_s11 = sphi %s11062_s11, %s13907_s11   ;;  %s10985_s10 = sphi %s11060_s10, %s13909_s10   ;;  %s10981_s30 = sphi %s11058_s30, %s13908_s30  }
   0x9   : > { %13763 = sst [smem:[#allocation18_spill]] %s10989_s11  ;;  %s7773_s14 = sadd.s32 4294967294, %s10993_s12  }
   0xa   : > { %s11083_s15 = sadd.s32 1, %s10993_s12   ;;  %s226_s16 = sadd.s32 1, %s10989_s11 }
   0xb   : > { %13764 = sst [smem:[#allocation19_spill]] %s11083_s15  ;;  %s223_s17 = ssub.s32 %s10993_s12, %s11083_s15 }
   0xc   : > { %p236_p0 = scmp.ne.s32.totalorder %s10989_s11, %s10985_s10  ;;  %p224_p1 = scmp.eq.s32.totalorder %s223_s17, 0 }
   0xd   : > { %p237_p2 = scmp.eq.s32.totalorder %s11079_s13, 1  ;;  %p242_p3 = scmp.ne.s32.totalorder %s10985_s10, %s10981_s30 }
   0xe   : > { %p243_p4 = scmp.eq.s32.totalorder %s7773_s14, 1  ;;  %p7774_p7 = scmp.ge.s32.totalorder %s10993_s12, 1 }
   0xf   : > { %s11094_s18 = scalar_select %p224_p1, %s10989_s11, %s226_s16  }
  0x10   : > { %p11096_p5 = por %p237_p2, %p236_p0  ;;  %p11100_p6 = por %p243_p4, %p242_p3 }
  0x11   : > { %13765 = sst [smem:[#allocation20_spill]] %s11094_s18  ;;  %p250_p8 = scmp.lt.s32.totalorder %s10993_s12, 3 }
  0x12   : > { %s13766_s19 = scalar_select %p11096_p5, 1, 0 }
  0x13   : > { %s13767_s20 = scalar_select %p11100_p6, 1, 0 }
  0x14   : > { %p13745_p9 = scmp.eq.s32.totalorder %s11079_s13, 0  ;;  %p11107_p10 = pnand %p7774_p7, %p250_p8 }
  0x15   : > { %13768 = sst [smem:[#allocation21_spill]] %s13767_s20  ;;  %s10995_s22 = smov [#allocation6]  }
  0x16   : > { %s13769_s21 = scalar_select %p11107_p10, 1, 0 }
  0x17   : > { %p10579_p11 = pneg %p11107_p10  ;;  %s275_s23 = sshll.u32 %s10995_s22, 4  ;;  %s11113_s23 = int_to_ptr.vmem [resolvable:$true] %s275_s23 }
  0x18   : > { %s10996_s25 = smov [#allocation9]   ;;  %s10997_s27 = smov [#allocation3]  }
  0x19   : > { %p11117_p12 = pnand %p13745_p9, %p10579_p11  ;;  %s301_s26 = sshll.u32 %s10996_s25, 4  ;;  %s11121_s26 = int_to_ptr.vmem [resolvable:$true] %s301_s26 }
  0x1a   : > { %s11123_s28 = sshll.u32 %s10997_s27, 4  ;;  %s13771_s2 = sld [smem:[#allocation59_spill]]  ;;  %s263_s28 = int_to_ptr.vmem [resolvable:$true] %s11123_s28 }
  0x1b   : > { %p11133_p0 = pneg %p11117_p12 }
  0x20   : > { %s10779_s16 = scalar_lea.hbm %s13771_s2, 18432 }
  0x21   : > { %p10780_p13 = scmp.ne.s32.totalorder %s13771_s2, %s10779_s16  ;;  %p10786_p3 = scmp.lt.u32.totalorder %s10779_s16, %s13771_s2 }
  0x23   : > { %p10782_p1 = pnand %p11133_p0, %p10780_p13 }
  0x25   : > { %p10783_p2 = pneg %p10782_p1 }
  0x27   : > { %p10788_p4 = pnand %p10786_p3, %p10783_p2 }
  0x29   : > { %10791 = shalt.err (!%p10788_p4)
}
  0x2a   : > { %s10792_s29 = scalar_lea.vmem %s11113_s23, 18432  ;;  %p10800_p9 = scmp.lt.s32.totalorder %s11113_s23, %s11113_s23 }
  0x2b   : > { %p10793_p7 = scmp.ne.s32.totalorder %s11113_s23, %s10792_s29  ;;  %p10801_p6 = scmp.lt.s32.totalorder %s10792_s29, %s10792_s29 }
  0x2d   : > { %p10795_p8 = pnand %p10793_p7, %p11133_p0  ;;  %p10802_p13 = por %p10801_p6, %p10800_p9 }
  0x2f   : > { %p10796_p11 = pneg %p10795_p8 }
  0x31   : > { %p10803_p1 = pnand %p10802_p13, %p10796_p11 }
  0x33   : > { %10806 = shalt.err (!%p10803_p1)
}
  0x34   : > { %s10998_s14 = smov 128   ;;  %s10999_s16 = smov 8  }
  0x35   : > { %10585 = dma.hbm_to_vmem [thread:$0]  (!%p11117_p12), %s13771_s2, 18432, %s11113_s23, [#allocation7], %s10998_s14, %s10998_s14, %s10999_s16  }
  0x36   : > { %s10807_s29 = scalar_lea.hbm %s13739_s4, 18432 }
  0x37   : > { %p10808_p6 = scmp.ne.s32.totalorder %s13739_s4, %s10807_s29  ;;  %p10814_p3 = scmp.lt.u32.totalorder %s10807_s29, %s13739_s4 }
  0x39   : > { %p10810_p9 = pnand %p10808_p6, %p11133_p0 }
  0x3b   : > { %p10811_p2 = pneg %p10810_p9 }
  0x3d   : > { %p10816_p4 = pnand %p10814_p3, %p10811_p2 }
  0x3f   : > { %10819 = shalt.err (!%p10816_p4)
}
  0x40   : > { %s10820_s23 = scalar_lea.vmem %s11121_s26, 18432  ;;  %p10828_p13 = scmp.lt.s32.totalorder %s11121_s26, %s11121_s26 }
  0x41   : > { %p10821_p7 = scmp.ne.s32.totalorder %s11121_s26, %s10820_s23  ;;  %p10829_p1 = scmp.lt.s32.totalorder %s10820_s23, %s10820_s23 }
  0x43   : > { %p10823_p8 = pnand %p10821_p7, %p11133_p0  ;;  %p10830_p6 = por %p10829_p1, %p10828_p13 }
  0x45   : > { %p10824_p11 = pneg %p10823_p8 }
  0x47   : > { %p10831_p9 = pnand %p10830_p6, %p10824_p11 }
  0x49   : > { %10834 = shalt.err (!%p10831_p9)
}
  0x4a   : > { %10591 = dma.hbm_to_vmem [thread:$0]  (!%p11117_p12), %s13739_s4, 18432, %s11121_s26, [#allocation10], %s10998_s14, %s10998_s14, %s10999_s16  }
  0x4b   : > { %s10835_s17 = scalar_lea.hbm %s13736_s1, 2048 }
  0x4c   : > { %p10836_p2 = scmp.ne.s32.totalorder %s13736_s1, %s10835_s17  ;;  %p10842_p7 = scmp.lt.u32.totalorder %s10835_s17, %s13736_s1 }
  0x4e   : > { %p10838_p3 = pnand %p10836_p2, %p11133_p0 }
  0x50   : > { %p10839_p4 = pneg %p10838_p3 }
  0x52   : > { %p10844_p8 = pnand %p10842_p7, %p10839_p4 }
  0x54   : > { %10847 = shalt.err (!%p10844_p8)
}
  0x55   : > { %s10848_s23 = scalar_lea.vmem %s263_s28, 2048  ;;  %p10856_p6 = scmp.lt.s32.totalorder %s263_s28, %s263_s28 }
  0x56   : > { %p10849_p11 = scmp.ne.s32.totalorder %s263_s28, %s10848_s23  ;;  %p10857_p9 = scmp.lt.s32.totalorder %s10848_s23, %s10848_s23 }
  0x58   : > { %p10851_p13 = pnand %p10849_p11, %p11133_p0  ;;  %p10858_p5 = por %p10857_p9, %p10856_p6 }
  0x5a   : > { %p10852_p1 = pneg %p10851_p13 }
  0x5c   : > { %p10859_p10 = pnand %p10858_p5, %p10852_p1 }
  0x5e   : > { %10862 = shalt.err (!%p10859_p10)
}
  0x5f   : > { %10582 = dma.hbm_to_vmem [thread:$0]  (!%p11117_p12), %s13736_s1, 2048, %s263_s28, [#allocation4], %s10998_s14, %s10998_s14, %s10999_s16  }
  0x60   : > { %s11000_s11 = smov [#allocation8]   ;;  %s11001_s20 = smov [#allocation11]  }
  0x61   : > { %s288_s15 = sshll.u32 %s11000_s11, 4  ;;  %s314_s17 = sshll.u32 %s11001_s20, 4  ;;  %s289_s15 = int_to_ptr.vmem [resolvable:$true] %s288_s15  ;;  %s315_s17 = int_to_ptr.vmem [resolvable:$true] %s314_s17 }
  0x62   : > { %s10863_s27 = scalar_lea.hbm %s13738_s3, 18432 }
  0x63   : > { %p10864_p5 = scmp.ne.s32.totalorder %s13738_s3, %s10863_s27  ;;  %p10870_p3 = scmp.lt.u32.totalorder %s10863_s27, %s13738_s3 }
  0x65   : > { %p10866_p10 = pnand %p10864_p5, %p11133_p0 }
  0x67   : > { %p10867_p2 = pneg %p10866_p10 }
  0x69   : > { %p10872_p4 = pnand %p10870_p3, %p10867_p2 }
  0x6b   : > { %10875 = shalt.err (!%p10872_p4)
}
  0x6c   : > { %s10876_s28 = scalar_lea.vmem %s289_s15, 18432  ;;  %p10884_p13 = scmp.lt.s32.totalorder %s289_s15, %s289_s15 }
  0x6d   : > { %p10877_p7 = scmp.ne.s32.totalorder %s289_s15, %s10876_s28  ;;  %p10885_p1 = scmp.lt.s32.totalorder %s10876_s28, %s10876_s28 }
  0x6f   : > { %p10879_p8 = pnand %p10877_p7, %p11133_p0  ;;  %p10886_p6 = por %p10885_p1, %p10884_p13 }
  0x71   : > { %p10880_p11 = pneg %p10879_p8 }
  0x73   : > { %p10887_p9 = pnand %p10886_p6, %p10880_p11 }
  0x75   : > { %10890 = shalt.err (!%p10887_p9)
}
  0x76   : > { %10588 = dma.hbm_to_vmem [thread:$0]  (!%p11117_p12), %s13738_s3, 18432, %s289_s15, [#allocation7], %s10998_s14, %s10998_s14, %s10999_s16  }
  0x77   : > { %s10891_s22 = scalar_lea.hbm %s13740_s5, 2048 }
  0x78   : > { %p10892_p5 = scmp.ne.s32.totalorder %s13740_s5, %s10891_s22  ;;  %p10898_p3 = scmp.lt.u32.totalorder %s10891_s22, %s13740_s5 }
  0x7a   : > { %p10894_p10 = pnand %p10892_p5, %p11133_p0 }
  0x7c   : > { %p10895_p2 = pneg %p10894_p10 }
  0x7e   : > { %p10900_p4 = pnand %p10898_p3, %p10895_p2 }
  0x80   : > { %10903 = shalt.err (!%p10900_p4)
}
  0x81   : > { %s10904_s26 = scalar_lea.vmem %s315_s17, 2048  ;;  %p10912_p13 = scmp.lt.s32.totalorder %s315_s17, %s315_s17 }
  0x82   : > { %p10905_p7 = scmp.ne.s32.totalorder %s315_s17, %s10904_s26  ;;  %p10913_p1 = scmp.lt.s32.totalorder %s10904_s26, %s10904_s26 }
  0x84   : > { %p10907_p8 = pnand %p10905_p7, %p11133_p0  ;;  %p10914_p6 = por %p10913_p1, %p10912_p13 }
  0x86   : > { %p10908_p11 = pneg %p10907_p8 }
  0x88   : > { %p10915_p9 = pnand %p10914_p6, %p10908_p11 }
  0x8a   : > { %10918 = shalt.err (!%p10915_p9)
}
  0x8b   : > { %10594 = dma.hbm_to_vmem [thread:$0]  (!%p11117_p12), %s13740_s5, 2048, %s315_s17, [#allocation10], %s10998_s14, %s10998_s14, %s10999_s16  }
  0x8c   : > { %p13773_p5 = scmp.ne.s32.totalorder %s13769_s21, 0 }
  0x8e   : > { %347 = sbr.rel (%p13773_p5) target bundleno = 2592 (0xa20), region = 56 }
  0x95   : > { %p13774_p0 = scmp.eq.s32.totalorder %s11079_s13, 0 }
  0x97   : > { %10964 = dma.done.wait (%p13774_p0), [#allocation4], 2048   ;;  %p13775_p10 = pmov %p13774_p0 }
  0x98   : > { %p13776_p2 = pmov %p13774_p0 }
  0x99   : > { %10966 = vsyncadd (%p13775_p10), [#allocation4], 4294965248 }
  0x9a   : > { %10968 = dma.done.wait (%p13776_p2), [#allocation7], 36864   ;;  %p13777_p3 = pmov %p13774_p0 }
  0x9b   : > { %p13778_p4 = pmov %p13774_p0 }
  0x9c   : > { %10970 = vsyncadd (%p13777_p3), [#allocation7], 4294930432 }
  0x9d   : > { %10972 = dma.done.wait (%p13778_p4), [#allocation10], 20480   ;;  %p13779_p12 = pmov %p13774_p0 }
  0x9e   : > { %v11002_v0 = vmov 0.0   ;;  %v13753_v1 = vmov 0.0|0.0   ;;  %p399_p7 = scmp.lt.s32.totalorder %s11079_s13, 1  ;;  %v1635_v2 = vld [vmem:[#allocation6] sm:$0xff]  ;;  %v1636_v3 = vld [vmem:[#allocation6 + $0x8] sm:$0xff]  ;;  %v1637_v4 = vld [vmem:[#allocation6 + $0x10] sm:$0xff] }
  0x9f   : > { %10974 = vsyncadd (%p13779_p12), [#allocation10], 4294946816  ;;  %404 = vst [vmem:[#allocation2] sm:$0xff] %v11002_v0  ;;  %9869 = vmatprep.subr.bf16.mxu1 %v13753_v1  ;;  %v11649_v5 = vpack.c.bf16 %v1636_v3, %v1635_v2  ;;  %v1638_v6 = vld [vmem:[#allocation6 + $0x18] sm:$0xff]  ;;  %v1639_v8 = vld [vmem:[#allocation6 + $0x20] sm:$0xff]  ;;  %vm949_vm0 = vcmask 31744  }
  0xa0   : > { %452 = vst [vmem:[#allocation2 + $0x180] sm:$0xff] %v11002_v0  ;;  %453 = vst [vmem:[#allocation2 + $0x188] sm:$0xff] %v11002_v0  ;;  %s400_s18 = scalar_select %p399_p7, %s11079_s13, 1  ;;  %v11652_v7 = vpack.c.bf16 %v1638_v6, %v1637_v4  ;;  %v1640_v9 = vld [vmem:[#allocation6 + $0x28] sm:$0xff]  ;;  %v1641_v11 = vld [vmem:[#allocation6 + $0x30] sm:$0xff]  ;;  %vm11004_vm1 = vmmov 0  }
  0xa1   : > { %454 = vst [vmem:[#allocation2 + $0x190] sm:$0xff] %v11002_v0  ;;  %457 = vst [vmem:[#allocation2 + $0x1a8] sm:$0xff] %v11002_v0  ;;  %9885 = vmatpush1.bf16.msra.mxu1 %v11649_v5  ;;  %v11656_v10 = vpack.c.bf16 %v1640_v9, %v1639_v8  ;;  %v1642_v12 = vld [vmem:[#allocation6 + $0x38] sm:$0xff]  ;;  %v1643_v16 = vld [vmem:[#allocation6 + $0x40] sm:$0xff]  ;;  %s396_s26 = sand.u32 1, %s10985_s10   ;;  %p13901_p11 = scmp.ne.s32.totalorder %s13766_s19, 0 }
  0xa2   : > { %458 = vst [vmem:[#allocation2 + $0x1b0] sm:$0xff] %v11002_v0  ;;  %459 = vst [vmem:[#allocation2 + $0x1b8] sm:$0xff] %v11002_v0  ;;  %9870 = vmatprep.subr.bf16.mxu1 %v13753_v1  ;;  %s7859_s21 = sshll.u32 %s400_s18, 8  ;;  %v11666_v14 = vpack.c.bf16 %v1642_v12, %v1641_v11  ;;  %v1644_v17 = vld [vmem:[#allocation6 + $0x48] sm:$0xff]  ;;  %v1645_v23 = vld [vmem:[#allocation6 + $0x50] sm:$0xff]  ;;  %s7787_s15 = sshll.u32 %s396_s26, 8 }
  0xa3   : > { %460 = vst [vmem:[#allocation2 + $0x1c0] sm:$0xff] %v11002_v0  ;;  %461 = vst [vmem:[#allocation2 + $0x1c8] sm:$0xff] %v11002_v0  ;;  %s11661_s16 = scalar_lea.vmem %s13735_s0, %s7859_s21  ;;  %v11678_v21 = vpack.c.bf16 %v1644_v17, %v1643_v16  ;;  %v1646_v24 = vld [vmem:[#allocation6 + $0x58] sm:$0xff]  ;;  %v1647_v29 = vld [vmem:[#allocation6 + $0x60] sm:$0xff]  ;;  %s13633_s28 = scalar_lea.vmem [#allocation12], %s7787_s15 }
  0xa4   : > { %462 = vst [vmem:[#allocation2 + $0x1d0] sm:$0xff] %v11002_v0  ;;  %465 = vst [vmem:[#allocation2 + $0x1e8] sm:$0xff] %v11002_v0  ;;  %v920_v13 = vld [vmem:[%s11661_s16 + $0x20] sm:$0xff]  ;;  %v921_v15 = vld [vmem:[%s11661_s16 + $0x28] sm:$0xff]  ;;  %v11691_v28 = vpack.c.bf16 %v1646_v24, %v1645_v23  ;;  %s7860_s18 = sshll.u32 %s11079_s13, 12  ;;  %s7661_s21 = sshll.u32 %s13633_s28, 4  ;;  %s13674_s21 = int_to_ptr.vmem [resolvable:$true] %s7661_s21 }
  0xa5   : > { %466 = vst [vmem:[#allocation2 + $0x1f0] sm:$0xff] %v11002_v0  ;;  %467 = vst [vmem:[#allocation2 + $0x1f8] sm:$0xff] %v11002_v0  ;;  %9886 = vmatpush1.bf16.msra.mxu1 %v11652_v7  ;;  %v922_v18 = vld [vmem:[%s11661_s16 + $0x30] sm:$0xff]  ;;  %v923_v19 = vld [vmem:[%s11661_s16 + $0x38] sm:$0xff]  ;;  %s13672_s14 = scalar_lea.hbm %s13744_s9, %s7860_s18  ;;  %s10919_s17 = scalar_lea.vmem %s13674_s21, 4096 }
  0xa6   : > { %468 = vst [vmem:[#allocation2 + $0x200] sm:$0xff] %v11002_v0  ;;  %469 = vst [vmem:[#allocation2 + $0x208] sm:$0xff] %v11002_v0  ;;  %9871 = vmatprep.subr.bf16.mxu1 %v13753_v1  ;;  %v924_v20 = vld [vmem:[%s11661_s16 + $0x40] sm:$0xff]  ;;  %v925_v22 = vld [vmem:[%s11661_s16 + $0x48] sm:$0xff]  ;;  %p10920_p8 = scmp.ne.s32.totalorder %s13674_s21, %s10919_s17  ;;  %s11005_s2 = smov [#allocation12]  }
  0xa7   : > { %470 = vst [vmem:[#allocation2 + $0x210] sm:$0xff] %v11002_v0  ;;  %473 = vst [vmem:[#allocation2 + $0x228] sm:$0xff] %v11002_v0  ;;  %v926_v25 = vld [vmem:[%s11661_s16 + $0x50] sm:$0xff]  ;;  %v927_v26 = vld [vmem:[%s11661_s16 + $0x58] sm:$0xff]  ;;  %s10923_s30 = sshll.u32 %s11005_s2, 4  ;;  %s10924_s30 = int_to_ptr.vmem [resolvable:$false] %s10923_s30 }
  0xa8   : > { %474 = vst [vmem:[#allocation2 + $0x230] sm:$0xff] %v11002_v0  ;;  %475 = vst [vmem:[#allocation2 + $0x238] sm:$0xff] %v11002_v0  ;;  %v1648_v30 = vld [vmem:[#allocation6 + $0x68] sm:$0xff]  ;;  %v928_v31 = vld [vmem:[%s11661_s16 + $0x60] sm:$0xff]  ;;  %p10921_p13 = pnand %p10920_p8, %p13901_p11  ;;  %s10925_s11 = scalar_lea.vmem %s10924_s30, 8192 }
  0xa9   : > { %476 = vst [vmem:[#allocation2 + $0x240] sm:$0xff] %v11002_v0  ;;  %477 = vst [vmem:[#allocation2 + $0x248] sm:$0xff] %v11002_v0  ;;  %9887 = vmatpush1.bf16.msra.mxu1 %v11656_v10  ;;  %v11698_v32 = vpack.c.bf16 %v1648_v30, %v1647_v29  ;;  %v929_v33 = vld [vmem:[%s11661_s16 + $0x68] sm:$0xff]  ;;  %v1649_v34 = vld [vmem:[#allocation6 + $0x70] sm:$0xff]  ;;  %p10926_p6 = scmp.lt.s32.totalorder %s13674_s21, %s10924_s30  ;;  %p10927_p9 = scmp.lt.s32.totalorder %s10925_s11, %s10919_s17 }
  0xaa   : > { %478 = vst [vmem:[#allocation2 + $0x250] sm:$0xff] %v11002_v0  ;;  %481 = vst [vmem:[#allocation2 + $0x268] sm:$0xff] %v11002_v0  ;;  %9872 = vmatprep.subr.bf16.mxu1 %v13753_v1  ;;  %v1650_v35 = vld [vmem:[#allocation6 + $0x78] sm:$0xff]  ;;  %v930_v36 = vld [vmem:[%s11661_s16 + $0x70] sm:$0xff]  ;;  %p10922_p1 = pneg %p10921_p13 }
  0xab   : > { %482 = vst [vmem:[#allocation2 + $0x270] sm:$0xff] %v11002_v0  ;;  %483 = vst [vmem:[#allocation2 + $0x278] sm:$0xff] %v11002_v0  ;;  %v11705_v37 = vpack.c.bf16 %v1650_v35, %v1649_v34  ;;  %v931_v38 = vld [vmem:[%s11661_s16 + $0x78] sm:$0xff]  ;;  %v1651_v39 = vld [vmem:[#allocation6 + $0x80] sm:$0xff]  ;;  %p10928_p5 = por %p10927_p9, %p10926_p6 }
  0xac   : > { %484 = vst [vmem:[#allocation2 + $0x280] sm:$0xff] %v11002_v0  ;;  %485 = vst [vmem:[#allocation2 + $0x288] sm:$0xff] %v11002_v0  ;;  %v1652_v40 = vld [vmem:[#allocation6 + $0x88] sm:$0xff]  ;;  %v932_v41 = vld [vmem:[%s11661_s16 + $0x80] sm:$0xff] }
  0xad   : > { %486 = vst [vmem:[#allocation2 + $0x290] sm:$0xff] %v11002_v0  ;;  %489 = vst [vmem:[#allocation2 + $0x2a8] sm:$0xff] %v11002_v0  ;;  %9888 = vmatpush1.bf16.msra.mxu1 %v11666_v14  ;;  %v933_v42 = vld [vmem:[%s11661_s16 + $0x88] sm:$0xff]  ;;  %v934_v43 = vld [vmem:[%s11661_s16 + $0x90] sm:$0xff]  ;;  %v11717_v44 = vpack.c.bf16 %v1652_v40, %v1651_v39  ;;  %p10929_p0 = pnand %p10928_p5, %p10922_p1 }
  0xae   : > { %490 = vst [vmem:[#allocation2 + $0x2b0] sm:$0xff] %v11002_v0  ;;  %491 = vst [vmem:[#allocation2 + $0x2b8] sm:$0xff] %v11002_v0  ;;  %9873 = vmatprep.subr.bf16.mxu1 %v13753_v1  ;;  %v1653_v45 = vld [vmem:[#allocation6 + $0x90] sm:$0xff]  ;;  %v1654_v46 = vld [vmem:[#allocation6 + $0x98] sm:$0xff] }
  0xaf   : > { %492 = vst [vmem:[#allocation2 + $0x2c0] sm:$0xff] %v11002_v0  ;;  %493 = vst [vmem:[#allocation2 + $0x2c8] sm:$0xff] %v11002_v0  ;;  %v935_v47 = vld [vmem:[%s11661_s16 + $0x98] sm:$0xff]  ;;  %v916_v48 = vld [vmem:[%s11661_s16] sm:$0xff]  ;;  %v11726_v49 = vpack.c.bf16 %v1654_v46, %v1653_v45 }
  0xb0   : > { %494 = vst [vmem:[#allocation2 + $0x2d0] sm:$0xff] %v11002_v0  ;;  %497 = vst [vmem:[#allocation2 + $0x2e8] sm:$0xff] %v11002_v0  ;;  %v1655_v50 = vld [vmem:[#allocation6 + $0xa0] sm:$0xff]  ;;  %v1656_v51 = vld [vmem:[#allocation6 + $0xa8] sm:$0xff] }
  0xb1   : > { %498 = vst [vmem:[#allocation2 + $0x2f0] sm:$0xff] %v11002_v0  ;;  %499 = vst [vmem:[#allocation2 + $0x2f8] sm:$0xff] %v11002_v0  ;;  %9889 = vmatpush1.bf16.msra.mxu1 %v11678_v21  ;;  %v917_v52 = vld [vmem:[%s11661_s16 + $0x8] sm:$0xff]  ;;  %v918_v53 = vld [vmem:[%s11661_s16 + $0x10] sm:$0xff]  ;;  %v11733_v54 = vpack.c.bf16 %v1656_v51, %v1655_v50 }
  0xb2   : > { %500 = vst [vmem:[#allocation2 + $0x300] sm:$0xff] %v11002_v0  ;;  %501 = vst [vmem:[#allocation2 + $0x308] sm:$0xff] %v11002_v0  ;;  %9874 = vmatprep.subr.bf16.mxu1 %v13753_v1  ;;  %v1657_v55 = vld [vmem:[#allocation6 + $0xb0] sm:$0xff]  ;;  %v1658_v56 = vld [vmem:[#allocation6 + $0xb8] sm:$0xff] }
  0xb3   : > { %502 = vst [vmem:[#allocation2 + $0x310] sm:$0xff] %v11002_v0  ;;  %503 = vst [vmem:[#allocation2 + $0x318] sm:$0xff] %v11002_v0  ;;  %v919_v57 = vld [vmem:[%s11661_s16 + $0x18] sm:$0xff]  ;;  %v11740_v58 = vpack.c.bf16 %v1658_v56, %v1657_v55  ;;  %v1659_v59 = vld [vmem:[#allocation6 + $0xc0] sm:$0xff] }
  0xb4   : > { %504 = vst [vmem:[#allocation2 + $0x320] sm:$0xff] %v11002_v0  ;;  %505 = vst [vmem:[#allocation2 + $0x328] sm:$0xff] %v11002_v0  ;;  %v1660_v60 = vld [vmem:[#allocation6 + $0xc8] sm:$0xff]  ;;  %v1661_v62 = vld [vmem:[#allocation6 + $0xd0] sm:$0xff] }
  0xb5   : > { %506 = vst [vmem:[#allocation2 + $0x330] sm:$0xff] %v11002_v0  ;;  %507 = vst [vmem:[#allocation2 + $0x338] sm:$0xff] %v11002_v0  ;;  %9890 = vmatpush1.bf16.msra.mxu1 %v11691_v28  ;;  %v11744_v61 = vpack.c.bf16 %v1660_v60, %v1659_v59  ;;  %v1662_v63 = vld [vmem:[#allocation6 + $0xd8] sm:$0xff]  ;;  %v1663_v2 = vld [vmem:[#allocation6 + $0xe0] sm:$0xff] }
  0xb6   : > { %508 = vst [vmem:[#allocation2 + $0x340] sm:$0xff] %v11002_v0  ;;  %509 = vst [vmem:[#allocation2 + $0x348] sm:$0xff] %v11002_v0  ;;  %9875 = vmatprep.subr.bf16.mxu1 %v13753_v1  ;;  %v1664_v3 = vld [vmem:[#allocation6 + $0xe8] sm:$0xff]  ;;  %v1665_v6 = vld [vmem:[#allocation6 + $0xf0] sm:$0xff] }
  0xb7   : > { %510 = vst [vmem:[#allocation2 + $0x350] sm:$0xff] %v11002_v0  ;;  %511 = vst [vmem:[#allocation2 + $0x358] sm:$0xff] %v11002_v0  ;;  %v11752_v4 = vpack.c.bf16 %v1664_v3, %v1663_v2  ;;  %v1666_v8 = vld [vmem:[#allocation6 + $0xf8] sm:$0xff]  ;;  %v1667_v11 = vld [vmem:[#allocation6 + $0x100] sm:$0xff] }
  0xb8   : > { %512 = vst [vmem:[#allocation2 + $0x360] sm:$0xff] %v11002_v0  ;;  %513 = vst [vmem:[#allocation2 + $0x368] sm:$0xff] %v11002_v0  ;;  %v11756_v9 = vpack.c.bf16 %v1666_v8, %v1665_v6  ;;  %v1668_v12 = vld [vmem:[#allocation6 + $0x108] sm:$0xff]  ;;  %v1669_v17 = vld [vmem:[#allocation6 + $0x110] sm:$0xff] }
  0xb9   : > { %514 = vst [vmem:[#allocation2 + $0x370] sm:$0xff] %v11002_v0  ;;  %515 = vst [vmem:[#allocation2 + $0x378] sm:$0xff] %v11002_v0  ;;  %9891 = vmatpush1.bf16.msra.mxu1 %v11698_v32  ;;  %v1671_v23 = vld [vmem:[#allocation6 + $0x120] sm:$0xff]  ;;  %v1672_v24 = vld [vmem:[#allocation6 + $0x128] sm:$0xff] }
  0xba   : > { %516 = vst [vmem:[#allocation2 + $0x380] sm:$0xff] %v11002_v0  ;;  %517 = vst [vmem:[#allocation2 + $0x388] sm:$0xff] %v11002_v0  ;;  %9876 = vmatprep.subr.bf16.mxu1 %v13753_v1  ;;  %v1673_v29 = vld [vmem:[#allocation6 + $0x130] sm:$0xff]  ;;  %v1676_v39 = vld [vmem:[#allocation6 + $0x148] sm:$0xff] }
  0xbb   : > { %518 = vst [vmem:[#allocation2 + $0x390] sm:$0xff] %v11002_v0  ;;  %519 = vst [vmem:[#allocation2 + $0x398] sm:$0xff] %v11002_v0  ;;  %v937_v40 = vld [vmem:[%s11661_s16 + $0xa8] sm:$0xff]  ;;  %v1678_v46 = vld [vmem:[#allocation6 + $0x158] sm:$0xff] }
  0xbc   : > { %520 = vst [vmem:[#allocation2 + $0x3a0] sm:$0xff] %v11002_v0  ;;  %521 = vst [vmem:[#allocation2 + $0x3a8] sm:$0xff] %v11002_v0  ;;  %v1679_v51 = vld [vmem:[#allocation6 + $0x160] sm:$0xff]  ;;  %v939_v55 = vld [vmem:[%s11661_s16 + $0xb8] sm:$0xff] }
  0xbd   : > { %522 = vst [vmem:[#allocation2 + $0x3b0] sm:$0xff] %v11002_v0  ;;  %523 = vst [vmem:[#allocation2 + $0x3b8] sm:$0xff] %v11002_v0  ;;  %9892 = vmatpush1.bf16.msra.mxu1 %v11705_v37  ;;  %v1681_v59 = vld [vmem:[#allocation6 + $0x170] sm:$0xff]  ;;  %v1683_v6 = vld [vmem:[#allocation6 + $0x180] sm:$0xff] }
  0xbe   : > { %524 = vst [vmem:[#allocation2 + $0x3c0] sm:$0xff] %v11002_v0  ;;  %525 = vst [vmem:[#allocation2 + $0x3c8] sm:$0xff] %v11002_v0  ;;  %9877 = vmatprep.subr.bf16.mxu1 %v13753_v1 }
  0xbf   : > { %526 = vst [vmem:[#allocation2 + $0x3d0] sm:$0xff] %v11002_v0  ;;  %527 = vst [vmem:[#allocation2 + $0x3d8] sm:$0xff] %v11002_v0 }
  0xc0   : > { %528 = vst [vmem:[#allocation2 + $0x3e0] sm:$0xff] %v11002_v0  ;;  %529 = vst [vmem:[#allocation2 + $0x3e8] sm:$0xff] %v11002_v0 }
  0xc1   : > { %530 = vst [vmem:[#allocation2 + $0x3f0] sm:$0xff] %v11002_v0  ;;  %531 = vst [vmem:[#allocation2 + $0x3f8] sm:$0xff] %v11002_v0  ;;  %9893 = vmatpush1.bf16.msra.mxu1 %v11717_v44 }
  0xc2   : > { %532 = vst [vmem:[#allocation2 + $0x400] sm:$0xff] %v11002_v0  ;;  %533 = vst [vmem:[#allocation2 + $0x408] sm:$0xff] %v11002_v0  ;;  %9878 = vmatprep.subr.bf16.mxu1 %v13753_v1 }
  0xc3   : > { %534 = vst [vmem:[#allocation2 + $0x410] sm:$0xff] %v11002_v0  ;;  %535 = vst [vmem:[#allocation2 + $0x418] sm:$0xff] %v11002_v0 }
  0xc4   : > { %536 = vst [vmem:[#allocation2 + $0x420] sm:$0xff] %v11002_v0  ;;  %537 = vst [vmem:[#allocation2 + $0x428] sm:$0xff] %v11002_v0 }
  0xc5   : > { %538 = vst [vmem:[#allocation2 + $0x430] sm:$0xff] %v11002_v0  ;;  %539 = vst [vmem:[#allocation2 + $0x438] sm:$0xff] %v11002_v0  ;;  %9894 = vmatpush1.bf16.msra.mxu1 %v11726_v49 }
  0xc6   : > { %540 = vst [vmem:[#allocation2 + $0x440] sm:$0xff] %v11002_v0  ;;  %541 = vst [vmem:[#allocation2 + $0x448] sm:$0xff] %v11002_v0  ;;  %9879 = vmatprep.subr.bf16.mxu1 %v13753_v1 }
  0xc7   : > { %542 = vst [vmem:[#allocation2 + $0x450] sm:$0xff] %v11002_v0  ;;  %543 = vst [vmem:[#allocation2 + $0x458] sm:$0xff] %v11002_v0 }
  0xc8   : > { %544 = vst [vmem:[#allocation2 + $0x460] sm:$0xff] %v11002_v0  ;;  %545 = vst [vmem:[#allocation2 + $0x468] sm:$0xff] %v11002_v0 }
  0xc9   : > { %546 = vst [vmem:[#allocation2 + $0x470] sm:$0xff] %v11002_v0  ;;  %547 = vst [vmem:[#allocation2 + $0x478] sm:$0xff] %v11002_v0  ;;  %9895 = vmatpush1.bf16.msra.mxu1 %v11733_v54 }
  0xca   : > { %548 = vst [vmem:[#allocation2 + $0x480] sm:$0xff] %v11002_v0  ;;  %549 = vst [vmem:[#allocation2 + $0x488] sm:$0xff] %v11002_v0  ;;  %9880 = vmatprep.subr.bf16.mxu1 %v13753_v1 }
  0xcb   : > { %550 = vst [vmem:[#allocation2 + $0x490] sm:$0xff] %v11002_v0  ;;  %551 = vst [vmem:[#allocation2 + $0x498] sm:$0xff] %v11002_v0 }
  0xcc   : > { %552 = vst [vmem:[#allocation2 + $0x4a0] sm:$0xff] %v11002_v0  ;;  %553 = vst [vmem:[#allocation2 + $0x4a8] sm:$0xff] %v11002_v0 }
  0xcd   : > { %554 = vst [vmem:[#allocation2 + $0x4b0] sm:$0xff] %v11002_v0  ;;  %555 = vst [vmem:[#allocation2 + $0x4b8] sm:$0xff] %v11002_v0  ;;  %9896 = vmatpush1.bf16.msra.mxu1 %v11740_v58 }
  0xce   : > { %556 = vst [vmem:[#allocation2 + $0x4c0] sm:$0xff] %v11002_v0  ;;  %557 = vst [vmem:[#allocation2 + $0x4c8] sm:$0xff] %v11002_v0  ;;  %9881 = vmatprep.subr.bf16.mxu1 %v13753_v1 }
  0xcf   : > { %558 = vst [vmem:[#allocation2 + $0x4d0] sm:$0xff] %v11002_v0  ;;  %559 = vst [vmem:[#allocation2 + $0x4d8] sm:$0xff] %v11002_v0 }
  0xd0   : > { %560 = vst [vmem:[#allocation2 + $0x4e0] sm:$0xff] %v11002_v0  ;;  %561 = vst [vmem:[#allocation2 + $0x4e8] sm:$0xff] %v11002_v0 }
  0xd1   : > { %562 = vst [vmem:[#allocation2 + $0x4f0] sm:$0xff] %v11002_v0  ;;  %563 = vst [vmem:[#allocation2 + $0x4f8] sm:$0xff] %v11002_v0  ;;  %9897 = vmatpush1.bf16.msra.mxu1 %v11744_v61 }
  0xd2   : > { %564 = vst [vmem:[#allocation2 + $0x500] sm:$0xff] %v11002_v0  ;;  %565 = vst [vmem:[#allocation2 + $0x508] sm:$0xff] %v11002_v0  ;;  %9882 = vmatprep.subr.bf16.mxu1 %v13753_v1 }
  0xd3   : > { %566 = vst [vmem:[#allocation2 + $0x510] sm:$0xff] %v11002_v0  ;;  %567 = vst [vmem:[#allocation2 + $0x518] sm:$0xff] %v11002_v0 }
  0xd4   : > { %568 = vst [vmem:[#allocation2 + $0x520] sm:$0xff] %v11002_v0  ;;  %569 = vst [vmem:[#allocation2 + $0x528] sm:$0xff] %v11002_v0 }
  0xd5   : > { %570 = vst [vmem:[#allocation2 + $0x530] sm:$0xff] %v11002_v0  ;;  %571 = vst [vmem:[#allocation2 + $0x538] sm:$0xff] %v11002_v0 }
  0xd6   : > { %572 = vst [vmem:[#allocation2 + $0x540] sm:$0xff] %v11002_v0  ;;  %573 = vst [vmem:[#allocation2 + $0x548] sm:$0xff] %v11002_v0 }
  0xd7   : > { %574 = vst [vmem:[#allocation2 + $0x550] sm:$0xff] %v11002_v0  ;;  %575 = vst [vmem:[#allocation2 + $0x558] sm:$0xff] %v11002_v0 }
  0xd8   : > { %576 = vst [vmem:[#allocation2 + $0x560] sm:$0xff] %v11002_v0  ;;  %577 = vst [vmem:[#allocation2 + $0x568] sm:$0xff] %v11002_v0 }
  0xd9   : > { %578 = vst [vmem:[#allocation2 + $0x570] sm:$0xff] %v11002_v0  ;;  %579 = vst [vmem:[#allocation2 + $0x578] sm:$0xff] %v11002_v0 }
  0xda   : > { %581 = vst [vmem:[#allocation2 + $0x588] sm:$0xff] %v11002_v0  ;;  %582 = vst [vmem:[#allocation2 + $0x590] sm:$0xff] %v11002_v0 }
  0xdb   : > { %583 = vst [vmem:[#allocation2 + $0x598] sm:$0xff] %v11002_v0  ;;  %584 = vst [vmem:[#allocation2 + $0x5a0] sm:$0xff] %v11002_v0 }
  0xdc   : > { %585 = vst [vmem:[#allocation2 + $0x5a8] sm:$0xff] %v11002_v0  ;;  %586 = vst [vmem:[#allocation2 + $0x5b0] sm:$0xff] %v11002_v0 }
  0xdd   : > { %589 = vst [vmem:[#allocation2 + $0x5c8] sm:$0xff] %v11002_v0  ;;  %590 = vst [vmem:[#allocation2 + $0x5d0] sm:$0xff] %v11002_v0 }
  0xde   : > { %591 = vst [vmem:[#allocation2 + $0x5d8] sm:$0xff] %v11002_v0  ;;  %592 = vst [vmem:[#allocation2 + $0x5e0] sm:$0xff] %v11002_v0 }
  0xdf   : > { %593 = vst [vmem:[#allocation2 + $0x5e8] sm:$0xff] %v11002_v0  ;;  %594 = vst [vmem:[#allocation2 + $0x5f0] sm:$0xff] %v11002_v0 }
  0xe0   : > { %596 = vst [vmem:[#allocation2 + $0x600] sm:$0xff] %v11002_v0  ;;  %597 = vst [vmem:[#allocation2 + $0x608] sm:$0xff] %v11002_v0 }
  0xe1   : > { %598 = vst [vmem:[#allocation2 + $0x610] sm:$0xff] %v11002_v0  ;;  %599 = vst [vmem:[#allocation2 + $0x618] sm:$0xff] %v11002_v0 }
  0xe2   : > { %600 = vst [vmem:[#allocation2 + $0x620] sm:$0xff] %v11002_v0  ;;  %601 = vst [vmem:[#allocation2 + $0x628] sm:$0xff] %v11002_v0 }
  0xe3   : > { %602 = vst [vmem:[#allocation2 + $0x630] sm:$0xff] %v11002_v0  ;;  %603 = vst [vmem:[#allocation2 + $0x638] sm:$0xff] %v11002_v0 }
  0xe4   : > { %604 = vst [vmem:[#allocation2 + $0x640] sm:$0xff] %v11002_v0  ;;  %605 = vst [vmem:[#allocation2 + $0x648] sm:$0xff] %v11002_v0 }
  0xe5   : > { %606 = vst [vmem:[#allocation2 + $0x650] sm:$0xff] %v11002_v0  ;;  %607 = vst [vmem:[#allocation2 + $0x658] sm:$0xff] %v11002_v0 }
  0xe6   : > { %608 = vst [vmem:[#allocation2 + $0x660] sm:$0xff] %v11002_v0  ;;  %609 = vst [vmem:[#allocation2 + $0x668] sm:$0xff] %v11002_v0 }
  0xe7   : > { %610 = vst [vmem:[#allocation2 + $0x670] sm:$0xff] %v11002_v0  ;;  %611 = vst [vmem:[#allocation2 + $0x678] sm:$0xff] %v11002_v0 }
  0xe8   : > { %612 = vst [vmem:[#allocation2 + $0x680] sm:$0xff] %v11002_v0  ;;  %613 = vst [vmem:[#allocation2 + $0x688] sm:$0xff] %v11002_v0 }
  0xe9   : > { %614 = vst [vmem:[#allocation2 + $0x690] sm:$0xff] %v11002_v0  ;;  %615 = vst [vmem:[#allocation2 + $0x698] sm:$0xff] %v11002_v0 }
  0xea   : > { %616 = vst [vmem:[#allocation2 + $0x6a0] sm:$0xff] %v11002_v0  ;;  %617 = vst [vmem:[#allocation2 + $0x6a8] sm:$0xff] %v11002_v0 }
  0xeb   : > { %618 = vst [vmem:[#allocation2 + $0x6b0] sm:$0xff] %v11002_v0  ;;  %619 = vst [vmem:[#allocation2 + $0x6b8] sm:$0xff] %v11002_v0 }
  0xec   : > { %620 = vst [vmem:[#allocation2 + $0x6c0] sm:$0xff] %v11002_v0  ;;  %621 = vst [vmem:[#allocation2 + $0x6c8] sm:$0xff] %v11002_v0 }
  0xed   : > { %622 = vst [vmem:[#allocation2 + $0x6d0] sm:$0xff] %v11002_v0  ;;  %623 = vst [vmem:[#allocation2 + $0x6d8] sm:$0xff] %v11002_v0 }
  0xee   : > { %624 = vst [vmem:[#allocation2 + $0x6e0] sm:$0xff] %v11002_v0  ;;  %625 = vst [vmem:[#allocation2 + $0x6e8] sm:$0xff] %v11002_v0 }
  0xef   : > { %626 = vst [vmem:[#allocation2 + $0x6f0] sm:$0xff] %v11002_v0  ;;  %627 = vst [vmem:[#allocation2 + $0x6f8] sm:$0xff] %v11002_v0 }
  0xf0   : > { %628 = vst [vmem:[#allocation2 + $0x700] sm:$0xff] %v11002_v0  ;;  %629 = vst [vmem:[#allocation2 + $0x708] sm:$0xff] %v11002_v0 }
  0xf1   : > { %630 = vst [vmem:[#allocation2 + $0x710] sm:$0xff] %v11002_v0  ;;  %631 = vst [vmem:[#allocation2 + $0x718] sm:$0xff] %v11002_v0 }
  0xf2   : > { %632 = vst [vmem:[#allocation2 + $0x720] sm:$0xff] %v11002_v0  ;;  %633 = vst [vmem:[#allocation2 + $0x728] sm:$0xff] %v11002_v0 }
  0xf3   : > { %634 = vst [vmem:[#allocation2 + $0x730] sm:$0xff] %v11002_v0  ;;  %635 = vst [vmem:[#allocation2 + $0x738] sm:$0xff] %v11002_v0 }
  0xf4   : > { %636 = vst [vmem:[#allocation2 + $0x740] sm:$0xff] %v11002_v0  ;;  %637 = vst [vmem:[#allocation2 + $0x748] sm:$0xff] %v11002_v0 }
  0xf5   : > { %638 = vst [vmem:[#allocation2 + $0x750] sm:$0xff] %v11002_v0  ;;  %639 = vst [vmem:[#allocation2 + $0x758] sm:$0xff] %v11002_v0 }
  0xf6   : > { %640 = vst [vmem:[#allocation2 + $0x760] sm:$0xff] %v11002_v0  ;;  %641 = vst [vmem:[#allocation2 + $0x768] sm:$0xff] %v11002_v0 }
  0xf7   : > { %642 = vst [vmem:[#allocation2 + $0x770] sm:$0xff] %v11002_v0  ;;  %643 = vst [vmem:[#allocation2 + $0x778] sm:$0xff] %v11002_v0 }
  0xf8   : > { %644 = vst [vmem:[#allocation2 + $0x780] sm:$0xff] %v11002_v0  ;;  %645 = vst [vmem:[#allocation2 + $0x788] sm:$0xff] %v11002_v0 }
  0xf9   : > { %646 = vst [vmem:[#allocation2 + $0x790] sm:$0xff] %v11002_v0  ;;  %647 = vst [vmem:[#allocation2 + $0x798] sm:$0xff] %v11002_v0 }
  0xfa   : > { %648 = vst [vmem:[#allocation2 + $0x7a0] sm:$0xff] %v11002_v0  ;;  %649 = vst [vmem:[#allocation2 + $0x7a8] sm:$0xff] %v11002_v0 }
  0xfb   : > { %650 = vst [vmem:[#allocation2 + $0x7b0] sm:$0xff] %v11002_v0  ;;  %651 = vst [vmem:[#allocation2 + $0x7b8] sm:$0xff] %v11002_v0 }
  0xfc   : > { %652 = vst [vmem:[#allocation2 + $0x7c0] sm:$0xff] %v11002_v0  ;;  %653 = vst [vmem:[#allocation2 + $0x7c8] sm:$0xff] %v11002_v0 }
  0xfd   : > { %654 = vst [vmem:[#allocation2 + $0x7d0] sm:$0xff] %v11002_v0  ;;  %655 = vst [vmem:[#allocation2 + $0x7d8] sm:$0xff] %v11002_v0 }
  0xfe   : > { %656 = vst [vmem:[#allocation2 + $0x7e0] sm:$0xff] %v11002_v0  ;;  %657 = vst [vmem:[#allocation2 + $0x7e8] sm:$0xff] %v11002_v0 }
  0xff   : > { %658 = vst [vmem:[#allocation2 + $0x7f0] sm:$0xff] %v11002_v0  ;;  %659 = vst [vmem:[#allocation2 + $0x7f8] sm:$0xff] %v11002_v0 }
 0x100   : > { %660 = vst [vmem:[#allocation2 + $0x800] sm:$0xff] %v11002_v0  ;;  %661 = vst [vmem:[#allocation2 + $0x808] sm:$0xff] %v11002_v0 }
 0x101   : > { %662 = vst [vmem:[#allocation2 + $0x810] sm:$0xff] %v11002_v0  ;;  %663 = vst [vmem:[#allocation2 + $0x818] sm:$0xff] %v11002_v0 }
 0x102   : > { %664 = vst [vmem:[#allocation2 + $0x820] sm:$0xff] %v11002_v0  ;;  %665 = vst [vmem:[#allocation2 + $0x828] sm:$0xff] %v11002_v0 }
 0x103   : > { %666 = vst [vmem:[#allocation2 + $0x830] sm:$0xff] %v11002_v0  ;;  %667 = vst [vmem:[#allocation2 + $0x838] sm:$0xff] %v11002_v0 }
 0x104   : > { %668 = vst [vmem:[#allocation2 + $0x840] sm:$0xff] %v11002_v0  ;;  %669 = vst [vmem:[#allocation2 + $0x848] sm:$0xff] %v11002_v0 }
 0x105   : > { %670 = vst [vmem:[#allocation2 + $0x850] sm:$0xff] %v11002_v0  ;;  %671 = vst [vmem:[#allocation2 + $0x858] sm:$0xff] %v11002_v0 }
 0x106   : > { %672 = vst [vmem:[#allocation2 + $0x860] sm:$0xff] %v11002_v0  ;;  %673 = vst [vmem:[#allocation2 + $0x868] sm:$0xff] %v11002_v0 }
 0x107   : > { %674 = vst [vmem:[#allocation2 + $0x870] sm:$0xff] %v11002_v0  ;;  %675 = vst [vmem:[#allocation2 + $0x878] sm:$0xff] %v11002_v0 }
 0x108   : > { %676 = vst [vmem:[#allocation2 + $0x880] sm:$0xff] %v11002_v0  ;;  %677 = vst [vmem:[#allocation2 + $0x888] sm:$0xff] %v11002_v0 }
 0x109   : > { %678 = vst [vmem:[#allocation2 + $0x890] sm:$0xff] %v11002_v0  ;;  %679 = vst [vmem:[#allocation2 + $0x898] sm:$0xff] %v11002_v0 }
 0x10a   : > { %680 = vst [vmem:[#allocation2 + $0x8a0] sm:$0xff] %v11002_v0  ;;  %681 = vst [vmem:[#allocation2 + $0x8a8] sm:$0xff] %v11002_v0 }
 0x10b   : > { %682 = vst [vmem:[#allocation2 + $0x8b0] sm:$0xff] %v11002_v0  ;;  %683 = vst [vmem:[#allocation2 + $0x8b8] sm:$0xff] %v11002_v0 }
 0x10c   : > { %684 = vst [vmem:[#allocation2 + $0x8c0] sm:$0xff] %v11002_v0  ;;  %685 = vst [vmem:[#allocation2 + $0x8c8] sm:$0xff] %v11002_v0 }
 0x10d   : > { %686 = vst [vmem:[#allocation2 + $0x8d0] sm:$0xff] %v11002_v0  ;;  %687 = vst [vmem:[#allocation2 + $0x8d8] sm:$0xff] %v11002_v0 }
 0x10e   : > { %688 = vst [vmem:[#allocation2 + $0x8e0] sm:$0xff] %v11002_v0  ;;  %689 = vst [vmem:[#allocation2 + $0x8e8] sm:$0xff] %v11002_v0 }
 0x10f   : > { %690 = vst [vmem:[#allocation2 + $0x8f0] sm:$0xff] %v11002_v0  ;;  %691 = vst [vmem:[#allocation2 + $0x8f8] sm:$0xff] %v11002_v0 }
 0x110   : > { %692 = vst [vmem:[#allocation2 + $0x900] sm:$0xff] %v11002_v0  ;;  %693 = vst [vmem:[#allocation2 + $0x908] sm:$0xff] %v11002_v0 }
 0x111   : > { %694 = vst [vmem:[#allocation2 + $0x910] sm:$0xff] %v11002_v0  ;;  %695 = vst [vmem:[#allocation2 + $0x918] sm:$0xff] %v11002_v0 }
 0x112   : > { %696 = vst [vmem:[#allocation2 + $0x920] sm:$0xff] %v11002_v0  ;;  %697 = vst [vmem:[#allocation2 + $0x928] sm:$0xff] %v11002_v0 }
 0x113   : > { %698 = vst [vmem:[#allocation2 + $0x930] sm:$0xff] %v11002_v0  ;;  %699 = vst [vmem:[#allocation2 + $0x938] sm:$0xff] %v11002_v0 }
 0x114   : > { %700 = vst [vmem:[#allocation2 + $0x940] sm:$0xff] %v11002_v0  ;;  %701 = vst [vmem:[#allocation2 + $0x948] sm:$0xff] %v11002_v0 }
 0x115   : > { %702 = vst [vmem:[#allocation2 + $0x950] sm:$0xff] %v11002_v0  ;;  %703 = vst [vmem:[#allocation2 + $0x958] sm:$0xff] %v11002_v0 }
 0x116   : > { %704 = vst [vmem:[#allocation2 + $0x960] sm:$0xff] %v11002_v0  ;;  %705 = vst [vmem:[#allocation2 + $0x968] sm:$0xff] %v11002_v0 }
 0x117   : > { %706 = vst [vmem:[#allocation2 + $0x970] sm:$0xff] %v11002_v0  ;;  %707 = vst [vmem:[#allocation2 + $0x978] sm:$0xff] %v11002_v0 }
 0x118   : > { %708 = vst [vmem:[#allocation2 + $0x980] sm:$0xff] %v11002_v0  ;;  %709 = vst [vmem:[#allocation2 + $0x988] sm:$0xff] %v11002_v0 }
 0x119   : > { %710 = vst [vmem:[#allocation2 + $0x990] sm:$0xff] %v11002_v0  ;;  %711 = vst [vmem:[#allocation2 + $0x998] sm:$0xff] %v11002_v0 }
 0x11a   : > { %712 = vst [vmem:[#allocation2 + $0x9a0] sm:$0xff] %v11002_v0  ;;  %713 = vst [vmem:[#allocation2 + $0x9a8] sm:$0xff] %v11002_v0 }
 0x11b   : > { %714 = vst [vmem:[#allocation2 + $0x9b0] sm:$0xff] %v11002_v0  ;;  %715 = vst [vmem:[#allocation2 + $0x9b8] sm:$0xff] %v11002_v0 }
 0x11c   : > { %716 = vst [vmem:[#allocation2 + $0x9c0] sm:$0xff] %v11002_v0  ;;  %717 = vst [vmem:[#allocation2 + $0x9c8] sm:$0xff] %v11002_v0 }
 0x11d   : > { %718 = vst [vmem:[#allocation2 + $0x9d0] sm:$0xff] %v11002_v0  ;;  %719 = vst [vmem:[#allocation2 + $0x9d8] sm:$0xff] %v11002_v0 }
 0x11e   : > { %720 = vst [vmem:[#allocation2 + $0x9e0] sm:$0xff] %v11002_v0  ;;  %721 = vst [vmem:[#allocation2 + $0x9e8] sm:$0xff] %v11002_v0 }
 0x11f   : > { %722 = vst [vmem:[#allocation2 + $0x9f0] sm:$0xff] %v11002_v0  ;;  %723 = vst [vmem:[#allocation2 + $0x9f8] sm:$0xff] %v11002_v0 }
 0x120   : > { %725 = vst [vmem:[#allocation2 + $0xa08] sm:$0xff] %v11002_v0  ;;  %726 = vst [vmem:[#allocation2 + $0xa10] sm:$0xff] %v11002_v0 }
 0x121   : > { %727 = vst [vmem:[#allocation2 + $0xa18] sm:$0xff] %v11002_v0  ;;  %728 = vst [vmem:[#allocation2 + $0xa20] sm:$0xff] %v11002_v0 }
 0x122   : > { %729 = vst [vmem:[#allocation2 + $0xa28] sm:$0xff] %v11002_v0  ;;  %730 = vst [vmem:[#allocation2 + $0xa30] sm:$0xff] %v11002_v0 }
 0x123   : > { %733 = vst [vmem:[#allocation2 + $0xa48] sm:$0xff] %v11002_v0  ;;  %734 = vst [vmem:[#allocation2 + $0xa50] sm:$0xff] %v11002_v0 }
 0x124   : > { %735 = vst [vmem:[#allocation2 + $0xa58] sm:$0xff] %v11002_v0  ;;  %736 = vst [vmem:[#allocation2 + $0xa60] sm:$0xff] %v11002_v0 }
 0x125   : > { %737 = vst [vmem:[#allocation2 + $0xa68] sm:$0xff] %v11002_v0  ;;  %738 = vst [vmem:[#allocation2 + $0xa70] sm:$0xff] %v11002_v0 }
 0x126   : > { %740 = vst [vmem:[#allocation2 + $0xa80] sm:$0xff] %v11002_v0  ;;  %741 = vst [vmem:[#allocation2 + $0xa88] sm:$0xff] %v11002_v0 }
 0x127   : > { %742 = vst [vmem:[#allocation2 + $0xa90] sm:$0xff] %v11002_v0  ;;  %743 = vst [vmem:[#allocation2 + $0xa98] sm:$0xff] %v11002_v0 }
 0x128   : > { %744 = vst [vmem:[#allocation2 + $0xaa0] sm:$0xff] %v11002_v0  ;;  %745 = vst [vmem:[#allocation2 + $0xaa8] sm:$0xff] %v11002_v0 }
 0x129   : > { %746 = vst [vmem:[#allocation2 + $0xab0] sm:$0xff] %v11002_v0  ;;  %747 = vst [vmem:[#allocation2 + $0xab8] sm:$0xff] %v11002_v0 }
 0x12a   : > { %748 = vst [vmem:[#allocation2 + $0xac0] sm:$0xff] %v11002_v0  ;;  %749 = vst [vmem:[#allocation2 + $0xac8] sm:$0xff] %v11002_v0 }
 0x12b   : > { %750 = vst [vmem:[#allocation2 + $0xad0] sm:$0xff] %v11002_v0  ;;  %751 = vst [vmem:[#allocation2 + $0xad8] sm:$0xff] %v11002_v0 }
 0x12c   : > { %752 = vst [vmem:[#allocation2 + $0xae0] sm:$0xff] %v11002_v0  ;;  %753 = vst [vmem:[#allocation2 + $0xae8] sm:$0xff] %v11002_v0 }
 0x12d   : > { %754 = vst [vmem:[#allocation2 + $0xaf0] sm:$0xff] %v11002_v0  ;;  %755 = vst [vmem:[#allocation2 + $0xaf8] sm:$0xff] %v11002_v0 }
 0x12e   : > { %756 = vst [vmem:[#allocation2 + $0xb00] sm:$0xff] %v11002_v0  ;;  %757 = vst [vmem:[#allocation2 + $0xb08] sm:$0xff] %v11002_v0 }
 0x12f   : > { %758 = vst [vmem:[#allocation2 + $0xb10] sm:$0xff] %v11002_v0  ;;  %759 = vst [vmem:[#allocation2 + $0xb18] sm:$0xff] %v11002_v0 }
 0x130   : > { %760 = vst [vmem:[#allocation2 + $0xb20] sm:$0xff] %v11002_v0  ;;  %761 = vst [vmem:[#allocation2 + $0xb28] sm:$0xff] %v11002_v0 }
 0x131   : > { %762 = vst [vmem:[#allocation2 + $0xb30] sm:$0xff] %v11002_v0  ;;  %763 = vst [vmem:[#allocation2 + $0xb38] sm:$0xff] %v11002_v0 }
 0x132   : > { %764 = vst [vmem:[#allocation2 + $0xb40] sm:$0xff] %v11002_v0  ;;  %765 = vst [vmem:[#allocation2 + $0xb48] sm:$0xff] %v11002_v0 }
 0x133   : > { %766 = vst [vmem:[#allocation2 + $0xb50] sm:$0xff] %v11002_v0  ;;  %767 = vst [vmem:[#allocation2 + $0xb58] sm:$0xff] %v11002_v0 }
 0x134   : > { %768 = vst [vmem:[#allocation2 + $0xb60] sm:$0xff] %v11002_v0  ;;  %769 = vst [vmem:[#allocation2 + $0xb68] sm:$0xff] %v11002_v0 }
 0x135   : > { %770 = vst [vmem:[#allocation2 + $0xb70] sm:$0xff] %v11002_v0  ;;  %771 = vst [vmem:[#allocation2 + $0xb78] sm:$0xff] %v11002_v0 }
 0x136   : > { %772 = vst [vmem:[#allocation2 + $0xb80] sm:$0xff] %v11002_v0  ;;  %773 = vst [vmem:[#allocation2 + $0xb88] sm:$0xff] %v11002_v0 }
 0x137   : > { %774 = vst [vmem:[#allocation2 + $0xb90] sm:$0xff] %v11002_v0  ;;  %775 = vst [vmem:[#allocation2 + $0xb98] sm:$0xff] %v11002_v0 }
 0x138   : > { %776 = vst [vmem:[#allocation2 + $0xba0] sm:$0xff] %v11002_v0  ;;  %777 = vst [vmem:[#allocation2 + $0xba8] sm:$0xff] %v11002_v0 }
 0x139   : > { %778 = vst [vmem:[#allocation2 + $0xbb0] sm:$0xff] %v11002_v0  ;;  %779 = vst [vmem:[#allocation2 + $0xbb8] sm:$0xff] %v11002_v0 }
 0x13a   : > { %780 = vst [vmem:[#allocation2 + $0xbc0] sm:$0xff] %v11002_v0  ;;  %781 = vst [vmem:[#allocation2 + $0xbc8] sm:$0xff] %v11002_v0 }
 0x13b   : > { %782 = vst [vmem:[#allocation2 + $0xbd0] sm:$0xff] %v11002_v0  ;;  %783 = vst [vmem:[#allocation2 + $0xbd8] sm:$0xff] %v11002_v0 }
 0x13c   : > { %784 = vst [vmem:[#allocation2 + $0xbe0] sm:$0xff] %v11002_v0  ;;  %785 = vst [vmem:[#allocation2 + $0xbe8] sm:$0xff] %v11002_v0 }
 0x13d   : > { %786 = vst [vmem:[#allocation2 + $0xbf0] sm:$0xff] %v11002_v0  ;;  %787 = vst [vmem:[#allocation2 + $0xbf8] sm:$0xff] %v11002_v0 }
 0x13e   : > { %788 = vst [vmem:[#allocation2 + $0xc00] sm:$0xff] %v11002_v0  ;;  %789 = vst [vmem:[#allocation2 + $0xc08] sm:$0xff] %v11002_v0 }
 0x13f   : > { %790 = vst [vmem:[#allocation2 + $0xc10] sm:$0xff] %v11002_v0  ;;  %791 = vst [vmem:[#allocation2 + $0xc18] sm:$0xff] %v11002_v0 }
 0x140   : > { %792 = vst [vmem:[#allocation2 + $0xc20] sm:$0xff] %v11002_v0  ;;  %793 = vst [vmem:[#allocation2 + $0xc28] sm:$0xff] %v11002_v0 }
 0x141   : > { %794 = vst [vmem:[#allocation2 + $0xc30] sm:$0xff] %v11002_v0  ;;  %795 = vst [vmem:[#allocation2 + $0xc38] sm:$0xff] %v11002_v0 }
 0x142   : > { %796 = vst [vmem:[#allocation2 + $0xc40] sm:$0xff] %v11002_v0  ;;  %797 = vst [vmem:[#allocation2 + $0xc48] sm:$0xff] %v11002_v0 }
 0x143   : > { %798 = vst [vmem:[#allocation2 + $0xc50] sm:$0xff] %v11002_v0  ;;  %799 = vst [vmem:[#allocation2 + $0xc58] sm:$0xff] %v11002_v0 }
 0x144   : > { %800 = vst [vmem:[#allocation2 + $0xc60] sm:$0xff] %v11002_v0  ;;  %801 = vst [vmem:[#allocation2 + $0xc68] sm:$0xff] %v11002_v0 }
 0x145   : > { %802 = vst [vmem:[#allocation2 + $0xc70] sm:$0xff] %v11002_v0  ;;  %803 = vst [vmem:[#allocation2 + $0xc78] sm:$0xff] %v11002_v0 }
 0x146   : > { %804 = vst [vmem:[#allocation2 + $0xc80] sm:$0xff] %v11002_v0  ;;  %805 = vst [vmem:[#allocation2 + $0xc88] sm:$0xff] %v11002_v0 }
 0x147   : > { %806 = vst [vmem:[#allocation2 + $0xc90] sm:$0xff] %v11002_v0  ;;  %807 = vst [vmem:[#allocation2 + $0xc98] sm:$0xff] %v11002_v0 }
 0x148   : > { %808 = vst [vmem:[#allocation2 + $0xca0] sm:$0xff] %v11002_v0  ;;  %809 = vst [vmem:[#allocation2 + $0xca8] sm:$0xff] %v11002_v0 }
 0x149   : > { %810 = vst [vmem:[#allocation2 + $0xcb0] sm:$0xff] %v11002_v0  ;;  %811 = vst [vmem:[#allocation2 + $0xcb8] sm:$0xff] %v11002_v0 }
 0x14a   : > { %812 = vst [vmem:[#allocation2 + $0xcc0] sm:$0xff] %v11002_v0  ;;  %813 = vst [vmem:[#allocation2 + $0xcc8] sm:$0xff] %v11002_v0 }
 0x14b   : > { %814 = vst [vmem:[#allocation2 + $0xcd0] sm:$0xff] %v11002_v0  ;;  %815 = vst [vmem:[#allocation2 + $0xcd8] sm:$0xff] %v11002_v0 }
 0x14c   : > { %816 = vst [vmem:[#allocation2 + $0xce0] sm:$0xff] %v11002_v0  ;;  %817 = vst [vmem:[#allocation2 + $0xce8] sm:$0xff] %v11002_v0 }
 0x14d   : > { %818 = vst [vmem:[#allocation2 + $0xcf0] sm:$0xff] %v11002_v0  ;;  %819 = vst [vmem:[#allocation2 + $0xcf8] sm:$0xff] %v11002_v0 }
 0x14e   : > { %820 = vst [vmem:[#allocation2 + $0xd00] sm:$0xff] %v11002_v0  ;;  %821 = vst [vmem:[#allocation2 + $0xd08] sm:$0xff] %v11002_v0 }
 0x14f   : > { %822 = vst [vmem:[#allocation2 + $0xd10] sm:$0xff] %v11002_v0  ;;  %825 = vst [vmem:[#allocation2 + $0xd28] sm:$0xff] %v11002_v0 }
 0x150   : > { %826 = vst [vmem:[#allocation2 + $0xd30] sm:$0xff] %v11002_v0  ;;  %827 = vst [vmem:[#allocation2 + $0xd38] sm:$0xff] %v11002_v0 }
 0x151   : > { %828 = vst [vmem:[#allocation2 + $0xd40] sm:$0xff] %v11002_v0  ;;  %829 = vst [vmem:[#allocation2 + $0xd48] sm:$0xff] %v11002_v0 }
 0x152   : > { %830 = vst [vmem:[#allocation2 + $0xd50] sm:$0xff] %v11002_v0  ;;  %833 = vst [vmem:[#allocation2 + $0xd68] sm:$0xff] %v11002_v0 }
 0x153   : > { %834 = vst [vmem:[#allocation2 + $0xd70] sm:$0xff] %v11002_v0  ;;  %835 = vst [vmem:[#allocation2 + $0xd78] sm:$0xff] %v11002_v0 }
 0x154   : > { %836 = vst [vmem:[#allocation2 + $0xd80] sm:$0xff] %v11002_v0  ;;  %837 = vst [vmem:[#allocation2 + $0xd88] sm:$0xff] %v11002_v0 }
 0x155   : > { %838 = vst [vmem:[#allocation2 + $0xd90] sm:$0xff] %v11002_v0  ;;  %841 = vst [vmem:[#allocation2 + $0xda8] sm:$0xff] %v11002_v0 }
 0x156   : > { %842 = vst [vmem:[#allocation2 + $0xdb0] sm:$0xff] %v11002_v0  ;;  %843 = vst [vmem:[#allocation2 + $0xdb8] sm:$0xff] %v11002_v0 }
 0x157   : > { %844 = vst [vmem:[#allocation2 + $0xdc0] sm:$0xff] %v11002_v0  ;;  %845 = vst [vmem:[#allocation2 + $0xdc8] sm:$0xff] %v11002_v0 }
 0x158   : > { %846 = vst [vmem:[#allocation2 + $0xdd0] sm:$0xff] %v11002_v0  ;;  %849 = vst [vmem:[#allocation2 + $0xde8] sm:$0xff] %v11002_v0 }
 0x159   : > { %850 = vst [vmem:[#allocation2 + $0xdf0] sm:$0xff] %v11002_v0  ;;  %851 = vst [vmem:[#allocation2 + $0xdf8] sm:$0xff] %v11002_v0 }
 0x15a   : > { %852 = vst [vmem:[#allocation2 + $0xe00] sm:$0xff] %v11002_v0  ;;  %853 = vst [vmem:[#allocation2 + $0xe08] sm:$0xff] %v11002_v0 }
 0x15b   : > { %854 = vst [vmem:[#allocation2 + $0xe10] sm:$0xff] %v11002_v0  ;;  %857 = vst [vmem:[#allocation2 + $0xe28] sm:$0xff] %v11002_v0 }
 0x15c   : > { %858 = vst [vmem:[#allocation2 + $0xe30] sm:$0xff] %v11002_v0  ;;  %859 = vst [vmem:[#allocation2 + $0xe38] sm:$0xff] %v11002_v0 }
 0x15d   : > { %860 = vst [vmem:[#allocation2 + $0xe40] sm:$0xff] %v11002_v0  ;;  %861 = vst [vmem:[#allocation2 + $0xe48] sm:$0xff] %v11002_v0 }
 0x15e   : > { %862 = vst [vmem:[#allocation2 + $0xe50] sm:$0xff] %v11002_v0  ;;  %865 = vst [vmem:[#allocation2 + $0xe68] sm:$0xff] %v11002_v0 }
 0x15f   : > { %866 = vst [vmem:[#allocation2 + $0xe70] sm:$0xff] %v11002_v0  ;;  %867 = vst [vmem:[#allocation2 + $0xe78] sm:$0xff] %v11002_v0  ;;  %v11748_v0 = vpack.c.bf16 %v1662_v63, %v1661_v62  ;;  %v1682_v62 = vld [vmem:[#allocation6 + $0x178] sm:$0xff]  ;;  %v940_v63 = vld [vmem:[%s11661_s16 + $0xc0] sm:$0xff] }
 0x160   : > { %954 = vst.msk [vmem:[#allocation2 + $0x698] sm:$0xff] %vm949_vm0, %v920_v13  ;;  %955 = vst.msk [vmem:[#allocation2 + $0x6a0] sm:$0xff] %vm949_vm0, %v921_v15  ;;  %v9070_v15 = vpack.c.bf16 %v1668_v12, %v1667_v11  ;;  %v9091_v3 = vpack.c.bf16 %v1682_v62, %v1681_v59  ;;  %v1684_v11 = vld [vmem:[#allocation6 + $0x188] sm:$0xff]  ;;  %v1020_v59 = vld [vmem:[#allocation3 + $0x20] sm:$0xff] }
 0x161   : > { %956 = vst.msk [vmem:[#allocation2 + $0x6d8] sm:$0xff] %vm949_vm0, %v922_v18  ;;  %957 = vst.msk [vmem:[#allocation2 + $0x6e0] sm:$0xff] %vm949_vm0, %v923_v19  ;;  %9898 = vmatpush1.bf16.msra.mxu1 %v11748_v0  ;;  %v1670_v18 = vld [vmem:[#allocation6 + $0x118] sm:$0xff]  ;;  %v941_v12 = vld [vmem:[%s11661_s16 + $0xc8] sm:$0xff] }
 0x162   : > { %958 = vst.msk [vmem:[#allocation2 + $0x718] sm:$0xff] %vm949_vm0, %v924_v20  ;;  %959 = vst.msk [vmem:[#allocation2 + $0x720] sm:$0xff] %vm949_vm0, %v925_v22  ;;  %9883 = vmatprep.subr.bf16.mxu1 %v13753_v1  ;;  %v9073_v20 = vpack.c.bf16 %v1670_v18, %v1669_v17  ;;  %v9094_v17 = vpack.c.bf16 %v1684_v11, %v1683_v6  ;;  %v1685_v18 = vld [vmem:[#allocation6 + $0x190] sm:$0xff]  ;;  %v1021_v62 = vld [vmem:[#allocation3 + $0x28] sm:$0xff] }
 0x163   : > { %960 = vst.msk [vmem:[#allocation2 + $0x758] sm:$0xff] %vm949_vm0, %v926_v25  ;;  %961 = vst.msk [vmem:[#allocation2 + $0x760] sm:$0xff] %vm949_vm0, %v927_v26  ;;  %v9076_v26 = vpack.c.bf16 %v1672_v24, %v1671_v23  ;;  %v1016_v24 = vld [vmem:[#allocation3] sm:$0xff] }
 0x164   : > { %962 = vst.msk [vmem:[#allocation2 + $0x798] sm:$0xff] %vm949_vm0, %v928_v31  ;;  %963 = vst.msk [vmem:[#allocation2 + $0x7a0] sm:$0xff] %vm949_vm0, %v929_v33  ;;  %v1674_v31 = vld [vmem:[#allocation6 + $0x138] sm:$0xff]  ;;  %v936_v33 = vld [vmem:[%s11661_s16 + $0xa0] sm:$0xff] }
 0x165   : > { %964 = vst.msk [vmem:[#allocation2 + $0x7d8] sm:$0xff] %vm949_vm0, %v930_v36  ;;  %965 = vst.msk [vmem:[#allocation2 + $0x7e0] sm:$0xff] %vm949_vm0, %v931_v38  ;;  %9899 = vmatpush1.bf16.msra.mxu1 %v11752_v4  ;;  %v9079_v35 = vpack.c.bf16 %v1674_v31, %v1673_v29  ;;  %v1675_v36 = vld [vmem:[#allocation6 + $0x140] sm:$0xff]  ;;  %v942_v31 = vld [vmem:[%s11661_s16 + $0xd0] sm:$0xff] }
 0x166   : > { %966 = vst.msk [vmem:[#allocation2 + $0x818] sm:$0xff] %vm949_vm0, %v932_v41  ;;  %967 = vst.msk [vmem:[#allocation2 + $0x820] sm:$0xff] %vm949_vm0, %v933_v42  ;;  %9884 = vmatprep.subr.bf16.mxu1 %v13753_v1  ;;  %v9082_v42 = vpack.c.bf16 %v1676_v39, %v1675_v36  ;;  %v1687_v36 = vld [vmem:[#allocation6 + $0x1a0] sm:$0xff]  ;;  %v1688_v39 = vld [vmem:[#allocation6 + $0x1a8] sm:$0xff] }
 0x167   : > { %v11687_v27 = vld [vmem:[#allocation2 + $0x698] sm:$0xff]  ;;  %968 = vst.msk [vmem:[#allocation2 + $0x858] sm:$0xff] %vm949_vm0, %v934_v43  ;;  %969 = vst.msk [vmem:[#allocation2 + $0x860] sm:$0xff] %vm949_vm0, %v935_v47  ;;  %v11763_v16 = vld [vmem:[#allocation2 + $0x6a0] sm:$0xff] }
 0x168   : > { %1923 = vmatprep.mubr.f32.mxu1 %v11687_v27  ;;  %950 = vst.msk [vmem:[#allocation2 + $0x618] sm:$0xff] %vm949_vm0, %v916_v48  ;;  %951 = vst.msk [vmem:[#allocation2 + $0x620] sm:$0xff] %vm949_vm0, %v917_v52  ;;  %v11760_v13 = vld [vmem:[#allocation2 + $0x692] sm:$0xff]  ;;  %v11767_v19 = vld [vmem:[#allocation2 + $0x69a] sm:$0xff] }
 0x169   : > { %952 = vst.msk [vmem:[#allocation2 + $0x658] sm:$0xff] %vm949_vm0, %v918_v53  ;;  %953 = vst.msk [vmem:[#allocation2 + $0x660] sm:$0xff] %vm949_vm0, %v919_v57  ;;  %9900 = vmatpush1.bf16.msra.mxu1 %v11756_v9  ;;  %v11770_v22 = vld [vmem:[#allocation2 + $0x6d8] sm:$0xff]  ;;  %v11777_v30 = vld [vmem:[#allocation2 + $0x6e0] sm:$0xff] }
 0x16a   : > { %9069 = vmatprep.subr.bf16.mxu1 %v13753_v1  ;;  %v11774_v25 = vld [vmem:[#allocation2 + $0x6d2] sm:$0xff]  ;;  %970 = vst.msk [vmem:[#allocation2 + $0x898] sm:$0xff] %vm949_vm0, %v936_v33  ;;  %v11783_v34 = vld [vmem:[#allocation2 + $0x6da] sm:$0xff]  ;;  %971 = vst.msk [vmem:[#allocation2 + $0x8a0] sm:$0xff] %vm949_vm0, %v937_v40 }
 0x16b   : > { %v11786_v38 = vld [vmem:[#allocation2 + $0x718] sm:$0xff]  ;;  %v1677_v43 = vld [vmem:[#allocation6 + $0x150] sm:$0xff]  ;;  %v11795_v45 = vld [vmem:[#allocation2 + $0x720] sm:$0xff]  ;;  %973 = vst.msk [vmem:[#allocation2 + $0x8e0] sm:$0xff] %vm949_vm0, %v939_v55 }
 0x16c   : > { %1924 = vmatmul.mubr.f32.vlgmr.msra.gmra.mrb[0].mxu1 %v11760_v13  ;;  %v11792_v41 = vld [vmem:[#allocation2 + $0x712] sm:$0xff]  ;;  %v11801_v48 = vld [vmem:[#allocation2 + $0x71a] sm:$0xff]  ;;  %v9085_v50 = vpack.c.bf16 %v1678_v46, %v1677_v43  ;;  %v1680_v53 = vld [vmem:[#allocation6 + $0x168] sm:$0xff]  ;;  %974 = vst.msk [vmem:[#allocation2 + $0x918] sm:$0xff] %vm949_vm0, %v940_v63 }
 0x16d   : > { %9071 = vmatpush1.bf16.msra.mxu1 %v9070_v15  ;;  %1928 = vmatprep.mubr.f32.mxu1 %v11763_v16  ;;  %v938_v47 = vld [vmem:[%s11661_s16 + $0xb0] sm:$0xff]  ;;  %v11804_v52 = vld [vmem:[#allocation2 + $0x758] sm:$0xff]  ;;  %v9088_v57 = vpack.c.bf16 %v1680_v53, %v1679_v51  ;;  %v11813_v60 = vld [vmem:[#allocation2 + $0x760] sm:$0xff]  ;;  %975 = vst.msk [vmem:[#allocation2 + $0x920] sm:$0xff] %vm949_vm0, %v941_v12  ;;  %v9100_v53 = vpack.c.bf16 %v1688_v39, %v1687_v36 }
 0x16e   : > { %9072 = vmatprep.subr.bf16.mxu1 %v13753_v1  ;;  %972 = vst.msk [vmem:[#allocation2 + $0x8d8] sm:$0xff] %vm949_vm0, %v938_v47  ;;  %v11810_v56 = vld [vmem:[#allocation2 + $0x752] sm:$0xff]  ;;  %v11819_v2 = vld [vmem:[#allocation2 + $0x75a] sm:$0xff]  ;;  %976 = vst.msk [vmem:[#allocation2 + $0x958] sm:$0xff] %vm949_vm0, %v942_v31 }
 0x16f   : > { %v11822_v8 = vld [vmem:[#allocation2 + $0x798] sm:$0xff]  ;;  %v11831_v23 = vld [vmem:[#allocation2 + $0x7a0] sm:$0xff]  ;;  %v1693_v36 = vld [vmem:[#allocation6 + $0x1d0] sm:$0xff] }
 0x170   : > { %1929 = vmatmul.mubr.f32.gmra.mrb[2].mxu1 %v11767_v19  ;;  %v11828_v15 = vld [vmem:[#allocation2 + $0x792] sm:$0xff]  ;;  %v11837_v33 = vld [vmem:[#allocation2 + $0x79a] sm:$0xff] }
 0x171   : > { %9074 = vmatpush1.bf16.msra.mxu1 %v9073_v20  ;;  %1933 = vmatprep.mubr.f32.mxu1 %v11770_v22  ;;  %v1686_v20 = vld [vmem:[#allocation6 + $0x198] sm:$0xff]  ;;  %v11848_v55 = vld [vmem:[#allocation2 + $0x7e0] sm:$0xff] }
 0x172   : > { %9075 = vmatprep.subr.bf16.mxu1 %v13753_v1  ;;  %v11840_v40 = vld [vmem:[#allocation2 + $0x7d8] sm:$0xff]  ;;  %v944_v63 = vld [vmem:[%s11661_s16 + $0xe0] sm:$0xff] }
 0x173   : > { %v1019_v43 = vld [vmem:[#allocation3 + $0x18] sm:$0xff]  ;;  %978 = vst.msk [vmem:[#allocation2 + $0x998] sm:$0xff] %vm949_vm0, %v944_v63  ;;  %v1691_v6 = vld [vmem:[#allocation6 + $0x1c0] sm:$0xff] }
 0x174   : > { %1934 = vmatmul.mubr.f32.gmra.mrb[4].mxu1 %v11774_v25  ;;  %v943_v47 = vld [vmem:[%s11661_s16 + $0xd8] sm:$0xff] }
 0x175   : > { %9077 = vmatpush1.bf16.msra.mxu1 %v9076_v26  ;;  %1938 = vmatprep.mubr.f32.mxu1 %v11777_v30  ;;  %v1017_v26 = vld [vmem:[#allocation3 + $0x8] sm:$0xff]  ;;  %977 = vst.msk [vmem:[#allocation2 + $0x960] sm:$0xff] %vm949_vm0, %v943_v47  ;;  %v11846_v51 = vld [vmem:[#allocation2 + $0x7d2] sm:$0xff]  ;;  %v11855_v11 = vld [vmem:[#allocation2 + $0x7da] sm:$0xff] }
 0x176   : > { %9078 = vmatprep.subr.bf16.mxu1 %v13753_v1  ;;  %v8989_v29 = vpack.c.bf16 %v1017_v26, %v1016_v24  ;;  %v1023_v24 = vld [vmem:[#allocation3 + $0x38] sm:$0xff]  ;;  %v945_v26 = vld [vmem:[%s11661_s16 + $0xe8] sm:$0xff] }
 0x177   : > { %979 = vst.msk [vmem:[#allocation2 + $0x9a0] sm:$0xff] %vm949_vm0, %v945_v26  ;;  %v11864_v31 = vld [vmem:[#allocation2 + $0x812] sm:$0xff] }
 0x178   : > { %1939 = vmatmul.mubr.f32.gmra.mrb[6].mxu1 %v11783_v34  ;;  %8990 = vmatprep.subr.bf16.mxu0 %v8989_v29  ;;  %v1694_v39 = vld [vmem:[#allocation6 + $0x1d8] sm:$0xff]  ;;  %v1697_v26 = vld [vmem:[#allocation6 + $0x1f0] sm:$0xff] }
 0x179   : > { %9080 = vmatpush1.bf16.msra.mxu1 %v9079_v35  ;;  %1943 = vmatprep.mubr.f32.mxu1 %v11786_v38  ;;  %v9097_v35 = vpack.c.bf16 %v1686_v20, %v1685_v18  ;;  %v1692_v18 = vld [vmem:[#allocation6 + $0x1c8] sm:$0xff]  ;;  %v1022_v20 = vld [vmem:[#allocation3 + $0x30] sm:$0xff]  ;;  %v11876_v63 = vld [vmem:[#allocation2 + $0x858] sm:$0xff] }
 0x17a   : > { %9081 = vmatprep.subr.bf16.mxu1 %v13753_v1  ;;  %8992 = vmatpush3.bf16.msra.mxu0 %v8989_v29  ;;  %v9001_v29 = vpack.c.bf16 %v1023_v24, %v1022_v20  ;;  %v11882_v20 = vld [vmem:[#allocation2 + $0x852] sm:$0xff] }
 0x17c   : > { %1944 = vmatmul.mubr.f32.gmra.mrb[8].mxu1 %v11792_v41 }
 0x17d   : > { %9083 = vmatpush1.bf16.msra.mxu1 %v9082_v42  ;;  %1948 = vmatprep.mubr.f32.mxu1 %v11795_v45  ;;  %v1018_v42 = vld [vmem:[#allocation3 + $0x10] sm:$0xff] }
 0x17e   : > { %9084 = vmatprep.subr.bf16.mxu1 %v13753_v1  ;;  %v8993_v46 = vpack.c.bf16 %v1019_v43, %v1018_v42  ;;  %v11867_v42 = vld [vmem:[#allocation2 + $0x820] sm:$0xff] }
 0x17f   : > { %v1024_v43 = vld [vmem:[#allocation3 + $0x40] sm:$0xff] }
 0x180   : > { %1949 = vmatmul.mubr.f32.gmra.mrb[10].mxu1 %v11801_v48  ;;  %8994 = vmatprep.subr.bf16.mxu0 %v8993_v46 }
 0x181   : > { %9086 = vmatpush1.bf16.msra.mxu1 %v9085_v50  ;;  %1953 = vmatprep.mubr.f32.mxu1 %v11804_v52  ;;  %v1689_v50 = vld [vmem:[#allocation6 + $0x1b0] sm:$0xff] }
 0x182   : > { %9087 = vmatprep.subr.bf16.mxu1 %v13753_v1  ;;  %8996 = vmatpush3.bf16.msra.mxu0 %v8993_v46  ;;  %v1025_v46 = vld [vmem:[#allocation3 + $0x48] sm:$0xff] }
 0x183   : > { %v9005_v47 = vpack.c.bf16 %v1025_v46, %v1024_v43  ;;  %v11889_v46 = vld [vmem:[#allocation2 + $0x85a] sm:$0xff] }
 0x184   : > { %1954 = vmatmul.mubr.f32.gmra.mrb[12].mxu1 %v11810_v56 }
 0x185   : > { %9089 = vmatpush1.bf16.msra.mxu1 %v9088_v57  ;;  %1958 = vmatprep.mubr.f32.mxu1 %v11813_v60  ;;  %v1690_v57 = vld [vmem:[#allocation6 + $0x1b8] sm:$0xff] }
 0x186   : > { %9090 = vmatprep.subr.bf16.mxu1 %v13753_v1  ;;  %v9103_v12 = vpack.c.bf16 %v1690_v57, %v1689_v50  ;;  %v946_v50 = vld [vmem:[%s11661_s16 + $0xf0] sm:$0xff]  ;;  %v9109_v57 = vpack.c.bf16 %v1694_v39, %v1693_v36  ;;  %v1028_v36 = vld [vmem:[#allocation3 + $0x60] sm:$0xff]  ;;  %v1029_v39 = vld [vmem:[#allocation3 + $0x68] sm:$0xff] }
 0x187   : > { %980 = vst.msk [vmem:[#allocation2 + $0x9d8] sm:$0xff] %vm949_vm0, %v946_v50  ;;  %v9013_v43 = vpack.c.bf16 %v1029_v39, %v1028_v36  ;;  %v1699_v50 = vld [vmem:[#allocation6 + $0x200] sm:$0xff]  ;;  %v1702_v36 = vld [vmem:[#allocation6 + $0x218] sm:$0xff] }
 0x188   : > { %1959 = vmatmul.mubr.f32.gmra.mrb[14].mxu1 %v11819_v2  ;;  %v11897_v39 = vld [vmem:[#allocation2 + $0x620] sm:$0xff] }
 0x189   : > { %9092 = vmatpush1.bf16.msra.mxu1 %v9091_v3  ;;  %1963 = vmatprep.mubr.f32.mxu1 %v11822_v8  ;;  %v8997_v3 = vpack.c.bf16 %v1021_v62, %v1020_v59  ;;  %v1695_v59 = vld [vmem:[#allocation6 + $0x1e0] sm:$0xff]  ;;  %v1696_v62 = vld [vmem:[#allocation6 + $0x1e8] sm:$0xff] }
 0x18a   : > { %9093 = vmatprep.subr.bf16.mxu1 %v13753_v1  ;;  %v9112_v24 = vpack.c.bf16 %v1696_v62, %v1695_v59  ;;  %v1474_v59 = vld [vmem:[#allocation2 + $0x612] sm:$0xff] }
 0x18b   : > { %8998 = vmatprep.subr.bf16.mxu0 %v8997_v3  ;;  %v1030_v62 = vld [vmem:[#allocation3 + $0x70] sm:$0xff] }
 0x18c   : > { %1964 = vmatmul.mubr.f32.gmra.mrb[16].mxu1 %v11828_v15  ;;  %9000 = vmatpush3.bf16.msra.mxu0 %v8997_v3  ;;  %v1026_v3 = vld [vmem:[#allocation3 + $0x50] sm:$0xff] }
 0x18d   : > { %9095 = vmatpush1.bf16.msra.mxu1 %v9094_v17  ;;  %1968 = vmatprep.mubr.f32.mxu1 %v11831_v23  ;;  %v11857_v17 = vld [vmem:[#allocation2 + $0x818] sm:$0xff] }
 0x18e   : > { %9096 = vmatprep.subr.bf16.mxu1 %v13753_v1  ;;  %9002 = vmatprep.subr.bf16.mxu0 %v9001_v29 }
 0x190   : > { %1969 = vmatmul.mubr.f32.gmra.mrb[18].mxu1 %v11837_v33  ;;  %9004 = vmatpush3.bf16.msra.mxu0 %v9001_v29  ;;  %v1698_v29 = vld [vmem:[#allocation6 + $0x1f8] sm:$0xff] }
 0x191   : > { %9098 = vmatpush1.bf16.msra.mxu1 %v9097_v35  ;;  %1973 = vmatprep.mubr.f32.mxu1 %v11840_v40  ;;  %v9106_v35 = vpack.c.bf16 %v1692_v18, %v1691_v6  ;;  %v1027_v6 = vld [vmem:[#allocation3 + $0x58] sm:$0xff] }
 0x192   : > { %9099 = vmatprep.subr.bf16.mxu1 %v13753_v1  ;;  %9006 = vmatprep.subr.bf16.mxu0 %v9005_v47  ;;  %v947_v18 = vld [vmem:[%s11661_s16 + $0xf8] sm:$0xff]  ;;  %s13694_s16 = scalar_lea.sflag [#allocation5], %s396_s26 }
 0x193   : > { %981 = vst.msk [vmem:[#allocation2 + $0x9e0] sm:$0xff] %vm949_vm0, %v947_v18 }
 0x194   : > { %1974 = vmatmul.mubr.f32.gmra.mrb[20].mxu1 %v11846_v51  ;;  %9008 = vmatpush3.bf16.msra.mxu0 %v9005_v47  ;;  %v9115_v47 = vpack.c.bf16 %v1698_v29, %v1697_v26  ;;  %v1475_v26 = vld [vmem:[#allocation2 + $0x61a] sm:$0xff]  ;;  %v1701_v29 = vld [vmem:[#allocation6 + $0x210] sm:$0xff] }
 0x195   : > { %9101 = vmatpush1.bf16.msra.mxu1 %v9100_v53  ;;  %1978 = vmatprep.mubr.f32.mxu1 %v11848_v55  ;;  %v11873_v53 = vld [vmem:[#allocation2 + $0x81a] sm:$0xff] }
 0x196   : > { %9102 = vmatprep.subr.bf16.mxu1 %v13753_v1 }
 0x198   : > { %1979 = vmatmul.mubr.f32.gmra.mrb[22].mxu1 %v11855_v11 }
 0x199   : > { %9104 = vmatpush1.bf16.msra.mxu1 %v9103_v12  ;;  %1983 = vmatprep.mubr.f32.mxu1 %v11857_v17  ;;  %v9009_v12 = vpack.c.bf16 %v1027_v6, %v1026_v3  ;;  %v1031_v3 = vld [vmem:[#allocation3 + $0x78] sm:$0xff] }
 0x19a   : > { %9105 = vmatprep.subr.bf16.mxu1 %v13753_v1  ;;  %v9017_v6 = vpack.c.bf16 %v1031_v3, %v1030_v62  ;;  %v1704_v62 = vld [vmem:[#allocation6 + $0x228] sm:$0xff]  ;;  %v11906_v3 = vld [vmem:[#allocation2 + $0x660] sm:$0xff] }
 0x19b   : > { %9010 = vmatprep.subr.bf16.mxu0 %v9009_v12 }
 0x19c   : > { %1984 = vmatmul.mubr.f32.gmra.mrb[24].mxu1 %v11864_v31  ;;  %9012 = vmatpush3.bf16.msra.mxu0 %v9009_v12  ;;  %v1442_v12 = vld [vmem:[#allocation2 + $0x49e] sm:$0xff] }
 0x19d   : > { %9107 = vmatpush1.bf16.msra.mxu1 %v9106_v35  ;;  %1988 = vmatprep.mubr.f32.mxu1 %v11867_v42  ;;  %v11885_v35 = vld [vmem:[#allocation2 + $0x860] sm:$0xff] }
 0x19e   : > { %9108 = vmatprep.subr.bf16.mxu1 %v13753_v1  ;;  %9014 = vmatprep.subr.bf16.mxu0 %v9013_v43 }
 0x1a0   : > { %1989 = vmatmul.mubr.f32.gmra.mrb[26].mxu1 %v11873_v53  ;;  %9016 = vmatpush3.bf16.msra.mxu0 %v9013_v43  ;;  %v1443_v43 = vld [vmem:[#allocation2 + $0x4a6] sm:$0xff] }
 0x1a1   : > { %9110 = vmatpush1.bf16.msra.mxu1 %v9109_v57  ;;  %1993 = vmatprep.mubr.f32.mxu1 %v11876_v63  ;;  %v1700_v57 = vld [vmem:[#allocation6 + $0x208] sm:$0xff] }
 0x1a2   : > { %9111 = vmatprep.subr.bf16.mxu1 %v13753_v1  ;;  %v9118_v18 = vpack.c.bf16 %v1700_v57, %v1699_v50  ;;  %9018 = vmatprep.subr.bf16.mxu0 %v9017_v6  ;;  %v11900_v50 = vld [vmem:[#allocation2 + $0x658] sm:$0xff] }
 0x1a3   : > { %v1476_v57 = vld [vmem:[#allocation2 + $0x652] sm:$0xff] }
 0x1a4   : > { %1994 = vmatmul.mubr.f32.gmra.mrb[28].mxu1 %v11882_v20  ;;  %9020 = vmatpush3.bf16.msra.mxu0 %v9017_v6  ;;  %v1444_v6 = vld [vmem:[#allocation2 + $0x4de] sm:$0xff] }
 0x1a5   : > { %9113 = vmatpush1.bf16.msra.mxu1 %v9112_v24  ;;  %1998 = vmatprep.mubr.f32.mxu1 %v11885_v35  ;;  %v11893_v24 = vld [vmem:[#allocation2 + $0x618] sm:$0xff] }
 0x1a6   : > { %9114 = vmatprep.subr.bf16.mxu1 %v13753_v1  ;;  %8311 = vmatprep.mubr.f32.mxu0 %v11893_v24 }
 0x1a7   : > { %9021 = vmatprep.subr.bf16.mxu0 %v13753_v1  ;;  %8312 = vmatmul.mubr.f32.vlgmr.msra.gmra.mrb[0].mxu0 %v11897_v39 }
 0x1a8   : > { %1999 = vmatmul.mubr.f32.gmra.mrb[30].mxu1 %v11889_v46  ;;  %9023 = vmatpush1.bf16.msra.mxu0 %v11649_v5  ;;  %v1445_v5 = vld [vmem:[#allocation2 + $0x4e6] sm:$0xff] }
 0x1a9   : > { %9116 = vmatpush1.bf16.msra.mxu1 %v9115_v47  ;;  %2068 = vmatprep.mubr.f32.mxu1 %v1474_v59  ;;  %v9121_v47 = vpack.c.bf16 %v1702_v36, %v1701_v29  ;;  %v1703_v59 = vld [vmem:[#allocation6 + $0x220] sm:$0xff]  ;;  %v1706_v29 = vld [vmem:[#allocation6 + $0x238] sm:$0xff] }
 0x1aa   : > { %9117 = vmatprep.subr.bf16.mxu1 %v13753_v1  ;;  %8314 = vmatprep.mubr.f32.mxu0 %v11900_v50 }
 0x1ab   : > { %9024 = vmatprep.subr.bf16.mxu0 %v13753_v1  ;;  %8315 = vmatmul.mubr.f32.gmra.mrb[2].mxu0 %v11906_v3 }
 0x1ac   : > { %2069 = vmatmul.mubr.f32.vlgmr.msra.gmra.mrb[32].mxu1 %v1442_v12  ;;  %v9124_v12 = vpack.c.bf16 %v1704_v62, %v1703_v59  ;;  %9026 = vmatpush1.bf16.msra.mxu0 %v11652_v7  ;;  %v1446_v7 = vld [vmem:[#allocation2 + $0x51e] sm:$0xff] }
 0x1ad   : > { %9119 = vmatpush1.bf16.msra.mxu1 %v9118_v18  ;;  %2073 = vmatprep.mubr.f32.mxu1 %v1475_v26  ;;  %v1477_v18 = vld [vmem:[#allocation2 + $0x65a] sm:$0xff]  ;;  %v1705_v26 = vld [vmem:[#allocation6 + $0x230] sm:$0xff] }
 0x1ae   : > { %9120 = vmatprep.subr.bf16.mxu1 %v13753_v1  ;;  %8317 = vmatprep.mubr.f32.mxu0 %v11687_v27  ;;  %v9127_v36 = vpack.c.bf16 %v1706_v29, %v1705_v26  ;;  %v1710_v59 = vld [vmem:[#allocation6 + $0x258] sm:$0xff]  ;;  %v1725_v26 = vld [vmem:[#allocation6 + $0x2d0] sm:$0xff] }
 0x1af   : > { %9027 = vmatprep.subr.bf16.mxu0 %v13753_v1  ;;  %8318 = vmatmul.mubr.f32.gmra.mrb[4].mxu0 %v11763_v16  ;;  %v1711_v16 = vld [vmem:[#allocation6 + $0x260] sm:$0xff]  ;;  %v1722_v62 = vld [vmem:[#allocation6 + $0x2b8] sm:$0xff] }
 0x1b0   : > { %2074 = vmatmul.mubr.f32.gmra.mrb[34].mxu1 %v1443_v43  ;;  %v1707_v43 = vld [vmem:[#allocation6 + $0x240] sm:$0xff]  ;;  %9029 = vmatpush1.bf16.msra.mxu0 %v11656_v10  ;;  %v1726_v29 = vld [vmem:[#allocation6 + $0x2d8] sm:$0xff] }
 0x1b1   : > { %2078 = vmatprep.mubr.f32.mxu1 %v1476_v57  ;;  %9122 = vmatpush1.bf16.msra.mxu1 %v9121_v47  ;;  %v1708_v47 = vld [vmem:[#allocation6 + $0x248] sm:$0xff]  ;;  %v1709_v57 = vld [vmem:[#allocation6 + $0x250] sm:$0xff] }
 0x1b2   : > { %9123 = vmatprep.subr.bf16.mxu1 %v13753_v1  ;;  %8320 = vmatprep.mubr.f32.mxu0 %v11770_v22  ;;  %v9130_v27 = vpack.c.bf16 %v1708_v47, %v1707_v43  ;;  %v1447_v10 = vld [vmem:[#allocation2 + $0x526] sm:$0xff] }
 0x1b3   : > { %9030 = vmatprep.subr.bf16.mxu0 %v13753_v1  ;;  %8321 = vmatmul.mubr.f32.gmra.mrb[6].mxu0 %v11777_v30  ;;  %v1712_v22 = vld [vmem:[#allocation6 + $0x268] sm:$0xff]  ;;  %v1713_v30 = vld [vmem:[#allocation6 + $0x270] sm:$0xff]  ;;  %v1727_v43 = vld [vmem:[#allocation6 + $0x2e0] sm:$0xff] }
 0x1b4   : > { %2079 = vmatmul.mubr.f32.gmra.mrb[36].mxu1 %v1444_v6  ;;  %9032 = vmatpush1.bf16.msra.mxu0 %v11666_v14  ;;  %v1448_v14 = vld [vmem:[#allocation2 + $0x55e] sm:$0xff] }
 0x1b5   : > { %2083 = vmatprep.mubr.f32.mxu1 %v1477_v18  ;;  %9125 = vmatpush1.bf16.msra.mxu1 %v9124_v12  ;;  %v1723_v6 = vld [vmem:[#allocation6 + $0x2c0] sm:$0xff]  ;;  %v11978_v18 = vld [vmem:[#allocation2 + $0x918] sm:$0xff] }
 0x1b6   : > { %9126 = vmatprep.subr.bf16.mxu1 %v13753_v1  ;;  %8323 = vmatprep.mubr.f32.mxu0 %v11786_v38  ;;  %v1714_v38 = vld [vmem:[#allocation6 + $0x278] sm:$0xff]  ;;  %v11998_v47 = vld [vmem:[#allocation2 + $0x960] sm:$0xff] }
 0x1b7   : > { %9033 = vmatprep.subr.bf16.mxu0 %v13753_v1  ;;  %8324 = vmatmul.mubr.f32.gmra.mrb[8].mxu0 %v11795_v45  ;;  %v1715_v45 = vld [vmem:[#allocation6 + $0x280] sm:$0xff] }
 0x1b8   : > { %2084 = vmatmul.mubr.f32.gmra.mrb[38].mxu1 %v1445_v5  ;;  %9035 = vmatpush1.bf16.msra.mxu0 %v11678_v21  ;;  %v1449_v21 = vld [vmem:[#allocation2 + $0x566] sm:$0xff]  ;;  %v9157_v5 = vpack.c.bf16 %v1726_v29, %v1725_v26  ;;  %v12076_v26 = vld [vmem:[#allocation2 + $0x7de] sm:$0xff] }
 0x1b9   : > { %2088 = vmatprep.mubr.f32.mxu1 %v11760_v13  ;;  %9128 = vmatpush1.bf16.msra.mxu1 %v9127_v36  ;;  %v9133_v13 = vpack.c.bf16 %v1710_v59, %v1709_v57  ;;  %v11991_v36 = vld [vmem:[#allocation2 + $0x958] sm:$0xff]  ;;  %v1729_v57 = vld [vmem:[#allocation6 + $0x2f0] sm:$0xff]  ;;  %v12011_v59 = vld [vmem:[#allocation2 + $0x9a0] sm:$0xff] }
 0x1ba   : > { %9129 = vmatprep.subr.bf16.mxu1 %v13753_v1  ;;  %8326 = vmatprep.mubr.f32.mxu0 %v11804_v52  ;;  %v1716_v52 = vld [vmem:[#allocation6 + $0x288] sm:$0xff]  ;;  %v1501_v29 = vld [vmem:[#allocation2 + $0x95a] sm:$0xff] }
 0x1bb   : > { %9036 = vmatprep.subr.bf16.mxu0 %v13753_v1  ;;  %8327 = vmatmul.mubr.f32.gmra.mrb[10].mxu0 %v11813_v60  ;;  %v1717_v60 = vld [vmem:[#allocation6 + $0x290] sm:$0xff] }
 0x1bc   : > { %2089 = vmatmul.mubr.f32.gmra.mrb[40].mxu1 %v1446_v7  ;;  %9038 = vmatpush1.bf16.msra.mxu0 %v11691_v28  ;;  %v1450_v28 = vld [vmem:[#allocation2 + $0x59e] sm:$0xff] }
 0x1bd   : > { %2093 = vmatprep.mubr.f32.mxu1 %v11767_v19  ;;  %9131 = vmatpush1.bf16.msra.mxu1 %v9130_v27  ;;  %v9136_v19 = vpack.c.bf16 %v1712_v22, %v1711_v16  ;;  %v12004_v27 = vld [vmem:[#allocation2 + $0x998] sm:$0xff]  ;;  %v12038_v22 = vld [vmem:[#allocation2 + $0x6a6] sm:$0xff] }
 0x1be   : > { %9132 = vmatprep.subr.bf16.mxu1 %v13753_v1  ;;  %8329 = vmatprep.mubr.f32.mxu0 %v11822_v8  ;;  %v1718_v8 = vld [vmem:[#allocation6 + $0x298] sm:$0xff] }
 0x1bf   : > { %9039 = vmatprep.subr.bf16.mxu0 %v13753_v1  ;;  %8330 = vmatmul.mubr.f32.gmra.mrb[12].mxu0 %v11831_v23  ;;  %v1719_v23 = vld [vmem:[#allocation6 + $0x2a0] sm:$0xff]  ;;  %v1378_v16 = vld [vmem:[#allocation2 + $0x492] sm:$0xff] }
 0x1c0   : > { %2094 = vmatmul.mubr.f32.gmra.mrb[42].mxu1 %v1447_v10  ;;  %9041 = vmatpush1.bf16.msra.mxu0 %v11698_v32  ;;  %v1451_v32 = vld [vmem:[#allocation2 + $0x5a6] sm:$0xff] }
 0x1c1   : > { %2098 = vmatprep.mubr.f32.mxu1 %v11774_v25  ;;  %9134 = vmatpush1.bf16.msra.mxu1 %v9133_v13  ;;  %v9139_v25 = vpack.c.bf16 %v1714_v38, %v1713_v30  ;;  %v12017_v13 = vld [vmem:[#allocation2 + $0x9d8] sm:$0xff] }
 0x1c2   : > { %9135 = vmatprep.subr.bf16.mxu1 %v13753_v1  ;;  %8332 = vmatprep.mubr.f32.mxu0 %v11840_v40  ;;  %v1720_v40 = vld [vmem:[#allocation6 + $0x2a8] sm:$0xff]  ;;  %v1381_v30 = vld [vmem:[#allocation2 + $0x4da] sm:$0xff] }
 0x1c3   : > { %9042 = vmatprep.subr.bf16.mxu0 %v13753_v1  ;;  %8333 = vmatmul.mubr.f32.gmra.mrb[14].mxu0 %v11848_v55  ;;  %v11956_v55 = vld [vmem:[#allocation2 + $0x898] sm:$0xff] }
 0x1c4   : > { %2099 = vmatmul.mubr.f32.gmra.mrb[44].mxu1 %v1448_v14  ;;  %9044 = vmatpush1.bf16.msra.mxu0 %v11705_v37  ;;  %v1452_v37 = vld [vmem:[#allocation2 + $0x5de] sm:$0xff]  ;;  %v1380_v14 = vld [vmem:[#allocation2 + $0x4d2] sm:$0xff] }
 0x1c5   : > { %2103 = vmatprep.mubr.f32.mxu1 %v11783_v34  ;;  %9137 = vmatpush1.bf16.msra.mxu1 %v9136_v19  ;;  %v9142_v34 = vpack.c.bf16 %v1716_v52, %v1715_v45  ;;  %v1494_v19 = vld [vmem:[#allocation2 + $0x892] sm:$0xff]  ;;  %v1495_v38 = vld [vmem:[#allocation2 + $0x89a] sm:$0xff] }
 0x1c6   : > { %9138 = vmatprep.subr.bf16.mxu1 %v13753_v1  ;;  %8335 = vmatprep.mubr.f32.mxu0 %v11857_v17  ;;  %v1721_v17 = vld [vmem:[#allocation6 + $0x2b0] sm:$0xff]  ;;  %v1383_v45 = vld [vmem:[#allocation2 + $0x51a] sm:$0xff] }
 0x1c7   : > { %9045 = vmatprep.subr.bf16.mxu0 %v13753_v1  ;;  %8336 = vmatmul.mubr.f32.gmra.mrb[16].mxu0 %v11867_v42  ;;  %v9151_v42 = vpack.c.bf16 %v1722_v62, %v1721_v17  ;;  %v12060_v52 = vld [vmem:[#allocation2 + $0x75e] sm:$0xff]  ;;  %v1386_v17 = vld [vmem:[#allocation2 + $0x592] sm:$0xff]  ;;  %v12072_v62 = vld [vmem:[#allocation2 + $0x7a6] sm:$0xff] }
 0x1c8   : > { %2104 = vmatmul.mubr.f32.gmra.mrb[46].mxu1 %v1449_v21  ;;  %9047 = vmatpush1.bf16.msra.mxu0 %v11717_v44  ;;  %v11962_v44 = vld [vmem:[#allocation2 + $0x8a0] sm:$0xff]  ;;  %v1382_v21 = vld [vmem:[#allocation2 + $0x512] sm:$0xff] }
 0x1c9   : > { %2108 = vmatprep.mubr.f32.mxu1 %v11792_v41  ;;  %9140 = vmatpush1.bf16.msra.mxu1 %v9139_v25  ;;  %v9145_v41 = vpack.c.bf16 %v1718_v8, %v1717_v60  ;;  %v1496_v25 = vld [vmem:[#allocation2 + $0x8d2] sm:$0xff]  ;;  %v12064_v60 = vld [vmem:[#allocation2 + $0x766] sm:$0xff] }
 0x1ca   : > { %9141 = vmatprep.subr.bf16.mxu1 %v13753_v1  ;;  %8338 = vmatprep.mubr.f32.mxu0 %v11876_v63  ;;  %v11966_v63 = vld [vmem:[#allocation2 + $0x8d8] sm:$0xff] }
 0x1cb   : > { %9048 = vmatprep.subr.bf16.mxu0 %v13753_v1  ;;  %8339 = vmatmul.mubr.f32.gmra.mrb[18].mxu0 %v11885_v35  ;;  %v1724_v35 = vld [vmem:[#allocation6 + $0x2c8] sm:$0xff]  ;;  %v1498_v8 = vld [vmem:[#allocation2 + $0x912] sm:$0xff] }
 0x1cc   : > { %2109 = vmatmul.mubr.f32.gmra.mrb[48].mxu1 %v1450_v28  ;;  %9050 = vmatpush1.bf16.msra.mxu0 %v11726_v49  ;;  %v11972_v49 = vld [vmem:[#allocation2 + $0x8e0] sm:$0xff]  ;;  %v9154_v12 = vpack.c.bf16 %v1724_v35, %v1723_v6  ;;  %v1766_v6 = vld [vmem:[#allocation6 + $0x418] sm:$0xff] }
 0x1cd   : > { %2113 = vmatprep.mubr.f32.mxu1 %v11801_v48  ;;  %9143 = vmatpush1.bf16.msra.mxu1 %v9142_v34  ;;  %v9148_v48 = vpack.c.bf16 %v1720_v40, %v1719_v23  ;;  %v1497_v28 = vld [vmem:[#allocation2 + $0x8da] sm:$0xff]  ;;  %v1384_v34 = vld [vmem:[#allocation2 + $0x552] sm:$0xff] }
 0x1ce   : > { %9144 = vmatprep.subr.bf16.mxu1 %v13753_v1  ;;  %8341 = vmatprep.mubr.f32.mxu0 %v11956_v55  ;;  %v1499_v23 = vld [vmem:[#allocation2 + $0x91a] sm:$0xff] }
 0x1cf   : > { %9051 = vmatprep.subr.bf16.mxu0 %v13753_v1  ;;  %8342 = vmatmul.mubr.f32.gmra.mrb[20].mxu0 %v11962_v44  ;;  %v1763_v40 = vld [vmem:[#allocation6 + $0x400] sm:$0xff] }
 0x1d0   : > { %2114 = vmatmul.mubr.f32.gmra.mrb[50].mxu1 %v1451_v32  ;;  %9053 = vmatpush1.bf16.msra.mxu0 %v11733_v54  ;;  %v11985_v54 = vld [vmem:[#allocation2 + $0x920] sm:$0xff] }
 0x1d1   : > { %2118 = vmatprep.mubr.f32.mxu1 %v11810_v56  ;;  %9146 = vmatpush1.bf16.msra.mxu1 %v9145_v41  ;;  %v1453_v56 = vld [vmem:[#allocation2 + $0x5e6] sm:$0xff]  ;;  %v1385_v32 = vld [vmem:[#allocation2 + $0x55a] sm:$0xff] }
 0x1d2   : > { %9147 = vmatprep.subr.bf16.mxu1 %v13753_v1  ;;  %8344 = vmatprep.mubr.f32.mxu0 %v11966_v63  ;;  %v12068_v41 = vld [vmem:[#allocation2 + $0x79e] sm:$0xff] }
 0x1d3   : > { %9054 = vmatprep.subr.bf16.mxu0 %v13753_v1  ;;  %8345 = vmatmul.mubr.f32.gmra.mrb[22].mxu0 %v11972_v49 }
 0x1d4   : > { %2119 = vmatmul.mubr.f32.gmra.mrb[52].mxu1 %v1452_v37  ;;  %9056 = vmatpush1.bf16.msra.mxu0 %v11740_v58  ;;  %v1728_v58 = vld [vmem:[#allocation6 + $0x2e8] sm:$0xff] }
 0x1d5   : > { %2123 = vmatprep.mubr.f32.mxu1 %v11819_v2  ;;  %9149 = vmatpush1.bf16.msra.mxu1 %v9148_v48  ;;  %v11976_v2 = vld [vmem:[#allocation2 + $0x61e] sm:$0xff]  ;;  %v9160_v7 = vpack.c.bf16 %v1728_v58, %v1727_v43  ;;  %v1764_v37 = vld [vmem:[#allocation6 + $0x408] sm:$0xff] }
 0x1d6   : > { %9150 = vmatprep.subr.bf16.mxu1 %v13753_v1  ;;  %8347 = vmatprep.mubr.f32.mxu0 %v11978_v18  ;;  %v9213_v48 = vpack.c.bf16 %v1764_v37, %v1763_v40  ;;  %v1768_v43 = vld [vmem:[#allocation6 + $0x428] sm:$0xff]  ;;  %v1391_v40 = vld [vmem:[#allocation2 + $0x61a] sm:$0xff] }
 0x1d7   : > { %9057 = vmatprep.subr.bf16.mxu0 %v13753_v1  ;;  %8348 = vmatmul.mubr.f32.gmra.mrb[24].mxu0 %v11985_v54  ;;  %v12092_v37 = vld [vmem:[#allocation2 + $0x85e] sm:$0xff] }
 0x1d8   : > { %2124 = vmatmul.mubr.f32.gmra.mrb[54].mxu1 %v1453_v56  ;;  %9059 = vmatpush1.bf16.msra.mxu0 %v11744_v61  ;;  %v1730_v61 = vld [vmem:[#allocation6 + $0x2f8] sm:$0xff] }
 0x1d9   : > { %2128 = vmatprep.mubr.f32.mxu1 %v11828_v15  ;;  %9152 = vmatpush1.bf16.msra.mxu1 %v9151_v42  ;;  %v11989_v15 = vld [vmem:[#allocation2 + $0x626] sm:$0xff]  ;;  %v9163_v10 = vpack.c.bf16 %v1730_v61, %v1729_v57  ;;  %v1500_v56 = vld [vmem:[#allocation2 + $0x952] sm:$0xff] }
 0x1da   : > { %9153 = vmatprep.subr.bf16.mxu1 %v13753_v1  ;;  %8350 = vmatprep.mubr.f32.mxu0 %v11991_v36  ;;  %v1765_v42 = vld [vmem:[#allocation6 + $0x410] sm:$0xff]  ;;  %v12080_v57 = vld [vmem:[#allocation2 + $0x7e6] sm:$0xff] }
 0x1db   : > { %9060 = vmatprep.subr.bf16.mxu0 %v13753_v1  ;;  %8351 = vmatmul.mubr.f32.gmra.mrb[26].mxu0 %v11998_v47  ;;  %v9217_v35 = vpack.c.bf16 %v1766_v6, %v1765_v42  ;;  %v1502_v61 = vld [vmem:[#allocation2 + $0x992] sm:$0xff] }
 0x1dc   : > { %2129 = vmatmul.mubr.f32.gmra.mrb[56].mxu1 %v11976_v2  ;;  %9062 = vmatpush1.bf16.msra.mxu0 %v11748_v0  ;;  %v12024_v0 = vld [vmem:[#allocation2 + $0x9e0] sm:$0xff]  ;;  %v1392_v6 = vld [vmem:[#allocation2 + $0x652] sm:$0xff] }
 0x1dd   : > { %2133 = vmatprep.mubr.f32.mxu1 %v11837_v33  ;;  %9155 = vmatpush1.bf16.msra.mxu1 %v9154_v12  ;;  %v12002_v33 = vld [vmem:[#allocation2 + $0x65e] sm:$0xff] }
 0x1de   : > { %9156 = vmatprep.subr.bf16.mxu1 %v13753_v1  ;;  %8353 = vmatprep.mubr.f32.mxu0 %v12004_v27  ;;  %v1387_v12 = vld [vmem:[#allocation2 + $0x59a] sm:$0xff] }
 0x1df   : > { %9063 = vmatprep.subr.bf16.mxu0 %v13753_v1  ;;  %8354 = vmatmul.mubr.f32.gmra.mrb[28].mxu0 %v12011_v59 }
 0x1e0   : > { %2134 = vmatmul.mubr.f32.gmra.mrb[58].mxu1 %v11989_v15  ;;  %9065 = vmatpush1.bf16.msra.mxu0 %v11752_v4  ;;  %v12033_v4 = vld [vmem:[#allocation2] sm:$0xff] }
 0x1e1   : > { %2138 = vmatprep.mubr.f32.mxu1 %v11846_v51  ;;  %9158 = vmatpush1.bf16.msra.mxu1 %v9157_v5  ;;  %v12015_v51 = vld [vmem:[#allocation2 + $0x666] sm:$0xff] }
 0x1e2   : > { %9159 = vmatprep.subr.bf16.mxu1 %v13753_v1  ;;  %8356 = vmatprep.mubr.f32.mxu0 %v12017_v13  ;;  %v1767_v5 = vld [vmem:[#allocation6 + $0x420] sm:$0xff] }
 0x1e3   : > { %9066 = vmatprep.subr.bf16.mxu0 %v13753_v1  ;;  %8357 = vmatmul.mubr.f32.gmra.mrb[30].mxu0 %v12024_v0  ;;  %v9221_v58 = vpack.c.bf16 %v1768_v43, %v1767_v5  ;;  %v1777_v5 = vld [vmem:[#allocation6 + $0x470] sm:$0xff]  ;;  %v1778_v43 = vld [vmem:[#allocation6 + $0x478] sm:$0xff] }
 0x1e4   : > { %2139 = vmatmul.mubr.f32.gmra.mrb[60].mxu1 %v12002_v33  ;;  %9068 = vmatpush1.bf16.msra.mxu0 %v11756_v9  ;;  %v12043_v9 = vld [vmem:[#allocation2 + $0x6de] sm:$0xff] }
 0x1e5   : > { %2143 = vmatprep.mubr.f32.mxu1 %v11855_v11  ;;  %9161 = vmatpush1.bf16.msra.mxu1 %v9160_v7  ;;  %v12028_v11 = vld [vmem:[#allocation2 + $0x69e] sm:$0xff]  ;;  %v1388_v7 = vld [vmem:[#allocation2 + $0x5d2] sm:$0xff] }
 0x1e6   : > { %9162 = vmatprep.subr.bf16.mxu1 %v13753_v1  ;;  %1843 = vmatprep.mubr.f32.mxu0 %v12033_v4 }
 0x1e7   : > { %1844 = vmatmul.mubr.f32.vlgmr.msra.gmra.mrb[32].mxu0 %v1378_v16  ;;  %9214 = vmatprep.subr.bf16.mxu0 %v9213_v48  ;;  %v1770_v16 = vld [vmem:[#allocation6 + $0x438] sm:$0xff] }
 0x1e8   : > { %2144 = vmatmul.mubr.f32.gmra.mrb[62].mxu1 %v12015_v51  ;;  %1848 = vmatprep.mubr.f32.mxu0 %v12033_v4 }
 0x1e9   : > { %2148 = vmatprep.mubr.f32.mxu1 %v11864_v31  ;;  %9164 = vmatpush1.bf16.msra.mxu1 %v9163_v10  ;;  %v1379_v31 = vld [vmem:[#allocation2 + $0x49a] sm:$0xff]  ;;  %v1769_v10 = vld [vmem:[#allocation6 + $0x430] sm:$0xff] }
 0x1ea   : > { %9165 = vmatprep.subr.bf16.mxu1 %v13753_v1  ;;  %9216 = vmatpush3.bf16.msra.mxu0 %v9213_v48  ;;  %v1505_v48 = vld [vmem:[#allocation2 + $0x9da] sm:$0xff] }
 0x1eb   : > { %1849 = vmatmul.mubr.f32.gmra.mrb[34].mxu0 %v1379_v31  ;;  %9218 = vmatprep.subr.bf16.mxu0 %v9217_v35  ;;  %v9225_v31 = vpack.c.bf16 %v1770_v16, %v1769_v10  ;;  %v1733_v10 = vld [vmem:[#allocation6 + $0x310] sm:$0xff]  ;;  %v1734_v16 = vld [vmem:[#allocation6 + $0x318] sm:$0xff] }
 0x1ec   : > { %2149 = vmatmul.mubr.f32.gmra.mrb[0].mxu1 %v12028_v11  ;;  %1853 = vmatprep.mubr.f32.mxu0 %v12033_v4 }
 0x1ed   : > { %2153 = vmatprep.mubr.f32.mxu1 %v11873_v53  ;;  %v12048_v53 = vld [vmem:[#allocation2 + $0x6e6] sm:$0xff] }
 0x1ee   : > { %9220 = vmatpush3.bf16.msra.mxu0 %v9217_v35  ;;  %v12096_v35 = vld [vmem:[#allocation2 + $0x866] sm:$0xff] }
 0x1ef   : > { %1854 = vmatmul.mubr.f32.gmra.mrb[36].mxu0 %v1380_v14  ;;  %9222 = vmatprep.subr.bf16.mxu0 %v9221_v58  ;;  %v1389_v14 = vld [vmem:[#allocation2 + $0x5da] sm:$0xff] }
 0x1f0   : > { %2154 = vmatmul.mubr.f32.gmra.mrb[2].mxu1 %v12038_v22  ;;  %1858 = vmatprep.mubr.f32.mxu0 %v12033_v4 }
 0x1f1   : > { %2158 = vmatprep.mubr.f32.mxu1 %v11882_v20  ;;  %v12052_v20 = vld [vmem:[#allocation2 + $0x71e] sm:$0xff] }
 0x1f2   : > { %9224 = vmatpush3.bf16.msra.mxu0 %v9221_v58  ;;  %v9241_v58 = vpack.c.bf16 %v1778_v43, %v1777_v5  ;;  %v1748_v5 = vld [vmem:[#allocation6 + $0x388] sm:$0xff]  ;;  %v12143_v43 = vld [vmem:[#allocation2 + $0x95e] sm:$0xff] }
 0x1f3   : > { %1859 = vmatmul.mubr.f32.gmra.mrb[38].mxu0 %v1381_v30  ;;  %9226 = vmatprep.subr.bf16.mxu0 %v9225_v31  ;;  %v1503_v30 = vld [vmem:[#allocation2 + $0x99a] sm:$0xff] }
 0x1f4   : > { %2159 = vmatmul.mubr.f32.gmra.mrb[4].mxu1 %v12043_v9  ;;  %1863 = vmatprep.mubr.f32.mxu0 %v12033_v4 }
 0x1f5   : > { %2163 = vmatprep.mubr.f32.mxu1 %v11889_v46  ;;  %v12056_v46 = vld [vmem:[#allocation2 + $0x726] sm:$0xff] }
 0x1f6   : > { %9228 = vmatpush3.bf16.msra.mxu0 %v9225_v31  ;;  %v1603_v31 = vld [vmem:[#allocation2 + $0x79e] sm:$0xff] }
 0x1f7   : > { %1864 = vmatmul.mubr.f32.gmra.mrb[40].mxu0 %v1382_v21  ;;  %v1772_v21 = vld [vmem:[#allocation6 + $0x448] sm:$0xff] }
 0x1f8   : > { %2164 = vmatmul.mubr.f32.gmra.mrb[6].mxu1 %v12048_v53  ;;  %1868 = vmatprep.mubr.f32.mxu0 %v12033_v4 }
 0x1f9   : > { %2168 = vmatprep.mubr.f32.mxu1 %v1494_v19  ;;  %v12084_v19 = vld [vmem:[#allocation2 + $0x81e] sm:$0xff] }
 0x1fb   : > { %1869 = vmatmul.mubr.f32.gmra.mrb[42].mxu0 %v1383_v45  ;;  %v1390_v45 = vld [vmem:[#allocation2 + $0x612] sm:$0xff] }
 0x1fc   : > { %2169 = vmatmul.mubr.f32.gmra.mrb[8].mxu1 %v12052_v20  ;;  %1873 = vmatprep.mubr.f32.mxu0 %v12033_v4 }
 0x1fd   : > { %2173 = vmatprep.mubr.f32.mxu1 %v1495_v38  ;;  %v1771_v38 = vld [vmem:[#allocation6 + $0x440] sm:$0xff] }
 0x1ff   : > { %1874 = vmatmul.mubr.f32.gmra.mrb[44].mxu0 %v1384_v34  ;;  %v1504_v34 = vld [vmem:[#allocation2 + $0x9d2] sm:$0xff] }
 0x200   : > { %2174 = vmatmul.mubr.f32.gmra.mrb[10].mxu1 %v12056_v46  ;;  %1878 = vmatprep.mubr.f32.mxu0 %v12033_v4 }
 0x201   : > { %2178 = vmatprep.mubr.f32.mxu1 %v1496_v25  ;;  %v9229_v25 = vpack.c.bf16 %v1772_v21, %v1771_v38  ;;  %v1736_v38 = vld [vmem:[#allocation6 + $0x328] sm:$0xff]  ;;  %v1738_v21 = vld [vmem:[#allocation6 + $0x338] sm:$0xff] }
 0x203   : > { %1879 = vmatmul.mubr.f32.gmra.mrb[46].mxu0 %v1385_v32  ;;  %9230 = vmatprep.subr.bf16.mxu0 %v9229_v25  ;;  %v1774_v32 = vld [vmem:[#allocation6 + $0x458] sm:$0xff] }
 0x204   : > { %2179 = vmatmul.mubr.f32.gmra.mrb[12].mxu1 %v12060_v52  ;;  %1883 = vmatprep.mubr.f32.mxu0 %v12033_v4 }
 0x205   : > { %2183 = vmatprep.mubr.f32.mxu1 %v1497_v28  ;;  %v12088_v28 = vld [vmem:[#allocation2 + $0x826] sm:$0xff]  ;;  %9232 = vmatpush3.bf16.msra.mxu0 %v9229_v25 }
 0x207   : > { %1884 = vmatmul.mubr.f32.gmra.mrb[48].mxu0 %v1386_v17  ;;  %v1775_v17 = vld [vmem:[#allocation6 + $0x460] sm:$0xff] }
 0x208   : > { %2184 = vmatmul.mubr.f32.gmra.mrb[14].mxu1 %v12064_v60  ;;  %1888 = vmatprep.mubr.f32.mxu0 %v12033_v4 }
 0x209   : > { %2188 = vmatprep.mubr.f32.mxu1 %v1498_v8  ;;  %v1773_v8 = vld [vmem:[#allocation6 + $0x450] sm:$0xff] }
 0x20b   : > { %1889 = vmatmul.mubr.f32.gmra.mrb[50].mxu0 %v1387_v12  ;;  %v1731_v12 = vld [vmem:[#allocation6 + $0x300] sm:$0xff] }
 0x20c   : > { %2189 = vmatmul.mubr.f32.gmra.mrb[16].mxu1 %v12068_v41  ;;  %1893 = vmatprep.mubr.f32.mxu0 %v12033_v4 }
 0x20d   : > { %2193 = vmatprep.mubr.f32.mxu1 %v1499_v23  ;;  %v9233_v23 = vpack.c.bf16 %v1774_v32, %v1773_v8  ;;  %v12124_v8 = vld [vmem:[#allocation2 + $0x8a6] sm:$0xff] }
 0x20e   : > { %v1744_v32 = vld [vmem:[#allocation6 + $0x368] sm:$0xff] }
 0x20f   : > { %1894 = vmatmul.mubr.f32.gmra.mrb[52].mxu0 %v1388_v7  ;;  %9234 = vmatprep.subr.bf16.mxu0 %v9233_v23  ;;  %v1393_v7 = vld [vmem:[#allocation2 + $0x65a] sm:$0xff] }
 0x210   : > { %2194 = vmatmul.mubr.f32.gmra.mrb[18].mxu1 %v12072_v62  ;;  %1898 = vmatprep.mubr.f32.mxu0 %v12033_v4 }
 0x211   : > { %2198 = vmatprep.mubr.f32.mxu1 %v1500_v56  ;;  %v1776_v56 = vld [vmem:[#allocation6 + $0x468] sm:$0xff]  ;;  %9236 = vmatpush3.bf16.msra.mxu0 %v9233_v23  ;;  %v12127_v23 = vld [vmem:[#allocation2 + $0x8de] sm:$0xff] }
 0x212   : > { %v9237_v42 = vpack.c.bf16 %v1776_v56, %v1775_v17  ;;  %v1745_v17 = vld [vmem:[#allocation6 + $0x370] sm:$0xff]  ;;  %v1746_v56 = vld [vmem:[#allocation6 + $0x378] sm:$0xff] }
 0x213   : > { %1899 = vmatmul.mubr.f32.gmra.mrb[54].mxu0 %v1389_v14  ;;  %v9169_v14 = vpack.c.bf16 %v1734_v16, %v1733_v10  ;;  %v1750_v10 = vld [vmem:[#allocation6 + $0x398] sm:$0xff] }
 0x214   : > { %2199 = vmatmul.mubr.f32.gmra.mrb[20].mxu1 %v12076_v26  ;;  %1903 = vmatprep.mubr.f32.mxu0 %v11893_v24  ;;  %v12151_v16 = vld [vmem:[#allocation2 + $0x99e] sm:$0xff] }
 0x215   : > { %2203 = vmatprep.mubr.f32.mxu1 %v1501_v29  ;;  %9238 = vmatprep.subr.bf16.mxu0 %v9237_v42  ;;  %v1732_v29 = vld [vmem:[#allocation6 + $0x308] sm:$0xff] }
 0x216   : > { %9240 = vmatpush3.bf16.msra.mxu0 %v9237_v42  ;;  %v12135_v42 = vld [vmem:[#allocation2 + $0x91e] sm:$0xff] }
 0x217   : > { %1904 = vmatmul.mubr.f32.gmra.mrb[56].mxu0 %v1390_v45  ;;  %9242 = vmatprep.subr.bf16.mxu0 %v9241_v58  ;;  %v12119_v45 = vld [vmem:[#allocation2 + $0x89e] sm:$0xff] }
 0x218   : > { %2204 = vmatmul.mubr.f32.gmra.mrb[22].mxu1 %v12080_v57  ;;  %1908 = vmatprep.mubr.f32.mxu0 %v11897_v39 }
 0x219   : > { %2208 = vmatprep.mubr.f32.mxu1 %v1502_v61  ;;  %v9166_v61 = vpack.c.bf16 %v1732_v29, %v1731_v12  ;;  %v12140_v12 = vld [vmem:[#allocation2 + $0x926] sm:$0xff] }
 0x21a   : > { %9244 = vmatpush3.bf16.msra.mxu0 %v9241_v58  ;;  %v1747_v29 = vld [vmem:[#allocation6 + $0x380] sm:$0xff] }
 0x21b   : > { %1909 = vmatmul.mubr.f32.gmra.mrb[58].mxu0 %v1391_v40  ;;  %v10656_v40 = vld [vmem:[#allocation2 + $0x6a0] sm:$0xff] }
 0x21c   : > { %2209 = vmatmul.mubr.f32.gmra.mrb[24].mxu1 %v12084_v19  ;;  %1913 = vmatprep.mubr.f32.mxu0 %v11900_v50  ;;  %v10658_v58 = vld [vmem:[#allocation2 + $0x6e0] sm:$0xff] }
 0x21d   : > { %2213 = vmatprep.mubr.f32.mxu1 %v1503_v30  ;;  %v1735_v30 = vld [vmem:[#allocation6 + $0x320] sm:$0xff] }
 0x21f   : > { %1914 = vmatmul.mubr.f32.gmra.mrb[60].mxu0 %v1392_v6  ;;  %v10657_v6 = vld [vmem:[#allocation2 + $0x6d8] sm:$0xff] }
 0x220   : > { %2214 = vmatmul.mubr.f32.gmra.mrb[26].mxu1 %v12088_v28  ;;  %1918 = vmatprep.mubr.f32.mxu0 %v11906_v3 }
 0x221   : > { %2218 = vmatprep.mubr.f32.mxu1 %v1504_v34  ;;  %v10655_v34 = vld [vmem:[#allocation2 + $0x698] sm:$0xff] }
 0x223   : > { %1919 = vmatmul.mubr.f32.gmra.mrb[62].mxu0 %v1393_v7  ;;  %v12148_v7 = vld [vmem:[#allocation2 + $0x966] sm:$0xff] }
 0x224   : > { %2219 = vmatmul.mubr.f32.gmra.mrb[28].mxu1 %v12092_v37  ;;  %8391 = vmatprep.mubr.f32.mxu0 %v1603_v31  ;;  %v10659_v31 = vld [vmem:[#allocation2 + $0x718] sm:$0xff] }
 0x225   : > { %2223 = vmatprep.mubr.f32.mxu1 %v1505_v48  ;;  %v12132_v48 = vld [vmem:[#allocation2 + $0x8e6] sm:$0xff] }
 0x227   : > { %8392 = vmatmul.mubr.f32.vlgmr.msra.gmra.mrb[64].mxu0 %v12072_v62 }
 0x228   : > { %2224 = vmatmul.mubr.f32.gmra.mrb[30].mxu1 %v12096_v35  ;;  %8394 = vmatprep.mubr.f32.mxu0 %v12076_v26 }
 0x229   : > { %2293 = vmatprep.mubr.f32.mxu1 %v11976_v2  ;;  %v9172_v2 = vpack.c.bf16 %v1736_v38, %v1735_v30  ;;  %v1751_v30 = vld [vmem:[#allocation6 + $0x3a0] sm:$0xff]  ;;  %v1752_v38 = vld [vmem:[#allocation6 + $0x3a8] sm:$0xff] }
 0x22b   : > { %8395 = vmatmul.mubr.f32.gmra.mrb[66].mxu0 %v12080_v57 }
 0x22c   : > { %2294 = vmatmul.mubr.f32.vlgmr.msra.gmra.mrb[32].mxu1 %v11893_v24  ;;  %v1737_v24 = vld [vmem:[#allocation6 + $0x330] sm:$0xff]  ;;  %8397 = vmatprep.mubr.f32.mxu0 %v12084_v19 }
 0x22d   : > { %9167 = vmatpush1.bf16.msra.mxu1 %v9166_v61  ;;  %2298 = vmatprep.mubr.f32.mxu1 %v11989_v15  ;;  %v9175_v15 = vpack.c.bf16 %v1738_v21, %v1737_v24  ;;  %v1749_v61 = vld [vmem:[#allocation6 + $0x390] sm:$0xff]  ;;  %v10660_v24 = vld [vmem:[#allocation2 + $0x720] sm:$0xff] }
 0x22e   : > { %9168 = vmatprep.subr.bf16.mxu1 %v13753_v1  ;;  %v12164_v21 = vld [vmem:[#allocation2 + $0x9e6] sm:$0xff] }
 0x22f   : > { %8398 = vmatmul.mubr.f32.gmra.mrb[68].mxu0 %v12088_v28 }
 0x230   : > { %2299 = vmatmul.mubr.f32.gmra.mrb[34].mxu1 %v11897_v39  ;;  %v1739_v39 = vld [vmem:[#allocation6 + $0x340] sm:$0xff]  ;;  %8400 = vmatprep.mubr.f32.mxu0 %v12092_v37 }
 0x231   : > { %2303 = vmatprep.mubr.f32.mxu1 %v12002_v33  ;;  %9170 = vmatpush1.bf16.msra.mxu1 %v9169_v14  ;;  %v1740_v33 = vld [vmem:[#allocation6 + $0x348] sm:$0xff] }
 0x232   : > { %9171 = vmatprep.subr.bf16.mxu1 %v13753_v1  ;;  %v9178_v25 = vpack.c.bf16 %v1740_v33, %v1739_v39  ;;  %v12156_v14 = vld [vmem:[#allocation2 + $0x9a6] sm:$0xff]  ;;  %v1754_v39 = vld [vmem:[#allocation6 + $0x3b8] sm:$0xff] }
 0x233   : > { %8401 = vmatmul.mubr.f32.gmra.mrb[70].mxu0 %v12096_v35  ;;  %v10661_v33 = vld [vmem:[#allocation2 + $0x758] sm:$0xff] }
 0x234   : > { %2304 = vmatmul.mubr.f32.gmra.mrb[36].mxu1 %v11900_v50  ;;  %v1741_v50 = vld [vmem:[#allocation6 + $0x350] sm:$0xff]  ;;  %8403 = vmatprep.mubr.f32.mxu0 %v12119_v45 }
 0x235   : > { %2308 = vmatprep.mubr.f32.mxu1 %v12015_v51  ;;  %9173 = vmatpush1.bf16.msra.mxu1 %v9172_v2  ;;  %v1742_v51 = vld [vmem:[#allocation6 + $0x358] sm:$0xff] }
 0x236   : > { %9174 = vmatprep.subr.bf16.mxu1 %v13753_v1  ;;  %v12159_v2 = vld [vmem:[#allocation2 + $0x9de] sm:$0xff] }
 0x237   : > { %8404 = vmatmul.mubr.f32.gmra.mrb[72].mxu0 %v12124_v8 }
 0x238   : > { %2309 = vmatmul.mubr.f32.gmra.mrb[38].mxu1 %v11906_v3  ;;  %v9181_v3 = vpack.c.bf16 %v1742_v51, %v1741_v50  ;;  %8406 = vmatprep.mubr.f32.mxu0 %v12127_v23  ;;  %v1755_v50 = vld [vmem:[#allocation6 + $0x3c0] sm:$0xff] }
 0x239   : > { %2313 = vmatprep.mubr.f32.mxu1 %v12028_v11  ;;  %9176 = vmatpush1.bf16.msra.mxu1 %v9175_v15  ;;  %v1743_v11 = vld [vmem:[#allocation6 + $0x360] sm:$0xff]  ;;  %v1753_v15 = vld [vmem:[#allocation6 + $0x3b0] sm:$0xff] }
 0x23a   : > { %9177 = vmatprep.subr.bf16.mxu1 %v13753_v1  ;;  %v10662_v51 = vld [vmem:[#allocation2 + $0x760] sm:$0xff] }
 0x23b   : > { %8407 = vmatmul.mubr.f32.gmra.mrb[74].mxu0 %v12132_v48 }
 0x23c   : > { %2314 = vmatmul.mubr.f32.gmra.mrb[40].mxu1 %v10655_v34  ;;  %8409 = vmatprep.mubr.f32.mxu0 %v12135_v42 }
 0x23d   : > { %2318 = vmatprep.mubr.f32.mxu1 %v12038_v22  ;;  %9179 = vmatpush1.bf16.msra.mxu1 %v9178_v25  ;;  %v9184_v22 = vpack.c.bf16 %v1744_v32, %v1743_v11  ;;  %v9199_v25 = vpack.c.bf16 %v1754_v39, %v1753_v15  ;;  %v1758_v11 = vld [vmem:[#allocation6 + $0x3d8] sm:$0xff] }
 0x23e   : > { %9180 = vmatprep.subr.bf16.mxu1 %v13753_v1  ;;  %v10663_v32 = vld [vmem:[#allocation2 + $0x798] sm:$0xff] }
 0x23f   : > { %8410 = vmatmul.mubr.f32.gmra.mrb[76].mxu0 %v12140_v12  ;;  %v7797_v15 = vld [vmem:[%s13741_s6 + $0xb8] sm:$0xff] }
 0x240   : > { %2319 = vmatmul.mubr.f32.gmra.mrb[42].mxu1 %v10656_v40  ;;  %8412 = vmatprep.mubr.f32.mxu0 %v12143_v43  ;;  %v1759_v40 = vld [vmem:[#allocation6 + $0x3e0] sm:$0xff]  ;;  %v1541_v39 = vld [vmem:[#allocation2 + $0x7d2] sm:$0xff] }
 0x241   : > { %2323 = vmatprep.mubr.f32.mxu1 %v12043_v9  ;;  %9182 = vmatpush1.bf16.msra.mxu1 %v9181_v3  ;;  %v9187_v9 = vpack.c.bf16 %v1746_v56, %v1745_v17  ;;  %v1757_v3 = vld [vmem:[#allocation6 + $0x3d0] sm:$0xff]  ;;  %v10664_v17 = vld [vmem:[#allocation2 + $0x7a0] sm:$0xff] }
 0x242   : > { %9183 = vmatprep.subr.bf16.mxu1 %v13753_v1  ;;  %v1761_v56 = vld [vmem:[#allocation6 + $0x3f0] sm:$0xff] }
 0x243   : > { %8413 = vmatmul.mubr.f32.gmra.mrb[78].mxu0 %v12148_v7 }
 0x244   : > { %2324 = vmatmul.mubr.f32.gmra.mrb[44].mxu1 %v10657_v6  ;;  %8415 = vmatprep.mubr.f32.mxu0 %v12151_v16  ;;  %v1762_v6 = vld [vmem:[#allocation6 + $0x3f8] sm:$0xff] }
 0x245   : > { %2328 = vmatprep.mubr.f32.mxu1 %v12048_v53  ;;  %9185 = vmatpush1.bf16.msra.mxu1 %v9184_v22  ;;  %v9190_v53 = vpack.c.bf16 %v1748_v5, %v1747_v29  ;;  %v1760_v22 = vld [vmem:[#allocation6 + $0x3e8] sm:$0xff]  ;;  %v10666_v29 = vld [vmem:[#allocation2 + $0x7e0] sm:$0xff] }
 0x246   : > { %9186 = vmatprep.subr.bf16.mxu1 %v13753_v1  ;;  %v10668_v5 = vld [vmem:[#allocation2 + $0x820] sm:$0xff] }
 0x247   : > { %8416 = vmatmul.mubr.f32.gmra.mrb[80].mxu0 %v12156_v14 }
 0x248   : > { %2329 = vmatmul.mubr.f32.gmra.mrb[46].mxu1 %v10658_v58  ;;  %8418 = vmatprep.mubr.f32.mxu0 %v12159_v2  ;;  %v10669_v58 = vld [vmem:[#allocation2 + $0x858] sm:$0xff] }
 0x249   : > { %2333 = vmatprep.mubr.f32.mxu1 %v12052_v20  ;;  %9188 = vmatpush1.bf16.msra.mxu1 %v9187_v9  ;;  %v9193_v20 = vpack.c.bf16 %v1750_v10, %v1749_v61  ;;  %v10665_v9 = vld [vmem:[#allocation2 + $0x7d8] sm:$0xff] }
 0x24a   : > { %9189 = vmatprep.subr.bf16.mxu1 %v13753_v1 }
 0x24b   : > { %8419 = vmatmul.mubr.f32.gmra.mrb[82].mxu0 %v12164_v21 }
 0x24c   : > { %2334 = vmatmul.mubr.f32.gmra.mrb[48].mxu1 %v10659_v31  ;;  %v7795_v31 = vld [vmem:[%s13741_s6 + $0xa8] sm:$0xff] }
 0x24d   : > { %2338 = vmatprep.mubr.f32.mxu1 %v12056_v46  ;;  %9191 = vmatpush1.bf16.msra.mxu1 %v9190_v53  ;;  %v9196_v46 = vpack.c.bf16 %v1752_v38, %v1751_v30  ;;  %v1623_v53 = vld [vmem:[#allocation2 + $0xa1e] sm:$0xff] }
 0x24e   : > { %9192 = vmatprep.subr.bf16.mxu1 %v13753_v1  ;;  %8421 = vmatprep.mubr.f32.mxu0 %v1623_v53  ;;  %v1573_v30 = vld [vmem:[#allocation2 + $0x7d8] sm:$0xff] }
 0x250   : > { %2339 = vmatmul.mubr.f32.gmra.mrb[50].mxu1 %v10660_v24 }
 0x251   : > { %2343 = vmatprep.mubr.f32.mxu1 %v12060_v52  ;;  %9194 = vmatpush1.bf16.msra.mxu1 %v9193_v20  ;;  %v1756_v52 = vld [vmem:[#allocation6 + $0x3c8] sm:$0xff]  ;;  %v1540_v20 = vld [vmem:[#allocation2 + $0x79a] sm:$0xff] }
 0x252   : > { %9195 = vmatprep.subr.bf16.mxu1 %v13753_v1  ;;  %v9202_v34 = vpack.c.bf16 %v1756_v52, %v1755_v50 }
 0x254   : > { %2344 = vmatmul.mubr.f32.gmra.mrb[52].mxu1 %v10661_v33 }
 0x255   : > { %2348 = vmatprep.mubr.f32.mxu1 %v12064_v60  ;;  %9197 = vmatpush1.bf16.msra.mxu1 %v9196_v46  ;;  %v9205_v60 = vpack.c.bf16 %v1758_v11, %v1757_v3  ;;  %v7798_v3 = vld [vmem:[%s13741_s6 + $0xc0] sm:$0xff]  ;;  %v7799_v11 = vld [vmem:[%s13741_s6 + $0xc8] sm:$0xff] }
 0x256   : > { %9198 = vmatprep.subr.bf16.mxu1 %v13753_v1 }
 0x258   : > { %2349 = vmatmul.mubr.f32.gmra.mrb[54].mxu1 %v10662_v51 }
 0x259   : > { %2353 = vmatprep.mubr.f32.mxu1 %v12068_v41  ;;  %9200 = vmatpush1.bf16.msra.mxu1 %v9199_v25  ;;  %v9208_v41 = vpack.c.bf16 %v1760_v22, %v1759_v40  ;;  %v1574_v25 = vld [vmem:[#allocation2 + $0x7e0] sm:$0xff]  ;;  %v1575_v40 = vld [vmem:[#allocation2 + $0x818] sm:$0xff] }
 0x25a   : > { %9201 = vmatprep.subr.bf16.mxu1 %v13753_v1 }
 0x25c   : > { %2354 = vmatmul.mubr.f32.gmra.mrb[56].mxu1 %v10663_v32  ;;  %v1542_v32 = vld [vmem:[#allocation2 + $0x7da] sm:$0xff] }
 0x25d   : > { %2358 = vmatprep.mubr.f32.mxu1 %v12072_v62  ;;  %9203 = vmatpush1.bf16.msra.mxu1 %v9202_v34  ;;  %v9211_v62 = vpack.c.bf16 %v1762_v6, %v1761_v56  ;;  %v1543_v6 = vld [vmem:[#allocation2 + $0x812] sm:$0xff] }
 0x25e   : > { %9204 = vmatprep.subr.bf16.mxu1 %v13753_v1 }
 0x260   : > { %2359 = vmatmul.mubr.f32.gmra.mrb[58].mxu1 %v10664_v17 }
 0x261   : > { %2363 = vmatprep.mubr.f32.mxu1 %v12076_v26  ;;  %9206 = vmatpush1.bf16.msra.mxu1 %v9205_v60  ;;  %v10667_v26 = vld [vmem:[#allocation2 + $0x818] sm:$0xff] }
 0x262   : > { %9207 = vmatprep.subr.bf16.mxu1 %v13753_v1 }
 0x264   : > { %2364 = vmatmul.mubr.f32.gmra.mrb[60].mxu1 %v10665_v9  ;;  %v1257_v9 = vlaneseq }
 0x265   : > { %2368 = vmatprep.mubr.f32.mxu1 %v12080_v57  ;;  %9209 = vmatpush1.bf16.msra.mxu1 %v9208_v41  ;;  %v10670_v57 = vld [vmem:[#allocation2 + $0x860] sm:$0xff]  ;;  %v9261_v41 = vpack.c.bf16 %v7799_v11, %v7798_v3 }
 0x266   : > { %9210 = vmatprep.subr.bf16.mxu1 %v13753_v1  ;;  %v12278_v53 = vshrl.u32 %v1257_v9, 7  ;;  %v1548_v3 = vld [vmem:[#allocation2 + $0x89a] sm:$0xff] }
 0x267   : > { %v7802_v1 = vld [vmem:[%s13741_s6 + $0xe0] sm:$0xff] }
 0x268   : > { %2369 = vmatmul.mubr.f32.gmra.mrb[62].mxu1 %v10666_v29  ;;  %v1576_v29 = vld [vmem:[#allocation2 + $0x820] sm:$0xff]  ;;  %13801 = vst [vmem:[#allocation43_spill] sm:$0xff] %v12278_v53 }
 0x269   : > { %2373 = vmatprep.mubr.f32.mxu1 %v12084_v19  ;;  %9212 = vmatpush1.bf16.msra.mxu1 %v9211_v62  ;;  %v1624_v19 = vld [vmem:[#allocation2 + $0xa26] sm:$0xff] }
 0x26a   : > { %8422 = vmatmul.mubr.f32.gmra.mrb[84].mxu0 %v1624_v19 }
 0x26c   : > { %2374 = vmatmul.mubr.f32.gmra.mrb[0].mxu1 %v10667_v26 }
 0x26d   : > { %2378 = vmatprep.mubr.f32.mxu1 %v12088_v28  ;;  %v1625_v28 = vld [vmem:[#allocation2 + $0xa5e] sm:$0xff] }
 0x26e   : > { %8424 = vmatprep.mubr.f32.mxu0 %v1625_v28  ;;  %v1577_v28 = vld [vmem:[#allocation2 + $0x858] sm:$0xff] }
 0x270   : > { %2379 = vmatmul.mubr.f32.gmra.mrb[2].mxu1 %v10668_v5 }
 0x271   : > { %2383 = vmatprep.mubr.f32.mxu1 %v12092_v37  ;;  %v1626_v37 = vld [vmem:[#allocation2 + $0xa66] sm:$0xff] }
 0x272   : > { %8425 = vmatmul.mubr.f32.gmra.mrb[86].mxu0 %v1626_v37 }
 0x274   : > { %2384 = vmatmul.mubr.f32.gmra.mrb[4].mxu1 %v10669_v58 }
 0x275   : > { %2388 = vmatprep.mubr.f32.mxu1 %v12096_v35  ;;  %v1627_v35 = vld [vmem:[#allocation2 + $0xa9e] sm:$0xff] }
 0x276   : > { %8427 = vmatprep.mubr.f32.mxu0 %v1627_v35 }
 0x278   : > { %2389 = vmatmul.mubr.f32.gmra.mrb[6].mxu1 %v10670_v57  ;;  %v1544_v57 = vld [vmem:[#allocation2 + $0x81a] sm:$0xff] }
 0x279   : > { %2393 = vmatprep.mubr.f32.mxu1 %v12119_v45  ;;  %v1539_v45 = vld [vmem:[#allocation2 + $0x792] sm:$0xff] }
 0x27c   : > { %2394 = vmatmul.mubr.f32.gmra.mrb[8].mxu1 %v11956_v55  ;;  %v1628_v55 = vld [vmem:[#allocation2 + $0xaa6] sm:$0xff] }
 0x27d   : > { %2398 = vmatprep.mubr.f32.mxu1 %v12124_v8  ;;  %8428 = vmatmul.mubr.f32.gmra.mrb[88].mxu0 %v1628_v55  ;;  %v12206_v8 = vpop.f32.mrb[0].mxu0 }
 0x27e   : > { %13780 = vst [vmem:[#allocation22_spill] sm:$0xff] %v12206_v8 }
 0x280   : > { %2399 = vmatmul.mubr.f32.gmra.mrb[10].mxu1 %v11962_v44  ;;  %v1629_v44 = vld [vmem:[#allocation2 + $0xade] sm:$0xff] }
 0x281   : > { %2403 = vmatprep.mubr.f32.mxu1 %v12127_v23  ;;  %8430 = vmatprep.mubr.f32.mxu0 %v1629_v44  ;;  %v7791_v23 = vld [vmem:[%s13741_s6 + $0x88] sm:$0xff]  ;;  %v1545_v44 = vld [vmem:[#allocation2 + $0x852] sm:$0xff] }
 0x284   : > { %2404 = vmatmul.mubr.f32.gmra.mrb[12].mxu1 %v11966_v63  ;;  %v1630_v63 = vld [vmem:[#allocation2 + $0xae6] sm:$0xff] }
 0x285   : > { %2408 = vmatprep.mubr.f32.mxu1 %v12132_v48  ;;  %8431 = vmatmul.mubr.f32.gmra.mrb[90].mxu0 %v1630_v63  ;;  %v7793_v48 = vld [vmem:[%s13741_s6 + $0x98] sm:$0xff]  ;;  %v1259_v63 = vsub.s32 0, %v12278_v53 }
 0x288   : > { %2409 = vmatmul.mubr.f32.gmra.mrb[14].mxu1 %v11972_v49  ;;  %v1631_v49 = vld [vmem:[#allocation2 + $0xb1e] sm:$0xff] }
 0x289   : > { %2413 = vmatprep.mubr.f32.mxu1 %v12135_v42  ;;  %8433 = vmatprep.mubr.f32.mxu0 %v1631_v49  ;;  %v1572_v42 = vld [vmem:[#allocation2 + $0x7a0] sm:$0xff] }
 0x28c   : > { %2414 = vmatmul.mubr.f32.gmra.mrb[16].mxu1 %v11978_v18  ;;  %v1632_v18 = vld [vmem:[#allocation2 + $0xb26] sm:$0xff] }
 0x28d   : > { %2418 = vmatprep.mubr.f32.mxu1 %v12140_v12  ;;  %8434 = vmatmul.mubr.f32.gmra.mrb[92].mxu0 %v1632_v18  ;;  %v1578_v18 = vld [vmem:[#allocation2 + $0x860] sm:$0xff] }
 0x290   : > { %2419 = vmatmul.mubr.f32.gmra.mrb[18].mxu1 %v11985_v54  ;;  %v1633_v54 = vld [vmem:[#allocation2 + $0xb5e] sm:$0xff] }
 0x291   : > { %2423 = vmatprep.mubr.f32.mxu1 %v12143_v43  ;;  %8436 = vmatprep.mubr.f32.mxu0 %v1633_v54  ;;  %v12294_v54 = vld [vmem:[%s13742_s7] sm:$0x3f] }
 0x294   : > { %2424 = vmatmul.mubr.f32.gmra.mrb[20].mxu1 %v11991_v36  ;;  %v1634_v36 = vld [vmem:[#allocation2 + $0xb66] sm:$0xff] }
 0x295   : > { %2428 = vmatprep.mubr.f32.mxu1 %v12148_v7  ;;  %8437 = vmatmul.mubr.f32.gmra.mrb[94].mxu0 %v1634_v36 }
 0x298   : > { %2429 = vmatmul.mubr.f32.gmra.mrb[22].mxu1 %v11998_v47  ;;  %v1571_v47 = vld [vmem:[#allocation2 + $0x798] sm:$0xff] }
 0x299   : > { %2433 = vmatprep.mubr.f32.mxu1 %v12151_v16  ;;  %v7794_v16 = vld [vmem:[%s13741_s6 + $0xa0] sm:$0xff] }
 0x29a   : > { %v9253_v24 = vpack.c.bf16 %v7795_v31, %v7794_v16 }
 0x29c   : > { %2434 = vmatmul.mubr.f32.gmra.mrb[24].mxu1 %v12004_v27  ;;  %v7790_v27 = vld [vmem:[%s13741_s6 + $0x80] sm:$0xff] }
 0x29d   : > { %2438 = vmatprep.mubr.f32.mxu1 %v12156_v14  ;;  %v9245_v43 = vpack.c.bf16 %v7791_v23, %v7790_v27  ;;  %v1546_v23 = vld [vmem:[#allocation2 + $0x85a] sm:$0xff] }
 0x29f   : > { %9246 = vmatprep.subr.bf16.mxu0 %v9245_v43 }
 0x2a0   : > { %2439 = vmatmul.mubr.f32.gmra.mrb[26].mxu1 %v12011_v59  ;;  %v12211_v59 = vpop.f32.mrb[1].mxu0  ;;  %9248 = vmatpush3.bf16.msra.mxu0 %v9245_v43 }
 0x2a1   : > { %2443 = vmatprep.mubr.f32.mxu1 %v12159_v2  ;;  %13781 = vst [vmem:[#allocation23_spill] sm:$0xff] %v12211_v59  ;;  %v12222_v12 = vpop.f32.mrb[2].mxu0 }
 0x2a2   : > { %13782 = vst [vmem:[#allocation24_spill] sm:$0xff] %v12222_v12  ;;  %v12224_v61 = vpop.f32.mrb[3].mxu0  ;;  %v3729_v12 = vld [vmem:[#allocation2 + $0xca4] sm:$0xff] }
 0x2a3   : > { %13783 = vst [vmem:[#allocation25_spill] sm:$0xff] %v12224_v61  ;;  %v12226_v10 = vpop.f32.mrb[4].mxu0 }
 0x2a4   : > { %2444 = vmatmul.mubr.f32.gmra.mrb[28].mxu1 %v12017_v13  ;;  %v7792_v13 = vld [vmem:[%s13741_s6 + $0x90] sm:$0xff]  ;;  %13784 = vst [vmem:[#allocation26_spill] sm:$0xff] %v12226_v10  ;;  %v12234_v14 = vpop.f32.mrb[5].mxu0  ;;  %v3725_v10 = vld [vmem:[#allocation2 + $0xc24] sm:$0xff] }
 0x2a5   : > { %2448 = vmatprep.mubr.f32.mxu1 %v12164_v21  ;;  %v9249_v7 = vpack.c.bf16 %v7793_v48, %v7792_v13  ;;  %13785 = vst [vmem:[#allocation27_spill] sm:$0xff] %v12234_v14  ;;  %v12236_v38 = vpop.f32.mrb[6].mxu0  ;;  %v7796_v21 = vld [vmem:[%s13741_s6 + $0xb0] sm:$0xff]  ;;  %v12308_v13 = vrot.slane %v12294_v54, %v1259_v63 }
 0x2a6   : > { %13786 = vst [vmem:[#allocation28_spill] sm:$0xff] %v12236_v38  ;;  %v12238_v2 = vpop.f32.mrb[7].mxu0  ;;  %v9257_v51 = vpack.c.bf16 %v7797_v15, %v7796_v21  ;;  %v5659_v38 = vld [vmem:[#allocation9 + $0xa8] sm:$0xff] }
 0x2a7   : > { %9250 = vmatprep.subr.bf16.mxu0 %v9249_v7  ;;  %13787 = vst [vmem:[#allocation29_spill] sm:$0xff] %v12238_v2  ;;  %v12240_v46 = vpop.f32.mrb[8].mxu0  ;;  %13810 = vst [vmem:[#allocation52_spill] sm:$0xff] %v12308_v13 }
 0x2a8   : > { %2449 = vmatmul.mubr.f32.gmra.mrb[30].mxu1 %v12024_v0  ;;  %13788 = vst [vmem:[#allocation30_spill] sm:$0xff] %v12240_v46  ;;  %v12248_v33 = vpop.f32.mrb[9].mxu0  ;;  %9252 = vmatpush3.bf16.msra.mxu0 %v9249_v7 }
 0x2a9   : > { %2518 = vmatprep.mubr.f32.mxu1 %v1571_v47  ;;  %13789 = vst [vmem:[#allocation31_spill] sm:$0xff] %v12248_v33  ;;  %v12250_v50 = vpop.f32.mrb[10].mxu0  ;;  %9254 = vmatprep.subr.bf16.mxu0 %v9253_v24  ;;  %v5656_v33 = vld [vmem:[#allocation9 + $0x90] sm:$0xff] }
 0x2aa   : > { %13790 = vst [vmem:[#allocation32_spill] sm:$0xff] %v12250_v50  ;;  %v12252_v52 = vpop.f32.mrb[11].mxu0 }
 0x2ab   : > { %13791 = vst [vmem:[#allocation33_spill] sm:$0xff] %v12252_v52  ;;  %v12254_v34 = vpop.f32.mrb[12].mxu0  ;;  %v3717_v52 = vld [vmem:[#allocation2 + $0xb24] sm:$0xff] }
 0x2ac   : > { %2519 = vmatmul.mubr.f32.vlgmr.msra.gmra.mrb[32].mxu1 %v1539_v45  ;;  %13792 = vst [vmem:[#allocation34_spill] sm:$0xff] %v12254_v34  ;;  %v12262_v60 = vpop.f32.mrb[13].mxu0  ;;  %9256 = vmatpush3.bf16.msra.mxu0 %v9253_v24  ;;  %v12303_v45 = vld [vmem:[%s13743_s8] sm:$0x3f] }
 0x2ad   : > { %2523 = vmatprep.mubr.f32.mxu1 %v1572_v42  ;;  %13793 = vst [vmem:[#allocation35_spill] sm:$0xff] %v12262_v60  ;;  %v12264_v22 = vpop.f32.mrb[14].mxu0  ;;  %9258 = vmatprep.subr.bf16.mxu0 %v9257_v51  ;;  %v12313_v43 = vrot.slane %v12303_v45, %v1259_v63 }
 0x2ae   : > { %13794 = vst [vmem:[#allocation36_spill] sm:$0xff] %v12264_v22  ;;  %v12266_v17 = vpop.f32.mrb[15].mxu0 }
 0x2af   : > { %13795 = vst [vmem:[#allocation37_spill] sm:$0xff] %v12266_v17  ;;  %v12268_v56 = vpop.f32.mrb[16].mxu0  ;;  %13812 = vst [vmem:[#allocation54_spill] sm:$0xff] %v12313_v43  ;;  %v5646_v17 = vld [vmem:[#allocation9 + $0x40] sm:$0xff] }
 0x2b0   : > { %2524 = vmatmul.mubr.f32.gmra.mrb[34].mxu1 %v1540_v20  ;;  %13796 = vst [vmem:[#allocation38_spill] sm:$0xff] %v12268_v56  ;;  %v12270_v62 = vpop.f32.mrb[17].mxu0  ;;  %9260 = vmatpush3.bf16.msra.mxu0 %v9257_v51  ;;  %v10671_v20 = vld [vmem:[#allocation2 + $0x898] sm:$0xff]  ;;  %v10672_v51 = vld [vmem:[#allocation2 + $0x8a0] sm:$0xff] }
 0x2b1   : > { %2528 = vmatprep.mubr.f32.mxu1 %v1573_v30  ;;  %13797 = vst [vmem:[#allocation39_spill] sm:$0xff] %v12270_v62  ;;  %v12272_v26 = vpop.f32.mrb[18].mxu0  ;;  %9262 = vmatprep.subr.bf16.mxu0 %v9261_v41  ;;  %v1547_v30 = vld [vmem:[#allocation2 + $0x892] sm:$0xff]  ;;  %v3705_v56 = vld [vmem:[#allocation2 + $0x9a4] sm:$0xff] }
 0x2b2   : > { %13798 = vst [vmem:[#allocation40_spill] sm:$0xff] %v12272_v26  ;;  %v12274_v5 = vpop.f32.mrb[19].mxu0  ;;  %v5640_v26 = vld [vmem:[#allocation9 + $0x10] sm:$0xff]  ;;  %v5642_v62 = vld [vmem:[#allocation9 + $0x20] sm:$0xff] }
 0x2b3   : > { %13799 = vst [vmem:[#allocation41_spill] sm:$0xff] %v12274_v5  ;;  %v12276_v58 = vpop.f32.mrb[20].mxu0 }
 0x2b4   : > { %2529 = vmatmul.mubr.f32.gmra.mrb[36].mxu1 %v1541_v39  ;;  %13800 = vst [vmem:[#allocation42_spill] sm:$0xff] %v12276_v58  ;;  %v12280_v19 = vpop.f32.mrb[21].mxu0  ;;  %9264 = vmatpush3.bf16.msra.mxu0 %v9261_v41  ;;  %v10673_v41 = vld [vmem:[#allocation2 + $0x8d8] sm:$0xff] }
 0x2b5   : > { %2533 = vmatprep.mubr.f32.mxu1 %v1574_v25  ;;  %13802 = vst [vmem:[#allocation44_spill] sm:$0xff] %v12280_v19  ;;  %v12282_v37 = vpop.f32.mrb[22].mxu0  ;;  %v3703_v19 = vld [vmem:[#allocation2 + $0x964] sm:$0xff] }
 0x2b6   : > { %13803 = vst [vmem:[#allocation45_spill] sm:$0xff] %v12282_v37  ;;  %v12284_v35 = vpop.f32.mrb[23].mxu0  ;;  %v1569_v37 = vld [vmem:[#allocation2 + $0xb52] sm:$0xff] }
 0x2b7   : > { %13804 = vst [vmem:[#allocation46_spill] sm:$0xff] %v12284_v35  ;;  %v12286_v55 = vpop.f32.mrb[24].mxu0 }
 0x2b8   : > { %2534 = vmatmul.mubr.f32.gmra.mrb[38].mxu1 %v1542_v32  ;;  %13805 = vst [vmem:[#allocation47_spill] sm:$0xff] %v12286_v55  ;;  %v12289_v49 = vpop.f32.mrb[25].mxu0  ;;  %v1567_v55 = vld [vmem:[#allocation2 + $0xb12] sm:$0xff] }
 0x2b9   : > { %2538 = vmatprep.mubr.f32.mxu1 %v1575_v40  ;;  %13806 = vst [vmem:[#allocation48_spill] sm:$0xff] %v12289_v49  ;;  %v12296_v36 = vpop.f32.mrb[26].mxu0 }
 0x2ba   : > { %13807 = vst [vmem:[#allocation49_spill] sm:$0xff] %v12296_v36  ;;  %v12298_v47 = vpop.f32.mrb[27].mxu0 }
 0x2bb   : > { %13808 = vst [vmem:[#allocation50_spill] sm:$0xff] %v12298_v47  ;;  %v12305_v27 = vpop.f32.mrb[28].mxu0  ;;  %v1565_v47 = vld [vmem:[#allocation2 + $0xad2] sm:$0xff] }
 0x2bc   : > { %2539 = vmatmul.mubr.f32.gmra.mrb[40].mxu1 %v1543_v6  ;;  %13809 = vst [vmem:[#allocation51_spill] sm:$0xff] %v12305_v27  ;;  %v12310_v48 = vpop.f32.mrb[29].mxu0  ;;  %v1549_v6 = vld [vmem:[#allocation2 + $0x8d2] sm:$0xff] }
 0x2bd   : > { %2543 = vmatprep.mubr.f32.mxu1 %v1576_v29  ;;  %13811 = vst [vmem:[#allocation53_spill] sm:$0xff] %v12310_v48  ;;  %v8358_v42 = vpop.f32.mrb[30].mxu0  ;;  %v3864_v27 = vld [vmem:[#allocation8 + $0x418] sm:$0xff] }
 0x2be   : > { %v1292_v7 = vmul.f32 %v8358_v42, %v12308_v13  ;;  %v12316_v16 = vpop.f32.mrb[31].mxu0  ;;  %v7805_v48 = vld [vmem:[%s13741_s6 + $0xf8] sm:$0xff] }
 0x2bf   : > { %13813 = vst [vmem:[#allocation55_spill] sm:$0xff] %v12316_v16  ;;  %v12318_v31 = vpop.f32.mrb[32].mxu0  ;;  %v3863_v16 = vld [vmem:[#allocation8 + $0x410] sm:$0xff] }
 0x2c0   : > { %2544 = vmatmul.mubr.f32.gmra.mrb[42].mxu1 %v1544_v57  ;;  %v12321_v24 = vadd.f32 %v12313_v43, %v1292_v7  ;;  %v1847_v21 = vpop.f32.mrb[33].mxu0  ;;  %v10674_v57 = vld [vmem:[#allocation2 + $0x8e0] sm:$0xff] }
 0x2c1   : > { %2548 = vmatprep.mubr.f32.mxu1 %v1577_v28  ;;  %v12323_v15 = vpop.f32.mrb[34].mxu0  ;;  %v1550_v28 = vld [vmem:[#allocation2 + $0x8da] sm:$0xff] }
 0x2c2   : > { %13814 = vst [vmem:[#allocation56_spill] sm:$0xff] %v12321_v24  ;;  %v1852_v39 = vpop.f32.mrb[35].mxu0  ;;  %v1562_v24 = vld [vmem:[#allocation2 + $0xa5a] sm:$0xff] }
 0x2c3   : > { %v12325_v25 = vpop.f32.mrb[36].mxu0 }
 0x2c4   : > { %2549 = vmatmul.mubr.f32.gmra.mrb[44].mxu1 %v1545_v44  ;;  %v1857_v11 = vpop.f32.mrb[37].mxu0 }
 0x2c5   : > { %2553 = vmatprep.mubr.f32.mxu1 %v1578_v18  ;;  %v10675_v18 = vld [vmem:[#allocation2 + $0x918] sm:$0xff] }
 0x2c6   : > { %v12327_v32 = vpop.f32.mrb[38].mxu0 }
 0x2c7   : > { %v1862_v40 = vpop.f32.mrb[39].mxu0 }
 0x2c8   : > { %2554 = vmatmul.mubr.f32.gmra.mrb[46].mxu1 %v1546_v23  ;;  %v1551_v23 = vld [vmem:[#allocation2 + $0x912] sm:$0xff] }
 0x2c9   : > { %2558 = vmatprep.mubr.f32.mxu1 %v10671_v20  ;;  %v10676_v20 = vld [vmem:[#allocation2 + $0x920] sm:$0xff] }
 0x2ca   : > { %v12329_v9 = vpop.f32.mrb[40].mxu0 }
 0x2cb   : > { %v1867_v29 = vpop.f32.mrb[41].mxu0 }
 0x2cc   : > { %2559 = vmatmul.mubr.f32.gmra.mrb[48].mxu1 %v1547_v30  ;;  %v1552_v30 = vld [vmem:[#allocation2 + $0x91a] sm:$0xff] }
 0x2cd   : > { %2563 = vmatprep.mubr.f32.mxu1 %v10672_v51  ;;  %v10677_v51 = vld [vmem:[#allocation2 + $0x958] sm:$0xff] }
 0x2ce   : > { %v12331_v44 = vpop.f32.mrb[42].mxu0 }
 0x2cf   : > { %v1872_v63 = vpop.f32.mrb[43].mxu0 }
 0x2d0   : > { %2564 = vmatmul.mubr.f32.gmra.mrb[50].mxu1 %v1548_v3  ;;  %v1553_v3 = vld [vmem:[#allocation2 + $0x952] sm:$0xff] }
 0x2d1   : > { %2568 = vmatprep.mubr.f32.mxu1 %v10673_v41  ;;  %v10678_v41 = vld [vmem:[#allocation2 + $0x960] sm:$0xff]  ;;  %v1555_v63 = vld [vmem:[#allocation2 + $0x992] sm:$0xff] }
 0x2d2   : > { %v12333_v42 = vpop.f32.mrb[44].mxu0 }
 0x2d3   : > { %v1877_v7 = vpop.f32.mrb[45].mxu0 }
 0x2d4   : > { %2569 = vmatmul.mubr.f32.gmra.mrb[52].mxu1 %v1549_v6  ;;  %v1554_v6 = vld [vmem:[#allocation2 + $0x95a] sm:$0xff] }
 0x2d5   : > { %2573 = vmatprep.mubr.f32.mxu1 %v10674_v57  ;;  %v10680_v7 = vld [vmem:[#allocation2 + $0x9a0] sm:$0xff] }
 0x2d6   : > { %v12335_v21 = vpop.f32.mrb[46].mxu0 }
 0x2d7   : > { %v1882_v39 = vpop.f32.mrb[47].mxu0 }
 0x2d8   : > { %2574 = vmatmul.mubr.f32.gmra.mrb[54].mxu1 %v1550_v28  ;;  %v10679_v28 = vld [vmem:[#allocation2 + $0x998] sm:$0xff] }
 0x2d9   : > { %2578 = vmatprep.mubr.f32.mxu1 %v10675_v18 }
 0x2da   : > { %v12337_v11 = vpop.f32.mrb[48].mxu0 }
 0x2db   : > { %v1887_v40 = vpop.f32.mrb[49].mxu0 }
 0x2dc   : > { %2579 = vmatmul.mubr.f32.gmra.mrb[56].mxu1 %v1551_v23 }
 0x2dd   : > { %2583 = vmatprep.mubr.f32.mxu1 %v10676_v20  ;;  %v1556_v20 = vld [vmem:[#allocation2 + $0x99a] sm:$0xff] }
 0x2de   : > { %v12339_v29 = vpop.f32.mrb[50].mxu0 }
 0x2df   : > { %v1892_v57 = vpop.f32.mrb[51].mxu0 }
 0x2e0   : > { %2584 = vmatmul.mubr.f32.gmra.mrb[58].mxu1 %v1552_v30 }
 0x2e1   : > { %2588 = vmatprep.mubr.f32.mxu1 %v10677_v51  ;;  %v10681_v51 = vld [vmem:[#allocation2 + $0x9d8] sm:$0xff] }
 0x2e2   : > { %v12341_v18 = vpop.f32.mrb[52].mxu0 }
 0x2e3   : > { %v1897_v23 = vpop.f32.mrb[53].mxu0 }
 0x2e4   : > { %2589 = vmatmul.mubr.f32.gmra.mrb[60].mxu1 %v1553_v3  ;;  %v1557_v3 = vld [vmem:[#allocation2 + $0x9d2] sm:$0xff] }
 0x2e5   : > { %2593 = vmatprep.mubr.f32.mxu1 %v10678_v41 }
 0x2e6   : > { %v12343_v30 = vpop.f32.mrb[54].mxu0 }
 0x2e7   : > { %v1902_v39 = vpop.f32.mrb[55].mxu0 }
 0x2e8   : > { %2594 = vmatmul.mubr.f32.gmra.mrb[62].mxu1 %v1554_v6  ;;  %v1558_v6 = vld [vmem:[#allocation2 + $0x9da] sm:$0xff] }
 0x2e9   : > { %2598 = vmatprep.mubr.f32.mxu1 %v10679_v28  ;;  %v1560_v39 = vld [vmem:[#allocation2 + $0xa1a] sm:$0xff] }
 0x2ea   : > { %v12345_v40 = vpop.f32.mrb[56].mxu0 }
 0x2eb   : > { %v1907_v41 = vpop.f32.mrb[57].mxu0 }
 0x2ec   : > { %2599 = vmatmul.mubr.f32.gmra.mrb[0].mxu1 %v1555_v63  ;;  %v1559_v63 = vld [vmem:[#allocation2 + $0xa12] sm:$0xff] }
 0x2ed   : > { %2603 = vmatprep.mubr.f32.mxu1 %v10680_v7 }
 0x2ee   : > { %v12348_v57 = vpop.f32.mrb[58].mxu0 }
 0x2ef   : > { %v1912_v28 = vpop.f32.mrb[59].mxu0 }
 0x2f0   : > { %2604 = vmatmul.mubr.f32.gmra.mrb[2].mxu1 %v1556_v20  ;;  %v12353_v20 = vld [vmem:[#allocation2] sm:$0xff] }
 0x2f1   : > { %2608 = vmatprep.mubr.f32.mxu1 %v10681_v51 }
 0x2f2   : > { %v12351_v23 = vpop.f32.mrb[60].mxu0 }
 0x2f3   : > { %v1917_v7 = vpop.f32.mrb[61].mxu0 }
 0x2f4   : > { %2609 = vmatmul.mubr.f32.gmra.mrb[4].mxu1 %v1557_v3  ;;  %v7800_v3 = vld [vmem:[%s13741_s6 + $0xd0] sm:$0xff]  ;;  %v3861_v7 = vld [vmem:[#allocation8 + $0x400] sm:$0xff] }
 0x2f5   : > { %2613 = vmatprep.mubr.f32.mxu1 %v12024_v0 }
 0x2f6   : > { %v12356_v51 = vpop.f32.mrb[62].mxu0 }
 0x2f7   : > { %v1922_v0 = vpop.f32.mrb[63].mxu0 }
 0x2f8   : > { %2614 = vmatmul.mubr.f32.gmra.mrb[6].mxu1 %v1558_v6  ;;  %v1561_v6 = vld [vmem:[#allocation2 + $0xa52] sm:$0xff]  ;;  %v3862_v0 = vld [vmem:[#allocation8 + $0x408] sm:$0xff] }
 0x2f9   : > { %2618 = vmatprep.mubr.f32.mxu1 %v12033_v4  ;;  %v7801_v4 = vld [vmem:[%s13741_s6 + $0xd8] sm:$0xff] }
 0x2fa   : > { %v9265_v41 = vpack.c.bf16 %v7801_v4, %v7800_v3  ;;  %v12365_v28 = vpop.f32.mrb[64].mxu0  ;;  %v9501_v3 = vpack.c.bf16 %v3862_v0, %v3861_v7  ;;  %v9505_v7 = vpack.c.bf16 %v3864_v27, %v3863_v16  ;;  %v1563_v0 = vld [vmem:[#allocation2 + $0xa92] sm:$0xff]  ;;  %v1564_v27 = vld [vmem:[#allocation2 + $0xa9a] sm:$0xff] }
 0x2fb   : > { %v3867_v16 = vld [vmem:[#allocation8 + $0x430] sm:$0xff] }
 0x2fc   : > { %2619 = vmatmul.mubr.f32.gmra.mrb[8].mxu1 %v1559_v63  ;;  %v12367_v63 = vpop.f32.mrb[65].mxu0  ;;  %9266 = vmatprep.subr.bf16.mxu0 %v9265_v41 }
 0x2fd   : > { %2623 = vmatprep.mubr.f32.mxu1 %v12353_v20  ;;  %9268 = vmatpush3.bf16.msra.mxu0 %v9265_v41  ;;  %v7804_v41 = vld [vmem:[%s13741_s6 + $0xf0] sm:$0xff] }
 0x2fe   : > { %9502 = vmatprep.subr.bf16.mxu1 %v9501_v3 }
 0x2ff   : > { %9504 = vmatpush3.bf16.msra.mxu1 %v9501_v3  ;;  %v3865_v3 = vld [vmem:[#allocation8 + $0x420] sm:$0xff] }
 0x300   : > { %2624 = vmatmul.mubr.f32.gmra.mrb[10].mxu1 %v1560_v39  ;;  %v7803_v39 = vld [vmem:[%s13741_s6 + $0xe8] sm:$0xff]  ;;  %9506 = vmatprep.subr.bf16.mxu1 %v9505_v7 }
 0x301   : > { %2628 = vmatprep.mubr.f32.mxu1 %v12353_v20  ;;  %v9269_v4 = vpack.c.bf16 %v7803_v39, %v7802_v1  ;;  %v12382_v1 = vpop.f32.mrb[66].mxu0 }
 0x302   : > { %v12385_v39 = vpop.f32.mrb[67].mxu0 }
 0x303   : > { %9270 = vmatprep.subr.bf16.mxu0 %v9269_v4  ;;  %9508 = vmatpush3.bf16.msra.mxu1 %v9505_v7 }
 0x304   : > { %2629 = vmatmul.mubr.f32.gmra.mrb[12].mxu1 %v1561_v6  ;;  %9272 = vmatpush3.bf16.msra.mxu0 %v9269_v4  ;;  %v9273_v6 = vpack.c.bf16 %v7805_v48, %v7804_v41  ;;  %v3866_v4 = vld [vmem:[#allocation8 + $0x428] sm:$0xff]  ;;  %v3868_v48 = vld [vmem:[#allocation8 + $0x438] sm:$0xff]  ;;  %v12388_v41 = vpop.f32.mrb[68].mxu0 }
 0x305   : > { %2633 = vmatprep.mubr.f32.mxu1 %v12353_v20  ;;  %v9509_v36 = vpack.c.bf16 %v3866_v4, %v3865_v3  ;;  %v12391_v7 = vpop.f32.mrb[69].mxu0  ;;  %v3871_v4 = vld [vmem:[#allocation8 + $0x450] sm:$0xff] }
 0x306   : > { %9274 = vmatprep.subr.bf16.mxu0 %v9273_v6 }
 0x307   : > { %9510 = vmatprep.subr.bf16.mxu1 %v9509_v36 }
 0x308   : > { %2634 = vmatmul.mubr.f32.gmra.mrb[14].mxu1 %v1562_v24  ;;  %9276 = vmatpush3.bf16.msra.mxu0 %v9273_v6  ;;  %v9513_v24 = vpack.c.bf16 %v3868_v48, %v3867_v16  ;;  %v3869_v6 = vld [vmem:[#allocation8 + $0x440] sm:$0xff]  ;;  %v12394_v48 = vpop.f32.mrb[70].mxu0 }
 0x309   : > { %2638 = vmatprep.mubr.f32.mxu1 %v12353_v20  ;;  %9512 = vmatpush3.bf16.msra.mxu1 %v9509_v36  ;;  %v1566_v36 = vld [vmem:[#allocation2 + $0xada] sm:$0xff]  ;;  %v12397_v49 = vpop.f32.mrb[71].mxu0 }
 0x30a   : > { %9514 = vmatprep.subr.bf16.mxu1 %v9513_v24 }
 0x30c   : > { %2639 = vmatmul.mubr.f32.gmra.mrb[16].mxu1 %v1563_v0  ;;  %v3870_v0 = vld [vmem:[#allocation8 + $0x448] sm:$0xff] }
 0x30d   : > { %2643 = vmatprep.mubr.f32.mxu1 %v12353_v20  ;;  %9516 = vmatpush3.bf16.msra.mxu1 %v9513_v24  ;;  %v9517_v3 = vpack.c.bf16 %v3870_v0, %v3869_v6  ;;  %v3873_v24 = vld [vmem:[#allocation8 + $0x460] sm:$0xff] }
 0x30e   : > { %v1568_v0 = vld [vmem:[#allocation2 + $0xb1a] sm:$0xff] }
 0x30f   : > { %9518 = vmatprep.subr.bf16.mxu1 %v9517_v3 }
 0x310   : > { %2644 = vmatmul.mubr.f32.gmra.mrb[18].mxu1 %v1564_v27  ;;  %v3872_v27 = vld [vmem:[#allocation8 + $0x458] sm:$0xff] }
 0x311   : > { %2648 = vmatprep.mubr.f32.mxu1 %v12353_v20  ;;  %9520 = vmatpush3.bf16.msra.mxu1 %v9517_v3  ;;  %v9521_v16 = vpack.c.bf16 %v3872_v27, %v3871_v4  ;;  %v3875_v3 = vld [vmem:[#allocation8 + $0x470] sm:$0xff]  ;;  %v12400_v27 = vpop.f32.mrb[72].mxu0 }
 0x312   : > { %v12403_v35 = vpop.f32.mrb[73].mxu0 }
 0x313   : > { %9522 = vmatprep.subr.bf16.mxu1 %v9521_v16 }
 0x314   : > { %2649 = vmatmul.mubr.f32.gmra.mrb[20].mxu1 %v1565_v47  ;;  %v3874_v47 = vld [vmem:[#allocation8 + $0x468] sm:$0xff] }
 0x315   : > { %2653 = vmatprep.mubr.f32.mxu1 %v12353_v20  ;;  %9524 = vmatpush3.bf16.msra.mxu1 %v9521_v16  ;;  %v9525_v6 = vpack.c.bf16 %v3874_v47, %v3873_v24  ;;  %v13815_v16 = vmov 0.0|0.0   ;;  %v3701_v24 = vld [vmem:[#allocation2 + $0x924] sm:$0xff] }
 0x316   : > { %v5638_v47 = vld [vmem:[#allocation9] sm:$0xff] }
 0x317   : > { %9526 = vmatprep.subr.bf16.mxu1 %v9525_v6 }
 0x318   : > { %2654 = vmatmul.mubr.f32.gmra.mrb[22].mxu1 %v1566_v36  ;;  %v3876_v36 = vld [vmem:[#allocation8 + $0x478] sm:$0xff] }
 0x319   : > { %2658 = vmatprep.mubr.f32.mxu1 %v12353_v20  ;;  %9528 = vmatpush3.bf16.msra.mxu1 %v9525_v6  ;;  %v9529_v4 = vpack.c.bf16 %v3876_v36, %v3875_v3  ;;  %v5639_v6 = vld [vmem:[#allocation9 + $0x8] sm:$0xff] }
 0x31a   : > { %v3702_v3 = vld [vmem:[#allocation2 + $0x92c] sm:$0xff]  ;;  %v9566_v36 = vpack.c.bf16 %v5639_v6, %v5638_v47 }
 0x31b   : > { %9530 = vmatprep.subr.bf16.mxu1 %v9529_v4 }
 0x31c   : > { %2659 = vmatmul.mubr.f32.gmra.mrb[24].mxu1 %v1567_v55  ;;  %v1570_v55 = vld [vmem:[#allocation2 + $0xb5a] sm:$0xff] }
 0x31d   : > { %2663 = vmatprep.mubr.f32.mxu1 %v12353_v20  ;;  %9532 = vmatpush3.bf16.msra.mxu1 %v9529_v4  ;;  %v5641_v4 = vld [vmem:[#allocation9 + $0x18] sm:$0xff] }
 0x31e   : > { %9565 = vmatprep.subr.bf16.mxu1 %v13815_v16  ;;  %v9569_v5 = vpack.c.bf16 %v5641_v4, %v5640_v26  ;;  %v3708_v26 = vld [vmem:[#allocation2 + $0x9ec] sm:$0xff] }
 0x320   : > { %2664 = vmatmul.mubr.f32.gmra.mrb[26].mxu1 %v1568_v0  ;;  %v12407_v0 = vpop.f32.mrb[74].mxu0 }
 0x321   : > { %2668 = vmatprep.mubr.f32.mxu1 %v12353_v20  ;;  %v12409_v58 = vpop.f32.mrb[75].mxu0 }
 0x322   : > { %v12412_v22 = vpop.f32.mrb[76].mxu0 }
 0x323   : > { %v12414_v6 = vpop.f32.mrb[77].mxu0 }
 0x324   : > { %2669 = vmatmul.mubr.f32.gmra.mrb[28].mxu1 %v1569_v37  ;;  %v3704_v37 = vld [vmem:[#allocation2 + $0x96c] sm:$0xff] }
 0x325   : > { %2673 = vmatprep.mubr.f32.mxu1 %v12353_v20 }
 0x328   : > { %2674 = vmatmul.mubr.f32.gmra.mrb[30].mxu1 %v1570_v55  ;;  %v5643_v55 = vld [vmem:[#allocation9 + $0x28] sm:$0xff] }
 0x329   : > { %8631 = vmatprep.mubr.f32.mxu1 %v3701_v24  ;;  %v3706_v24 = vld [vmem:[#allocation2 + $0x9ac] sm:$0xff]  ;;  %v9572_v47 = vpack.c.bf16 %v5643_v55, %v5642_v62 }
 0x32a   : > { %v3710_v62 = vld [vmem:[#allocation2 + $0xa2c] sm:$0xff] }
 0x32c   : > { %8632 = vmatmul.mubr.f32.vlgmr.msra.gmra.mrb[64].mxu1 %v3702_v3  ;;  %v3707_v3 = vld [vmem:[#allocation2 + $0x9e4] sm:$0xff] }
 0x32d   : > { %9567 = vmatpush1.bf16.msra.mxu1 %v9566_v36  ;;  %8634 = vmatprep.mubr.f32.mxu1 %v3703_v19  ;;  %v5644_v19 = vld [vmem:[#allocation9 + $0x30] sm:$0xff]  ;;  %v5645_v36 = vld [vmem:[#allocation9 + $0x38] sm:$0xff] }
 0x32e   : > { %9568 = vmatprep.subr.bf16.mxu1 %v13815_v16  ;;  %v9575_v4 = vpack.c.bf16 %v5645_v36, %v5644_v19  ;;  %v3712_v19 = vld [vmem:[#allocation2 + $0xa6c] sm:$0xff] }
 0x330   : > { %8635 = vmatmul.mubr.f32.gmra.mrb[66].mxu1 %v3704_v37  ;;  %v3709_v37 = vld [vmem:[#allocation2 + $0xa24] sm:$0xff] }
 0x331   : > { %9570 = vmatpush1.bf16.msra.mxu1 %v9569_v5  ;;  %8637 = vmatprep.mubr.f32.mxu1 %v3705_v56  ;;  %v5647_v5 = vld [vmem:[#allocation9 + $0x48] sm:$0xff]  ;;  %v12418_v56 = vpop.f32.mrb[78].mxu0 }
 0x332   : > { %9571 = vmatprep.subr.bf16.mxu1 %v13815_v16  ;;  %v9578_v55 = vpack.c.bf16 %v5647_v5, %v5646_v17  ;;  %v12420_v34 = vpop.f32.mrb[79].mxu0  ;;  %v3714_v5 = vld [vmem:[#allocation2 + $0xaac] sm:$0xff] }
 0x333   : > { %v12424_v60 = vpop.f32.mrb[80].mxu0 }
 0x334   : > { %8638 = vmatmul.mubr.f32.gmra.mrb[68].mxu1 %v3706_v24  ;;  %v3711_v24 = vld [vmem:[#allocation2 + $0xa64] sm:$0xff]  ;;  %v12426_v17 = vpop.f32.mrb[81].mxu0 }
 0x335   : > { %9573 = vmatpush1.bf16.msra.mxu1 %v9572_v47  ;;  %8640 = vmatprep.mubr.f32.mxu1 %v3707_v3  ;;  %v5648_v47 = vld [vmem:[#allocation9 + $0x50] sm:$0xff]  ;;  %v5649_v3 = vld [vmem:[#allocation9 + $0x58] sm:$0xff]  ;;  %v12430_v46 = vpop.f32.mrb[82].mxu0 }
 0x336   : > { %9574 = vmatprep.subr.bf16.mxu1 %v13815_v16  ;;  %v9581_v36 = vpack.c.bf16 %v5649_v3, %v5648_v47  ;;  %v3716_v47 = vld [vmem:[#allocation2 + $0xaec] sm:$0xff] }
 0x338   : > { %8641 = vmatmul.mubr.f32.gmra.mrb[70].mxu1 %v3708_v26  ;;  %v3713_v26 = vld [vmem:[#allocation2 + $0xaa4] sm:$0xff] }
 0x339   : > { %9576 = vmatpush1.bf16.msra.mxu1 %v9575_v4  ;;  %8643 = vmatprep.mubr.f32.mxu1 %v3709_v37  ;;  %v5650_v4 = vld [vmem:[#allocation9 + $0x60] sm:$0xff]  ;;  %v5651_v37 = vld [vmem:[#allocation9 + $0x68] sm:$0xff] }
 0x33a   : > { %9577 = vmatprep.subr.bf16.mxu1 %v13815_v16  ;;  %v9584_v50 = vpack.c.bf16 %v5651_v37, %v5650_v4  ;;  %v3718_v4 = vld [vmem:[#allocation2 + $0xb2c] sm:$0xff] }
 0x33c   : > { %8644 = vmatmul.mubr.f32.gmra.mrb[72].mxu1 %v3710_v62  ;;  %v3715_v62 = vld [vmem:[#allocation2 + $0xae4] sm:$0xff] }
 0x33d   : > { %9579 = vmatpush1.bf16.msra.mxu1 %v9578_v55  ;;  %8646 = vmatprep.mubr.f32.mxu1 %v3711_v24  ;;  %v5652_v55 = vld [vmem:[#allocation9 + $0x70] sm:$0xff]  ;;  %v5653_v24 = vld [vmem:[#allocation9 + $0x78] sm:$0xff] }
 0x33e   : > { %9580 = vmatprep.subr.bf16.mxu1 %v13815_v16  ;;  %v9587_v3 = vpack.c.bf16 %v5653_v24, %v5652_v55  ;;  %v3719_v24 = vld [vmem:[#allocation2 + $0xb64] sm:$0xff] }
 0x340   : > { %8647 = vmatmul.mubr.f32.gmra.mrb[74].mxu1 %v3712_v19  ;;  %v5654_v19 = vld [vmem:[#allocation9 + $0x80] sm:$0xff] }
 0x341   : > { %9582 = vmatpush1.bf16.msra.mxu1 %v9581_v36  ;;  %8649 = vmatprep.mubr.f32.mxu1 %v3713_v26  ;;  %v5655_v36 = vld [vmem:[#allocation9 + $0x88] sm:$0xff]  ;;  %v12432_v26 = vpop.f32.mrb[83].mxu0 }
 0x342   : > { %9583 = vmatprep.subr.bf16.mxu1 %v13815_v16  ;;  %v9590_v37 = vpack.c.bf16 %v5655_v36, %v5654_v19  ;;  %v12445_v19 = vpop.f32.mrb[84].mxu0  ;;  %v5658_v36 = vld [vmem:[#allocation9 + $0xa0] sm:$0xff] }
 0x343   : > { %v12447_v2 = vpop.f32.mrb[85].mxu0 }
 0x344   : > { %8650 = vmatmul.mubr.f32.gmra.mrb[76].mxu1 %v3714_v5  ;;  %v1362_v5 = vld [vmem:[%s13741_s6 + $0x8] sm:$0xff] }
 0x345   : > { %9585 = vmatpush1.bf16.msra.mxu1 %v9584_v50  ;;  %8652 = vmatprep.mubr.f32.mxu1 %v3715_v62  ;;  %v1361_v50 = vld [vmem:[%s13741_s6] sm:$0xff]  ;;  %v5657_v62 = vld [vmem:[#allocation9 + $0x98] sm:$0xff]  ;;  %v12451_v14 = vpop.f32.mrb[86].mxu0 }
 0x346   : > { %9586 = vmatprep.subr.bf16.mxu1 %v13815_v16  ;;  %v12441_v55 = vpack.c.bf16 %v1362_v5, %v1361_v50  ;;  %v3722_v50 = vld [vmem:[#allocation2 + $0xbac] sm:$0xff] }
 0x347   : > { %v5660_v5 = vld [vmem:[#allocation9 + $0xb0] sm:$0xff] }
 0x348   : > { %8653 = vmatmul.mubr.f32.gmra.mrb[78].mxu1 %v3716_v47  ;;  %9278 = vmatprep.subr.bf16.mxu0 %v12441_v55  ;;  %v9593_v47 = vpack.c.bf16 %v5657_v62, %v5656_v33  ;;  %v5661_v33 = vld [vmem:[#allocation9 + $0xb8] sm:$0xff]  ;;  %v3724_v62 = vld [vmem:[#allocation2 + $0xbec] sm:$0xff] }
 0x349   : > { %9588 = vmatpush1.bf16.msra.mxu1 %v9587_v3  ;;  %8655 = vmatprep.mubr.f32.mxu1 %v3717_v52  ;;  %v3720_v52 = vld [vmem:[#allocation2 + $0xb6c] sm:$0xff]  ;;  %v3721_v3 = vld [vmem:[#allocation2 + $0xba4] sm:$0xff] }
 0x34a   : > { %9589 = vmatprep.subr.bf16.mxu1 %v13815_v16 }
 0x34c   : > { %8656 = vmatmul.mubr.f32.gmra.mrb[80].mxu1 %v3718_v4  ;;  %v9596_v4 = vpack.c.bf16 %v5659_v38, %v5658_v36  ;;  %v3726_v38 = vld [vmem:[#allocation2 + $0xc2c] sm:$0xff] }
 0x34d   : > { %9591 = vmatpush1.bf16.msra.mxu1 %v9590_v37  ;;  %8658 = vmatprep.mubr.f32.mxu1 %v3719_v24  ;;  %v3723_v37 = vld [vmem:[#allocation2 + $0xbe4] sm:$0xff]  ;;  %v9599_v24 = vpack.c.bf16 %v5661_v33, %v5660_v5  ;;  %v3728_v5 = vld [vmem:[#allocation2 + $0xc6c] sm:$0xff] }
 0x34e   : > { %9592 = vmatprep.subr.bf16.mxu1 %v13815_v16 }
 0x350   : > { %8659 = vmatmul.mubr.f32.gmra.mrb[82].mxu1 %v3720_v52  ;;  %v5662_v52 = vld [vmem:[#allocation9 + $0xc0] sm:$0xff] }
 0x351   : > { %9594 = vmatpush1.bf16.msra.mxu1 %v9593_v47  ;;  %8661 = vmatprep.mubr.f32.mxu1 %v3721_v3  ;;  %v5663_v47 = vld [vmem:[#allocation9 + $0xc8] sm:$0xff]  ;;  %v12453_v3 = vpop.f32.mrb[87].mxu0 }
 0x352   : > { %9595 = vmatprep.subr.bf16.mxu1 %v13815_v16  ;;  %v9602_v36 = vpack.c.bf16 %v5663_v47, %v5662_v52  ;;  %v12457_v61 = vpop.f32.mrb[88].mxu0  ;;  %v3730_v52 = vld [vmem:[#allocation2 + $0xcac] sm:$0xff] }
 0x354   : > { %8662 = vmatmul.mubr.f32.gmra.mrb[84].mxu1 %v3722_v50  ;;  %v3727_v50 = vld [vmem:[#allocation2 + $0xc64] sm:$0xff] }
 0x355   : > { %9597 = vmatpush1.bf16.msra.mxu1 %v9596_v4  ;;  %8664 = vmatprep.mubr.f32.mxu1 %v3723_v37  ;;  %v5664_v4 = vld [vmem:[#allocation9 + $0xd0] sm:$0xff]  ;;  %v5665_v37 = vld [vmem:[#allocation9 + $0xd8] sm:$0xff] }
 0x356   : > { %9598 = vmatprep.subr.bf16.mxu1 %v13815_v16  ;;  %v9605_v33 = vpack.c.bf16 %v5665_v37, %v5664_v4  ;;  %v3732_v4 = vld [vmem:[#allocation2 + $0xcec] sm:$0xff] }
 0x358   : > { %8665 = vmatmul.mubr.f32.gmra.mrb[86].mxu1 %v3724_v62  ;;  %v5666_v62 = vld [vmem:[#allocation9 + $0xe0] sm:$0xff] }
 0x359   : > { %9600 = vmatpush1.bf16.msra.mxu1 %v9599_v24  ;;  %8667 = vmatprep.mubr.f32.mxu1 %v3725_v10  ;;  %v5667_v24 = vld [vmem:[#allocation9 + $0xe8] sm:$0xff]  ;;  %v12459_v10 = vpop.f32.mrb[89].mxu0 }
 0x35a   : > { %9601 = vmatprep.subr.bf16.mxu1 %v13815_v16  ;;  %v9608_v47 = vpack.c.bf16 %v5667_v24, %v5666_v62  ;;  %v12463_v43 = vpop.f32.mrb[90].mxu0  ;;  %v5383_v24 = vld [vmem:[#allocation2 + $0x1c6] sm:$0xff] }
 0x35b   : > { %v12465_v8 = vpop.f32.mrb[91].mxu0 }
 0x35c   : > { %8668 = vmatmul.mubr.f32.gmra.mrb[88].mxu1 %v3726_v38  ;;  %v3731_v38 = vld [vmem:[#allocation2 + $0xce4] sm:$0xff] }
 0x35d   : > { %9603 = vmatpush1.bf16.msra.mxu1 %v9602_v36  ;;  %8670 = vmatprep.mubr.f32.mxu1 %v3727_v50  ;;  %v5668_v36 = vld [vmem:[#allocation9 + $0xf0] sm:$0xff]  ;;  %v5669_v50 = vld [vmem:[#allocation9 + $0xf8] sm:$0xff] }
 0x35e   : > { %9604 = vmatprep.subr.bf16.mxu1 %v13815_v16  ;;  %v9611_v37 = vpack.c.bf16 %v5669_v50, %v5668_v36  ;;  %v5385_v36 = vld [vmem:[#allocation2 + $0x206] sm:$0xff]  ;;  %v2906_v50 = vsub.s32 1, %v12278_v53 }
 0x360   : > { %8671 = vmatmul.mubr.f32.gmra.mrb[90].mxu1 %v3728_v5  ;;  %v5382_v5 = vld [vmem:[#allocation2 + $0x18e] sm:$0xff]  ;;  %v12490_v13 = vrot.slane %v12303_v45, %v2906_v50 }
 0x361   : > { %9606 = vmatpush1.bf16.msra.mxu1 %v9605_v33  ;;  %8673 = vmatprep.mubr.f32.mxu1 %v3729_v12  ;;  %v5381_v12 = vld [vmem:[#allocation2 + $0x186] sm:$0xff]  ;;  %v12470_v33 = vpop.f32.mrb[92].mxu0 }
 0x362   : > { %9607 = vmatprep.subr.bf16.mxu1 %v13815_v16  ;;  %v12472_v62 = vpop.f32.mrb[93].mxu0 }
 0x364   : > { %8674 = vmatmul.mubr.f32.gmra.mrb[92].mxu1 %v3730_v52  ;;  %v5384_v52 = vld [vmem:[#allocation2 + $0x1ce] sm:$0xff] }
 0x365   : > { %9609 = vmatpush1.bf16.msra.mxu1 %v9608_v47  ;;  %8676 = vmatprep.mubr.f32.mxu1 %v3731_v38 }
 0x366   : > { %9610 = vmatprep.subr.bf16.mxu1 %v13815_v16 }
 0x368   : > { %8677 = vmatmul.mubr.f32.gmra.mrb[94].mxu1 %v3732_v4  ;;  %v12476_v47 = vpop.f32.mrb[94].mxu0  ;;  %v5386_v4 = vld [vmem:[#allocation2 + $0x20e] sm:$0xff] }
 0x369   : > { %9612 = vmatpush1.bf16.msra.mxu1 %v9611_v37  ;;  %5846 = vmatprep.mubr.f32.mxu1 %v12353_v20  ;;  %13816 = vst [vmem:[#allocation57_spill] sm:$0xff] %v12476_v47  ;;  %v12478_v38 = vpop.f32.mrb[95].mxu0 }
 0x36a   : > { %9613 = vmatprep.subr.bf16.mxu1 %v13815_v16  ;;  %13817 = vst [vmem:[#allocation58_spill] sm:$0xff] %v12478_v38 }
 0x36c   : > { %5847 = vmatmul.mubr.f32.vlgmr.msra.gmra.mrb[96].mxu1 %v5381_v12 }
 0x36d   : > { %5851 = vmatprep.mubr.f32.mxu1 %v12353_v20 }
 0x370   : > { %5852 = vmatmul.mubr.f32.gmra.mrb[98].mxu1 %v5382_v5 }
 0x371   : > { %5856 = vmatprep.mubr.f32.mxu1 %v12353_v20 }
 0x374   : > { %5857 = vmatmul.mubr.f32.gmra.mrb[100].mxu1 %v5383_v24  ;;  %v12485_v24 = vrot.slane %v12294_v54, %v2906_v50  ;;  %v5388_v54 = vld [vmem:[#allocation2 + $0x24e] sm:$0xff] }
 0x375   : > { %5861 = vmatprep.mubr.f32.mxu1 %v12353_v20 }
 0x378   : > { %5862 = vmatmul.mubr.f32.gmra.mrb[102].mxu1 %v5384_v52  ;;  %v5387_v52 = vld [vmem:[#allocation2 + $0x246] sm:$0xff] }
 0x379   : > { %5866 = vmatprep.mubr.f32.mxu1 %v12353_v20 }
 0x37c   : > { %5867 = vmatmul.mubr.f32.gmra.mrb[104].mxu1 %v5385_v36 }
 0x37d   : > { %5871 = vmatprep.mubr.f32.mxu1 %v12353_v20 }
 0x37f   : > { %v2520_v37 = vpop.f32.mrb[32].mxu1 }
 0x380   : > { %v9901_v12 = vadd.f32 %v2520_v37, %v12318_v31  ;;  %v2522_v5 = vpop.f32.mrb[33].mxu1  ;;  %5872 = vmatmul.mubr.f32.gmra.mrb[106].mxu1 %v5386_v4 }
 0x381   : > { %5876 = vmatprep.mubr.f32.mxu1 %v12353_v20 }
 0x382   : > { %v2746_v47 = vadd.f32 %v9901_v12, %v12367_v63 }
 0x383   : > { %v2525_v36 = vpop.f32.mrb[34].mxu1 }
 0x384   : > { %v2908_v53 = vmul.f32 %v12485_v24, %v2746_v47  ;;  %v9902_v59 = vadd.f32 %v2525_v36, %v12323_v15  ;;  %v2527_v38 = vpop.f32.mrb[35].mxu1  ;;  %5877 = vmatmul.mubr.f32.gmra.mrb[108].mxu1 %v5387_v52  ;;  %v1363_v15 = vld [vmem:[%s13741_s6 + $0x10] sm:$0xff]  ;;  %v1364_v47 = vld [vmem:[%s13741_s6 + $0x18] sm:$0xff] }
 0x385   : > { %5881 = vmatprep.mubr.f32.mxu1 %v12353_v20 }
 0x386   : > { %v2751_v31 = vadd.f32 %v9902_v59, %v12365_v28  ;;  %v2944_v4 = vadd.f32 %v12490_v13, %v2908_v53  ;;  %v5389_v59 = vld [vmem:[#allocation2 + $0x286] sm:$0xff] }
 0x387   : > { %v2530_v37 = vpop.f32.mrb[36].mxu1 }
 0x388   : > { %v2909_v63 = vmul.f32 %v12485_v24, %v2751_v31  ;;  %v9903_v45 = vadd.f32 %v2530_v37, %v12325_v25  ;;  %v2532_v50 = vpop.f32.mrb[37].mxu1  ;;  %v2976_v12 = vmax.f32 %v2944_v4, 0.0  ;;  %5882 = vmatmul.mubr.f32.gmra.mrb[110].mxu1 %v5388_v54  ;;  %v9281_v54 = vpack.c.bf16 %v1364_v47, %v1363_v15  ;;  %v1365_v31 = vld [vmem:[%s13741_s6 + $0x20] sm:$0xff]  ;;  %v1366_v4 = vld [vmem:[%s13741_s6 + $0x28] sm:$0xff] }
 0x389   : > { %5886 = vmatprep.mubr.f32.mxu1 %v12353_v20  ;;  %v9285_v47 = vpack.c.bf16 %v1366_v4, %v1365_v31  ;;  %v1369_v31 = vld [vmem:[%s13741_s6 + $0x40] sm:$0xff] }
 0x38a   : > { %v2945_v53 = vadd.f32 %v12490_v13, %v2909_v63  ;;  %v2756_v28 = vadd.f32 %v9903_v45, %v12385_v39  ;;  %8471 = vmatprep.mubr.f32.mxu0 %v2976_v12  ;;  %v5390_v39 = vld [vmem:[#allocation2 + $0x28e] sm:$0xff] }
 0x38b   : > { %v2535_v25 = vpop.f32.mrb[38].mxu1 }
 0x38c   : > { %v2977_v38 = vmax.f32 %v2945_v53, 0.0  ;;  %v2910_v5 = vmul.f32 %v12485_v24, %v2756_v28  ;;  %v9904_v52 = vadd.f32 %v2535_v25, %v12327_v32  ;;  %v2537_v36 = vpop.f32.mrb[39].mxu1  ;;  %5887 = vmatmul.mubr.f32.gmra.mrb[112].mxu1 %v5389_v59  ;;  %v1367_v59 = vld [vmem:[%s13741_s6 + $0x30] sm:$0xff] }
 0x38d   : > { %5891 = vmatprep.mubr.f32.mxu1 %v12353_v20 }
 0x38e   : > { %v2761_v37 = vadd.f32 %v9904_v52, %v12382_v1  ;;  %8472 = vmatmul.mubr.f32.vlgmr.msra.gmra.mrb[96].mxu0 %v2977_v38  ;;  %v2946_v63 = vadd.f32 %v12490_v13, %v2910_v5  ;;  %v1368_v1 = vld [vmem:[%s13741_s6 + $0x38] sm:$0xff] }
 0x38f   : > { %v2540_v32 = vpop.f32.mrb[40].mxu1  ;;  %9280 = vmatpush3.bf16.msra.mxu0 %v12441_v55  ;;  %v5391_v55 = vld [vmem:[#allocation2 + $0x2c6] sm:$0xff]  ;;  %v9289_v36 = vpack.c.bf16 %v1368_v1, %v1367_v59 }
 0x390   : > { %v2911_v45 = vmul.f32 %v12485_v24, %v2761_v37  ;;  %v9905_v50 = vadd.f32 %v2540_v32, %v12329_v9  ;;  %v2542_v12 = vpop.f32.mrb[41].mxu1  ;;  %v2978_v15 = vmax.f32 %v2946_v63, 0.0  ;;  %9282 = vmatprep.subr.bf16.mxu0 %v9281_v54  ;;  %5892 = vmatmul.mubr.f32.gmra.mrb[114].mxu1 %v5390_v39 }
 0x391   : > { %5896 = vmatprep.mubr.f32.mxu1 %v12353_v20  ;;  %v1371_v12 = vld [vmem:[%s13741_s6 + $0x50] sm:$0xff] }
 0x392   : > { %v2766_v53 = vadd.f32 %v9905_v50, %v12391_v7  ;;  %8474 = vmatprep.mubr.f32.mxu0 %v2978_v15  ;;  %v2947_v9 = vadd.f32 %v12490_v13, %v2911_v45  ;;  %v1370_v7 = vld [vmem:[%s13741_s6 + $0x48] sm:$0xff] }
 0x393   : > { %v2545_v28 = vpop.f32.mrb[42].mxu1  ;;  %9284 = vmatpush3.bf16.msra.mxu0 %v9281_v54  ;;  %v5392_v54 = vld [vmem:[#allocation2 + $0x2ce] sm:$0xff]  ;;  %v9293_v50 = vpack.c.bf16 %v1370_v7, %v1369_v31  ;;  %v5393_v15 = vld [vmem:[#allocation2 + $0x306] sm:$0xff] }
 0x394   : > { %v2912_v25 = vmul.f32 %v12485_v24, %v2766_v53  ;;  %v9906_v38 = vadd.f32 %v2545_v28, %v12331_v44  ;;  %v2547_v5 = vpop.f32.mrb[43].mxu1  ;;  %v2979_v52 = vmax.f32 %v2947_v9, 0.0  ;;  %9286 = vmatprep.subr.bf16.mxu0 %v9285_v47  ;;  %5897 = vmatmul.mubr.f32.gmra.mrb[116].mxu1 %v5391_v55 }
 0x395   : > { %5901 = vmatprep.mubr.f32.mxu1 %v12353_v20 }
 0x396   : > { %v2771_v4 = vadd.f32 %v9906_v38, %v12388_v41  ;;  %8475 = vmatmul.mubr.f32.gmra.mrb[98].mxu0 %v2979_v52  ;;  %v2948_v44 = vadd.f32 %v12490_v13, %v2912_v25  ;;  %v1372_v41 = vld [vmem:[%s13741_s6 + $0x58] sm:$0xff]  ;;  %v1373_v25 = vld [vmem:[%s13741_s6 + $0x60] sm:$0xff]  ;;  %v5394_v38 = vld [vmem:[#allocation2 + $0x30e] sm:$0xff] }
 0x397   : > { %v2550_v39 = vpop.f32.mrb[44].mxu1  ;;  %9288 = vmatpush3.bf16.msra.mxu0 %v9285_v47  ;;  %v9297_v28 = vpack.c.bf16 %v1372_v41, %v1371_v12 }
 0x398   : > { %v2913_v37 = vmul.f32 %v12485_v24, %v2771_v4  ;;  %v9907_v63 = vadd.f32 %v2550_v39, %v12333_v42  ;;  %v2552_v32 = vpop.f32.mrb[45].mxu1  ;;  %v2980_v45 = vmax.f32 %v2948_v44, 0.0  ;;  %9290 = vmatprep.subr.bf16.mxu0 %v9289_v36  ;;  %5902 = vmatmul.mubr.f32.gmra.mrb[118].mxu1 %v5392_v54  ;;  %v1375_v44 = vld [vmem:[%s13741_s6 + $0x70] sm:$0xff]  ;;  %v5395_v39 = vld [vmem:[#allocation2 + $0x346] sm:$0xff] }
 0x399   : > { %5906 = vmatprep.mubr.f32.mxu1 %v12353_v20 }
 0x39a   : > { %v2776_v47 = vadd.f32 %v9907_v63, %v12397_v49  ;;  %8477 = vmatprep.mubr.f32.mxu0 %v2980_v45  ;;  %v2949_v42 = vadd.f32 %v12490_v13, %v2913_v37  ;;  %v1374_v49 = vld [vmem:[%s13741_s6 + $0x68] sm:$0xff]  ;;  %v5670_v45 = vld [vmem:[#allocation9 + $0x100] sm:$0xff] }
 0x39b   : > { %v2555_v59 = vpop.f32.mrb[46].mxu1  ;;  %9292 = vmatpush3.bf16.msra.mxu0 %v9289_v36  ;;  %v9301_v4 = vpack.c.bf16 %v1374_v49, %v1373_v25 }
 0x39c   : > { %v2914_v1 = vmul.f32 %v12485_v24, %v2776_v47  ;;  %v9908_v55 = vadd.f32 %v2555_v59, %v12335_v21  ;;  %v2557_v53 = vpop.f32.mrb[47].mxu1  ;;  %v2981_v9 = vmax.f32 %v2949_v42, 0.0  ;;  %9294 = vmatprep.subr.bf16.mxu0 %v9293_v50  ;;  %5907 = vmatmul.mubr.f32.gmra.mrb[120].mxu1 %v5393_v15 }
 0x39d   : > { %5911 = vmatprep.mubr.f32.mxu1 %v12353_v20  ;;  %v5672_v53 = vld [vmem:[#allocation9 + $0x110] sm:$0xff] }
 0x39e   : > { %v2781_v5 = vadd.f32 %v9908_v55, %v12394_v48  ;;  %8478 = vmatmul.mubr.f32.gmra.mrb[100].mxu0 %v2981_v9  ;;  %v2950_v21 = vadd.f32 %v12490_v13, %v2914_v1  ;;  %v1376_v48 = vld [vmem:[%s13741_s6 + $0x78] sm:$0xff] }
 0x39f   : > { %v2560_v52 = vpop.f32.mrb[48].mxu1  ;;  %9296 = vmatpush3.bf16.msra.mxu0 %v9293_v50  ;;  %v9305_v32 = vpack.c.bf16 %v1376_v48, %v1375_v44  ;;  %v5671_v50 = vld [vmem:[#allocation9 + $0x108] sm:$0xff] }
 0x3a0   : > { %v2915_v36 = vmul.f32 %v12485_v24, %v2781_v5  ;;  %v9909_v31 = vadd.f32 %v2560_v52, %v12337_v11  ;;  %v2562_v7 = vpop.f32.mrb[49].mxu1  ;;  %v2982_v54 = vmax.f32 %v2950_v21, 0.0  ;;  %9298 = vmatprep.subr.bf16.mxu0 %v9297_v28  ;;  %5912 = vmatmul.mubr.f32.gmra.mrb[122].mxu1 %v5394_v38  ;;  %v9614_v42 = vpack.c.bf16 %v5671_v50, %v5670_v45  ;;  %v5398_v44 = vld [vmem:[#allocation2 + $0x38e] sm:$0xff] }
 0x3a1   : > { %5916 = vmatprep.mubr.f32.mxu1 %v12353_v20 }
 0x3a2   : > { %v2786_v37 = vadd.f32 %v9909_v31, %v12403_v35  ;;  %8480 = vmatprep.mubr.f32.mxu0 %v2982_v54  ;;  %v2951_v11 = vadd.f32 %v12490_v13, %v2915_v36  ;;  %v5396_v35 = vld [vmem:[#allocation2 + $0x34e] sm:$0xff]  ;;  %9615 = vmatpush1.bf16.msra.mxu1 %v9614_v42  ;;  %v5674_v36 = vld [vmem:[#allocation9 + $0x120] sm:$0xff] }
 0x3a3   : > { %v2565_v63 = vpop.f32.mrb[50].mxu1  ;;  %9300 = vmatpush3.bf16.msra.mxu0 %v9297_v28  ;;  %9616 = vmatprep.subr.bf16.mxu1 %v13815_v16  ;;  %v5678_v42 = vld [vmem:[#allocation9 + $0x140] sm:$0xff] }
 0x3a4   : > { %v2916_v12 = vmul.f32 %v12485_v24, %v2786_v37  ;;  %v9910_v41 = vadd.f32 %v2565_v63, %v12339_v29  ;;  %v2567_v15 = vpop.f32.mrb[51].mxu1  ;;  %v2983_v47 = vmax.f32 %v2951_v11, 0.0  ;;  %9302 = vmatprep.subr.bf16.mxu0 %v9301_v4  ;;  %5917 = vmatmul.mubr.f32.gmra.mrb[124].mxu1 %v5395_v39  ;;  %v5673_v29 = vld [vmem:[#allocation9 + $0x118] sm:$0xff]  ;;  %v5676_v11 = vld [vmem:[#allocation9 + $0x130] sm:$0xff] }
 0x3a5   : > { %5921 = vmatprep.mubr.f32.mxu1 %v12353_v20  ;;  %v9617_v38 = vpack.c.bf16 %v5673_v29, %v5672_v53 }
 0x3a6   : > { %v2791_v59 = vadd.f32 %v9910_v41, %v12400_v27  ;;  %8481 = vmatmul.mubr.f32.gmra.mrb[102].mxu0 %v2983_v47  ;;  %v2952_v1 = vadd.f32 %v12490_v13, %v2916_v12  ;;  %v5397_v27 = vld [vmem:[#allocation2 + $0x386] sm:$0xff] }
 0x3a7   : > { %v2570_v55 = vpop.f32.mrb[52].mxu1  ;;  %9304 = vmatpush3.bf16.msra.mxu0 %v9301_v4  ;;  %9618 = vmatpush1.bf16.msra.mxu1 %v9617_v38 }
 0x3a8   : > { %v2917_v9 = vmul.f32 %v12485_v24, %v2791_v59  ;;  %v9911_v28 = vadd.f32 %v2570_v55, %v12341_v18  ;;  %v2572_v25 = vpop.f32.mrb[53].mxu1  ;;  %v2984_v49 = vmax.f32 %v2952_v1, 0.0  ;;  %9306 = vmatprep.subr.bf16.mxu0 %v9305_v32  ;;  %5922 = vmatmul.mubr.f32.gmra.mrb[126].mxu1 %v5396_v35  ;;  %v5675_v18 = vld [vmem:[#allocation9 + $0x128] sm:$0xff] }
 0x3a9   : > { %5926 = vmatprep.mubr.f32.mxu1 %v12353_v20  ;;  %9619 = vmatprep.subr.bf16.mxu1 %v13815_v16  ;;  %v5679_v35 = vld [vmem:[#allocation9 + $0x148] sm:$0xff]  ;;  %v5680_v25 = vld [vmem:[#allocation9 + $0x150] sm:$0xff] }
 0x3aa   : > { %v2796_v5 = vadd.f32 %v9911_v28, %v12409_v58  ;;  %8483 = vmatprep.mubr.f32.mxu0 %v2984_v49  ;;  %v2953_v21 = vadd.f32 %v12490_v13, %v2917_v9  ;;  %v9620_v58 = vpack.c.bf16 %v5675_v18, %v5674_v36  ;;  %v9626_v53 = vpack.c.bf16 %v5679_v35, %v5678_v42  ;;  %v5681_v49 = vld [vmem:[#allocation9 + $0x158] sm:$0xff] }
 0x3ab   : > { %v2575_v52 = vpop.f32.mrb[54].mxu1  ;;  %9308 = vmatpush3.bf16.msra.mxu0 %v9305_v32 }
 0x3ac   : > { %v2918_v31 = vmul.f32 %v12485_v24, %v2796_v5  ;;  %v9912_v7 = vadd.f32 %v2575_v52, %v12343_v30  ;;  %v2577_v54 = vpop.f32.mrb[55].mxu1  ;;  %v2985_v4 = vmax.f32 %v2953_v21, 0.0  ;;  %9309 = vmatprep.subr.bf16.mxu0 %v13815_v16  ;;  %5927 = vmatmul.mubr.f32.gmra.mrb[128].mxu1 %v5397_v27  ;;  %v5677_v30 = vld [vmem:[#allocation9 + $0x138] sm:$0xff]  ;;  %v9629_v21 = vpack.c.bf16 %v5681_v49, %v5680_v25 }
 0x3ad   : > { %5931 = vmatprep.mubr.f32.mxu1 %v12353_v20  ;;  %9621 = vmatpush1.bf16.msra.mxu1 %v9620_v58  ;;  %v9623_v12 = vpack.c.bf16 %v5677_v30, %v5676_v11  ;;  %v5684_v11 = vld [vmem:[#allocation9 + $0x170] sm:$0xff] }
 0x3ae   : > { %v2801_v48 = vadd.f32 %v9912_v7, %v12407_v0  ;;  %8484 = vmatmul.mubr.f32.gmra.mrb[104].mxu0 %v2985_v4  ;;  %v2954_v39 = vadd.f32 %v12490_v13, %v2918_v31  ;;  %9622 = vmatprep.subr.bf16.mxu1 %v13815_v16  ;;  %v5399_v0 = vld [vmem:[#allocation2 + $0x3c6] sm:$0xff] }
 0x3af   : > { %v2580_v37 = vpop.f32.mrb[56].mxu1  ;;  %v5682_v31 = vld [vmem:[#allocation9 + $0x160] sm:$0xff]  ;;  %v5683_v7 = vld [vmem:[#allocation9 + $0x168] sm:$0xff] }
 0x3b0   : > { %v2919_v63 = vmul.f32 %v12485_v24, %v2801_v48  ;;  %v9913_v32 = vadd.f32 %v2580_v37, %v12345_v40  ;;  %v2582_v45 = vpop.f32.mrb[57].mxu1  ;;  %v2986_v50 = vmax.f32 %v2954_v39, 0.0  ;;  %5932 = vmatmul.mubr.f32.gmra.mrb[130].mxu1 %v5398_v44  ;;  %v12614_v44 = vld [vmem:[#allocation2] sm:$0xff] }
 0x3b1   : > { %5936 = vmatprep.mubr.f32.mxu1 %v12353_v20  ;;  %9624 = vmatpush1.bf16.msra.mxu1 %v9623_v12 }
 0x3b2   : > { %v2806_v41 = vadd.f32 %v9913_v32, %v12414_v6  ;;  %8486 = vmatprep.mubr.f32.mxu0 %v2986_v50  ;;  %v2955_v15 = vadd.f32 %v12490_v13, %v2919_v63  ;;  %9625 = vmatprep.subr.bf16.mxu1 %v13815_v16  ;;  %v5400_v6 = vld [vmem:[#allocation2 + $0x3ce] sm:$0xff] }
 0x3b3   : > { %v2585_v47 = vpop.f32.mrb[58].mxu1 }
 0x3b4   : > { %v2920_v40 = vmul.f32 %v12485_v24, %v2806_v41  ;;  %v9914_v59 = vadd.f32 %v2585_v47, %v12348_v57  ;;  %v2587_v1 = vpop.f32.mrb[59].mxu1  ;;  %v2987_v55 = vmax.f32 %v2955_v15, 0.0  ;;  %5937 = vmatmul.mubr.f32.gmra.mrb[132].mxu1 %v5399_v0  ;;  %v5686_v15 = vld [vmem:[#allocation9 + $0x180] sm:$0xff]  ;;  %v5687_v47 = vld [vmem:[#allocation9 + $0x188] sm:$0xff] }
 0x3b5   : > { %5941 = vmatprep.mubr.f32.mxu1 %v12353_v20  ;;  %9627 = vmatpush1.bf16.msra.mxu1 %v9626_v53  ;;  %v5404_v1 = vld [vmem:[#allocation2 + $0x44e] sm:$0xff] }
 0x3b6   : > { %v2811_v29 = vadd.f32 %v9914_v59, %v12412_v22  ;;  %8487 = vmatmul.mubr.f32.gmra.mrb[106].mxu0 %v2987_v55  ;;  %v2956_v9 = vadd.f32 %v12490_v13, %v2920_v40  ;;  %9628 = vmatprep.subr.bf16.mxu1 %v13815_v16  ;;  %v5401_v22 = vld [vmem:[#allocation2 + $0x406] sm:$0xff]  ;;  %v9638_v59 = vpack.c.bf16 %v5687_v47, %v5686_v15  ;;  %v5696_v15 = vld [vmem:[#allocation9 + $0x1d0] sm:$0xff]  ;;  %v5697_v47 = vld [vmem:[#allocation9 + $0x1d8] sm:$0xff] }
 0x3b7   : > { %v2590_v28 = vpop.f32.mrb[60].mxu1 }
 0x3b8   : > { %v2921_v57 = vmul.f32 %v12485_v24, %v2811_v29  ;;  %v9915_v38 = vadd.f32 %v2590_v28, %v12351_v23  ;;  %v2592_v27 = vpop.f32.mrb[61].mxu1  ;;  %v2988_v5 = vmax.f32 %v2956_v9, 0.0  ;;  %5942 = vmatmul.mubr.f32.gmra.mrb[134].mxu1 %v5400_v6  ;;  %v5688_v29 = vld [vmem:[#allocation9 + $0x190] sm:$0xff]  ;;  %v5689_v9 = vld [vmem:[#allocation9 + $0x198] sm:$0xff] }
 0x3b9   : > { %5946 = vmatprep.mubr.f32.mxu1 %v12353_v20  ;;  %9630 = vmatpush1.bf16.msra.mxu1 %v9629_v21  ;;  %v9632_v20 = vpack.c.bf16 %v5683_v7, %v5682_v31  ;;  %v9641_v49 = vpack.c.bf16 %v5689_v9, %v5688_v29  ;;  %v5690_v21 = vld [vmem:[#allocation9 + $0x1a0] sm:$0xff]  ;;  %v5406_v31 = vld [vmem:[#allocation2 + $0x48e] sm:$0xff] }
 0x3ba   : > { %v2816_v52 = vadd.f32 %v9915_v38, %v12420_v34  ;;  %8489 = vmatprep.mubr.f32.mxu0 %v2988_v5  ;;  %v2957_v36 = vadd.f32 %v12490_v13, %v2921_v57  ;;  %9631 = vmatprep.subr.bf16.mxu1 %v13815_v16  ;;  %v5402_v34 = vld [vmem:[#allocation2 + $0x40e] sm:$0xff]  ;;  %v5405_v57 = vld [vmem:[#allocation2 + $0x486] sm:$0xff] }
 0x3bb   : > { %v2595_v18 = vpop.f32.mrb[62].mxu1 }
 0x3bc   : > { %v2922_v23 = vmul.f32 %v12485_v24, %v2816_v52  ;;  %v9916_v54 = vadd.f32 %v2595_v18, %v12356_v51  ;;  %v2597_v4 = vpop.f32.mrb[63].mxu1  ;;  %v2989_v58 = vmax.f32 %v2957_v36, 0.0  ;;  %5947 = vmatmul.mubr.f32.gmra.mrb[136].mxu1 %v5401_v22  ;;  %v5685_v51 = vld [vmem:[#allocation9 + $0x178] sm:$0xff]  ;;  %v5691_v22 = vld [vmem:[#allocation9 + $0x1a8] sm:$0xff] }
 0x3bd   : > { %5951 = vmatprep.mubr.f32.mxu1 %v12614_v44  ;;  %9633 = vmatpush1.bf16.msra.mxu1 %v9632_v20  ;;  %v9635_v50 = vpack.c.bf16 %v5685_v51, %v5684_v11  ;;  %v9644_v18 = vpack.c.bf16 %v5691_v22, %v5690_v21  ;;  %v5692_v4 = vld [vmem:[#allocation9 + $0x1b0] sm:$0xff] }
 0x3be   : > { %v2821_v48 = vadd.f32 %v9916_v54, %v12418_v56  ;;  %8490 = vmatmul.mubr.f32.gmra.mrb[108].mxu0 %v2989_v58  ;;  %v2958_v39 = vadd.f32 %v12490_v13, %v2922_v23  ;;  %9634 = vmatprep.subr.bf16.mxu1 %v13815_v16  ;;  %v5403_v56 = vld [vmem:[#allocation2 + $0x446] sm:$0xff]  ;;  %v5693_v58 = vld [vmem:[#allocation9 + $0x1b8] sm:$0xff] }
 0x3bf   : > { %v2600_v37 = vpop.f32.mrb[0].mxu1 }
 0x3c0   : > { %v2923_v30 = vmul.f32 %v12485_v24, %v2821_v48  ;;  %v2826_v63 = vadd.f32 %v12426_v17, %v2600_v37  ;;  %v2602_v32 = vpop.f32.mrb[1].mxu1  ;;  %v2990_v45 = vmax.f32 %v2958_v39, 0.0  ;;  %5952 = vmatmul.mubr.f32.gmra.mrb[138].mxu1 %v5402_v34  ;;  %v9647_v48 = vpack.c.bf16 %v5693_v58, %v5692_v4  ;;  %v5407_v39 = vld [vmem:[#allocation2 + $0x4c6] sm:$0xff] }
 0x3c1   : > { %5956 = vmatprep.mubr.f32.mxu1 %v12614_v44  ;;  %9636 = vmatpush1.bf16.msra.mxu1 %v9635_v50  ;;  %v5477_v58 = vld [vmem:[#allocation2 + $0x606] sm:$0xff] }
 0x3c2   : > { %v2924_v12 = vmul.f32 %v12485_v24, %v2826_v63  ;;  %8492 = vmatprep.mubr.f32.mxu0 %v2990_v45  ;;  %v2959_v0 = vadd.f32 %v12490_v13, %v2923_v30  ;;  %9637 = vmatprep.subr.bf16.mxu1 %v13815_v16  ;;  %v5694_v30 = vld [vmem:[#allocation9 + $0x1c0] sm:$0xff]  ;;  %v5695_v63 = vld [vmem:[#allocation9 + $0x1c8] sm:$0xff] }
 0x3c3   : > { %v2605_v41 = vpop.f32.mrb[2].mxu1  ;;  %v9650_v50 = vpack.c.bf16 %v5695_v63, %v5694_v30 }
 0x3c4   : > { %v2831_v17 = vadd.f32 %v12424_v60, %v2605_v41  ;;  %v2607_v42 = vpop.f32.mrb[3].mxu1  ;;  %v2991_v35 = vmax.f32 %v2959_v0, 0.0  ;;  %v2960_v40 = vadd.f32 %v12490_v13, %v2924_v12  ;;  %5957 = vmatmul.mubr.f32.gmra.mrb[140].mxu1 %v5403_v56  ;;  %v5408_v56 = vld [vmem:[#allocation2 + $0x4ce] sm:$0xff] }
 0x3c5   : > { %5961 = vmatprep.mubr.f32.mxu1 %v12614_v44  ;;  %9639 = vmatpush1.bf16.msra.mxu1 %v9638_v59 }
 0x3c6   : > { %v2925_v55 = vmul.f32 %v12485_v24, %v2831_v17  ;;  %8493 = vmatmul.mubr.f32.gmra.mrb[110].mxu0 %v2991_v35  ;;  %v2992_v53 = vmax.f32 %v2960_v40, 0.0  ;;  %9640 = vmatprep.subr.bf16.mxu1 %v13815_v16  ;;  %v9653_v35 = vpack.c.bf16 %v5697_v47, %v5696_v15  ;;  %v5409_v40 = vld [vmem:[#allocation2 + $0x506] sm:$0xff]  ;;  %v5480_v47 = vld [vmem:[#allocation2 + $0x64e] sm:$0xff] }
 0x3c7   : > { %v2610_v6 = vpop.f32.mrb[4].mxu1 }
 0x3c8   : > { %v2836_v60 = vadd.f32 %v12432_v26, %v2610_v6  ;;  %v2612_v28 = vpop.f32.mrb[5].mxu1  ;;  %8495 = vmatprep.mubr.f32.mxu0 %v2992_v53  ;;  %v2961_v25 = vadd.f32 %v12490_v13, %v2925_v55  ;;  %5962 = vmatmul.mubr.f32.gmra.mrb[142].mxu1 %v5404_v1  ;;  %v5698_v53 = vld [vmem:[#allocation9 + $0x1e0] sm:$0xff]  ;;  %v5699_v6 = vld [vmem:[#allocation9 + $0x1e8] sm:$0xff] }
 0x3c9   : > { %5966 = vmatprep.mubr.f32.mxu1 %v12614_v44  ;;  %9642 = vmatpush1.bf16.msra.mxu1 %v9641_v49  ;;  %v5410_v28 = vld [vmem:[#allocation2 + $0x50e] sm:$0xff] }
 0x3ca   : > { %v2926_v38 = vmul.f32 %v12485_v24, %v2836_v60  ;;  %v2993_v27 = vmax.f32 %v2961_v25, 0.0  ;;  %9643 = vmatprep.subr.bf16.mxu1 %v13815_v16  ;;  %v9656_v60 = vpack.c.bf16 %v5699_v6, %v5698_v53  ;;  %v13818_v53 = vld [vmem:[#allocation58_spill] sm:$0xff] }
 0x3cb   : > { %v2615_v5 = vpop.f32.mrb[6].mxu1 }
 0x3cc   : > { %v2841_v26 = vadd.f32 %v12430_v46, %v2615_v5  ;;  %v2617_v52 = vpop.f32.mrb[7].mxu1  ;;  %8496 = vmatmul.mubr.f32.gmra.mrb[112].mxu0 %v2993_v27  ;;  %v2962_v36 = vadd.f32 %v12490_v13, %v2926_v38  ;;  %5967 = vmatmul.mubr.f32.gmra.mrb[144].mxu1 %v5405_v57  ;;  %v5700_v38 = vld [vmem:[#allocation9 + $0x1f0] sm:$0xff]  ;;  %v5701_v27 = vld [vmem:[#allocation9 + $0x1f8] sm:$0xff] }
 0x3cd   : > { %5971 = vmatprep.mubr.f32.mxu1 %v12614_v44  ;;  %9645 = vmatpush1.bf16.msra.mxu1 %v9644_v18  ;;  %v9659_v22 = vpack.c.bf16 %v5701_v27, %v5700_v38  ;;  %v13821_v27 = vld [vmem:[#allocation57_spill] sm:$0xff] }
 0x3ce   : > { %v2927_v7 = vmul.f32 %v12485_v24, %v2841_v26  ;;  %v2994_v23 = vmax.f32 %v2962_v36, 0.0  ;;  %9646 = vmatprep.subr.bf16.mxu1 %v13815_v16  ;;  %v5411_v26 = vld [vmem:[#allocation2 + $0x546] sm:$0xff] }
 0x3cf   : > { %v2620_v54 = vpop.f32.mrb[8].mxu1 }
 0x3d0   : > { %v2846_v46 = vadd.f32 %v12447_v2, %v2620_v54  ;;  %v2622_v20 = vpop.f32.mrb[9].mxu1  ;;  %8498 = vmatprep.mubr.f32.mxu0 %v2994_v23  ;;  %v2963_v34 = vadd.f32 %v12490_v13, %v2927_v7  ;;  %5972 = vmatmul.mubr.f32.gmra.mrb[146].mxu1 %v5406_v31  ;;  %v5412_v23 = vld [vmem:[#allocation2 + $0x54e] sm:$0xff] }
 0x3d1   : > { %5976 = vmatprep.mubr.f32.mxu1 %v12614_v44  ;;  %9648 = vmatpush1.bf16.msra.mxu1 %v9647_v48 }
 0x3d2   : > { %v2928_v37 = vmul.f32 %v12485_v24, %v2846_v46  ;;  %v2995_v11 = vmax.f32 %v2963_v34, 0.0  ;;  %9649 = vmatprep.subr.bf16.mxu1 %v13815_v16 }
 0x3d3   : > { %v2625_v51 = vpop.f32.mrb[10].mxu1 }
 0x3d4   : > { %v2851_v2 = vadd.f32 %v12445_v19, %v2625_v51  ;;  %v2627_v32 = vpop.f32.mrb[11].mxu1  ;;  %8499 = vmatmul.mubr.f32.gmra.mrb[114].mxu0 %v2995_v11  ;;  %v2964_v45 = vadd.f32 %v12490_v13, %v2928_v37  ;;  %5977 = vmatmul.mubr.f32.gmra.mrb[148].mxu1 %v5407_v39  ;;  %v5478_v11 = vld [vmem:[#allocation2 + $0x60e] sm:$0xff] }
 0x3d5   : > { %5981 = vmatprep.mubr.f32.mxu1 %v12614_v44  ;;  %9651 = vmatpush1.bf16.msra.mxu1 %v9650_v50 }
 0x3d6   : > { %v2929_v12 = vmul.f32 %v12485_v24, %v2851_v2  ;;  %v2996_v0 = vmax.f32 %v2964_v45, 0.0  ;;  %9652 = vmatprep.subr.bf16.mxu1 %v13815_v16  ;;  %v5479_v45 = vld [vmem:[#allocation2 + $0x646] sm:$0xff] }
 0x3d7   : > { %v2630_v41 = vpop.f32.mrb[12].mxu1 }
 0x3d8   : > { %v2856_v19 = vadd.f32 %v12453_v3, %v2630_v41  ;;  %v2632_v17 = vpop.f32.mrb[13].mxu1  ;;  %8501 = vmatprep.mubr.f32.mxu0 %v2996_v0  ;;  %v2965_v42 = vadd.f32 %v12490_v13, %v2929_v12  ;;  %5982 = vmatmul.mubr.f32.gmra.mrb[150].mxu1 %v5408_v56 }
 0x3d9   : > { %5986 = vmatprep.mubr.f32.mxu1 %v12614_v44  ;;  %9654 = vmatpush1.bf16.msra.mxu1 %v9653_v35 }
 0x3da   : > { %v2930_v59 = vmul.f32 %v12485_v24, %v2856_v19  ;;  %v2997_v1 = vmax.f32 %v2965_v42, 0.0  ;;  %9655 = vmatprep.subr.bf16.mxu1 %v13815_v16 }
 0x3db   : > { %v2635_v55 = vpop.f32.mrb[14].mxu1 }
 0x3dc   : > { %v2861_v3 = vadd.f32 %v12451_v14, %v2635_v55  ;;  %v2637_v29 = vpop.f32.mrb[15].mxu1  ;;  %8502 = vmatmul.mubr.f32.gmra.mrb[116].mxu0 %v2997_v1  ;;  %v2966_v9 = vadd.f32 %v12490_v13, %v2930_v59  ;;  %5987 = vmatmul.mubr.f32.gmra.mrb[152].mxu1 %v5409_v40  ;;  %v5481_v1 = vld [vmem:[#allocation2 + $0x686] sm:$0xff] }
 0x3dd   : > { %5991 = vmatprep.mubr.f32.mxu1 %v12614_v44  ;;  %9657 = vmatpush1.bf16.msra.mxu1 %v9656_v60 }
 0x3de   : > { %v2931_v25 = vmul.f32 %v12485_v24, %v2861_v3  ;;  %v2998_v49 = vmax.f32 %v2966_v9, 0.0  ;;  %9658 = vmatprep.subr.bf16.mxu1 %v13815_v16 }
 0x3df   : > { %v2640_v57 = vpop.f32.mrb[16].mxu1 }
 0x3e0   : > { %v2866_v14 = vadd.f32 %v12459_v10, %v2640_v57  ;;  %v2642_v5 = vpop.f32.mrb[17].mxu1  ;;  %8504 = vmatprep.mubr.f32.mxu0 %v2998_v49  ;;  %v2967_v21 = vadd.f32 %v12490_v13, %v2931_v25  ;;  %5992 = vmatmul.mubr.f32.gmra.mrb[154].mxu1 %v5410_v28  ;;  %v5482_v28 = vld [vmem:[#allocation2 + $0x68e] sm:$0xff] }
 0x3e1   : > { %5996 = vmatprep.mubr.f32.mxu1 %v12614_v44  ;;  %9660 = vmatpush1.bf16.msra.mxu1 %v9659_v22  ;;  %v13819_v25 = vld [vmem:[#allocation23_spill] sm:$0xff]  ;;  %v13820_v49 = vld [vmem:[#allocation52_spill] sm:$0xff] }
 0x3e2   : > { %v2932_v52 = vmul.f32 %v12485_v24, %v2866_v14  ;;  %v2999_v36 = vmax.f32 %v2967_v21, 0.0  ;;  %9661 = vmatprep.subr.bf16.mxu1 %v13815_v16  ;;  %v1261_v57 = vmul.f32 %v13820_v49, %v13819_v25  ;;  %v5450_v22 = vld [vmem:[#allocation2 + $0x232] sm:$0xff] }
 0x3e3   : > { %v2645_v18 = vpop.f32.mrb[18].mxu1  ;;  %v3739_v25 = vld [vmem:[#allocation8 + $0x30] sm:$0xff] }
 0x3e4   : > { %v2871_v31 = vadd.f32 %v12457_v61, %v2645_v18  ;;  %v2647_v7 = vpop.f32.mrb[19].mxu1  ;;  %8505 = vmatmul.mubr.f32.gmra.mrb[118].mxu0 %v2999_v36  ;;  %v2968_v10 = vadd.f32 %v12490_v13, %v2932_v52  ;;  %5997 = vmatmul.mubr.f32.gmra.mrb[156].mxu1 %v5411_v26  ;;  %v5445_v61 = vld [vmem:[#allocation2 + $0x1aa] sm:$0xff]  ;;  %v13822_v26 = vld [vmem:[#allocation22_spill] sm:$0xff] }
 0x3e5   : > { %6001 = vmatprep.mubr.f32.mxu1 %v12614_v44  ;;  %v1262_v52 = vmul.f32 %v13822_v26, %v13820_v49  ;;  %v13823_v7 = vld [vmem:[#allocation54_spill] sm:$0xff]  ;;  %v5455_v26 = vld [vmem:[#allocation2 + $0x2ea] sm:$0xff] }
 0x3e6   : > { %v2933_v54 = vmul.f32 %v12485_v24, %v2871_v31  ;;  %v3000_v4 = vmax.f32 %v2968_v10, 0.0  ;;  %v5483_v31 = vld [vmem:[#allocation2 + $0x6c6] sm:$0xff]  ;;  %v1297_v10 = vadd.f32 %v13823_v7, %v1261_v57  ;;  %v3740_v57 = vld [vmem:[#allocation8 + $0x38] sm:$0xff] }
 0x3e7   : > { %v2650_v46 = vpop.f32.mrb[20].mxu1 }
 0x3e8   : > { %v2876_v20 = vadd.f32 %v12465_v8, %v2650_v46  ;;  %v2652_v34 = vpop.f32.mrb[21].mxu1  ;;  %8507 = vmatprep.mubr.f32.mxu0 %v3000_v4  ;;  %v2969_v48 = vadd.f32 %v12490_v13, %v2933_v54  ;;  %6002 = vmatmul.mubr.f32.gmra.mrb[158].mxu1 %v5412_v23  ;;  %v5446_v8 = vld [vmem:[#allocation2 + $0x1b2] sm:$0xff]  ;;  %v1298_v46 = vadd.f32 %v13823_v7, %v1262_v52 }
 0x3e9   : > { %6071 = vmatprep.mubr.f32.mxu1 %v5477_v58  ;;  %v13824_v23 = vld [vmem:[#allocation25_spill] sm:$0xff]  ;;  %v5451_v58 = vld [vmem:[#allocation2 + $0x26a] sm:$0xff] }
 0x3ea   : > { %v2934_v39 = vmul.f32 %v12485_v24, %v2876_v20  ;;  %v3001_v37 = vmax.f32 %v2969_v48, 0.0  ;;  %v1263_v54 = vmul.f32 %v13820_v49, %v13824_v23  ;;  %v13825_v20 = vld [vmem:[#allocation24_spill] sm:$0xff]  ;;  %v3742_v23 = vld [vmem:[#allocation8 + $0x48] sm:$0xff] }
 0x3eb   : > { %v2655_v44 = vpop.f32.mrb[22].mxu1  ;;  %v1264_v34 = vmul.f32 %v13825_v20, %v13820_v49  ;;  %v5488_v20 = vld [vmem:[#allocation2 + $0x74e] sm:$0xff] }
 0x3ec   : > { %v2881_v51 = vadd.f32 %v12463_v43, %v2655_v44  ;;  %v2657_v30 = vpop.f32.mrb[23].mxu1  ;;  %8508 = vmatmul.mubr.f32.gmra.mrb[120].mxu0 %v3001_v37  ;;  %v2970_v63 = vadd.f32 %v12490_v13, %v2934_v39  ;;  %6072 = vmatmul.mubr.f32.vlgmr.msra.gmra.mrb[96].mxu1 %v5445_v61  ;;  %v5447_v43 = vld [vmem:[#allocation2 + $0x1ea] sm:$0xff]  ;;  %v1329_v37 = vmax.f32 %v1297_v10, 0.0  ;;  %v3741_v10 = vld [vmem:[#allocation8 + $0x40] sm:$0xff] }
 0x3ed   : > { %6076 = vmatprep.mubr.f32.mxu1 %v5478_v11  ;;  %v3734_v61 = vld [vmem:[#allocation8 + $0x8] sm:$0xff]  ;;  %v1299_v11 = vadd.f32 %v13823_v7, %v1263_v54  ;;  %v5452_v30 = vld [vmem:[#allocation2 + $0x272] sm:$0xff] }
 0x3ee   : > { %v2935_v2 = vmul.f32 %v12485_v24, %v2881_v51  ;;  %v3002_v32 = vmax.f32 %v2970_v63, 0.0  ;;  %v5484_v39 = vld [vmem:[#allocation2 + $0x6ce] sm:$0xff]  ;;  %v1330_v63 = vmax.f32 %v1298_v46, 0.0 }
 0x3ef   : > { %v2660_v50 = vpop.f32.mrb[24].mxu1  ;;  %v13826_v44 = vld [vmem:[#allocation27_spill] sm:$0xff] }
 0x3f0   : > { %v2886_v56 = vadd.f32 %v12472_v62, %v2660_v50  ;;  %v2662_v12 = vpop.f32.mrb[25].mxu1  ;;  %8510 = vmatprep.mubr.f32.mxu0 %v3002_v32  ;;  %v2971_v0 = vadd.f32 %v12490_v13, %v2935_v2  ;;  %6077 = vmatmul.mubr.f32.gmra.mrb[98].mxu1 %v5446_v8  ;;  %v5448_v62 = vld [vmem:[#allocation2 + $0x1f2] sm:$0xff]  ;;  %v1265_v51 = vmul.f32 %v13820_v49, %v13826_v44  ;;  %v13827_v2 = vld [vmem:[#allocation26_spill] sm:$0xff] }
 0x3f1   : > { %6081 = vmatprep.mubr.f32.mxu1 %v5479_v45  ;;  %v1300_v8 = vadd.f32 %v13823_v7, %v1264_v34  ;;  %v1266_v32 = vmul.f32 %v13827_v2, %v13820_v49  ;;  %v3735_v45 = vld [vmem:[#allocation8 + $0x10] sm:$0xff]  ;;  %v3736_v50 = vld [vmem:[#allocation8 + $0x18] sm:$0xff]  ;;  %v9322_v34 = vpack.c.bf16 %v3742_v23, %v3741_v10 }
 0x3f2   : > { %v2936_v41 = vmul.f32 %v12485_v24, %v2886_v56  ;;  %v3003_v15 = vmax.f32 %v2971_v0, 0.0  ;;  %v1331_v56 = vmax.f32 %v1299_v11, 0.0  ;;  %v1301_v12 = vadd.f32 %v13823_v7, %v1265_v51  ;;  %v13828_v0 = vld [vmem:[#allocation29_spill] sm:$0xff]  ;;  %v3743_v11 = vld [vmem:[#allocation8 + $0x50] sm:$0xff] }
 0x3f3   : > { %v2665_v19 = vpop.f32.mrb[26].mxu1  ;;  %v3744_v44 = vld [vmem:[#allocation8 + $0x58] sm:$0xff] }
 0x3f4   : > { %v2891_v17 = vadd.f32 %v12470_v33, %v2665_v19  ;;  %v2667_v42 = vpop.f32.mrb[27].mxu1  ;;  %8511 = vmatmul.mubr.f32.gmra.mrb[122].mxu0 %v3003_v15  ;;  %v2972_v35 = vadd.f32 %v12490_v13, %v2936_v41  ;;  %6082 = vmatmul.mubr.f32.gmra.mrb[100].mxu1 %v5447_v43  ;;  %v5449_v33 = vld [vmem:[#allocation2 + $0x22a] sm:$0xff]  ;;  %v1267_v43 = vmul.f32 %v13820_v49, %v13828_v0  ;;  %v1332_v19 = vmax.f32 %v1300_v8, 0.0  ;;  %v3745_v0 = vld [vmem:[#allocation8 + $0x60] sm:$0xff] }
 0x3f5   : > { %6086 = vmatprep.mubr.f32.mxu1 %v5480_v47  ;;  %v5485_v41 = vld [vmem:[#allocation2 + $0x706] sm:$0xff]  ;;  %v9313_v15 = vpack.c.bf16 %v3736_v50, %v3735_v45  ;;  %v13829_v42 = vld [vmem:[#allocation28_spill] sm:$0xff]  ;;  %v9325_v2 = vpack.c.bf16 %v3744_v44, %v3743_v11 }
 0x3f6   : > { %v2937_v40 = vmul.f32 %v12485_v24, %v2891_v17  ;;  %v3004_v59 = vmax.f32 %v2972_v35, 0.0  ;;  %v5453_v47 = vld [vmem:[#allocation2 + $0x2aa] sm:$0xff]  ;;  %v1302_v17 = vadd.f32 %v13823_v7, %v1266_v32  ;;  %v1268_v35 = vmul.f32 %v13829_v42, %v13820_v49 }
 0x3f7   : > { %v2670_v55 = vpop.f32.mrb[28].mxu1  ;;  %v5489_v8 = vld [vmem:[#allocation2 + $0x786] sm:$0xff]  ;;  %v5704_v44 = vld [vmem:[#allocation9 + $0x210] sm:$0xff] }
 0x3f8   : > { %v2896_v6 = vadd.f32 %v13818_v53, %v2670_v55  ;;  %v2672_v3 = vpop.f32.mrb[29].mxu1  ;;  %8513 = vmatprep.mubr.f32.mxu0 %v3004_v59  ;;  %v2973_v29 = vadd.f32 %v12490_v13, %v2937_v40  ;;  %6087 = vmatmul.mubr.f32.gmra.mrb[102].mxu1 %v5448_v62  ;;  %v3737_v62 = vld [vmem:[#allocation8 + $0x20] sm:$0xff]  ;;  %v3738_v40 = vld [vmem:[#allocation8 + $0x28] sm:$0xff]  ;;  %v1333_v59 = vmax.f32 %v1301_v12, 0.0 }
 0x3f9   : > { %6091 = vmatprep.mubr.f32.mxu1 %v5481_v1  ;;  %v1303_v1 = vadd.f32 %v13823_v7, %v1267_v43  ;;  %v13830_v55 = vld [vmem:[#allocation31_spill] sm:$0xff]  ;;  %v9316_v3 = vpack.c.bf16 %v3738_v40, %v3737_v62 }
 0x3fa   : > { %v2938_v9 = vmul.f32 %v12485_v24, %v2896_v6  ;;  %v3005_v60 = vmax.f32 %v2973_v29, 0.0  ;;  %v1269_v53 = vmul.f32 %v13820_v49, %v13830_v55  ;;  %v5486_v6 = vld [vmem:[#allocation2 + $0x70e] sm:$0xff]  ;;  %v5493_v11 = vld [vmem:[#allocation2 + $0x806] sm:$0xff] }
 0x3fb   : > { %v2675_v38 = vpop.f32.mrb[30].mxu1  ;;  %v5454_v29 = vld [vmem:[#allocation2 + $0x2b2] sm:$0xff]  ;;  %v5457_v32 = vld [vmem:[#allocation2 + $0x32a] sm:$0xff] }
 0x3fc   : > { %v2901_v14 = vadd.f32 %v13821_v27, %v2675_v38  ;;  %v2677_v5 = vpop.f32.mrb[31].mxu1  ;;  %8514 = vmatmul.mubr.f32.gmra.mrb[124].mxu0 %v3005_v60  ;;  %v2974_v21 = vadd.f32 %v12490_v13, %v2938_v9  ;;  %6092 = vmatmul.mubr.f32.gmra.mrb[104].mxu1 %v5449_v33  ;;  %v1334_v33 = vmax.f32 %v1302_v17, 0.0  ;;  %v1304_v9 = vadd.f32 %v13823_v7, %v1268_v35  ;;  %v13831_v60 = vld [vmem:[#allocation30_spill] sm:$0xff]  ;;  %v3746_v43 = vld [vmem:[#allocation8 + $0x68] sm:$0xff]  ;;  %v5458_v35 = vld [vmem:[#allocation2 + $0x332] sm:$0xff] }
 0x3fd   : > { %6096 = vmatprep.mubr.f32.mxu1 %v5482_v28  ;;  %v1270_v28 = vmul.f32 %v13831_v60, %v13820_v49  ;;  %v1335_v38 = vmax.f32 %v1303_v1, 0.0  ;;  %v1305_v27 = vadd.f32 %v13823_v7, %v1269_v53  ;;  %v5490_v17 = vld [vmem:[#allocation2 + $0x78e] sm:$0xff]  ;;  %v9328_v42 = vpack.c.bf16 %v3746_v43, %v3745_v0  ;;  %v3748_v53 = vld [vmem:[#allocation8 + $0x78] sm:$0xff] }
 0x3fe   : > { %v2939_v36 = vmul.f32 %v12485_v24, %v2901_v14  ;;  %v3006_v18 = vmax.f32 %v2974_v21, 0.0  ;;  %v3733_v24 = vld [vmem:[#allocation8] sm:$0xff]  ;;  %v13832_v14 = vld [vmem:[#allocation33_spill] sm:$0xff]  ;;  %v1336_v52 = vmax.f32 %v1304_v9, 0.0  ;;  %v3747_v55 = vld [vmem:[#allocation8 + $0x70] sm:$0xff] }
 0x3ff   : > { %v1271_v5 = vmul.f32 %v13820_v49, %v13832_v14  ;;  %v5487_v21 = vld [vmem:[#allocation2 + $0x746] sm:$0xff]  ;;  %v1337_v54 = vmax.f32 %v1305_v27, 0.0  ;;  %v9331_v60 = vpack.c.bf16 %v3748_v53, %v3747_v55  ;;  %v13846_v0 = vld [vmem:[#allocation48_spill] sm:$0xff] }
 0x400   : > { %8516 = vmatprep.mubr.f32.mxu0 %v3006_v18  ;;  %v2975_v4 = vadd.f32 %v12490_v13, %v2939_v36  ;;  %6097 = vmatmul.mubr.f32.gmra.mrb[106].mxu1 %v5450_v22  ;;  %v9310_v13 = vpack.c.bf16 %v3734_v61, %v3733_v24  ;;  %v9319_v22 = vpack.c.bf16 %v3740_v57, %v3739_v25  ;;  %v13833_v18 = vld [vmem:[#allocation32_spill] sm:$0xff]  ;;  %v5491_v9 = vld [vmem:[#allocation2 + $0x7c6] sm:$0xff] }
 0x401   : > { %6101 = vmatprep.mubr.f32.mxu1 %v5483_v31  ;;  %v1306_v36 = vadd.f32 %v13823_v7, %v1270_v28  ;;  %v1272_v31 = vmul.f32 %v13833_v18, %v13820_v49  ;;  %v5459_v28 = vld [vmem:[#allocation2 + $0x36a] sm:$0xff]  ;;  %v3749_v14 = vld [vmem:[#allocation8 + $0x80] sm:$0xff]  ;;  %v1285_v43 = vmul.f32 %v13820_v49, %v13846_v0 }
 0x402   : > { %v3007_v48 = vmax.f32 %v2975_v4, 0.0  ;;  %v1307_v4 = vadd.f32 %v13823_v7, %v1271_v5  ;;  %v3750_v5 = vld [vmem:[#allocation8 + $0x88] sm:$0xff]  ;;  %v5702_v18 = vld [vmem:[#allocation9 + $0x200] sm:$0xff] }
 0x403   : > { %v1338_v24 = vmax.f32 %v1306_v36, 0.0  ;;  %v1308_v61 = vadd.f32 %v13823_v7, %v1272_v31  ;;  %v5492_v36 = vld [vmem:[#allocation2 + $0x7ce] sm:$0xff]  ;;  %v9334_v23 = vpack.c.bf16 %v3750_v5, %v3749_v14  ;;  %v1321_v55 = vadd.f32 %v13823_v7, %v1285_v43  ;;  %v13848_v53 = vld [vmem:[#allocation50_spill] sm:$0xff] }
 0x404   : > { %8517 = vmatmul.mubr.f32.gmra.mrb[126].mxu0 %v3007_v48  ;;  %6102 = vmatmul.mubr.f32.gmra.mrb[108].mxu1 %v5451_v58  ;;  %v13834_v58 = vld [vmem:[#allocation35_spill] sm:$0xff]  ;;  %v5456_v48 = vld [vmem:[#allocation2 + $0x2f2] sm:$0xff]  ;;  %v1339_v51 = vmax.f32 %v1307_v4, 0.0 }
 0x405   : > { %8551 = vmatprep.mubr.f32.mxu0 %v1329_v37  ;;  %6106 = vmatprep.mubr.f32.mxu1 %v5484_v39  ;;  %v1273_v46 = vmul.f32 %v13820_v49, %v13834_v58  ;;  %v13835_v39 = vld [vmem:[#allocation34_spill] sm:$0xff]  ;;  %v1340_v45 = vmax.f32 %v1308_v61, 0.0  ;;  %v5703_v31 = vld [vmem:[#allocation9 + $0x208] sm:$0xff] }
 0x406   : > { %v1274_v37 = vmul.f32 %v13835_v39, %v13820_v49  ;;  %v9662_v10 = vpack.c.bf16 %v5703_v31, %v5702_v18  ;;  %v13844_v39 = vld [vmem:[#allocation46_spill] sm:$0xff]  ;;  %v3758_v14 = vld [vmem:[#allocation8 + $0xc8] sm:$0xff]  ;;  %v5709_v18 = vld [vmem:[#allocation9 + $0x238] sm:$0xff] }
 0x407   : > { %v5496_v31 = vld [vmem:[#allocation2 + $0x84e] sm:$0xff] }
 0x408   : > { %8552 = vmatmul.mubr.f32.vlgmr.msra.gmra.mrb[96].mxu0 %v1330_v63  ;;  %6107 = vmatmul.mubr.f32.gmra.mrb[110].mxu1 %v5452_v30  ;;  %v13836_v30 = vld [vmem:[#allocation37_spill] sm:$0xff]  ;;  %v1310_v50 = vadd.f32 %v13823_v7, %v1274_v37  ;;  %v1283_v37 = vmul.f32 %v13820_v49, %v13844_v39  ;;  %v13852_v39 = vld [vmem:[#allocation55_spill] sm:$0xff] }
 0x409   : > { %8554 = vmatprep.mubr.f32.mxu0 %v1331_v56  ;;  %9311 = vmatpush1.bf16.msra.mxu0 %v9310_v13  ;;  %v1309_v13 = vadd.f32 %v13823_v7, %v1273_v46  ;;  %v1275_v63 = vmul.f32 %v13820_v49, %v13836_v30  ;;  %v13837_v56 = vld [vmem:[#allocation36_spill] sm:$0xff]  ;;  %v13843_v46 = vld [vmem:[#allocation42_spill] sm:$0xff] }
 0x40a   : > { %9312 = vmatprep.subr.bf16.mxu0 %v13815_v16  ;;  %6111 = vmatprep.mubr.f32.mxu1 %v5485_v41  ;;  %v1276_v12 = vmul.f32 %v13837_v56, %v13820_v49  ;;  %v1342_v62 = vmax.f32 %v1310_v50, 0.0  ;;  %v5461_v30 = vld [vmem:[#allocation2 + $0x3aa] sm:$0xff] }
 0x40b   : > { %v1341_v41 = vmax.f32 %v1309_v13, 0.0  ;;  %9663 = vmatpush1.bf16.msra.mxu1 %v9662_v10  ;;  %v3754_v50 = vld [vmem:[#allocation8 + $0xa8] sm:$0xff] }
 0x40c   : > { %8555 = vmatmul.mubr.f32.gmra.mrb[98].mxu0 %v1332_v19  ;;  %6112 = vmatmul.mubr.f32.gmra.mrb[112].mxu1 %v5453_v47  ;;  %v13838_v47 = vld [vmem:[#allocation39_spill] sm:$0xff]  ;;  %v1312_v40 = vadd.f32 %v13823_v7, %v1276_v12  ;;  %v1319_v12 = vadd.f32 %v13823_v7, %v1283_v37  ;;  %v1291_v37 = vmul.f32 %v13820_v49, %v13852_v39 }
 0x40d   : > { %8557 = vmatprep.mubr.f32.mxu0 %v1333_v59  ;;  %9314 = vmatpush1.bf16.msra.mxu0 %v9313_v15  ;;  %v1311_v15 = vadd.f32 %v13823_v7, %v1275_v63  ;;  %v1277_v19 = vmul.f32 %v13820_v49, %v13838_v47  ;;  %v13839_v59 = vld [vmem:[#allocation38_spill] sm:$0xff]  ;;  %v5498_v0 = vld [vmem:[#allocation2 + $0x88e] sm:$0xff] }
 0x40e   : > { %9315 = vmatprep.subr.bf16.mxu0 %v13815_v16  ;;  %6116 = vmatprep.mubr.f32.mxu1 %v5486_v6  ;;  %v1278_v1 = vmul.f32 %v13839_v59, %v13820_v49  ;;  %v1344_v25 = vmax.f32 %v1312_v40, 0.0  ;;  %v3755_v40 = vld [vmem:[#allocation8 + $0xb0] sm:$0xff]  ;;  %v3756_v59 = vld [vmem:[#allocation8 + $0xb8] sm:$0xff]  ;;  %v5723_v39 = vld [vmem:[#allocation9 + $0x2a8] sm:$0xff] }
 0x40f   : > { %v1343_v6 = vmax.f32 %v1311_v15, 0.0  ;;  %9664 = vmatprep.subr.bf16.mxu1 %v13815_v16 }
 0x410   : > { %8558 = vmatmul.mubr.f32.gmra.mrb[100].mxu0 %v1334_v33  ;;  %6117 = vmatmul.mubr.f32.gmra.mrb[114].mxu1 %v5454_v29  ;;  %v13840_v29 = vld [vmem:[#allocation41_spill] sm:$0xff]  ;;  %v1314_v57 = vadd.f32 %v13823_v7, %v1278_v1  ;;  %v1351_v1 = vmax.f32 %v1319_v12, 0.0 }
 0x411   : > { %8560 = vmatprep.mubr.f32.mxu0 %v1335_v38  ;;  %9317 = vmatpush1.bf16.msra.mxu0 %v9316_v3  ;;  %v1313_v3 = vadd.f32 %v13823_v7, %v1277_v19  ;;  %v1279_v33 = vmul.f32 %v13820_v49, %v13840_v29  ;;  %v13841_v38 = vld [vmem:[#allocation40_spill] sm:$0xff]  ;;  %v5706_v29 = vld [vmem:[#allocation9 + $0x220] sm:$0xff]  ;;  %v5713_v12 = vld [vmem:[#allocation9 + $0x258] sm:$0xff] }
 0x412   : > { %9318 = vmatprep.subr.bf16.mxu0 %v13815_v16  ;;  %6121 = vmatprep.mubr.f32.mxu1 %v5487_v21  ;;  %v1280_v27 = vmul.f32 %v13841_v38, %v13820_v49  ;;  %v1346_v4 = vmax.f32 %v1314_v57, 0.0  ;;  %v5462_v19 = vld [vmem:[#allocation2 + $0x3b2] sm:$0xff] }
 0x413   : > { %v1345_v21 = vmax.f32 %v1313_v3, 0.0  ;;  %v5495_v3 = vld [vmem:[#allocation2 + $0x846] sm:$0xff]  ;;  %v13849_v57 = vld [vmem:[#allocation49_spill] sm:$0xff] }
 0x414   : > { %8561 = vmatmul.mubr.f32.gmra.mrb[102].mxu0 %v1336_v52  ;;  %6122 = vmatmul.mubr.f32.gmra.mrb[116].mxu1 %v5455_v26  ;;  %v13842_v26 = vld [vmem:[#allocation44_spill] sm:$0xff]  ;;  %v1316_v58 = vadd.f32 %v13823_v7, %v1280_v27  ;;  %v1288_v38 = vmul.f32 %v13849_v57, %v13820_v49  ;;  %v3757_v27 = vld [vmem:[#allocation8 + $0xc0] sm:$0xff] }
 0x415   : > { %8563 = vmatprep.mubr.f32.mxu0 %v1337_v54  ;;  %9320 = vmatpush1.bf16.msra.mxu0 %v9319_v22  ;;  %v1315_v22 = vadd.f32 %v13823_v7, %v1279_v33  ;;  %v1281_v52 = vmul.f32 %v13820_v49, %v13842_v26  ;;  %v5460_v54 = vld [vmem:[#allocation2 + $0x372] sm:$0xff]  ;;  %v5707_v33 = vld [vmem:[#allocation9 + $0x228] sm:$0xff]  ;;  %v9346_v10 = vpack.c.bf16 %v3758_v14, %v3757_v27 }
 0x416   : > { %9321 = vmatprep.subr.bf16.mxu0 %v13815_v16  ;;  %6126 = vmatprep.mubr.f32.mxu1 %v5488_v20  ;;  %v1282_v20 = vmul.f32 %v13843_v46, %v13820_v49  ;;  %v1348_v63 = vmax.f32 %v1316_v58, 0.0  ;;  %v9668_v5 = vpack.c.bf16 %v5707_v33, %v5706_v29  ;;  %v13850_v26 = vld [vmem:[#allocation53_spill] sm:$0xff]  ;;  %v13851_v58 = vld [vmem:[#allocation51_spill] sm:$0xff]  ;;  %v5716_v29 = vld [vmem:[#allocation9 + $0x270] sm:$0xff] }
 0x417   : > { %v1317_v61 = vadd.f32 %v13823_v7, %v1281_v52  ;;  %v1289_v52 = vmul.f32 %v13820_v49, %v13850_v26  ;;  %v1290_v46 = vmul.f32 %v13851_v58, %v13820_v49  ;;  %v5717_v33 = vld [vmem:[#allocation9 + $0x278] sm:$0xff]  ;;  %v3478_v58 = vld [vmem:[#allocation2 + $0x34c] sm:$0xff] }
 0x418   : > { %8564 = vmatmul.mubr.f32.gmra.mrb[104].mxu0 %v1338_v24  ;;  %6127 = vmatmul.mubr.f32.gmra.mrb[118].mxu1 %v5456_v48  ;;  %v3752_v48 = vld [vmem:[#allocation8 + $0x98] sm:$0xff]  ;;  %v1347_v24 = vmax.f32 %v1315_v22, 0.0  ;;  %v9683_v14 = vpack.c.bf16 %v5717_v33, %v5716_v29  ;;  %v5730_v33 = vld [vmem:[#allocation9 + $0x2e0] sm:$0xff] }
 0x419   : > { %8566 = vmatprep.mubr.f32.mxu0 %v1339_v51  ;;  %9323 = vmatpush1.bf16.msra.mxu0 %v9322_v34  ;;  %v3751_v34 = vld [vmem:[#allocation8 + $0x90] sm:$0xff]  ;;  %v5705_v51 = vld [vmem:[#allocation9 + $0x218] sm:$0xff]  ;;  %v1349_v56 = vmax.f32 %v1317_v61, 0.0  ;;  %v1325_v61 = vadd.f32 %v13823_v7, %v1289_v52 }
 0x41a   : > { %9324 = vmatprep.subr.bf16.mxu0 %v13815_v16  ;;  %6131 = vmatprep.mubr.f32.mxu1 %v5489_v8  ;;  %v9337_v13 = vpack.c.bf16 %v3752_v48, %v3751_v34  ;;  %v1318_v8 = vadd.f32 %v13823_v7, %v1282_v20  ;;  %v9665_v15 = vpack.c.bf16 %v5705_v51, %v5704_v44  ;;  %v3759_v20 = vld [vmem:[#allocation8 + $0xd0] sm:$0xff]  ;;  %v3760_v34 = vld [vmem:[#allocation8 + $0xd8] sm:$0xff]  ;;  %v5711_v44 = vld [vmem:[#allocation9 + $0x248] sm:$0xff] }
 0x41b   : > { %v5497_v51 = vld [vmem:[#allocation2 + $0x886] sm:$0xff]  ;;  %v5468_v57 = vld [vmem:[#allocation2 + $0x472] sm:$0xff] }
 0x41c   : > { %8567 = vmatmul.mubr.f32.gmra.mrb[106].mxu0 %v1340_v45  ;;  %6132 = vmatmul.mubr.f32.gmra.mrb[120].mxu1 %v5457_v32  ;;  %v3753_v45 = vld [vmem:[#allocation8 + $0xa0] sm:$0xff]  ;;  %v3768_v27 = vld [vmem:[#allocation8 + $0x118] sm:$0xff] }
 0x41d   : > { %8569 = vmatprep.mubr.f32.mxu0 %v1341_v41  ;;  %9326 = vmatpush1.bf16.msra.mxu0 %v9325_v2  ;;  %v13845_v2 = vld [vmem:[#allocation45_spill] sm:$0xff]  ;;  %v5494_v41 = vld [vmem:[#allocation2 + $0x80e] sm:$0xff]  ;;  %v9340_v47 = vpack.c.bf16 %v3754_v50, %v3753_v45  ;;  %v1357_v45 = vmax.f32 %v1325_v61, 0.0  ;;  %v1327_v50 = vadd.f32 %v13823_v7, %v1291_v37  ;;  %v5722_v61 = vld [vmem:[#allocation9 + $0x2a0] sm:$0xff] }
 0x41e   : > { %9327 = vmatprep.subr.bf16.mxu0 %v13815_v16  ;;  %6136 = vmatprep.mubr.f32.mxu1 %v5490_v17  ;;  %v1284_v32 = vmul.f32 %v13845_v2, %v13820_v49  ;;  %v1350_v17 = vmax.f32 %v1318_v8, 0.0  ;;  %v1326_v8 = vadd.f32 %v13823_v7, %v1290_v46  ;;  %v3761_v2 = vld [vmem:[#allocation8 + $0xe0] sm:$0xff]  ;;  %v3477_v26 = vld [vmem:[#allocation2 + $0x314] sm:$0xff] }
 0x41f   : > { %9666 = vmatpush1.bf16.msra.mxu1 %v9665_v15  ;;  %v5503_v37 = vld [vmem:[#allocation2 + $0x946] sm:$0xff] }
 0x420   : > { %8570 = vmatmul.mubr.f32.gmra.mrb[108].mxu0 %v1342_v62  ;;  %6137 = vmatmul.mubr.f32.gmra.mrb[122].mxu1 %v5458_v35  ;;  %v13847_v35 = vld [vmem:[#allocation47_spill] sm:$0xff]  ;;  %v1358_v15 = vmax.f32 %v1326_v8, 0.0  ;;  %v5724_v8 = vld [vmem:[#allocation9 + $0x2b0] sm:$0xff] }
 0x421   : > { %8572 = vmatprep.mubr.f32.mxu0 %v1343_v6  ;;  %9329 = vmatpush1.bf16.msra.mxu0 %v9328_v42  ;;  %v1320_v42 = vadd.f32 %v13823_v7, %v1284_v32  ;;  %v1286_v62 = vmul.f32 %v13847_v35, %v13820_v49  ;;  %v1287_v6 = vmul.f32 %v13820_v49, %v13848_v53  ;;  %v3762_v32 = vld [vmem:[#allocation8 + $0xe8] sm:$0xff]  ;;  %v3765_v53 = vld [vmem:[#allocation8 + $0x100] sm:$0xff] }
 0x422   : > { %9330 = vmatprep.subr.bf16.mxu0 %v13815_v16  ;;  %6141 = vmatprep.mubr.f32.mxu1 %v5491_v9  ;;  %v9343_v9 = vpack.c.bf16 %v3756_v59, %v3755_v40  ;;  %v9352_v43 = vpack.c.bf16 %v3762_v32, %v3761_v2  ;;  %v5715_v35 = vld [vmem:[#allocation9 + $0x268] sm:$0xff]  ;;  %v5725_v2 = vld [vmem:[#allocation9 + $0x2b8] sm:$0xff] }
 0x423   : > { %v1323_v22 = vadd.f32 %v13823_v7, %v1287_v6  ;;  %9667 = vmatprep.subr.bf16.mxu1 %v13815_v16  ;;  %v5467_v59 = vld [vmem:[#allocation2 + $0x46a] sm:$0xff] }
 0x424   : > { %8573 = vmatmul.mubr.f32.gmra.mrb[110].mxu0 %v1344_v25  ;;  %6142 = vmatmul.mubr.f32.gmra.mrb[124].mxu1 %v5459_v28  ;;  %v1352_v28 = vmax.f32 %v1320_v42, 0.0  ;;  %v1322_v25 = vadd.f32 %v13823_v7, %v1286_v62  ;;  %v5714_v42 = vld [vmem:[#allocation9 + $0x260] sm:$0xff]  ;;  %v3766_v6 = vld [vmem:[#allocation8 + $0x108] sm:$0xff] }
 0x425   : > { %8575 = vmatprep.mubr.f32.mxu0 %v1345_v21  ;;  %9332 = vmatpush1.bf16.msra.mxu0 %v9331_v60  ;;  %v5463_v60 = vld [vmem:[#allocation2 + $0x3ea] sm:$0xff]  ;;  %v1353_v21 = vmax.f32 %v1321_v55, 0.0 }
 0x426   : > { %9333 = vmatprep.subr.bf16.mxu0 %v13815_v16  ;;  %6146 = vmatprep.mubr.f32.mxu1 %v5492_v36  ;;  %v5708_v36 = vld [vmem:[#allocation9 + $0x230] sm:$0xff]  ;;  %v5499_v62 = vld [vmem:[#allocation2 + $0x8c6] sm:$0xff] }
 0x427   : > { %9669 = vmatpush1.bf16.msra.mxu1 %v9668_v5  ;;  %v9671_v48 = vpack.c.bf16 %v5709_v18, %v5708_v36  ;;  %v5718_v5 = vld [vmem:[#allocation9 + $0x280] sm:$0xff]  ;;  %v5469_v36 = vld [vmem:[#allocation2 + $0x4aa] sm:$0xff] }
 0x428   : > { %8576 = vmatmul.mubr.f32.gmra.mrb[112].mxu0 %v1346_v4  ;;  %6147 = vmatmul.mubr.f32.gmra.mrb[126].mxu1 %v5460_v54  ;;  %v1354_v54 = vmax.f32 %v1322_v25, 0.0  ;;  %v1324_v4 = vadd.f32 %v13823_v7, %v1288_v38  ;;  %v1359_v7 = vmax.f32 %v1327_v50, 0.0  ;;  %v9358_v25 = vpack.c.bf16 %v3766_v6, %v3765_v53  ;;  %v3767_v38 = vld [vmem:[#allocation8 + $0x110] sm:$0xff]  ;;  %v3769_v18 = vld [vmem:[#allocation8 + $0x120] sm:$0xff] }
 0x429   : > { %8578 = vmatprep.mubr.f32.mxu0 %v1347_v24  ;;  %9335 = vmatpush1.bf16.msra.mxu0 %v9334_v23  ;;  %v5464_v23 = vld [vmem:[#allocation2 + $0x3f2] sm:$0xff]  ;;  %v1355_v24 = vmax.f32 %v1323_v22, 0.0  ;;  %v5501_v22 = vld [vmem:[#allocation2 + $0x906] sm:$0xff]  ;;  %v9361_v52 = vpack.c.bf16 %v3768_v27, %v3767_v38 }
 0x42a   : > { %9336 = vmatprep.subr.bf16.mxu0 %v13815_v16  ;;  %6151 = vmatprep.mubr.f32.mxu1 %v5493_v11  ;;  %v5710_v11 = vld [vmem:[#allocation9 + $0x240] sm:$0xff]  ;;  %v5504_v32 = vld [vmem:[#allocation2 + $0x94e] sm:$0xff] }
 0x42b   : > { %9670 = vmatprep.subr.bf16.mxu1 %v13815_v16  ;;  %v9674_v49 = vpack.c.bf16 %v5711_v44, %v5710_v11  ;;  %v3479_v11 = vld [vmem:[#allocation2 + $0x354] sm:$0xff]  ;;  %v5475_v38 = vld [vmem:[#allocation2 + $0x56a] sm:$0xff]  ;;  %v3781_v27 = vld [vmem:[#allocation8 + $0x180] sm:$0xff] }
 0x42c   : > { %8579 = vmatmul.mubr.f32.gmra.mrb[114].mxu0 %v1348_v63  ;;  %6152 = vmatmul.mubr.f32.gmra.mrb[128].mxu1 %v5461_v30  ;;  %v5465_v30 = vld [vmem:[#allocation2 + $0x42a] sm:$0xff]  ;;  %v1356_v63 = vmax.f32 %v1324_v4, 0.0  ;;  %v5472_v50 = vld [vmem:[#allocation2 + $0x4f2] sm:$0xff] }
 0x42d   : > { %8581 = vmatprep.mubr.f32.mxu0 %v1349_v56  ;;  %9338 = vmatpush1.bf16.msra.mxu0 %v9337_v13  ;;  %v9349_v13 = vpack.c.bf16 %v3760_v34, %v3759_v20  ;;  %v5712_v56 = vld [vmem:[#allocation9 + $0x250] sm:$0xff] }
 0x42e   : > { %9339 = vmatprep.subr.bf16.mxu0 %v13815_v16  ;;  %6156 = vmatprep.mubr.f32.mxu1 %v5494_v41  ;;  %v5466_v41 = vld [vmem:[#allocation2 + $0x432] sm:$0xff] }
 0x42f   : > { %9672 = vmatpush1.bf16.msra.mxu1 %v9671_v48  ;;  %v5502_v4 = vld [vmem:[#allocation2 + $0x90e] sm:$0xff]  ;;  %v3772_v48 = vld [vmem:[#allocation8 + $0x138] sm:$0xff] }
 0x430   : > { %8582 = vmatmul.mubr.f32.gmra.mrb[116].mxu0 %v1350_v17  ;;  %6157 = vmatmul.mubr.f32.gmra.mrb[130].mxu1 %v5462_v19  ;;  %v3764_v19 = vld [vmem:[#allocation8 + $0xf8] sm:$0xff]  ;;  %v9677_v17 = vpack.c.bf16 %v5713_v12, %v5712_v56  ;;  %v3771_v34 = vld [vmem:[#allocation8 + $0x130] sm:$0xff] }
 0x431   : > { %8584 = vmatprep.mubr.f32.mxu0 %v1351_v1  ;;  %9341 = vmatpush1.bf16.msra.mxu0 %v9340_v47  ;;  %v3763_v47 = vld [vmem:[#allocation8 + $0xf0] sm:$0xff]  ;;  %v9367_v44 = vpack.c.bf16 %v3772_v48, %v3771_v34  ;;  %v3776_v12 = vld [vmem:[#allocation8 + $0x158] sm:$0xff] }
 0x432   : > { %9342 = vmatprep.subr.bf16.mxu0 %v13815_v16  ;;  %6161 = vmatprep.mubr.f32.mxu1 %v5495_v3  ;;  %v9355_v40 = vpack.c.bf16 %v3764_v19, %v3763_v47  ;;  %v13853_v1 = vld [vmem:[#allocation56_spill] sm:$0xff]  ;;  %v9680_v3 = vpack.c.bf16 %v5715_v35, %v5714_v42  ;;  %v3778_v42 = vld [vmem:[#allocation8 + $0x168] sm:$0xff] }
 0x433   : > { %9673 = vmatprep.subr.bf16.mxu1 %v13815_v16  ;;  %v1360_v55 = vmax.f32 %v13853_v1, 0.0  ;;  %v5470_v20 = vld [vmem:[#allocation2 + $0x4b2] sm:$0xff] }
 0x434   : > { %8585 = vmatmul.mubr.f32.gmra.mrb[118].mxu0 %v1352_v28  ;;  %6162 = vmatmul.mubr.f32.gmra.mrb[132].mxu1 %v5463_v60  ;;  %v12804_v60 = vld [vmem:[#allocation2] sm:$0xff]  ;;  %v3476_v28 = vld [vmem:[#allocation2 + $0x30c] sm:$0xff]  ;;  %v3481_v47 = vld [vmem:[#allocation2 + $0x394] sm:$0xff] }
 0x435   : > { %8587 = vmatprep.mubr.f32.mxu0 %v1353_v21  ;;  %9344 = vmatpush1.bf16.msra.mxu0 %v9343_v9  ;;  %v5500_v9 = vld [vmem:[#allocation2 + $0x8ce] sm:$0xff] }
 0x436   : > { %9345 = vmatprep.subr.bf16.mxu0 %v13815_v16  ;;  %6166 = vmatprep.mubr.f32.mxu1 %v5496_v31  ;;  %v5719_v21 = vld [vmem:[#allocation9 + $0x288] sm:$0xff]  ;;  %v3775_v56 = vld [vmem:[#allocation8 + $0x150] sm:$0xff] }
 0x437   : > { %9675 = vmatpush1.bf16.msra.mxu1 %v9674_v49  ;;  %v3770_v31 = vld [vmem:[#allocation8 + $0x128] sm:$0xff]  ;;  %v9373_v19 = vpack.c.bf16 %v3776_v12, %v3775_v56  ;;  %v5474_v53 = vld [vmem:[#allocation2 + $0x532] sm:$0xff] }
 0x438   : > { %8588 = vmatmul.mubr.f32.gmra.mrb[120].mxu0 %v1354_v54  ;;  %6167 = vmatmul.mubr.f32.gmra.mrb[134].mxu1 %v5464_v23  ;;  %v5720_v23 = vld [vmem:[#allocation9 + $0x290] sm:$0xff]  ;;  %v5721_v54 = vld [vmem:[#allocation9 + $0x298] sm:$0xff]  ;;  %v9364_v46 = vpack.c.bf16 %v3770_v31, %v3769_v18 }
 0x439   : > { %8590 = vmatprep.mubr.f32.mxu0 %v1355_v24  ;;  %9347 = vmatpush1.bf16.msra.mxu0 %v9346_v10  ;;  %v9686_v10 = vpack.c.bf16 %v5719_v21, %v5718_v5  ;;  %v9689_v24 = vpack.c.bf16 %v5721_v54, %v5720_v23  ;;  %v3480_v49 = vld [vmem:[#allocation2 + $0x38c] sm:$0xff]  ;;  %v3489_v12 = vld [vmem:[#allocation2 + $0x494] sm:$0xff] }
 0x43a   : > { %9348 = vmatprep.subr.bf16.mxu0 %v13815_v16  ;;  %6171 = vmatprep.mubr.f32.mxu1 %v5497_v51  ;;  %v5471_v51 = vld [vmem:[#allocation2 + $0x4ea] sm:$0xff]  ;;  %v5476_v18 = vld [vmem:[#allocation2 + $0x572] sm:$0xff] }
 0x43b   : > { %9676 = vmatprep.subr.bf16.mxu1 %v13815_v16  ;;  %v3482_v1 = vld [vmem:[#allocation2 + $0x3cc] sm:$0xff] }
 0x43c   : > { %8591 = vmatmul.mubr.f32.gmra.mrb[122].mxu0 %v1356_v63  ;;  %6172 = vmatmul.mubr.f32.gmra.mrb[136].mxu1 %v5465_v30  ;;  %v3774_v30 = vld [vmem:[#allocation8 + $0x148] sm:$0xff]  ;;  %v9692_v63 = vpack.c.bf16 %v5723_v39, %v5722_v61  ;;  %v3779_v6 = vld [vmem:[#allocation8 + $0x170] sm:$0xff]  ;;  %v3788_v39 = vld [vmem:[#allocation8 + $0x1b8] sm:$0xff] }
 0x43d   : > { %8593 = vmatprep.mubr.f32.mxu0 %v1357_v45  ;;  %9350 = vmatpush1.bf16.msra.mxu0 %v9349_v13  ;;  %v3773_v13 = vld [vmem:[#allocation8 + $0x140] sm:$0xff]  ;;  %v5732_v21 = vld [vmem:[#allocation9 + $0x2f0] sm:$0xff] }
 0x43e   : > { %9351 = vmatprep.subr.bf16.mxu0 %v13815_v16  ;;  %6176 = vmatprep.mubr.f32.mxu1 %v5498_v0  ;;  %v9370_v45 = vpack.c.bf16 %v3774_v30, %v3773_v13  ;;  %v9695_v0 = vpack.c.bf16 %v5725_v2, %v5724_v8  ;;  %v3783_v31 = vld [vmem:[#allocation8 + $0x190] sm:$0xff]  ;;  %v3789_v13 = vld [vmem:[#allocation8 + $0x1c0] sm:$0xff]  ;;  %v3790_v30 = vld [vmem:[#allocation8 + $0x1c8] sm:$0xff] }
 0x43f   : > { %9678 = vmatpush1.bf16.msra.mxu1 %v9677_v17  ;;  %v5473_v17 = vld [vmem:[#allocation2 + $0x52a] sm:$0xff]  ;;  %v5510_v34 = vld [vmem:[#allocation2 + $0x632] sm:$0xff] }
 0x440   : > { %8594 = vmatmul.mubr.f32.gmra.mrb[124].mxu0 %v1358_v15  ;;  %6177 = vmatmul.mubr.f32.gmra.mrb[138].mxu1 %v5466_v41  ;;  %v5727_v41 = vld [vmem:[#allocation9 + $0x2c8] sm:$0xff]  ;;  %v3787_v61 = vld [vmem:[#allocation8 + $0x1b0] sm:$0xff] }
 0x441   : > { %8596 = vmatprep.mubr.f32.mxu0 %v1359_v7  ;;  %9353 = vmatpush1.bf16.msra.mxu0 %v9352_v43  ;;  %v5726_v43 = vld [vmem:[#allocation9 + $0x2c0] sm:$0xff]  ;;  %v5509_v54 = vld [vmem:[#allocation2 + $0x62a] sm:$0xff]  ;;  %v5512_v8 = vld [vmem:[#allocation2 + $0x672] sm:$0xff] }
 0x442   : > { %9354 = vmatprep.subr.bf16.mxu0 %v13815_v16  ;;  %6181 = vmatprep.mubr.f32.mxu1 %v5499_v62  ;;  %v5505_v15 = vld [vmem:[#allocation2 + $0x986] sm:$0xff]  ;;  %v9698_v35 = vpack.c.bf16 %v5727_v41, %v5726_v43  ;;  %v5728_v62 = vld [vmem:[#allocation9 + $0x2d0] sm:$0xff] }
 0x443   : > { %9679 = vmatprep.subr.bf16.mxu1 %v13815_v16  ;;  %v3777_v7 = vld [vmem:[#allocation8 + $0x160] sm:$0xff]  ;;  %v3486_v48 = vld [vmem:[#allocation2 + $0x44c] sm:$0xff] }
 0x444   : > { %8597 = vmatmul.mubr.f32.gmra.mrb[126].mxu0 %v1360_v55  ;;  %6182 = vmatmul.mubr.f32.gmra.mrb[140].mxu1 %v5467_v59  ;;  %v5506_v59 = vld [vmem:[#allocation2 + $0x98e] sm:$0xff]  ;;  %v9376_v55 = vpack.c.bf16 %v3778_v42, %v3777_v7  ;;  %v3793_v43 = vld [vmem:[#allocation8 + $0x1e0] sm:$0xff]  ;;  %v3796_v42 = vld [vmem:[#allocation8 + $0x1f8] sm:$0xff] }
 0x445   : > { %9356 = vmatpush1.bf16.msra.mxu0 %v9355_v40  ;;  %3941 = vmatprep.mubr.f32.mxu0 %v12804_v60  ;;  %v5729_v40 = vld [vmem:[#allocation9 + $0x2d8] sm:$0xff]  ;;  %v3488_v2 = vld [vmem:[#allocation2 + $0x48c] sm:$0xff] }
 0x446   : > { %9357 = vmatprep.subr.bf16.mxu0 %v13815_v16  ;;  %9681 = vmatpush1.bf16.msra.mxu1 %v9680_v3  ;;  %v3780_v3 = vld [vmem:[#allocation8 + $0x178] sm:$0xff]  ;;  %v9701_v29 = vpack.c.bf16 %v5729_v40, %v5728_v62  ;;  %v5513_v56 = vld [vmem:[#allocation2 + $0x6aa] sm:$0xff] }
 0x447   : > { %6186 = vmatprep.mubr.f32.mxu1 %v5500_v9  ;;  %9682 = vmatprep.subr.bf16.mxu1 %v13815_v16  ;;  %v5731_v9 = vld [vmem:[#allocation9 + $0x2e8] sm:$0xff]  ;;  %v3795_v7 = vld [vmem:[#allocation8 + $0x1f0] sm:$0xff] }
 0x448   : > { %3942 = vmatmul.mubr.f32.vlgmr.msra.gmra.mrb[128].mxu0 %v3476_v28  ;;  %6187 = vmatmul.mubr.f32.gmra.mrb[142].mxu1 %v5468_v57  ;;  %v5507_v28 = vld [vmem:[#allocation2 + $0x9c6] sm:$0xff]  ;;  %v9379_v57 = vpack.c.bf16 %v3780_v3, %v3779_v6  ;;  %v9704_v5 = vpack.c.bf16 %v5731_v9, %v5730_v33  ;;  %v3491_v40 = vld [vmem:[#allocation2 + $0x4d4] sm:$0xff] }
 0x449   : > { %9359 = vmatpush1.bf16.msra.mxu0 %v9358_v25  ;;  %3946 = vmatprep.mubr.f32.mxu0 %v12804_v60  ;;  %v3483_v25 = vld [vmem:[#allocation2 + $0x3d4] sm:$0xff]  ;;  %v3794_v41 = vld [vmem:[#allocation8 + $0x1e8] sm:$0xff]  ;;  %v10692_v33 = vld [vmem:[#allocation2 + $0x6e0] sm:$0xff] }
 0x44a   : > { %9360 = vmatprep.subr.bf16.mxu0 %v13815_v16  ;;  %9684 = vmatpush1.bf16.msra.mxu1 %v9683_v14  ;;  %v3782_v14 = vld [vmem:[#allocation8 + $0x188] sm:$0xff]  ;;  %v10691_v6 = vld [vmem:[#allocation2 + $0x6d8] sm:$0xff] }
 0x44b   : > { %6191 = vmatprep.mubr.f32.mxu1 %v5501_v22  ;;  %9685 = vmatprep.subr.bf16.mxu1 %v13815_v16  ;;  %v5733_v22 = vld [vmem:[#allocation9 + $0x2f8] sm:$0xff]  ;;  %v5515_v62 = vld [vmem:[#allocation2 + $0x6ea] sm:$0xff] }
 0x44c   : > { %3947 = vmatmul.mubr.f32.gmra.mrb[130].mxu0 %v3477_v26  ;;  %6192 = vmatmul.mubr.f32.gmra.mrb[144].mxu1 %v5469_v36  ;;  %v5508_v26 = vld [vmem:[#allocation2 + $0x9ce] sm:$0xff]  ;;  %v9382_v36 = vpack.c.bf16 %v3782_v14, %v3781_v27  ;;  %v9707_v23 = vpack.c.bf16 %v5733_v22, %v5732_v21  ;;  %v10694_v27 = vld [vmem:[#allocation2 + $0x720] sm:$0xff]  ;;  %v10695_v21 = vld [vmem:[#allocation2 + $0x758] sm:$0xff] }
 0x44d   : > { %3951 = vmatprep.mubr.f32.mxu0 %v12804_v60  ;;  %9362 = vmatpush1.bf16.msra.mxu0 %v9361_v52  ;;  %v3484_v52 = vld [vmem:[#allocation2 + $0x40c] sm:$0xff] }
 0x44e   : > { %9363 = vmatprep.subr.bf16.mxu0 %v13815_v16  ;;  %9687 = vmatpush1.bf16.msra.mxu1 %v9686_v10  ;;  %v3784_v10 = vld [vmem:[#allocation8 + $0x198] sm:$0xff]  ;;  %v5517_v3 = vld [vmem:[#allocation2 + $0x72a] sm:$0xff] }
 0x44f   : > { %6196 = vmatprep.mubr.f32.mxu1 %v5502_v4  ;;  %9688 = vmatprep.subr.bf16.mxu1 %v13815_v16  ;;  %v3485_v4 = vld [vmem:[#allocation2 + $0x414] sm:$0xff]  ;;  %v5521_v22 = vld [vmem:[#allocation2 + $0x7aa] sm:$0xff] }
 0x450   : > { %3952 = vmatmul.mubr.f32.gmra.mrb[132].mxu0 %v3478_v58  ;;  %6197 = vmatmul.mubr.f32.gmra.mrb[146].mxu1 %v5470_v20  ;;  %v9385_v58 = vpack.c.bf16 %v3784_v10, %v3783_v31  ;;  %v3786_v20 = vld [vmem:[#allocation8 + $0x1a8] sm:$0xff]  ;;  %v5518_v9 = vld [vmem:[#allocation2 + $0x732] sm:$0xff] }
 0x451   : > { %3956 = vmatprep.mubr.f32.mxu0 %v12804_v60  ;;  %9365 = vmatpush1.bf16.msra.mxu0 %v9364_v46  ;;  %v3785_v46 = vld [vmem:[#allocation8 + $0x1a0] sm:$0xff]  ;;  %v5520_v14 = vld [vmem:[#allocation2 + $0x772] sm:$0xff]  ;;  %v5523_v10 = vld [vmem:[#allocation2 + $0x7ea] sm:$0xff] }
 0x452   : > { %9366 = vmatprep.subr.bf16.mxu0 %v13815_v16  ;;  %9690 = vmatpush1.bf16.msra.mxu1 %v9689_v24  ;;  %v9388_v24 = vpack.c.bf16 %v3786_v20, %v3785_v46  ;;  %v10697_v31 = vld [vmem:[#allocation2 + $0x798] sm:$0xff]  ;;  %v5735_v46 = vld [vmem:[#allocation9 + $0x308] sm:$0xff] }
 0x453   : > { %6201 = vmatprep.mubr.f32.mxu1 %v5503_v37  ;;  %9691 = vmatprep.subr.bf16.mxu1 %v13815_v16  ;;  %v10685_v37 = vld [vmem:[#allocation2 + $0x618] sm:$0xff] }
 0x454   : > { %3957 = vmatmul.mubr.f32.gmra.mrb[134].mxu0 %v3479_v11  ;;  %6202 = vmatmul.mubr.f32.gmra.mrb[148].mxu1 %v5471_v51  ;;  %v5511_v11 = vld [vmem:[#allocation2 + $0x66a] sm:$0xff]  ;;  %v9391_v51 = vpack.c.bf16 %v3788_v39, %v3787_v61  ;;  %v5524_v20 = vld [vmem:[#allocation2 + $0x7f2] sm:$0xff] }
 0x455   : > { %3961 = vmatprep.mubr.f32.mxu0 %v12804_v60  ;;  %9368 = vmatpush1.bf16.msra.mxu0 %v9367_v44  ;;  %v3487_v44 = vld [vmem:[#allocation2 + $0x454] sm:$0xff] }
 0x456   : > { %9369 = vmatprep.subr.bf16.mxu0 %v13815_v16  ;;  %9693 = vmatpush1.bf16.msra.mxu1 %v9692_v63  ;;  %v10686_v63 = vld [vmem:[#allocation2 + $0x620] sm:$0xff]  ;;  %v10699_v61 = vld [vmem:[#allocation2 + $0x7d8] sm:$0xff]  ;;  %v5736_v39 = vld [vmem:[#allocation9 + $0x310] sm:$0xff] }
 0x457   : > { %6206 = vmatprep.mubr.f32.mxu1 %v5504_v32  ;;  %9694 = vmatprep.subr.bf16.mxu1 %v13815_v16  ;;  %v9394_v32 = vpack.c.bf16 %v3790_v30, %v3789_v13  ;;  %v10700_v13 = vld [vmem:[#allocation2 + $0x7e0] sm:$0xff] }
 0x458   : > { %3962 = vmatmul.mubr.f32.gmra.mrb[136].mxu0 %v3480_v49  ;;  %6207 = vmatmul.mubr.f32.gmra.mrb[150].mxu1 %v5472_v50  ;;  %v3791_v49 = vld [vmem:[#allocation8 + $0x1d0] sm:$0xff]  ;;  %v10687_v50 = vld [vmem:[#allocation2 + $0x658] sm:$0xff]  ;;  %v5738_v30 = vld [vmem:[#allocation9 + $0x320] sm:$0xff] }
 0x459   : > { %3966 = vmatprep.mubr.f32.mxu0 %v12804_v60  ;;  %9371 = vmatpush1.bf16.msra.mxu0 %v9370_v45  ;;  %v3792_v45 = vld [vmem:[#allocation8 + $0x1d8] sm:$0xff] }
 0x45a   : > { %9372 = vmatprep.subr.bf16.mxu0 %v13815_v16  ;;  %9696 = vmatpush1.bf16.msra.mxu1 %v9695_v0  ;;  %v9397_v0 = vpack.c.bf16 %v3792_v45, %v3791_v49  ;;  %v3535_v49 = vld [vmem:[#allocation2 + $0x660] sm:$0xff]  ;;  %v10701_v45 = vld [vmem:[#allocation2 + $0x818] sm:$0xff] }
 0x45b   : > { %6211 = vmatprep.mubr.f32.mxu1 %v5505_v15  ;;  %9697 = vmatprep.subr.bf16.mxu1 %v13815_v16  ;;  %v10688_v15 = vld [vmem:[#allocation2 + $0x660] sm:$0xff] }
 0x45c   : > { %3967 = vmatmul.mubr.f32.gmra.mrb[138].mxu0 %v3481_v47  ;;  %6212 = vmatmul.mubr.f32.gmra.mrb[152].mxu1 %v5473_v17  ;;  %v5514_v47 = vld [vmem:[#allocation2 + $0x6b2] sm:$0xff]  ;;  %v9400_v17 = vpack.c.bf16 %v3794_v41, %v3793_v43 }
 0x45d   : > { %3971 = vmatprep.mubr.f32.mxu0 %v12804_v60  ;;  %9374 = vmatpush1.bf16.msra.mxu0 %v9373_v19  ;;  %v3490_v19 = vld [vmem:[#allocation2 + $0x4cc] sm:$0xff]  ;;  %v12869_v43 = vld [vmem:[#allocation2 + $0x654] sm:$0xff] }
 0x45e   : > { %9375 = vmatprep.subr.bf16.mxu0 %v13815_v16  ;;  %9699 = vmatpush1.bf16.msra.mxu1 %v9698_v35  ;;  %v10689_v35 = vld [vmem:[#allocation2 + $0x698] sm:$0xff] }
 0x45f   : > { %6216 = vmatprep.mubr.f32.mxu1 %v5506_v59  ;;  %9700 = vmatprep.subr.bf16.mxu1 %v13815_v16  ;;  %v9403_v59 = vpack.c.bf16 %v3796_v42, %v3795_v7  ;;  %v3536_v41 = vld [vmem:[#allocation2 + $0x698] sm:$0xff]  ;;  %v12873_v42 = vld [vmem:[#allocation2 + $0x68c] sm:$0xff] }
 0x460   : > { %3972 = vmatmul.mubr.f32.gmra.mrb[140].mxu0 %v3482_v1  ;;  %6217 = vmatmul.mubr.f32.gmra.mrb[154].mxu1 %v5474_v53  ;;  %v10690_v1 = vld [vmem:[#allocation2 + $0x6a0] sm:$0xff]  ;;  %v3492_v53 = vld [vmem:[#allocation2 + $0x50c] sm:$0xff] }
 0x461   : > { %3976 = vmatprep.mubr.f32.mxu0 %v12804_v60  ;;  %9377 = vmatpush1.bf16.msra.mxu0 %v9376_v55  ;;  %v5516_v55 = vld [vmem:[#allocation2 + $0x6f2] sm:$0xff] }
 0x462   : > { %9378 = vmatprep.subr.bf16.mxu0 %v13815_v16  ;;  %9702 = vmatpush1.bf16.msra.mxu1 %v9701_v29  ;;  %v3493_v29 = vld [vmem:[#allocation2 + $0x514] sm:$0xff] }
 0x463   : > { %6221 = vmatprep.mubr.f32.mxu1 %v5507_v28  ;;  %9703 = vmatprep.subr.bf16.mxu1 %v13815_v16  ;;  %v3494_v28 = vld [vmem:[#allocation2 + $0x54c] sm:$0xff] }
 0x464   : > { %3977 = vmatmul.mubr.f32.gmra.mrb[142].mxu0 %v3483_v25  ;;  %6222 = vmatmul.mubr.f32.gmra.mrb[156].mxu1 %v5475_v38  ;;  %v10693_v25 = vld [vmem:[#allocation2 + $0x718] sm:$0xff] }
 0x465   : > { %3981 = vmatprep.mubr.f32.mxu0 %v12804_v60  ;;  %9380 = vmatpush1.bf16.msra.mxu0 %v9379_v57  ;;  %v5519_v57 = vld [vmem:[#allocation2 + $0x76a] sm:$0xff]  ;;  %v3495_v38 = vld [vmem:[#allocation2 + $0x554] sm:$0xff] }
 0x466   : > { %9381 = vmatprep.subr.bf16.mxu0 %v13815_v16  ;;  %9705 = vmatpush1.bf16.msra.mxu1 %v9704_v5  ;;  %v3496_v5 = vld [vmem:[#allocation2 + $0x58c] sm:$0xff] }
 0x467   : > { %6226 = vmatprep.mubr.f32.mxu1 %v5508_v26  ;;  %9706 = vmatprep.subr.bf16.mxu1 %v13815_v16  ;;  %v3497_v26 = vld [vmem:[#allocation2 + $0x594] sm:$0xff] }
 0x468   : > { %3982 = vmatmul.mubr.f32.gmra.mrb[144].mxu0 %v3484_v52  ;;  %6227 = vmatmul.mubr.f32.gmra.mrb[158].mxu1 %v5476_v18  ;;  %v10696_v52 = vld [vmem:[#allocation2 + $0x760] sm:$0xff]  ;;  %v3498_v18 = vld [vmem:[#allocation2 + $0x5cc] sm:$0xff] }
 0x469   : > { %3986 = vmatprep.mubr.f32.mxu0 %v12804_v60  ;;  %9383 = vmatpush1.bf16.msra.mxu0 %v9382_v36  ;;  %v5522_v36 = vld [vmem:[#allocation2 + $0x7b2] sm:$0xff] }
 0x46a   : > { %9384 = vmatprep.subr.bf16.mxu0 %v13815_v16  ;;  %9708 = vmatpush1.bf16.msra.mxu1 %v9707_v23  ;;  %v3499_v23 = vld [vmem:[#allocation2 + $0x5d4] sm:$0xff] }
 0x46b   : > { %6296 = vmatprep.mubr.f32.mxu1 %v5509_v54  ;;  %9709 = vmatprep.subr.bf16.mxu1 %v13815_v16  ;;  %v3532_v54 = vld [vmem:[#allocation2 + $0x618] sm:$0xff] }
 0x46c   : > { %3987 = vmatmul.mubr.f32.gmra.mrb[146].mxu0 %v3485_v4  ;;  %v10698_v4 = vld [vmem:[#allocation2 + $0x7a0] sm:$0xff] }
 0x46d   : > { %3991 = vmatprep.mubr.f32.mxu0 %v12804_v60  ;;  %9386 = vmatpush1.bf16.msra.mxu0 %v9385_v58  ;;  %v5734_v58 = vld [vmem:[#allocation9 + $0x300] sm:$0xff] }
 0x46e   : > { %9387 = vmatprep.subr.bf16.mxu0 %v13815_v16  ;;  %6297 = vmatmul.mubr.f32.vlgmr.msra.gmra.mrb[96].mxu1 %v10685_v37  ;;  %v5525_v37 = vld [vmem:[#allocation2 + $0x82a] sm:$0xff] }
 0x46f   : > { %6301 = vmatprep.mubr.f32.mxu1 %v5510_v34  ;;  %v9710_v34 = vpack.c.bf16 %v5735_v46, %v5734_v58  ;;  %v3799_v58 = vld [vmem:[#allocation8 + $0x210] sm:$0xff]  ;;  %v3800_v46 = vld [vmem:[#allocation8 + $0x218] sm:$0xff] }
 0x470   : > { %3992 = vmatmul.mubr.f32.gmra.mrb[148].mxu0 %v3486_v48  ;;  %v12857_v48 = vld [vmem:[#allocation2 + $0x60c] sm:$0xff] }
 0x471   : > { %3996 = vmatprep.mubr.f32.mxu0 %v12804_v60  ;;  %9389 = vmatpush1.bf16.msra.mxu0 %v9388_v24  ;;  %v3533_v24 = vld [vmem:[#allocation2 + $0x620] sm:$0xff] }
 0x472   : > { %9390 = vmatprep.subr.bf16.mxu0 %v13815_v16  ;;  %6302 = vmatmul.mubr.f32.gmra.mrb[98].mxu1 %v10686_v63  ;;  %v5739_v63 = vld [vmem:[#allocation9 + $0x328] sm:$0xff] }
 0x473   : > { %6306 = vmatprep.mubr.f32.mxu1 %v5511_v11  ;;  %9711 = vmatpush1.bf16.msra.mxu1 %v9710_v34  ;;  %v5752_v34 = vld [vmem:[#allocation9 + $0x390] sm:$0xff] }
 0x474   : > { %3997 = vmatmul.mubr.f32.gmra.mrb[150].mxu0 %v3487_v44  ;;  %9712 = vmatprep.subr.bf16.mxu1 %v13815_v16  ;;  %v12861_v44 = vld [vmem:[#allocation2 + $0x614] sm:$0xff] }
 0x475   : > { %4001 = vmatprep.mubr.f32.mxu0 %v12804_v60  ;;  %9392 = vmatpush1.bf16.msra.mxu0 %v9391_v51  ;;  %v3534_v51 = vld [vmem:[#allocation2 + $0x658] sm:$0xff] }
 0x476   : > { %9393 = vmatprep.subr.bf16.mxu0 %v13815_v16  ;;  %6307 = vmatmul.mubr.f32.gmra.mrb[100].mxu1 %v10687_v50  ;;  %v5740_v50 = vld [vmem:[#allocation9 + $0x330] sm:$0xff] }
 0x477   : > { %6311 = vmatprep.mubr.f32.mxu1 %v5512_v8  ;;  %v5526_v8 = vld [vmem:[#allocation2 + $0x832] sm:$0xff] }
 0x478   : > { %4002 = vmatmul.mubr.f32.gmra.mrb[152].mxu0 %v3488_v2  ;;  %v9716_v2 = vpack.c.bf16 %v5739_v63, %v5738_v30  ;;  %v5755_v30 = vld [vmem:[#allocation9 + $0x3a8] sm:$0xff]  ;;  %v5534_v63 = vld [vmem:[#allocation2 + $0x932] sm:$0xff] }
 0x479   : > { %4006 = vmatprep.mubr.f32.mxu0 %v12804_v60  ;;  %9395 = vmatpush1.bf16.msra.mxu0 %v9394_v32  ;;  %v12865_v32 = vld [vmem:[#allocation2 + $0x64c] sm:$0xff] }
 0x47a   : > { %9396 = vmatprep.subr.bf16.mxu0 %v13815_v16  ;;  %6312 = vmatmul.mubr.f32.gmra.mrb[102].mxu1 %v10688_v15  ;;  %v10702_v15 = vld [vmem:[#allocation2 + $0x820] sm:$0xff] }
 0x47b   : > { %6316 = vmatprep.mubr.f32.mxu1 %v5513_v56  ;;  %v5741_v56 = vld [vmem:[#allocation9 + $0x338] sm:$0xff] }
 0x47c   : > { %4007 = vmatmul.mubr.f32.gmra.mrb[154].mxu0 %v3489_v12  ;;  %v5527_v12 = vld [vmem:[#allocation2 + $0x86a] sm:$0xff] }
 0x47d   : > { %4011 = vmatprep.mubr.f32.mxu0 %v12804_v60  ;;  %9398 = vmatpush1.bf16.msra.mxu0 %v9397_v0  ;;  %v9719_v0 = vpack.c.bf16 %v5741_v56, %v5740_v50  ;;  %v12899_v50 = vld [vmem:[#allocation2 + $0x918] sm:$0xff]  ;;  %v5756_v56 = vld [vmem:[#allocation9 + $0x3b0] sm:$0xff] }
 0x47e   : > { %9399 = vmatprep.subr.bf16.mxu0 %v13815_v16  ;;  %6317 = vmatmul.mubr.f32.gmra.mrb[104].mxu1 %v10689_v35  ;;  %v3537_v35 = vld [vmem:[#allocation2 + $0x6a0] sm:$0xff] }
 0x47f   : > { %6321 = vmatprep.mubr.f32.mxu1 %v5514_v47  ;;  %v5742_v47 = vld [vmem:[#allocation9 + $0x340] sm:$0xff] }
 0x480   : > { %4012 = vmatmul.mubr.f32.gmra.mrb[156].mxu0 %v3490_v19  ;;  %v5743_v19 = vld [vmem:[#allocation9 + $0x348] sm:$0xff] }
 0x481   : > { %4016 = vmatprep.mubr.f32.mxu0 %v12804_v60  ;;  %9401 = vmatpush1.bf16.msra.mxu0 %v9400_v17  ;;  %v5528_v17 = vld [vmem:[#allocation2 + $0x872] sm:$0xff]  ;;  %v9722_v7 = vpack.c.bf16 %v5743_v19, %v5742_v47  ;;  %v3805_v47 = vld [vmem:[#allocation8 + $0x240] sm:$0xff]  ;;  %v3806_v19 = vld [vmem:[#allocation8 + $0x248] sm:$0xff] }
 0x482   : > { %9402 = vmatprep.subr.bf16.mxu0 %v13815_v16  ;;  %6322 = vmatmul.mubr.f32.gmra.mrb[106].mxu1 %v10690_v1  ;;  %v5529_v1 = vld [vmem:[#allocation2 + $0x8aa] sm:$0xff] }
 0x483   : > { %6326 = vmatprep.mubr.f32.mxu1 %v5515_v62  ;;  %v10703_v62 = vld [vmem:[#allocation2 + $0x858] sm:$0xff] }
 0x484   : > { %4017 = vmatmul.mubr.f32.gmra.mrb[158].mxu0 %v3491_v40  ;;  %v5744_v40 = vld [vmem:[#allocation9 + $0x350] sm:$0xff] }
 0x485   : > { %4021 = vmatprep.mubr.f32.mxu0 %v12804_v60  ;;  %9404 = vmatpush1.bf16.msra.mxu0 %v9403_v59  ;;  %v5745_v59 = vld [vmem:[#allocation9 + $0x358] sm:$0xff] }
 0x486   : > { %9405 = vmatprep.subr.bf16.mxu0 %v13815_v16  ;;  %6327 = vmatmul.mubr.f32.gmra.mrb[108].mxu1 %v10691_v6  ;;  %v3538_v6 = vld [vmem:[#allocation2 + $0x6d8] sm:$0xff] }
 0x487   : > { %6331 = vmatprep.mubr.f32.mxu1 %v5516_v55  ;;  %v9725_v55 = vpack.c.bf16 %v5745_v59, %v5744_v40  ;;  %v3544_v40 = vld [vmem:[#allocation2 + $0x3a4] sm:$0xff]  ;;  %v9418_v59 = vpack.c.bf16 %v3806_v19, %v3805_v47  ;;  %v3551_v47 = vld [vmem:[#allocation2 + $0x46c] sm:$0xff] }
 0x488   : > { %4022 = vmatmul.mubr.f32.gmra.mrb[160].mxu0 %v3492_v53  ;;  %v12877_v53 = vld [vmem:[#allocation2 + $0x694] sm:$0xff] }
 0x489   : > { %4026 = vmatprep.mubr.f32.mxu0 %v12804_v60 }
 0x48a   : > { %6332 = vmatmul.mubr.f32.gmra.mrb[110].mxu1 %v10692_v33  ;;  %v5747_v33 = vld [vmem:[#allocation9 + $0x368] sm:$0xff] }
 0x48b   : > { %6336 = vmatprep.mubr.f32.mxu1 %v5517_v3  ;;  %v10704_v3 = vld [vmem:[#allocation2 + $0x860] sm:$0xff] }
 0x48c   : > { %4027 = vmatmul.mubr.f32.gmra.mrb[162].mxu0 %v3493_v29  ;;  %v5746_v29 = vld [vmem:[#allocation9 + $0x360] sm:$0xff] }
 0x48d   : > { %4031 = vmatprep.mubr.f32.mxu0 %v12804_v60 }
 0x48e   : > { %6337 = vmatmul.mubr.f32.gmra.mrb[112].mxu1 %v10693_v25  ;;  %v12881_v25 = vld [vmem:[#allocation2 + $0x6cc] sm:$0xff] }
 0x48f   : > { %6341 = vmatprep.mubr.f32.mxu1 %v5518_v9  ;;  %v5530_v9 = vld [vmem:[#allocation2 + $0x8b2] sm:$0xff] }
 0x490   : > { %4032 = vmatmul.mubr.f32.gmra.mrb[164].mxu0 %v3494_v28  ;;  %v9728_v28 = vpack.c.bf16 %v5747_v33, %v5746_v29  ;;  %v5761_v29 = vld [vmem:[#allocation9 + $0x3d8] sm:$0xff]  ;;  %v5537_v33 = vld [vmem:[#allocation2 + $0x9aa] sm:$0xff] }
 0x491   : > { %4036 = vmatprep.mubr.f32.mxu0 %v12804_v60 }
 0x492   : > { %6342 = vmatmul.mubr.f32.gmra.mrb[114].mxu1 %v10694_v27  ;;  %v5748_v27 = vld [vmem:[#allocation9 + $0x370] sm:$0xff] }
 0x493   : > { %6346 = vmatprep.mubr.f32.mxu1 %v5519_v57  ;;  %v3539_v57 = vld [vmem:[#allocation2 + $0x6e0] sm:$0xff] }
 0x494   : > { %4037 = vmatmul.mubr.f32.gmra.mrb[166].mxu0 %v3495_v38  ;;  %v10705_v38 = vld [vmem:[#allocation2 + $0x898] sm:$0xff] }
 0x495   : > { %4041 = vmatprep.mubr.f32.mxu0 %v12804_v60 }
 0x496   : > { %6347 = vmatmul.mubr.f32.gmra.mrb[116].mxu1 %v10695_v21 }
 0x497   : > { %6351 = vmatprep.mubr.f32.mxu1 %v5520_v14  ;;  %v5749_v14 = vld [vmem:[#allocation9 + $0x378] sm:$0xff] }
 0x498   : > { %4042 = vmatmul.mubr.f32.gmra.mrb[168].mxu0 %v3496_v5  ;;  %v5531_v5 = vld [vmem:[#allocation2 + $0x8ea] sm:$0xff]  ;;  %v9731_v21 = vpack.c.bf16 %v5749_v14, %v5748_v27  ;;  %v12917_v27 = vld [vmem:[#allocation2 + $0x960] sm:$0xff] }
 0x499   : > { %4046 = vmatprep.mubr.f32.mxu0 %v12804_v60  ;;  %v5762_v14 = vld [vmem:[#allocation9 + $0x3e0] sm:$0xff] }
 0x49a   : > { %6352 = vmatmul.mubr.f32.gmra.mrb[118].mxu1 %v10696_v52  ;;  %v3798_v52 = vld [vmem:[#allocation8 + $0x208] sm:$0xff] }
 0x49b   : > { %6356 = vmatprep.mubr.f32.mxu1 %v5521_v22  ;;  %v12885_v22 = vld [vmem:[#allocation2 + $0x6d4] sm:$0xff] }
 0x49c   : > { %4047 = vmatmul.mubr.f32.gmra.mrb[170].mxu0 %v3497_v26  ;;  %v3797_v26 = vld [vmem:[#allocation8 + $0x200] sm:$0xff] }
 0x49d   : > { %4051 = vmatprep.mubr.f32.mxu0 %v12804_v60 }
 0x49e   : > { %6357 = vmatmul.mubr.f32.gmra.mrb[120].mxu1 %v10697_v31  ;;  %v5751_v31 = vld [vmem:[#allocation9 + $0x388] sm:$0xff] }
 0x49f   : > { %6361 = vmatprep.mubr.f32.mxu1 %v5522_v36  ;;  %v10706_v36 = vld [vmem:[#allocation2 + $0x8a0] sm:$0xff] }
 0x4a0   : > { %4052 = vmatmul.mubr.f32.gmra.mrb[172].mxu0 %v3498_v18  ;;  %v5750_v18 = vld [vmem:[#allocation9 + $0x380] sm:$0xff] }
 0x4a1   : > { %4056 = vmatprep.mubr.f32.mxu0 %v12804_v60  ;;  %v5737_v60 = vld [vmem:[#allocation9 + $0x318] sm:$0xff] }
 0x4a2   : > { %6362 = vmatmul.mubr.f32.gmra.mrb[122].mxu1 %v10698_v4  ;;  %v9713_v11 = vpack.c.bf16 %v5737_v60, %v5736_v39  ;;  %v9406_v4 = vpack.c.bf16 %v3798_v52, %v3797_v26  ;;  %v3541_v60 = vld [vmem:[#allocation2 + $0x32c] sm:$0xff]  ;;  %v3546_v26 = vld [vmem:[#allocation2 + $0x3e4] sm:$0xff] }
 0x4a3   : > { %6366 = vmatprep.mubr.f32.mxu1 %v5523_v10  ;;  %v5532_v10 = vld [vmem:[#allocation2 + $0x8f2] sm:$0xff] }
 0x4a4   : > { %4057 = vmatmul.mubr.f32.gmra.mrb[174].mxu0 %v3499_v23  ;;  %9714 = vmatpush1.bf16.msra.mxu1 %v9713_v11  ;;  %v9734_v23 = vpack.c.bf16 %v5751_v31, %v5750_v18  ;;  %v3802_v11 = vld [vmem:[#allocation8 + $0x228] sm:$0xff]  ;;  %v3812_v18 = vld [vmem:[#allocation8 + $0x278] sm:$0xff] }
 0x4a5   : > { %4061 = vmatprep.mubr.f32.mxu0 %v3532_v54  ;;  %9715 = vmatprep.subr.bf16.mxu1 %v13815_v16  ;;  %v3540_v54 = vld [vmem:[#allocation2 + $0x324] sm:$0xff]  ;;  %v12923_v31 = vld [vmem:[#allocation2 + $0x998] sm:$0xff] }
 0x4a6   : > { %6367 = vmatmul.mubr.f32.gmra.mrb[124].mxu1 %v10699_v61  ;;  %v5533_v61 = vld [vmem:[#allocation2 + $0x92a] sm:$0xff] }
 0x4a7   : > { %6371 = vmatprep.mubr.f32.mxu1 %v5524_v20  ;;  %v10707_v20 = vld [vmem:[#allocation2 + $0x8d8] sm:$0xff] }
 0x4a8   : > { %4062 = vmatmul.mubr.f32.gmra.mrb[176].mxu0 %v12857_v48  ;;  %9717 = vmatpush1.bf16.msra.mxu1 %v9716_v2 }
 0x4a9   : > { %4066 = vmatprep.mubr.f32.mxu0 %v3533_v24  ;;  %9718 = vmatprep.subr.bf16.mxu1 %v13815_v16  ;;  %v5753_v24 = vld [vmem:[#allocation9 + $0x398] sm:$0xff] }
 0x4aa   : > { %6372 = vmatmul.mubr.f32.gmra.mrb[126].mxu1 %v10700_v13  ;;  %v9737_v39 = vpack.c.bf16 %v5753_v24, %v5752_v34  ;;  %v5754_v13 = vld [vmem:[#allocation9 + $0x3a0] sm:$0xff]  ;;  %v3814_v34 = vld [vmem:[#allocation8 + $0x288] sm:$0xff] }
 0x4ab   : > { %6376 = vmatprep.mubr.f32.mxu1 %v5525_v37  ;;  %v3801_v37 = vld [vmem:[#allocation8 + $0x220] sm:$0xff] }
 0x4ac   : > { %4067 = vmatmul.mubr.f32.gmra.mrb[178].mxu0 %v12861_v44  ;;  %9720 = vmatpush1.bf16.msra.mxu1 %v9719_v0  ;;  %v9412_v2 = vpack.c.bf16 %v3802_v11, %v3801_v37  ;;  %v5535_v0 = vld [vmem:[#allocation2 + $0x96a] sm:$0xff]  ;;  %v12929_v24 = vld [vmem:[#allocation2 + $0x9a0] sm:$0xff]  ;;  %v3816_v37 = vld [vmem:[#allocation8 + $0x298] sm:$0xff] }
 0x4ad   : > { %4071 = vmatprep.mubr.f32.mxu0 %v3534_v51  ;;  %9721 = vmatprep.subr.bf16.mxu1 %v13815_v16  ;;  %v12893_v51 = vld [vmem:[#allocation2 + $0x8e0] sm:$0xff]  ;;  %v12933_v11 = vld [vmem:[#allocation2 + $0x9d8] sm:$0xff] }
 0x4ae   : > { %6377 = vmatmul.mubr.f32.gmra.mrb[128].mxu1 %v10701_v45  ;;  %v3804_v45 = vld [vmem:[#allocation8 + $0x238] sm:$0xff] }
 0x4af   : > { %6381 = vmatprep.mubr.f32.mxu1 %v5526_v8  ;;  %v9740_v8 = vpack.c.bf16 %v5755_v30, %v5754_v13  ;;  %v3549_v13 = vld [vmem:[#allocation2 + $0x42c] sm:$0xff] }
 0x4b0   : > { %4072 = vmatmul.mubr.f32.gmra.mrb[180].mxu0 %v12865_v32  ;;  %9723 = vmatpush1.bf16.msra.mxu1 %v9722_v7  ;;  %v5758_v7 = vld [vmem:[#allocation9 + $0x3c0] sm:$0xff] }
 0x4b1   : > { %4076 = vmatprep.mubr.f32.mxu0 %v3535_v49  ;;  %9724 = vmatprep.subr.bf16.mxu1 %v13815_v16  ;;  %v3803_v49 = vld [vmem:[#allocation8 + $0x230] sm:$0xff] }
 0x4b2   : > { %6382 = vmatmul.mubr.f32.gmra.mrb[130].mxu1 %v10702_v15  ;;  %v9415_v15 = vpack.c.bf16 %v3804_v45, %v3803_v49  ;;  %v12940_v49 = vld [vmem:[#allocation2] sm:$0xff] }
 0x4b3   : > { %6386 = vmatprep.mubr.f32.mxu1 %v5527_v12  ;;  %v5757_v12 = vld [vmem:[#allocation9 + $0x3b8] sm:$0xff]  ;;  %v5542_v45 = vld [vmem:[#allocation2 + $0xa86] sm:$0xff] }
 0x4b4   : > { %4077 = vmatmul.mubr.f32.gmra.mrb[182].mxu0 %v12869_v43  ;;  %9726 = vmatpush1.bf16.msra.mxu1 %v9725_v55  ;;  %v3808_v55 = vld [vmem:[#allocation8 + $0x258] sm:$0xff] }
 0x4b5   : > { %4081 = vmatprep.mubr.f32.mxu0 %v3536_v41  ;;  %9727 = vmatprep.subr.bf16.mxu1 %v13815_v16  ;;  %v3543_v41 = vld [vmem:[#allocation2 + $0x36c] sm:$0xff] }
 0x4b6   : > { %6387 = vmatmul.mubr.f32.gmra.mrb[132].mxu1 %v10703_v62  ;;  %v5536_v62 = vld [vmem:[#allocation2 + $0x972] sm:$0xff] }
 0x4b7   : > { %6391 = vmatprep.mubr.f32.mxu1 %v5528_v17  ;;  %v12905_v17 = vld [vmem:[#allocation2 + $0x920] sm:$0xff] }
 0x4b8   : > { %4082 = vmatmul.mubr.f32.gmra.mrb[184].mxu0 %v12873_v42  ;;  %9729 = vmatpush1.bf16.msra.mxu1 %v9728_v28 }
 0x4b9   : > { %4086 = vmatprep.mubr.f32.mxu0 %v3537_v35  ;;  %9730 = vmatprep.subr.bf16.mxu1 %v13815_v16  ;;  %v5759_v35 = vld [vmem:[#allocation9 + $0x3c8] sm:$0xff] }
 0x4ba   : > { %6392 = vmatmul.mubr.f32.gmra.mrb[134].mxu1 %v10704_v3  ;;  %v5760_v3 = vld [vmem:[#allocation9 + $0x3d0] sm:$0xff] }
 0x4bb   : > { %6396 = vmatprep.mubr.f32.mxu1 %v5529_v1  ;;  %v3807_v1 = vld [vmem:[#allocation8 + $0x250] sm:$0xff] }
 0x4bc   : > { %4087 = vmatmul.mubr.f32.gmra.mrb[186].mxu0 %v12877_v53  ;;  %9732 = vmatpush1.bf16.msra.mxu1 %v9731_v21  ;;  %v9421_v28 = vpack.c.bf16 %v3808_v55, %v3807_v1  ;;  %v5538_v21 = vld [vmem:[#allocation2 + $0x9b2] sm:$0xff] }
 0x4bd   : > { %4091 = vmatprep.mubr.f32.mxu0 %v3538_v6  ;;  %9733 = vmatprep.subr.bf16.mxu1 %v13815_v16  ;;  %v12911_v6 = vld [vmem:[#allocation2 + $0x958] sm:$0xff]  ;;  %v3823_v55 = vld [vmem:[#allocation8 + $0x2d0] sm:$0xff] }
 0x4be   : > { %6397 = vmatmul.mubr.f32.gmra.mrb[136].mxu1 %v10705_v38  ;;  %v3810_v38 = vld [vmem:[#allocation8 + $0x268] sm:$0xff]  ;;  %v3585_v1 = vld [vmem:[#allocation2 + $0x794] sm:$0xff] }
 0x4bf   : > { %6401 = vmatprep.mubr.f32.mxu1 %v5530_v9  ;;  %v3545_v9 = vld [vmem:[#allocation2 + $0x3ac] sm:$0xff] }
 0x4c0   : > { %4092 = vmatmul.mubr.f32.gmra.mrb[188].mxu0 %v12881_v25  ;;  %9735 = vmatpush1.bf16.msra.mxu1 %v9734_v23  ;;  %v5765_v23 = vld [vmem:[#allocation9 + $0x3f8] sm:$0xff] }
 0x4c1   : > { %4096 = vmatprep.mubr.f32.mxu0 %v3539_v57  ;;  %9736 = vmatprep.subr.bf16.mxu1 %v13815_v16  ;;  %v3809_v57 = vld [vmem:[#allocation8 + $0x260] sm:$0xff] }
 0x4c2   : > { %6402 = vmatmul.mubr.f32.gmra.mrb[138].mxu1 %v10706_v36  ;;  %v9424_v52 = vpack.c.bf16 %v3810_v38, %v3809_v57  ;;  %v3811_v36 = vld [vmem:[#allocation8 + $0x270] sm:$0xff]  ;;  %v3826_v57 = vld [vmem:[#allocation8 + $0x2e8] sm:$0xff] }
 0x4c3   : > { %6406 = vmatprep.mubr.f32.mxu1 %v5531_v5  ;;  %v5763_v5 = vld [vmem:[#allocation9 + $0x3e8] sm:$0xff] }
 0x4c4   : > { %4097 = vmatmul.mubr.f32.gmra.mrb[190].mxu0 %v12885_v22  ;;  %9738 = vmatpush1.bf16.msra.mxu1 %v9737_v39  ;;  %v3548_v39 = vld [vmem:[#allocation2 + $0x424] sm:$0xff] }
 0x4c5   : > { %4166 = vmatprep.mubr.f32.mxu0 %v12857_v48  ;;  %v9409_v48 = vpack.c.bf16 %v3800_v46, %v3799_v58  ;;  %9739 = vmatprep.subr.bf16.mxu1 %v13815_v16  ;;  %v9427_v58 = vpack.c.bf16 %v3812_v18, %v3811_v36  ;;  %v3580_v46 = vld [vmem:[#allocation2 + $0x70c] sm:$0xff] }
 0x4c6   : > { %6407 = vmatmul.mubr.f32.gmra.mrb[140].mxu1 %v10707_v20  ;;  %v3813_v20 = vld [vmem:[#allocation8 + $0x280] sm:$0xff]  ;;  %v3555_v36 = vld [vmem:[#allocation2 + $0x4ec] sm:$0xff] }
 0x4c7   : > { %6411 = vmatprep.mubr.f32.mxu1 %v5532_v10  ;;  %v5764_v10 = vld [vmem:[#allocation9 + $0x3f0] sm:$0xff]  ;;  %v5546_v38 = vld [vmem:[#allocation2 + $0xb06] sm:$0xff] }
 0x4c8   : > { %4167 = vmatmul.mubr.f32.vlgmr.msra.gmra.mrb[128].mxu0 %v3540_v54  ;;  %9741 = vmatpush1.bf16.msra.mxu1 %v9740_v8  ;;  %v5539_v54 = vld [vmem:[#allocation2 + $0x9ea] sm:$0xff]  ;;  %v3817_v8 = vld [vmem:[#allocation8 + $0x2a0] sm:$0xff] }
 0x4c9   : > { %9407 = vmatpush1.bf16.msra.mxu0 %v9406_v4  ;;  %4171 = vmatprep.mubr.f32.mxu0 %v12861_v44  ;;  %v3542_v44 = vld [vmem:[#allocation2 + $0x364] sm:$0xff]  ;;  %v3547_v4 = vld [vmem:[#allocation2 + $0x3ec] sm:$0xff] }
 0x4ca   : > { %9408 = vmatprep.subr.bf16.mxu0 %v13815_v16  ;;  %6412 = vmatmul.mubr.f32.gmra.mrb[142].mxu1 %v12893_v51 }
 0x4cb   : > { %6416 = vmatprep.mubr.f32.mxu1 %v5533_v61  ;;  %9742 = vmatprep.subr.bf16.mxu1 %v13815_v16  ;;  %v5540_v61 = vld [vmem:[#allocation2 + $0x9f2] sm:$0xff] }
 0x4cc   : > { %4172 = vmatmul.mubr.f32.gmra.mrb[130].mxu0 %v3541_v60  ;;  %v3581_v60 = vld [vmem:[#allocation2 + $0x714] sm:$0xff] }
 0x4cd   : > { %4176 = vmatprep.mubr.f32.mxu0 %v12865_v32  ;;  %9410 = vmatpush1.bf16.msra.mxu0 %v9409_v48  ;;  %v9743_v32 = vpack.c.bf16 %v5757_v12, %v5756_v56  ;;  %v3815_v48 = vld [vmem:[#allocation8 + $0x290] sm:$0xff]  ;;  %v3550_v56 = vld [vmem:[#allocation2 + $0x464] sm:$0xff] }
 0x4ce   : > { %9411 = vmatprep.subr.bf16.mxu0 %v13815_v16  ;;  %6417 = vmatmul.mubr.f32.gmra.mrb[144].mxu1 %v12899_v50  ;;  %v9433_v30 = vpack.c.bf16 %v3816_v37, %v3815_v48  ;;  %v5552_v48 = vld [vmem:[#allocation2 + $0xbc6] sm:$0xff] }
 0x4cf   : > { %6421 = vmatprep.mubr.f32.mxu1 %v5534_v63  ;;  %9744 = vmatpush1.bf16.msra.mxu1 %v9743_v32  ;;  %v3582_v63 = vld [vmem:[#allocation2 + $0x74c] sm:$0xff]  ;;  %v3560_v37 = vld [vmem:[#allocation2 + $0x5a4] sm:$0xff] }
 0x4d0   : > { %4177 = vmatmul.mubr.f32.gmra.mrb[132].mxu0 %v3542_v44  ;;  %9745 = vmatprep.subr.bf16.mxu1 %v13815_v16  ;;  %v3818_v44 = vld [vmem:[#allocation8 + $0x2a8] sm:$0xff]  ;;  %v3819_v32 = vld [vmem:[#allocation8 + $0x2b0] sm:$0xff] }
 0x4d1   : > { %4181 = vmatprep.mubr.f32.mxu0 %v12869_v43  ;;  %9413 = vmatpush1.bf16.msra.mxu0 %v9412_v2  ;;  %v9746_v43 = vpack.c.bf16 %v5759_v35, %v5758_v7  ;;  %v12937_v2 = vld [vmem:[#allocation2 + $0x9e0] sm:$0xff]  ;;  %v9436_v12 = vpack.c.bf16 %v3818_v44, %v3817_v8  ;;  %v3584_v7 = vld [vmem:[#allocation2 + $0x78c] sm:$0xff] }
 0x4d2   : > { %9414 = vmatprep.subr.bf16.mxu0 %v13815_v16  ;;  %6422 = vmatmul.mubr.f32.gmra.mrb[146].mxu1 %v12905_v17  ;;  %v3821_v35 = vld [vmem:[#allocation8 + $0x2c0] sm:$0xff]  ;;  %v3594_v8 = vld [vmem:[#allocation2 + $0x8cc] sm:$0xff] }
 0x4d3   : > { %6426 = vmatprep.mubr.f32.mxu1 %v5535_v0  ;;  %9747 = vmatpush1.bf16.msra.mxu1 %v9746_v43  ;;  %v3583_v0 = vld [vmem:[#allocation2 + $0x754] sm:$0xff]  ;;  %v5544_v43 = vld [vmem:[#allocation2 + $0xac6] sm:$0xff] }
 0x4d4   : > { %4182 = vmatmul.mubr.f32.gmra.mrb[134].mxu0 %v3543_v41  ;;  %9748 = vmatprep.subr.bf16.mxu1 %v13815_v16  ;;  %v3820_v41 = vld [vmem:[#allocation8 + $0x2b8] sm:$0xff]  ;;  %v5554_v44 = vld [vmem:[#allocation2 + $0xc06] sm:$0xff] }
 0x4d5   : > { %4186 = vmatprep.mubr.f32.mxu0 %v12873_v42  ;;  %9416 = vmatpush1.bf16.msra.mxu0 %v9415_v15  ;;  %v9749_v42 = vpack.c.bf16 %v5761_v29, %v5760_v3  ;;  %v5543_v15 = vld [vmem:[#allocation2 + $0xa8e] sm:$0xff]  ;;  %v9439_v19 = vpack.c.bf16 %v3820_v41, %v3819_v32  ;;  %v3824_v3 = vld [vmem:[#allocation8 + $0x2d8] sm:$0xff]  ;;  %v5556_v41 = vld [vmem:[#allocation2 + $0xc46] sm:$0xff] }
 0x4d6   : > { %9417 = vmatprep.subr.bf16.mxu0 %v13815_v16  ;;  %6427 = vmatmul.mubr.f32.gmra.mrb[148].mxu1 %v12911_v6  ;;  %v5545_v29 = vld [vmem:[#allocation2 + $0xace] sm:$0xff] }
 0x4d7   : > { %6431 = vmatprep.mubr.f32.mxu1 %v5536_v62  ;;  %9750 = vmatpush1.bf16.msra.mxu1 %v9749_v42  ;;  %v3822_v62 = vld [vmem:[#allocation8 + $0x2c8] sm:$0xff]  ;;  %v9445_v42 = vpack.c.bf16 %v3824_v3, %v3823_v55 }
 0x4d8   : > { %4187 = vmatmul.mubr.f32.gmra.mrb[136].mxu0 %v3544_v40  ;;  %9751 = vmatprep.subr.bf16.mxu1 %v13815_v16  ;;  %v3552_v40 = vld [vmem:[#allocation2 + $0x4a4] sm:$0xff]  ;;  %v12963_v32 = vld [vmem:[#allocation2 + $0x90c] sm:$0xff] }
 0x4d9   : > { %4191 = vmatprep.mubr.f32.mxu0 %v12877_v53  ;;  %9419 = vmatpush1.bf16.msra.mxu0 %v9418_v59  ;;  %v9752_v53 = vpack.c.bf16 %v5763_v5, %v5762_v14  ;;  %v9442_v59 = vpack.c.bf16 %v3822_v62, %v3821_v35  ;;  %v3554_v14 = vld [vmem:[#allocation2 + $0x4e4] sm:$0xff]  ;;  %v12971_v35 = vld [vmem:[#allocation2 + $0x94c] sm:$0xff] }
 0x4da   : > { %9420 = vmatprep.subr.bf16.mxu0 %v13815_v16  ;;  %6432 = vmatmul.mubr.f32.gmra.mrb[150].mxu1 %v12917_v27  ;;  %v5558_v62 = vld [vmem:[#allocation2 + $0xc86] sm:$0xff] }
 0x4db   : > { %6436 = vmatprep.mubr.f32.mxu1 %v5537_v33  ;;  %9753 = vmatpush1.bf16.msra.mxu1 %v9752_v53  ;;  %v3553_v33 = vld [vmem:[#allocation2 + $0x4ac] sm:$0xff] }
 0x4dc   : > { %4192 = vmatmul.mubr.f32.gmra.mrb[138].mxu0 %v3545_v9  ;;  %9754 = vmatprep.subr.bf16.mxu1 %v13815_v16  ;;  %v3586_v9 = vld [vmem:[#allocation2 + $0x7cc] sm:$0xff] }
 0x4dd   : > { %4196 = vmatprep.mubr.f32.mxu0 %v12881_v25  ;;  %9422 = vmatpush1.bf16.msra.mxu0 %v9421_v28  ;;  %v9755_v25 = vpack.c.bf16 %v5765_v23, %v5764_v10  ;;  %v3825_v28 = vld [vmem:[#allocation8 + $0x2e0] sm:$0xff]  ;;  %v3827_v53 = vld [vmem:[#allocation8 + $0x2f0] sm:$0xff] }
 0x4de   : > { %9423 = vmatprep.subr.bf16.mxu0 %v13815_v16  ;;  %6437 = vmatmul.mubr.f32.gmra.mrb[152].mxu1 %v12923_v31  ;;  %v9448_v5 = vpack.c.bf16 %v3826_v57, %v3825_v28  ;;  %v3588_v10 = vld [vmem:[#allocation2 + $0x80c] sm:$0xff] }
 0x4df   : > { %6441 = vmatprep.mubr.f32.mxu1 %v5538_v21  ;;  %9756 = vmatpush1.bf16.msra.mxu1 %v9755_v25  ;;  %v3587_v21 = vld [vmem:[#allocation2 + $0x7d4] sm:$0xff]  ;;  %v5548_v23 = vld [vmem:[#allocation2 + $0xb46] sm:$0xff] }
 0x4e0   : > { %4197 = vmatmul.mubr.f32.gmra.mrb[140].mxu0 %v3546_v26  ;;  %v3828_v26 = vld [vmem:[#allocation8 + $0x2f8] sm:$0xff]  ;;  %v12981_v55 = vld [vmem:[#allocation2 + $0x98c] sm:$0xff] }
 0x4e1   : > { %4201 = vmatprep.mubr.f32.mxu0 %v12885_v22  ;;  %9425 = vmatpush1.bf16.msra.mxu0 %v9424_v52  ;;  %v9430_v22 = vpack.c.bf16 %v3814_v34, %v3813_v20  ;;  %v5547_v52 = vld [vmem:[#allocation2 + $0xb0e] sm:$0xff]  ;;  %v9451_v18 = vpack.c.bf16 %v3828_v26, %v3827_v53  ;;  %v5550_v20 = vld [vmem:[#allocation2 + $0xb86] sm:$0xff] }
 0x4e2   : > { %9426 = vmatprep.subr.bf16.mxu0 %v13815_v16  ;;  %6442 = vmatmul.mubr.f32.gmra.mrb[154].mxu1 %v12929_v24  ;;  %v3589_v25 = vld [vmem:[#allocation2 + $0x814] sm:$0xff]  ;;  %v3558_v34 = vld [vmem:[#allocation2 + $0x564] sm:$0xff]  ;;  %v12995_v28 = vld [vmem:[#allocation2 + $0x9cc] sm:$0xff] }
 0x4e3   : > { %6446 = vmatprep.mubr.f32.mxu1 %v5539_v54  ;;  %v3556_v54 = vld [vmem:[#allocation2 + $0x524] sm:$0xff] }
 0x4e4   : > { %4202 = vmatmul.mubr.f32.gmra.mrb[142].mxu0 %v3547_v4  ;;  %v5549_v4 = vld [vmem:[#allocation2 + $0xb4e] sm:$0xff]  ;;  %v5560_v3 = vld [vmem:[#allocation2 + $0xcc6] sm:$0xff] }
 0x4e5   : > { %4206 = vmatprep.mubr.f32.mxu0 %v3580_v46  ;;  %9428 = vmatpush1.bf16.msra.mxu0 %v9427_v58  ;;  %v3557_v58 = vld [vmem:[#allocation2 + $0x52c] sm:$0xff]  ;;  %v3829_v53 = vld [vmem:[#allocation8 + $0x300] sm:$0xff] }
 0x4e6   : > { %9429 = vmatprep.subr.bf16.mxu0 %v13815_v16  ;;  %6447 = vmatmul.mubr.f32.gmra.mrb[156].mxu1 %v12933_v11  ;;  %v3590_v46 = vld [vmem:[#allocation2 + $0x84c] sm:$0xff] }
 0x4e7   : > { %6451 = vmatprep.mubr.f32.mxu1 %v5540_v61  ;;  %v3591_v61 = vld [vmem:[#allocation2 + $0x854] sm:$0xff]  ;;  %v5562_v57 = vld [vmem:[#allocation2 + $0xd06] sm:$0xff] }
 0x4e8   : > { %4207 = vmatmul.mubr.f32.gmra.mrb[144].mxu0 %v3548_v39  ;;  %v5551_v39 = vld [vmem:[#allocation2 + $0xb8e] sm:$0xff] }
 0x4e9   : > { %4211 = vmatprep.mubr.f32.mxu0 %v3581_v60  ;;  %9431 = vmatpush1.bf16.msra.mxu0 %v9430_v22  ;;  %v3559_v22 = vld [vmem:[#allocation2 + $0x56c] sm:$0xff] }
 0x4ea   : > { %9432 = vmatprep.subr.bf16.mxu0 %v13815_v16  ;;  %6452 = vmatmul.mubr.f32.gmra.mrb[158].mxu1 %v12937_v2  ;;  %v3592_v60 = vld [vmem:[#allocation2 + $0x88c] sm:$0xff] }
 0x4eb   : > { %6521 = vmatprep.mubr.f32.mxu1 %v12940_v49  ;;  %v3830_v26 = vld [vmem:[#allocation8 + $0x308] sm:$0xff] }
 0x4ec   : > { %4212 = vmatmul.mubr.f32.gmra.mrb[146].mxu0 %v3549_v13  ;;  %v3593_v13 = vld [vmem:[#allocation2 + $0x894] sm:$0xff] }
 0x4ed   : > { %4216 = vmatprep.mubr.f32.mxu0 %v3582_v63  ;;  %9434 = vmatpush1.bf16.msra.mxu0 %v9433_v30  ;;  %v5553_v30 = vld [vmem:[#allocation2 + $0xbce] sm:$0xff] }
 0x4ee   : > { %9435 = vmatprep.subr.bf16.mxu0 %v13815_v16  ;;  %6522 = vmatmul.mubr.f32.vlgmr.msra.gmra.mrb[96].mxu1 %v5542_v45  ;;  %v3561_v63 = vld [vmem:[#allocation2 + $0x5ac] sm:$0xff]  ;;  %v3562_v45 = vld [vmem:[#allocation2 + $0x5e4] sm:$0xff] }
 0x4ef   : > { %6526 = vmatprep.mubr.f32.mxu1 %v12940_v49 }
 0x4f0   : > { %4217 = vmatmul.mubr.f32.gmra.mrb[148].mxu0 %v3550_v56  ;;  %v3595_v56 = vld [vmem:[#allocation2 + $0x8d4] sm:$0xff] }
 0x4f1   : > { %4221 = vmatprep.mubr.f32.mxu0 %v3583_v0  ;;  %9437 = vmatpush1.bf16.msra.mxu0 %v9436_v12  ;;  %v5555_v12 = vld [vmem:[#allocation2 + $0xc0e] sm:$0xff] }
 0x4f2   : > { %9438 = vmatprep.subr.bf16.mxu0 %v13815_v16  ;;  %6527 = vmatmul.mubr.f32.gmra.mrb[98].mxu1 %v5543_v15  ;;  %v3563_v0 = vld [vmem:[#allocation2 + $0x5ec] sm:$0xff]  ;;  %v3564_v15 = vld [vmem:[#allocation2 + $0x624] sm:$0xff] }
 0x4f3   : > { %6531 = vmatprep.mubr.f32.mxu1 %v12940_v49 }
 0x4f4   : > { %4222 = vmatmul.mubr.f32.gmra.mrb[150].mxu0 %v3551_v47  ;;  %v12967_v47 = vld [vmem:[#allocation2 + $0x914] sm:$0xff] }
 0x4f5   : > { %4226 = vmatprep.mubr.f32.mxu0 %v3584_v7  ;;  %9440 = vmatpush1.bf16.msra.mxu0 %v9439_v19  ;;  %v5557_v19 = vld [vmem:[#allocation2 + $0xc4e] sm:$0xff] }
 0x4f6   : > { %9441 = vmatprep.subr.bf16.mxu0 %v13815_v16  ;;  %6532 = vmatmul.mubr.f32.gmra.mrb[100].mxu1 %v5544_v43  ;;  %v3565_v7 = vld [vmem:[#allocation2 + $0x62c] sm:$0xff]  ;;  %v3566_v43 = vld [vmem:[#allocation2 + $0x664] sm:$0xff] }
 0x4f7   : > { %6536 = vmatprep.mubr.f32.mxu1 %v12940_v49 }
 0x4f8   : > { %4227 = vmatmul.mubr.f32.gmra.mrb[152].mxu0 %v3552_v40  ;;  %v12975_v40 = vld [vmem:[#allocation2 + $0x954] sm:$0xff] }
 0x4f9   : > { %4231 = vmatprep.mubr.f32.mxu0 %v3585_v1  ;;  %9443 = vmatpush1.bf16.msra.mxu0 %v9442_v59  ;;  %v5559_v59 = vld [vmem:[#allocation2 + $0xc8e] sm:$0xff] }
 0x4fa   : > { %9444 = vmatprep.subr.bf16.mxu0 %v13815_v16  ;;  %6537 = vmatmul.mubr.f32.gmra.mrb[102].mxu1 %v5545_v29  ;;  %v12979_v1 = vld [vmem:[#allocation2 + $0x66c] sm:$0xff]  ;;  %v12986_v29 = vld [vmem:[#allocation2 + $0x6a4] sm:$0xff] }
 0x4fb   : > { %6541 = vmatprep.mubr.f32.mxu1 %v12940_v49 }
 0x4fc   : > { %4232 = vmatmul.mubr.f32.gmra.mrb[154].mxu0 %v3553_v33  ;;  %v12988_v33 = vld [vmem:[#allocation2 + $0x994] sm:$0xff] }
 0x4fd   : > { %4236 = vmatprep.mubr.f32.mxu0 %v3586_v9  ;;  %9446 = vmatpush1.bf16.msra.mxu0 %v9445_v42  ;;  %v5561_v42 = vld [vmem:[#allocation2 + $0xcce] sm:$0xff] }
 0x4fe   : > { %9447 = vmatprep.subr.bf16.mxu0 %v13815_v16  ;;  %6542 = vmatmul.mubr.f32.gmra.mrb[104].mxu1 %v5546_v38  ;;  %v12993_v9 = vld [vmem:[#allocation2 + $0x6ac] sm:$0xff]  ;;  %v13000_v38 = vld [vmem:[#allocation2 + $0x6e4] sm:$0xff] }
 0x4ff   : > { %6546 = vmatprep.mubr.f32.mxu1 %v12940_v49 }
 0x500   : > { %4237 = vmatmul.mubr.f32.gmra.mrb[156].mxu0 %v3554_v14  ;;  %v13002_v14 = vld [vmem:[#allocation2 + $0x9d4] sm:$0xff] }
 0x501   : > { %4241 = vmatprep.mubr.f32.mxu0 %v3587_v21  ;;  %9449 = vmatpush1.bf16.msra.mxu0 %v9448_v5  ;;  %v5563_v5 = vld [vmem:[#allocation2 + $0xd0e] sm:$0xff] }
 0x502   : > { %9450 = vmatprep.subr.bf16.mxu0 %v13815_v16  ;;  %6547 = vmatmul.mubr.f32.gmra.mrb[106].mxu1 %v5547_v52  ;;  %v13007_v21 = vld [vmem:[#allocation2 + $0x6ec] sm:$0xff] }
 0x503   : > { %6551 = vmatprep.mubr.f32.mxu1 %v12940_v49  ;;  %v5564_v52 = vld [vmem:[#allocation2 + $0xd46] sm:$0xff] }
 0x504   : > { %4242 = vmatmul.mubr.f32.gmra.mrb[158].mxu0 %v3555_v36  ;;  %v9454_v36 = vpack.c.bf16 %v3830_v26, %v3829_v53  ;;  %v3613_v26 = vld [vmem:[#allocation2 + $0x72c] sm:$0xff] }
 0x505   : > { %4246 = vmatprep.mubr.f32.mxu0 %v3588_v10  ;;  %9452 = vmatpush1.bf16.msra.mxu0 %v9451_v18  ;;  %v3831_v18 = vld [vmem:[#allocation8 + $0x310] sm:$0xff]  ;;  %v3832_v10 = vld [vmem:[#allocation8 + $0x318] sm:$0xff] }
 0x506   : > { %9453 = vmatprep.subr.bf16.mxu0 %v13815_v16  ;;  %6552 = vmatmul.mubr.f32.gmra.mrb[108].mxu1 %v5548_v23  ;;  %v5565_v23 = vld [vmem:[#allocation2 + $0xd4e] sm:$0xff] }
 0x507   : > { %6556 = vmatprep.mubr.f32.mxu1 %v12940_v49 }
 0x508   : > { %4247 = vmatmul.mubr.f32.gmra.mrb[160].mxu0 %v3556_v54  ;;  %v10718_v54 = vld [vmem:[#allocation2 + $0x618] sm:$0xff] }
 0x509   : > { %4251 = vmatprep.mubr.f32.mxu0 %v3589_v25  ;;  %v9457_v25 = vpack.c.bf16 %v3832_v10, %v3831_v18  ;;  %v10726_v18 = vld [vmem:[#allocation2 + $0x718] sm:$0xff] }
 0x50a   : > { %6557 = vmatmul.mubr.f32.gmra.mrb[110].mxu1 %v5549_v4  ;;  %v3833_v4 = vld [vmem:[#allocation8 + $0x320] sm:$0xff] }
 0x50b   : > { %6561 = vmatprep.mubr.f32.mxu1 %v12940_v49 }
 0x50c   : > { %4252 = vmatmul.mubr.f32.gmra.mrb[162].mxu0 %v3557_v58  ;;  %v3834_v58 = vld [vmem:[#allocation8 + $0x328] sm:$0xff] }
 0x50d   : > { %4256 = vmatprep.mubr.f32.mxu0 %v3590_v46  ;;  %v5566_v46 = vld [vmem:[#allocation2 + $0xd86] sm:$0xff] }
 0x50e   : > { %6562 = vmatmul.mubr.f32.gmra.mrb[112].mxu1 %v5550_v20  ;;  %v10719_v20 = vld [vmem:[#allocation2 + $0x620] sm:$0xff] }
 0x50f   : > { %6566 = vmatprep.mubr.f32.mxu1 %v12940_v49 }
 0x510   : > { %4257 = vmatmul.mubr.f32.gmra.mrb[164].mxu0 %v3558_v34  ;;  %v9460_v34 = vpack.c.bf16 %v3834_v58, %v3833_v4  ;;  %v10727_v4 = vld [vmem:[#allocation2 + $0x720] sm:$0xff] }
 0x511   : > { %4261 = vmatprep.mubr.f32.mxu0 %v3591_v61  ;;  %v3835_v61 = vld [vmem:[#allocation8 + $0x330] sm:$0xff] }
 0x512   : > { %6567 = vmatmul.mubr.f32.gmra.mrb[114].mxu1 %v5551_v39  ;;  %v3836_v39 = vld [vmem:[#allocation8 + $0x338] sm:$0xff] }
 0x513   : > { %6571 = vmatprep.mubr.f32.mxu1 %v12940_v49 }
 0x514   : > { %4262 = vmatmul.mubr.f32.gmra.mrb[166].mxu0 %v3559_v22  ;;  %v5567_v22 = vld [vmem:[#allocation2 + $0xd8e] sm:$0xff] }
 0x515   : > { %4266 = vmatprep.mubr.f32.mxu0 %v3592_v60  ;;  %v10720_v60 = vld [vmem:[#allocation2 + $0x658] sm:$0xff] }
 0x516   : > { %6572 = vmatmul.mubr.f32.gmra.mrb[116].mxu1 %v5552_v48  ;;  %v9463_v48 = vpack.c.bf16 %v3836_v39, %v3835_v61  ;;  %v10728_v61 = vld [vmem:[#allocation2 + $0x758] sm:$0xff] }
 0x517   : > { %6576 = vmatprep.mubr.f32.mxu1 %v12940_v49 }
 0x518   : > { %4267 = vmatmul.mubr.f32.gmra.mrb[168].mxu0 %v3560_v37  ;;  %v3837_v37 = vld [vmem:[#allocation8 + $0x340] sm:$0xff] }
 0x519   : > { %4271 = vmatprep.mubr.f32.mxu0 %v3593_v13  ;;  %v3838_v13 = vld [vmem:[#allocation8 + $0x348] sm:$0xff] }
 0x51a   : > { %6577 = vmatmul.mubr.f32.gmra.mrb[118].mxu1 %v5553_v30  ;;  %v5568_v30 = vld [vmem:[#allocation2 + $0xdc6] sm:$0xff] }
 0x51b   : > { %6581 = vmatprep.mubr.f32.mxu1 %v12940_v49 }
 0x51c   : > { %4272 = vmatmul.mubr.f32.gmra.mrb[170].mxu0 %v3561_v63  ;;  %v10721_v63 = vld [vmem:[#allocation2 + $0x660] sm:$0xff] }
 0x51d   : > { %4276 = vmatprep.mubr.f32.mxu0 %v3594_v8  ;;  %v9466_v8 = vpack.c.bf16 %v3838_v13, %v3837_v37  ;;  %v10729_v37 = vld [vmem:[#allocation2 + $0x760] sm:$0xff] }
 0x51e   : > { %6582 = vmatmul.mubr.f32.gmra.mrb[120].mxu1 %v5554_v44  ;;  %v3839_v44 = vld [vmem:[#allocation8 + $0x350] sm:$0xff] }
 0x51f   : > { %6586 = vmatprep.mubr.f32.mxu1 %v12940_v49 }
 0x520   : > { %4277 = vmatmul.mubr.f32.gmra.mrb[172].mxu0 %v3562_v45  ;;  %v3840_v45 = vld [vmem:[#allocation8 + $0x358] sm:$0xff] }
 0x521   : > { %4281 = vmatprep.mubr.f32.mxu0 %v3595_v56  ;;  %v5569_v56 = vld [vmem:[#allocation2 + $0xdce] sm:$0xff] }
 0x522   : > { %6587 = vmatmul.mubr.f32.gmra.mrb[122].mxu1 %v5555_v12  ;;  %v10722_v12 = vld [vmem:[#allocation2 + $0x698] sm:$0xff] }
 0x523   : > { %6591 = vmatprep.mubr.f32.mxu1 %v12940_v49 }
 0x524   : > { %4282 = vmatmul.mubr.f32.gmra.mrb[174].mxu0 %v3563_v0  ;;  %v9469_v0 = vpack.c.bf16 %v3840_v45, %v3839_v44  ;;  %v10730_v44 = vld [vmem:[#allocation2 + $0x798] sm:$0xff]  ;;  %v13037_v45 = vpop.f32.mrb[64].mxu1 }
 0x525   : > { %4286 = vmatprep.mubr.f32.mxu0 %v12963_v32 }
 0x526   : > { %6592 = vmatmul.mubr.f32.gmra.mrb[124].mxu1 %v5556_v41  ;;  %v3841_v41 = vld [vmem:[#allocation8 + $0x360] sm:$0xff] }
 0x527   : > { %6596 = vmatprep.mubr.f32.mxu1 %v12940_v49 }
 0x528   : > { %4287 = vmatmul.mubr.f32.gmra.mrb[176].mxu0 %v3564_v15 }
 0x529   : > { %4291 = vmatprep.mubr.f32.mxu0 %v12967_v47 }
 0x52a   : > { %6597 = vmatmul.mubr.f32.gmra.mrb[126].mxu1 %v5557_v19  ;;  %v5570_v19 = vld [vmem:[#allocation2 + $0xe06] sm:$0xff] }
 0x52b   : > { %6601 = vmatprep.mubr.f32.mxu1 %v12940_v49 }
 0x52c   : > { %4292 = vmatmul.mubr.f32.gmra.mrb[178].mxu0 %v3565_v7 }
 0x52d   : > { %4296 = vmatprep.mubr.f32.mxu0 %v12971_v35 }
 0x52e   : > { %6602 = vmatmul.mubr.f32.gmra.mrb[128].mxu1 %v5558_v62 }
 0x52f   : > { %6606 = vmatprep.mubr.f32.mxu1 %v12940_v49 }
 0x530   : > { %4297 = vmatmul.mubr.f32.gmra.mrb[180].mxu0 %v3566_v43 }
 0x531   : > { %4301 = vmatprep.mubr.f32.mxu0 %v12975_v40 }
 0x532   : > { %6607 = vmatmul.mubr.f32.gmra.mrb[130].mxu1 %v5559_v59  ;;  %v3844_v59 = vld [vmem:[#allocation8 + $0x378] sm:$0xff] }
 0x533   : > { %6611 = vmatprep.mubr.f32.mxu1 %v12940_v49 }
 0x534   : > { %4302 = vmatmul.mubr.f32.gmra.mrb[182].mxu0 %v12979_v1 }
 0x535   : > { %4306 = vmatprep.mubr.f32.mxu0 %v12981_v55 }
 0x536   : > { %6612 = vmatmul.mubr.f32.gmra.mrb[132].mxu1 %v5560_v3  ;;  %v10724_v3 = vld [vmem:[#allocation2 + $0x6d8] sm:$0xff] }
 0x537   : > { %6616 = vmatprep.mubr.f32.mxu1 %v12940_v49 }
 0x538   : > { %4307 = vmatmul.mubr.f32.gmra.mrb[184].mxu0 %v12986_v29 }
 0x539   : > { %4311 = vmatprep.mubr.f32.mxu0 %v12988_v33 }
 0x53a   : > { %6617 = vmatmul.mubr.f32.gmra.mrb[134].mxu1 %v5561_v42  ;;  %v3612_v42 = vld [vmem:[#allocation2 + $0x724] sm:$0xff] }
 0x53b   : > { %6621 = vmatprep.mubr.f32.mxu1 %v12940_v49 }
 0x53c   : > { %4312 = vmatmul.mubr.f32.gmra.mrb[186].mxu0 %v12993_v9 }
 0x53d   : > { %4316 = vmatprep.mubr.f32.mxu0 %v12995_v28 }
 0x53e   : > { %6622 = vmatmul.mubr.f32.gmra.mrb[136].mxu1 %v5562_v57  ;;  %v3846_v57 = vld [vmem:[#allocation8 + $0x388] sm:$0xff] }
 0x53f   : > { %6626 = vmatprep.mubr.f32.mxu1 %v12940_v49 }
 0x540   : > { %4317 = vmatmul.mubr.f32.gmra.mrb[188].mxu0 %v13000_v38 }
 0x541   : > { %4321 = vmatprep.mubr.f32.mxu0 %v13002_v14 }
 0x542   : > { %6627 = vmatmul.mubr.f32.gmra.mrb[138].mxu1 %v5563_v5  ;;  %v10725_v5 = vld [vmem:[#allocation2 + $0x6e0] sm:$0xff] }
 0x543   : > { %6631 = vmatprep.mubr.f32.mxu1 %v12940_v49 }
 0x544   : > { %4322 = vmatmul.mubr.f32.gmra.mrb[190].mxu0 %v13007_v21 }
 0x545   : > { %4391 = vmatprep.mubr.f32.mxu0 %v3564_v15  ;;  %v3842_v15 = vld [vmem:[#allocation8 + $0x368] sm:$0xff] }
 0x546   : > { %6632 = vmatmul.mubr.f32.gmra.mrb[140].mxu1 %v5564_v52  ;;  %v9472_v62 = vpack.c.bf16 %v3842_v15, %v3841_v41  ;;  %v3848_v52 = vld [vmem:[#allocation8 + $0x398] sm:$0xff]  ;;  %v3857_v41 = vld [vmem:[#allocation8 + $0x3e0] sm:$0xff]  ;;  %v3858_v15 = vld [vmem:[#allocation8 + $0x3e8] sm:$0xff] }
 0x547   : > { %6636 = vmatprep.mubr.f32.mxu1 %v12940_v49 }
 0x548   : > { %4392 = vmatmul.mubr.f32.vlgmr.msra.gmra.mrb[128].mxu0 %v10718_v54  ;;  %v3849_v54 = vld [vmem:[#allocation8 + $0x3a0] sm:$0xff] }
 0x549   : > { %9455 = vmatpush1.bf16.msra.mxu0 %v9454_v36  ;;  %4396 = vmatprep.mubr.f32.mxu0 %v3565_v7  ;;  %v10723_v7 = vld [vmem:[#allocation2 + $0x6a0] sm:$0xff]  ;;  %v5573_v36 = vld [vmem:[#allocation2 + $0xe4e] sm:$0xff] }
 0x54a   : > { %9456 = vmatprep.subr.bf16.mxu0 %v13815_v16  ;;  %6637 = vmatmul.mubr.f32.gmra.mrb[142].mxu1 %v5565_v23  ;;  %v3614_v23 = vld [vmem:[#allocation2 + $0x764] sm:$0xff] }
 0x54b   : > { %6641 = vmatprep.mubr.f32.mxu1 %v12940_v49 }
 0x54c   : > { %4397 = vmatmul.mubr.f32.gmra.mrb[130].mxu0 %v10719_v20  ;;  %v3851_v20 = vld [vmem:[#allocation8 + $0x3b0] sm:$0xff] }
 0x54d   : > { %4401 = vmatprep.mubr.f32.mxu0 %v3566_v43  ;;  %9458 = vmatpush1.bf16.msra.mxu0 %v9457_v25  ;;  %v3843_v43 = vld [vmem:[#allocation8 + $0x370] sm:$0xff]  ;;  %v3850_v25 = vld [vmem:[#allocation8 + $0x3a8] sm:$0xff] }
 0x54e   : > { %9459 = vmatprep.subr.bf16.mxu0 %v13815_v16  ;;  %6642 = vmatmul.mubr.f32.gmra.mrb[144].mxu1 %v5566_v46  ;;  %v9484_v58 = vpack.c.bf16 %v3850_v25, %v3849_v54  ;;  %v3615_v46 = vld [vmem:[#allocation2 + $0x76c] sm:$0xff] }
 0x54f   : > { %6646 = vmatprep.mubr.f32.mxu1 %v12940_v49 }
 0x550   : > { %4402 = vmatmul.mubr.f32.gmra.mrb[132].mxu0 %v10720_v60  ;;  %v3853_v60 = vld [vmem:[#allocation8 + $0x3c0] sm:$0xff] }
 0x551   : > { %4406 = vmatprep.mubr.f32.mxu0 %v12979_v1  ;;  %9461 = vmatpush1.bf16.msra.mxu0 %v9460_v34  ;;  %v5571_v1 = vld [vmem:[#allocation2 + $0xe0e] sm:$0xff]  ;;  %v3852_v34 = vld [vmem:[#allocation8 + $0x3b8] sm:$0xff] }
 0x552   : > { %9462 = vmatprep.subr.bf16.mxu0 %v13815_v16  ;;  %6647 = vmatmul.mubr.f32.gmra.mrb[146].mxu1 %v5567_v22  ;;  %v9487_v39 = vpack.c.bf16 %v3852_v34, %v3851_v20  ;;  %v3616_v22 = vld [vmem:[#allocation2 + $0x7a4] sm:$0xff] }
 0x553   : > { %6651 = vmatprep.mubr.f32.mxu1 %v12940_v49  ;;  %v3624_v34 = vld [vmem:[#allocation2 + $0x8a4] sm:$0xff] }
 0x554   : > { %4407 = vmatmul.mubr.f32.gmra.mrb[134].mxu0 %v10721_v63  ;;  %v3855_v63 = vld [vmem:[#allocation8 + $0x3d0] sm:$0xff] }
 0x555   : > { %4411 = vmatprep.mubr.f32.mxu0 %v12986_v29  ;;  %9464 = vmatpush1.bf16.msra.mxu0 %v9463_v48  ;;  %v9475_v29 = vpack.c.bf16 %v3844_v59, %v3843_v43  ;;  %v3854_v48 = vld [vmem:[#allocation8 + $0x3c8] sm:$0xff] }
 0x556   : > { %9465 = vmatprep.subr.bf16.mxu0 %v13815_v16  ;;  %6652 = vmatmul.mubr.f32.gmra.mrb[148].mxu1 %v5568_v30  ;;  %v9490_v13 = vpack.c.bf16 %v3854_v48, %v3853_v60  ;;  %v3617_v30 = vld [vmem:[#allocation2 + $0x7ac] sm:$0xff]  ;;  %v10738_v48 = vld [vmem:[#allocation2 + $0x898] sm:$0xff] }
 0x557   : > { %6656 = vmatprep.mubr.f32.mxu1 %v12940_v49  ;;  %v3619_v59 = vld [vmem:[#allocation2 + $0x7ec] sm:$0xff] }
 0x558   : > { %4412 = vmatmul.mubr.f32.gmra.mrb[136].mxu0 %v10722_v12  ;;  %v13039_v12 = vpop.f32.mrb[65].mxu1  ;;  %v3625_v60 = vld [vmem:[#allocation2 + $0x8ac] sm:$0xff] }
 0x559   : > { %4416 = vmatprep.mubr.f32.mxu0 %v12993_v9  ;;  %9467 = vmatpush1.bf16.msra.mxu0 %v9466_v8  ;;  %v3845_v9 = vld [vmem:[#allocation8 + $0x380] sm:$0xff]  ;;  %v3856_v8 = vld [vmem:[#allocation8 + $0x3d8] sm:$0xff] }
 0x55a   : > { %9468 = vmatprep.subr.bf16.mxu0 %v13815_v16  ;;  %6657 = vmatmul.mubr.f32.gmra.mrb[150].mxu1 %v5569_v56  ;;  %v9478_v53 = vpack.c.bf16 %v3846_v57, %v3845_v9  ;;  %v9493_v56 = vpack.c.bf16 %v3856_v8, %v3855_v63  ;;  %v10739_v63 = vld [vmem:[#allocation2 + $0x8a0] sm:$0xff] }
 0x55b   : > { %6661 = vmatprep.mubr.f32.mxu1 %v12940_v49 }
 0x55c   : > { %4417 = vmatmul.mubr.f32.gmra.mrb[138].mxu0 %v10723_v7  ;;  %v13042_v7 = vpop.f32.mrb[66].mxu1 }
 0x55d   : > { %4421 = vmatprep.mubr.f32.mxu0 %v13000_v38  ;;  %9470 = vmatpush1.bf16.msra.mxu0 %v9469_v0  ;;  %v5572_v38 = vld [vmem:[#allocation2 + $0xe46] sm:$0xff]  ;;  %v13044_v43 = vpop.f32.mrb[67].mxu1 }
 0x55e   : > { %9471 = vmatprep.subr.bf16.mxu0 %v13815_v16  ;;  %6662 = vmatmul.mubr.f32.gmra.mrb[152].mxu1 %v5570_v19  ;;  %v3618_v0 = vld [vmem:[#allocation2 + $0x7e4] sm:$0xff] }
 0x55f   : > { %6666 = vmatprep.mubr.f32.mxu1 %v12940_v49  ;;  %v10731_v19 = vld [vmem:[#allocation2 + $0x7a0] sm:$0xff] }
 0x560   : > { %4422 = vmatmul.mubr.f32.gmra.mrb[140].mxu0 %v10724_v3  ;;  %v3860_v3 = vld [vmem:[#allocation8 + $0x3f8] sm:$0xff] }
 0x561   : > { %4426 = vmatprep.mubr.f32.mxu0 %v13007_v21  ;;  %9473 = vmatpush1.bf16.msra.mxu0 %v9472_v62  ;;  %v3847_v21 = vld [vmem:[#allocation8 + $0x390] sm:$0xff]  ;;  %v9496_v62 = vpack.c.bf16 %v3858_v15, %v3857_v41 }
 0x562   : > { %9474 = vmatprep.subr.bf16.mxu0 %v13815_v16  ;;  %6667 = vmatmul.mubr.f32.gmra.mrb[154].mxu1 %v5571_v1  ;;  %v9481_v10 = vpack.c.bf16 %v3848_v52, %v3847_v21  ;;  %v3859_v1 = vld [vmem:[#allocation8 + $0x3f0] sm:$0xff]  ;;  %v10734_v52 = vld [vmem:[#allocation2 + $0x818] sm:$0xff] }
 0x563   : > { %6671 = vmatprep.mubr.f32.mxu1 %v12940_v49  ;;  %v9499_v9 = vpack.c.bf16 %v3860_v3, %v3859_v1  ;;  %v3621_v21 = vld [vmem:[#allocation2 + $0x82c] sm:$0xff] }
 0x564   : > { %4427 = vmatmul.mubr.f32.gmra.mrb[142].mxu0 %v10725_v5  ;;  %v10733_v5 = vld [vmem:[#allocation2 + $0x7e0] sm:$0xff]  ;;  %v3629_v1 = vld [vmem:[#allocation2 + $0x92c] sm:$0xff] }
 0x565   : > { %4431 = vmatprep.mubr.f32.mxu0 %v3612_v42  ;;  %9476 = vmatpush1.bf16.msra.mxu0 %v9475_v29  ;;  %v10732_v29 = vld [vmem:[#allocation2 + $0x7d8] sm:$0xff]  ;;  %v13047_v42 = vpop.f32.mrb[68].mxu1 }
 0x566   : > { %9477 = vmatprep.subr.bf16.mxu0 %v13815_v16  ;;  %6672 = vmatmul.mubr.f32.gmra.mrb[156].mxu1 %v5572_v38  ;;  %v13049_v57 = vpop.f32.mrb[69].mxu1  ;;  %v3620_v38 = vld [vmem:[#allocation2 + $0x824] sm:$0xff] }
 0x567   : > { %6676 = vmatprep.mubr.f32.mxu1 %v12940_v49 }
 0x568   : > { %4432 = vmatmul.mubr.f32.gmra.mrb[144].mxu0 %v10726_v18 }
 0x569   : > { %4436 = vmatprep.mubr.f32.mxu0 %v3613_v26  ;;  %9479 = vmatpush1.bf16.msra.mxu0 %v9478_v53  ;;  %v13052_v53 = vpop.f32.mrb[70].mxu1 }
 0x56a   : > { %9480 = vmatprep.subr.bf16.mxu0 %v13815_v16  ;;  %6677 = vmatmul.mubr.f32.gmra.mrb[158].mxu1 %v5573_v36  ;;  %v13054_v26 = vpop.f32.mrb[71].mxu1 }
 0x56b   : > { %v13056_v36 = vpop.f32.mrb[72].mxu1 }
 0x56c   : > { %4437 = vmatmul.mubr.f32.gmra.mrb[146].mxu0 %v10727_v4  ;;  %v13058_v18 = vpop.f32.mrb[73].mxu1  ;;  %v3623_v4 = vld [vmem:[#allocation2 + $0x86c] sm:$0xff] }
 0x56d   : > { %4441 = vmatprep.mubr.f32.mxu0 %v3614_v23  ;;  %9482 = vmatpush1.bf16.msra.mxu0 %v9481_v10  ;;  %v3622_v10 = vld [vmem:[#allocation2 + $0x864] sm:$0xff]  ;;  %v13060_v54 = vpop.f32.mrb[74].mxu1 }
 0x56e   : > { %9483 = vmatprep.subr.bf16.mxu0 %v13815_v16  ;;  %v10735_v23 = vld [vmem:[#allocation2 + $0x820] sm:$0xff]  ;;  %v13062_v25 = vpop.f32.mrb[75].mxu1 }
 0x570   : > { %4442 = vmatmul.mubr.f32.gmra.mrb[148].mxu0 %v10728_v61  ;;  %v10737_v61 = vld [vmem:[#allocation2 + $0x860] sm:$0xff] }
 0x571   : > { %4446 = vmatprep.mubr.f32.mxu0 %v3615_v46  ;;  %9485 = vmatpush1.bf16.msra.mxu0 %v9484_v58  ;;  %v10736_v58 = vld [vmem:[#allocation2 + $0x858] sm:$0xff]  ;;  %v13064_v46 = vpop.f32.mrb[76].mxu1 }
 0x572   : > { %9486 = vmatprep.subr.bf16.mxu0 %v13815_v16  ;;  %v13066_v20 = vpop.f32.mrb[77].mxu1 }
 0x574   : > { %4447 = vmatmul.mubr.f32.gmra.mrb[150].mxu0 %v10729_v37 }
 0x575   : > { %4451 = vmatprep.mubr.f32.mxu0 %v3616_v22  ;;  %9488 = vmatpush1.bf16.msra.mxu0 %v9487_v39  ;;  %v13068_v39 = vpop.f32.mrb[78].mxu1 }
 0x576   : > { %9489 = vmatprep.subr.bf16.mxu0 %v13815_v16  ;;  %v13070_v22 = vpop.f32.mrb[79].mxu1 }
 0x577   : > { %v13072_v37 = vpop.f32.mrb[80].mxu1 }
 0x578   : > { %4452 = vmatmul.mubr.f32.gmra.mrb[152].mxu0 %v10730_v44 }
 0x579   : > { %4456 = vmatprep.mubr.f32.mxu0 %v3617_v30  ;;  %9491 = vmatpush1.bf16.msra.mxu0 %v9490_v13  ;;  %v13074_v13 = vpop.f32.mrb[81].mxu1  ;;  %v3626_v30 = vld [vmem:[#allocation2 + $0x8e4] sm:$0xff] }
 0x57a   : > { %9492 = vmatprep.subr.bf16.mxu0 %v13815_v16  ;;  %v13076_v8 = vpop.f32.mrb[82].mxu1 }
 0x57b   : > { %v13078_v44 = vpop.f32.mrb[83].mxu1 }
 0x57c   : > { %4457 = vmatmul.mubr.f32.gmra.mrb[154].mxu0 %v10731_v19  ;;  %v13080_v41 = vpop.f32.mrb[84].mxu1  ;;  %v3628_v19 = vld [vmem:[#allocation2 + $0x924] sm:$0xff] }
 0x57d   : > { %4461 = vmatprep.mubr.f32.mxu0 %v3618_v0  ;;  %9494 = vmatpush1.bf16.msra.mxu0 %v9493_v56  ;;  %v3627_v56 = vld [vmem:[#allocation2 + $0x8ec] sm:$0xff]  ;;  %v10740_v0 = vld [vmem:[#allocation2 + $0x8d8] sm:$0xff]  ;;  %v13082_v15 = vpop.f32.mrb[85].mxu1 }
 0x57e   : > { %9495 = vmatprep.subr.bf16.mxu0 %v13815_v16 }
 0x580   : > { %4462 = vmatmul.mubr.f32.gmra.mrb[156].mxu0 %v10732_v29 }
 0x581   : > { %4466 = vmatprep.mubr.f32.mxu0 %v3619_v59  ;;  %9497 = vmatpush1.bf16.msra.mxu0 %v9496_v62  ;;  %v13085_v62 = vpop.f32.mrb[86].mxu1 }
 0x582   : > { %9498 = vmatprep.subr.bf16.mxu0 %v13815_v16  ;;  %v13087_v59 = vpop.f32.mrb[87].mxu1 }
 0x583   : > { %v13090_v3 = vpop.f32.mrb[88].mxu1 }
 0x584   : > { %4467 = vmatmul.mubr.f32.gmra.mrb[158].mxu0 %v10733_v5  ;;  %v13092_v29 = vpop.f32.mrb[89].mxu1  ;;  %v3631_v5 = vld [vmem:[#allocation2 + $0x96c] sm:$0xff] }
 0x585   : > { %4471 = vmatprep.mubr.f32.mxu0 %v3620_v38  ;;  %9500 = vmatpush1.bf16.msra.mxu0 %v9499_v9  ;;  %v3630_v9 = vld [vmem:[#allocation2 + $0x964] sm:$0xff]  ;;  %v13095_v38 = vpop.f32.mrb[90].mxu1 }
 0x588   : > { %4472 = vmatmul.mubr.f32.gmra.mrb[160].mxu0 %v10734_v52  ;;  %v3632_v52 = vld [vmem:[#allocation2 + $0x9a4] sm:$0xff] }
 0x589   : > { %4476 = vmatprep.mubr.f32.mxu0 %v3621_v21 }
 0x58c   : > { %4477 = vmatmul.mubr.f32.gmra.mrb[162].mxu0 %v10735_v23  ;;  %v3633_v23 = vld [vmem:[#allocation2 + $0x9ac] sm:$0xff] }
 0x58d   : > { %4481 = vmatprep.mubr.f32.mxu0 %v3622_v10 }
 0x590   : > { %4482 = vmatmul.mubr.f32.gmra.mrb[164].mxu0 %v10736_v58 }
 0x591   : > { %4486 = vmatprep.mubr.f32.mxu0 %v3623_v4  ;;  %v3634_v4 = vld [vmem:[#allocation2 + $0x9e4] sm:$0xff] }
 0x594   : > { %4487 = vmatmul.mubr.f32.gmra.mrb[166].mxu0 %v10737_v61  ;;  %v7806_v61 = vld [vmem:[%s13741_s6 + $0x100] sm:$0xff] }
 0x595   : > { %4491 = vmatprep.mubr.f32.mxu0 %v3624_v34 }
 0x598   : > { %4492 = vmatmul.mubr.f32.gmra.mrb[168].mxu0 %v10738_v48  ;;  %v3670_v48 = vld [vmem:[#allocation2 + $0x920] sm:$0xff] }
 0x599   : > { %4496 = vmatprep.mubr.f32.mxu0 %v3625_v60 }
 0x59c   : > { %4497 = vmatmul.mubr.f32.gmra.mrb[170].mxu0 %v10739_v63 }
 0x59d   : > { %4501 = vmatprep.mubr.f32.mxu0 %v3626_v30 }
 0x5a0   : > { %4502 = vmatmul.mubr.f32.gmra.mrb[172].mxu0 %v10740_v0  ;;  %v7811_v0 = vld [vmem:[%s13741_s6 + $0x128] sm:$0xff] }
 0x5a1   : > { %4506 = vmatprep.mubr.f32.mxu0 %v3627_v56  ;;  %v7810_v56 = vld [vmem:[%s13741_s6 + $0x120] sm:$0xff] }
 0x5a4   : > { %4507 = vmatmul.mubr.f32.gmra.mrb[174].mxu0 %v12893_v51  ;;  %v13097_v51 = vpop.f32.mrb[91].mxu1 }
 0x5a5   : > { %4511 = vmatprep.mubr.f32.mxu0 %v3628_v19  ;;  %v13100_v21 = vpop.f32.mrb[92].mxu1 }
 0x5a8   : > { %4512 = vmatmul.mubr.f32.gmra.mrb[176].mxu0 %v12899_v50  ;;  %v13102_v50 = vpop.f32.mrb[93].mxu1 }
 0x5a9   : > { %4516 = vmatprep.mubr.f32.mxu0 %v3629_v1  ;;  %v13105_v10 = vpop.f32.mrb[94].mxu1  ;;  %v3671_v1 = vld [vmem:[#allocation2 + $0x958] sm:$0xff] }
 0x5ac   : > { %4517 = vmatmul.mubr.f32.gmra.mrb[178].mxu0 %v12905_v17  ;;  %v13107_v17 = vpop.f32.mrb[95].mxu1 }
 0x5ad   : > { %4521 = vmatprep.mubr.f32.mxu0 %v3630_v9 }
 0x5b0   : > { %4522 = vmatmul.mubr.f32.gmra.mrb[180].mxu0 %v12911_v6  ;;  %v3635_v6 = vld [vmem:[#allocation2 + $0x9ec] sm:$0xff] }
 0x5b1   : > { %4526 = vmatprep.mubr.f32.mxu0 %v3631_v5  ;;  %v9541_v5 = vpack.c.bf16 %v7811_v0, %v7810_v56 }
 0x5b4   : > { %4527 = vmatmul.mubr.f32.gmra.mrb[182].mxu0 %v12917_v27  ;;  %v3669_v27 = vld [vmem:[#allocation2 + $0x918] sm:$0xff] }
 0x5b5   : > { %4531 = vmatprep.mubr.f32.mxu0 %v3632_v52  ;;  %v7812_v52 = vld [vmem:[%s13741_s6 + $0x130] sm:$0xff] }
 0x5b8   : > { %4532 = vmatmul.mubr.f32.gmra.mrb[184].mxu0 %v12923_v31  ;;  %v7807_v31 = vld [vmem:[%s13741_s6 + $0x108] sm:$0xff] }
 0x5b9   : > { %4536 = vmatprep.mubr.f32.mxu0 %v3633_v23  ;;  %v9533_v60 = vpack.c.bf16 %v7807_v31, %v7806_v61  ;;  %v7813_v23 = vld [vmem:[%s13741_s6 + $0x138] sm:$0xff]  ;;  %v7815_v61 = vld [vmem:[%s13741_s6 + $0x148] sm:$0xff] }
 0x5ba   : > { %v3673_v31 = vld [vmem:[#allocation2 + $0x998] sm:$0xff] }
 0x5bb   : > { %9534 = vmatprep.subr.bf16.mxu0 %v9533_v60 }
 0x5bc   : > { %4537 = vmatmul.mubr.f32.gmra.mrb[186].mxu0 %v12929_v24  ;;  %v7808_v24 = vld [vmem:[%s13741_s6 + $0x110] sm:$0xff] }
 0x5bd   : > { %4541 = vmatprep.mubr.f32.mxu0 %v3634_v4  ;;  %v3672_v4 = vld [vmem:[#allocation2 + $0x960] sm:$0xff] }
 0x5c0   : > { %4542 = vmatmul.mubr.f32.gmra.mrb[188].mxu0 %v12933_v11 }
 0x5c1   : > { %4546 = vmatprep.mubr.f32.mxu0 %v3635_v6  ;;  %v13112_v58 = vpop.f32.mrb[96].mxu1 }
 0x5c2   : > { %v6525_v34 = vpop.f32.mrb[97].mxu1 }
 0x5c3   : > { %v7814_v34 = vld [vmem:[%s13741_s6 + $0x140] sm:$0xff] }
 0x5c4   : > { %4547 = vmatmul.mubr.f32.gmra.mrb[190].mxu0 %v12937_v2  ;;  %v7809_v2 = vld [vmem:[%s13741_s6 + $0x118] sm:$0xff] }
 0x5c5   : > { %4616 = vmatprep.mubr.f32.mxu0 %v3669_v27  ;;  %v13124_v11 = vpop.f32.mrb[98].mxu1  ;;  %v9537_v63 = vpack.c.bf16 %v7809_v2, %v7808_v24  ;;  %v9545_v27 = vpack.c.bf16 %v7813_v23, %v7812_v52 }
 0x5c6   : > { %v6530_v30 = vpop.f32.mrb[99].mxu1 }
 0x5c8   : > { %4617 = vmatmul.mubr.f32.vlgmr.msra.gmra.mrb[128].mxu0 %v12963_v32 }
 0x5c9   : > { %4621 = vmatprep.mubr.f32.mxu0 %v3670_v48  ;;  %v13136_v19 = vpop.f32.mrb[100].mxu1  ;;  %9536 = vmatpush3.bf16.msra.mxu0 %v9533_v60  ;;  %v9549_v60 = vpack.c.bf16 %v7815_v61, %v7814_v34  ;;  %v3674_v48 = vld [vmem:[#allocation2 + $0x9a0] sm:$0xff]  ;;  %v3648_v34 = vld [vmem:[#allocation2 + $0xa54] sm:$0xff] }
 0x5ca   : > { %v6535_v9 = vpop.f32.mrb[101].mxu1  ;;  %9538 = vmatprep.subr.bf16.mxu0 %v9537_v63 }
 0x5cc   : > { %4622 = vmatmul.mubr.f32.gmra.mrb[130].mxu0 %v12967_v47 }
 0x5cd   : > { %4626 = vmatprep.mubr.f32.mxu0 %v3671_v1  ;;  %v13145_v32 = vpop.f32.mrb[102].mxu1  ;;  %9540 = vmatpush3.bf16.msra.mxu0 %v9537_v63  ;;  %v3675_v63 = vld [vmem:[#allocation2 + $0x9d8] sm:$0xff] }
 0x5ce   : > { %v6540_v6 = vpop.f32.mrb[103].mxu1  ;;  %9542 = vmatprep.subr.bf16.mxu0 %v9541_v5 }
 0x5d0   : > { %4627 = vmatmul.mubr.f32.gmra.mrb[132].mxu0 %v12971_v35 }
 0x5d1   : > { %4631 = vmatprep.mubr.f32.mxu0 %v3672_v4  ;;  %v13154_v47 = vpop.f32.mrb[104].mxu1  ;;  %9544 = vmatpush3.bf16.msra.mxu0 %v9541_v5 }
 0x5d2   : > { %v6545_v24 = vpop.f32.mrb[105].mxu1  ;;  %9546 = vmatprep.subr.bf16.mxu0 %v9545_v27 }
 0x5d3   : > { %v3649_v24 = vld [vmem:[#allocation2 + $0xa8c] sm:$0xff] }
 0x5d4   : > { %4632 = vmatmul.mubr.f32.gmra.mrb[134].mxu0 %v12975_v40  ;;  %v3676_v40 = vld [vmem:[#allocation2 + $0x9e0] sm:$0xff] }
 0x5d5   : > { %4636 = vmatprep.mubr.f32.mxu0 %v3673_v31  ;;  %v13157_v2 = vpop.f32.mrb[106].mxu1  ;;  %9548 = vmatpush3.bf16.msra.mxu0 %v9545_v27 }
 0x5d6   : > { %v6550_v30 = vpop.f32.mrb[107].mxu1  ;;  %9550 = vmatprep.subr.bf16.mxu0 %v9549_v60 }
 0x5d7   : > { %v3650_v30 = vld [vmem:[#allocation2 + $0xa94] sm:$0xff] }
 0x5d8   : > { %4637 = vmatmul.mubr.f32.gmra.mrb[136].mxu0 %v12981_v55  ;;  %v3645_v55 = vld [vmem:[#allocation2 + $0xa0c] sm:$0xff] }
 0x5d9   : > { %4641 = vmatprep.mubr.f32.mxu0 %v3674_v48  ;;  %v13160_v35 = vpop.f32.mrb[108].mxu1  ;;  %9552 = vmatpush3.bf16.msra.mxu0 %v9549_v60 }
 0x5da   : > { %v6555_v56 = vpop.f32.mrb[109].mxu1 }
 0x5dc   : > { %4642 = vmatmul.mubr.f32.gmra.mrb[138].mxu0 %v12988_v33  ;;  %v3646_v33 = vld [vmem:[#allocation2 + $0xa14] sm:$0xff] }
 0x5dd   : > { %4646 = vmatprep.mubr.f32.mxu0 %v3675_v63  ;;  %v13163_v0 = vpop.f32.mrb[110].mxu1 }
 0x5de   : > { %v6560_v1 = vpop.f32.mrb[111].mxu1 }
 0x5e0   : > { %4647 = vmatmul.mubr.f32.gmra.mrb[140].mxu0 %v12995_v28  ;;  %v3647_v28 = vld [vmem:[#allocation2 + $0xa4c] sm:$0xff] }
 0x5e1   : > { %4651 = vmatprep.mubr.f32.mxu0 %v3676_v40  ;;  %v13166_v9 = vpop.f32.mrb[112].mxu1  ;;  %v3651_v40 = vld [vmem:[#allocation2 + $0xacc] sm:$0xff] }
 0x5e2   : > { %13854 = vst [vmem:[#allocation58_spill] sm:$0xff] %v13166_v9  ;;  %v6565_v5 = vpop.f32.mrb[113].mxu1 }
 0x5e4   : > { %4652 = vmatmul.mubr.f32.gmra.mrb[142].mxu0 %v13002_v14 }
 0x5e5   : > { %4656 = vmatprep.mubr.f32.mxu0 %v12940_v49  ;;  %v13170_v52 = vpop.f32.mrb[114].mxu1 }
 0x5e6   : > { %v6570_v23 = vpop.f32.mrb[115].mxu1 }
 0x5e7   : > { %v3652_v23 = vld [vmem:[#allocation2 + $0xad4] sm:$0xff] }
 0x5e8   : > { %4657 = vmatmul.mubr.f32.gmra.mrb[144].mxu0 %v3645_v55  ;;  %v13190_v55 = vld [vmem:[#allocation2] sm:$0xff] }
 0x5e9   : > { %4661 = vmatprep.mubr.f32.mxu0 %v12940_v49  ;;  %v13173_v4 = vpop.f32.mrb[116].mxu1 }
 0x5ea   : > { %13855 = vst [vmem:[#allocation23_spill] sm:$0xff] %v13173_v4  ;;  %v6575_v6 = vpop.f32.mrb[117].mxu1 }
 0x5ec   : > { %4662 = vmatmul.mubr.f32.gmra.mrb[146].mxu0 %v3646_v33 }
 0x5ed   : > { %4666 = vmatprep.mubr.f32.mxu0 %v12940_v49  ;;  %v13176_v27 = vpop.f32.mrb[118].mxu1 }
 0x5ee   : > { %13856 = vst [vmem:[#allocation52_spill] sm:$0xff] %v13176_v27  ;;  %v6580_v14 = vpop.f32.mrb[119].mxu1 }
 0x5f0   : > { %4667 = vmatmul.mubr.f32.gmra.mrb[148].mxu0 %v3647_v28  ;;  %v3653_v28 = vld [vmem:[#allocation2 + $0xb0c] sm:$0xff] }
 0x5f1   : > { %4671 = vmatprep.mubr.f32.mxu0 %v12940_v49  ;;  %v13179_v61 = vpop.f32.mrb[120].mxu1 }
 0x5f2   : > { %13857 = vst [vmem:[#allocation57_spill] sm:$0xff] %v13179_v61  ;;  %v6585_v31 = vpop.f32.mrb[121].mxu1 }
 0x5f4   : > { %4672 = vmatmul.mubr.f32.gmra.mrb[150].mxu0 %v3648_v34  ;;  %v3654_v34 = vld [vmem:[#allocation2 + $0xb14] sm:$0xff] }
 0x5f5   : > { %4676 = vmatprep.mubr.f32.mxu0 %v12940_v49  ;;  %v13182_v60 = vpop.f32.mrb[122].mxu1 }
 0x5f6   : > { %13858 = vst [vmem:[#allocation22_spill] sm:$0xff] %v13182_v60  ;;  %v6590_v48 = vpop.f32.mrb[123].mxu1 }
 0x5f7   : > { %v3655_v48 = vld [vmem:[#allocation2 + $0xb4c] sm:$0xff] }
 0x5f8   : > { %4677 = vmatmul.mubr.f32.gmra.mrb[152].mxu0 %v3649_v24 }
 0x5f9   : > { %4681 = vmatprep.mubr.f32.mxu0 %v12940_v49  ;;  %v13185_v63 = vpop.f32.mrb[124].mxu1 }
 0x5fa   : > { %13859 = vst [vmem:[#allocation54_spill] sm:$0xff] %v13185_v63  ;;  %v6595_v56 = vpop.f32.mrb[125].mxu1 }
 0x5fc   : > { %4682 = vmatmul.mubr.f32.gmra.mrb[154].mxu0 %v3650_v30 }
 0x5fd   : > { %4686 = vmatprep.mubr.f32.mxu0 %v12940_v49  ;;  %v13188_v1 = vpop.f32.mrb[126].mxu1 }
 0x5fe   : > { %13860 = vst [vmem:[#allocation25_spill] sm:$0xff] %v13188_v1  ;;  %v6600_v5 = vpop.f32.mrb[127].mxu1  ;;  %v5769_v1 = vld [vmem:[#allocation9 + $0x418] sm:$0xff] }
 0x600   : > { %4687 = vmatmul.mubr.f32.gmra.mrb[156].mxu0 %v3651_v40  ;;  %v3656_v40 = vld [vmem:[#allocation2 + $0xb54] sm:$0xff] }
 0x601   : > { %4691 = vmatprep.mubr.f32.mxu0 %v13190_v55  ;;  %v13193_v33 = vpop.f32.mrb[128].mxu1 }
 0x602   : > { %13861 = vst [vmem:[#allocation24_spill] sm:$0xff] %v13193_v33  ;;  %v6605_v6 = vpop.f32.mrb[129].mxu1 }
 0x603   : > { %v3657_v6 = vld [vmem:[#allocation2 + $0xb8c] sm:$0xff] }
 0x604   : > { %4692 = vmatmul.mubr.f32.gmra.mrb[158].mxu0 %v3652_v23 }
 0x605   : > { %4696 = vmatprep.mubr.f32.mxu0 %v13190_v55  ;;  %v13196_v14 = vpop.f32.mrb[130].mxu1 }
 0x606   : > { %13862 = vst [vmem:[#allocation27_spill] sm:$0xff] %v13196_v14  ;;  %v6610_v49 = vpop.f32.mrb[131].mxu1 }
 0x608   : > { %4697 = vmatmul.mubr.f32.gmra.mrb[160].mxu0 %v3653_v28 }
 0x609   : > { %4701 = vmatprep.mubr.f32.mxu0 %v13190_v55  ;;  %v13199_v31 = vpop.f32.mrb[132].mxu1 }
 0x60a   : > { %13863 = vst [vmem:[#allocation26_spill] sm:$0xff] %v13199_v31  ;;  %v6615_v24 = vpop.f32.mrb[133].mxu1 }
 0x60c   : > { %4702 = vmatmul.mubr.f32.gmra.mrb[162].mxu0 %v3654_v34  ;;  %v3658_v34 = vld [vmem:[#allocation2 + $0xb94] sm:$0xff] }
 0x60d   : > { %4706 = vmatprep.mubr.f32.mxu0 %v13190_v55  ;;  %v13202_v30 = vpop.f32.mrb[134].mxu1 }
 0x60e   : > { %13864 = vst [vmem:[#allocation29_spill] sm:$0xff] %v13202_v30  ;;  %v6620_v56 = vpop.f32.mrb[135].mxu1 }
 0x60f   : > { %v7817_v56 = vld [vmem:[%s13741_s6 + $0x158] sm:$0xff] }
 0x610   : > { %4707 = vmatmul.mubr.f32.gmra.mrb[164].mxu0 %v3655_v48  ;;  %v7816_v48 = vld [vmem:[%s13741_s6 + $0x150] sm:$0xff] }
 0x611   : > { %4711 = vmatprep.mubr.f32.mxu0 %v13190_v55  ;;  %v13205_v5 = vpop.f32.mrb[136].mxu1 }
 0x612   : > { %13865 = vst [vmem:[#allocation28_spill] sm:$0xff] %v13205_v5  ;;  %v6625_v23 = vpop.f32.mrb[137].mxu1  ;;  %v7819_v5 = vld [vmem:[%s13741_s6 + $0x168] sm:$0xff] }
 0x613   : > { %v9553_v23 = vpack.c.bf16 %v7817_v56, %v7816_v48  ;;  %v7820_v56 = vld [vmem:[%s13741_s6 + $0x170] sm:$0xff] }
 0x614   : > { %4712 = vmatmul.mubr.f32.gmra.mrb[166].mxu0 %v3656_v40 }
 0x615   : > { %4716 = vmatprep.mubr.f32.mxu0 %v13190_v55  ;;  %v13208_v28 = vpop.f32.mrb[138].mxu1  ;;  %9554 = vmatprep.subr.bf16.mxu0 %v9553_v23 }
 0x616   : > { %13866 = vst [vmem:[#allocation31_spill] sm:$0xff] %v13208_v28  ;;  %v6630_v49 = vpop.f32.mrb[139].mxu1  ;;  %9556 = vmatpush3.bf16.msra.mxu0 %v9553_v23 }
 0x618   : > { %4717 = vmatmul.mubr.f32.gmra.mrb[168].mxu0 %v3657_v6  ;;  %v3659_v6 = vld [vmem:[#allocation2 + $0xbcc] sm:$0xff] }
 0x619   : > { %4721 = vmatprep.mubr.f32.mxu0 %v13190_v55  ;;  %v13211_v24 = vpop.f32.mrb[140].mxu1 }
 0x61a   : > { %13867 = vst [vmem:[#allocation30_spill] sm:$0xff] %v13211_v24  ;;  %v6635_v40 = vpop.f32.mrb[141].mxu1  ;;  %v7818_v24 = vld [vmem:[%s13741_s6 + $0x160] sm:$0xff] }
 0x61b   : > { %v9557_v31 = vpack.c.bf16 %v7819_v5, %v7818_v24  ;;  %v7821_v40 = vld [vmem:[%s13741_s6 + $0x178] sm:$0xff]  ;;  %v3661_v5 = vld [vmem:[#allocation2 + $0xc0c] sm:$0xff] }
 0x61c   : > { %4722 = vmatmul.mubr.f32.gmra.mrb[170].mxu0 %v3658_v34  ;;  %v3660_v34 = vld [vmem:[#allocation2 + $0xbd4] sm:$0xff] }
 0x61d   : > { %4726 = vmatprep.mubr.f32.mxu0 %v13190_v55  ;;  %v13220_v49 = vpop.f32.mrb[142].mxu1  ;;  %9558 = vmatprep.subr.bf16.mxu0 %v9557_v31 }
 0x61e   : > { %13868 = vst [vmem:[#allocation33_spill] sm:$0xff] %v13220_v49  ;;  %v6640_v28 = vpop.f32.mrb[143].mxu1  ;;  %9560 = vmatpush3.bf16.msra.mxu0 %v9557_v31  ;;  %v9561_v49 = vpack.c.bf16 %v7821_v40, %v7820_v56  ;;  %v3662_v31 = vld [vmem:[#allocation2 + $0xc14] sm:$0xff]  ;;  %v3663_v56 = vld [vmem:[#allocation2 + $0xc4c] sm:$0xff] }
 0x620   : > { %4727 = vmatmul.mubr.f32.gmra.mrb[172].mxu0 %v3659_v6  ;;  %9562 = vmatprep.subr.bf16.mxu0 %v9561_v49 }
 0x621   : > { %4731 = vmatprep.mubr.f32.mxu0 %v13190_v55  ;;  %v13229_v48 = vpop.f32.mrb[144].mxu1 }
 0x622   : > { %13869 = vst [vmem:[#allocation32_spill] sm:$0xff] %v13229_v48  ;;  %v6645_v23 = vpop.f32.mrb[145].mxu1  ;;  %9564 = vmatpush3.bf16.msra.mxu0 %v9561_v49 }
 0x623   : > { %v3664_v23 = vld [vmem:[#allocation2 + $0xc54] sm:$0xff] }
 0x624   : > { %4732 = vmatmul.mubr.f32.gmra.mrb[174].mxu0 %v3660_v34 }
 0x625   : > { %4736 = vmatprep.mubr.f32.mxu0 %v13190_v55  ;;  %v13238_v28 = vpop.f32.mrb[146].mxu1 }
 0x626   : > { %13870 = vst [vmem:[#allocation35_spill] sm:$0xff] %v13238_v28  ;;  %v6650_v24 = vpop.f32.mrb[147].mxu1  ;;  %v13877_v28 = vld [vmem:[#allocation43_spill] sm:$0xff] }
 0x627   : > { %v3665_v24 = vld [vmem:[#allocation2 + $0xc8c] sm:$0xff]  ;;  %v5004_v30 = vsub.s32 2, %v13877_v28 }
 0x628   : > { %4737 = vmatmul.mubr.f32.gmra.mrb[176].mxu0 %v3661_v5 }
 0x629   : > { %4741 = vmatprep.mubr.f32.mxu0 %v13190_v55  ;;  %v13241_v6 = vpop.f32.mrb[148].mxu1 }
 0x62a   : > { %13871 = vst [vmem:[#allocation34_spill] sm:$0xff] %v13241_v6  ;;  %v6655_v48 = vpop.f32.mrb[149].mxu1 }
 0x62c   : > { %4742 = vmatmul.mubr.f32.gmra.mrb[178].mxu0 %v3662_v31  ;;  %v3666_v31 = vld [vmem:[#allocation2 + $0xc94] sm:$0xff] }
 0x62d   : > { %4746 = vmatprep.mubr.f32.mxu0 %v13190_v55  ;;  %v13244_v34 = vpop.f32.mrb[150].mxu1 }
 0x62e   : > { %13872 = vst [vmem:[#allocation37_spill] sm:$0xff] %v13244_v34  ;;  %v6660_v40 = vpop.f32.mrb[151].mxu1 }
 0x62f   : > { %v3667_v40 = vld [vmem:[#allocation2 + $0xccc] sm:$0xff] }
 0x630   : > { %4747 = vmatmul.mubr.f32.gmra.mrb[180].mxu0 %v3663_v56 }
 0x631   : > { %4751 = vmatprep.mubr.f32.mxu0 %v13190_v55  ;;  %v13247_v49 = vpop.f32.mrb[152].mxu1 }
 0x632   : > { %13873 = vst [vmem:[#allocation36_spill] sm:$0xff] %v13247_v49  ;;  %v6665_v5 = vpop.f32.mrb[153].mxu1 }
 0x633   : > { %v3668_v5 = vld [vmem:[#allocation2 + $0xcd4] sm:$0xff] }
 0x634   : > { %4752 = vmatmul.mubr.f32.gmra.mrb[182].mxu0 %v3664_v23 }
 0x635   : > { %4756 = vmatprep.mubr.f32.mxu0 %v13190_v55  ;;  %v13250_v6 = vpop.f32.mrb[154].mxu1 }
 0x636   : > { %13874 = vst [vmem:[#allocation39_spill] sm:$0xff] %v13250_v6  ;;  %v6670_v48 = vpop.f32.mrb[155].mxu1 }
 0x637   : > { %v5766_v48 = vld [vmem:[#allocation9 + $0x400] sm:$0xff] }
 0x638   : > { %4757 = vmatmul.mubr.f32.gmra.mrb[184].mxu0 %v3665_v24  ;;  %v5767_v24 = vld [vmem:[#allocation9 + $0x408] sm:$0xff] }
 0x639   : > { %4761 = vmatprep.mubr.f32.mxu0 %v13190_v55  ;;  %v13253_v34 = vpop.f32.mrb[156].mxu1  ;;  %v9757_v6 = vpack.c.bf16 %v5767_v24, %v5766_v48 }
 0x63a   : > { %13875 = vst [vmem:[#allocation38_spill] sm:$0xff] %v13253_v34  ;;  %v6675_v56 = vpop.f32.mrb[157].mxu1 }
 0x63b   : > { %9758 = vmatprep.subr.bf16.mxu0 %v9757_v6 }
 0x63c   : > { %4762 = vmatmul.mubr.f32.gmra.mrb[186].mxu0 %v3666_v31  ;;  %v13263_v31 = vld [vmem:[%s13742_s7] sm:$0x3f] }
 0x63d   : > { %4766 = vmatprep.mubr.f32.mxu0 %v13190_v55  ;;  %v13256_v49 = vpop.f32.mrb[158].mxu1  ;;  %v13266_v56 = vrot.slane %v13263_v31, %v5004_v30 }
 0x63e   : > { %13876 = vst [vmem:[#allocation41_spill] sm:$0xff] %v13256_v49  ;;  %v6680_v23 = vpop.f32.mrb[159].mxu1 }
 0x640   : > { %4767 = vmatmul.mubr.f32.gmra.mrb[188].mxu0 %v3667_v40 }
 0x641   : > { %4771 = vmatprep.mubr.f32.mxu0 %v13190_v55 }
 0x644   : > { %4772 = vmatmul.mubr.f32.gmra.mrb[190].mxu0 %v3668_v5  ;;  %v13272_v5 = vld [vmem:[%s13743_s8] sm:$0x3f] }
 0x645   : > { %v13275_v48 = vrot.slane %v13272_v5, %v5004_v30 }
 0x69b   : > { %v4618_v23 = vpop.f32.mrb[128].mxu0 }
 0x69c   : > { %v4844_v40 = vadd.f32 %v13039_v12, %v4618_v23  ;;  %v4620_v55 = vpop.f32.mrb[129].mxu0 }
 0x69d   : > { %v5768_v55 = vld [vmem:[#allocation9 + $0x410] sm:$0xff] }
 0x69e   : > { %v5006_v24 = vmul.f32 %v13266_v56, %v4844_v40  ;;  %v9761_v27 = vpack.c.bf16 %v5769_v1, %v5768_v55 }
 0x69f   : > { %v4623_v34 = vpop.f32.mrb[130].mxu0 }
 0x6a0   : > { %v4849_v49 = vadd.f32 %v13037_v45, %v4623_v34  ;;  %v4625_v33 = vpop.f32.mrb[131].mxu0  ;;  %v5042_v14 = vadd.f32 %v13275_v48, %v5006_v24  ;;  %v5771_v34 = vld [vmem:[#allocation9 + $0x428] sm:$0xff] }
 0x6a1   : > { %v5770_v33 = vld [vmem:[#allocation9 + $0x420] sm:$0xff] }
 0x6a2   : > { %v5007_v63 = vmul.f32 %v13266_v56, %v4849_v49  ;;  %v5074_v12 = vmax.f32 %v5042_v14, 0.0 }
 0x6a3   : > { %v4628_v23 = vpop.f32.mrb[132].mxu0 }
 0x6a4   : > { %v5043_v61 = vadd.f32 %v13275_v48, %v5007_v63  ;;  %v4854_v60 = vadd.f32 %v13044_v43, %v4628_v23  ;;  %v4630_v30 = vpop.f32.mrb[133].mxu0  ;;  %8711 = vmatprep.mubr.f32.mxu0 %v5074_v12  ;;  %v9765_v43 = vpack.c.bf16 %v5771_v34, %v5770_v33  ;;  %v5773_v23 = vld [vmem:[#allocation9 + $0x438] sm:$0xff] }
 0x6a6   : > { %v5075_v4 = vmax.f32 %v5043_v61, 0.0  ;;  %v5008_v40 = vmul.f32 %v13266_v56, %v4854_v60  ;;  %v5772_v61 = vld [vmem:[#allocation9 + $0x430] sm:$0xff] }
 0x6a7   : > { %v4633_v45 = vpop.f32.mrb[134].mxu0 }
 0x6a8   : > { %v4859_v24 = vadd.f32 %v13042_v7, %v4633_v45  ;;  %v4635_v49 = vpop.f32.mrb[135].mxu0  ;;  %8712 = vmatmul.mubr.f32.vlgmr.msra.gmra.mrb[96].mxu0 %v5075_v4  ;;  %v5044_v14 = vadd.f32 %v13275_v48, %v5008_v40  ;;  %v5774_v40 = vld [vmem:[#allocation9 + $0x440] sm:$0xff]  ;;  %v5775_v45 = vld [vmem:[#allocation9 + $0x448] sm:$0xff] }
 0x6a9   : > { %9760 = vmatpush3.bf16.msra.mxu0 %v9757_v6  ;;  %v9769_v6 = vpack.c.bf16 %v5773_v23, %v5772_v61 }
 0x6aa   : > { %v5009_v63 = vmul.f32 %v13266_v56, %v4859_v24  ;;  %v5076_v9 = vmax.f32 %v5044_v14, 0.0  ;;  %9762 = vmatprep.subr.bf16.mxu0 %v9761_v27  ;;  %v5776_v14 = vld [vmem:[#allocation9 + $0x450] sm:$0xff] }
 0x6ab   : > { %v4638_v12 = vpop.f32.mrb[136].mxu0 }
 0x6ac   : > { %v4864_v60 = vadd.f32 %v13049_v57, %v4638_v12  ;;  %v4640_v1 = vpop.f32.mrb[137].mxu0  ;;  %8714 = vmatprep.mubr.f32.mxu0 %v5076_v9  ;;  %v5045_v55 = vadd.f32 %v13275_v48, %v5009_v63  ;;  %v5777_v63 = vld [vmem:[#allocation9 + $0x458] sm:$0xff] }
 0x6ad   : > { %9764 = vmatpush3.bf16.msra.mxu0 %v9761_v27  ;;  %v9773_v27 = vpack.c.bf16 %v5775_v45, %v5774_v40 }
 0x6ae   : > { %v5010_v7 = vmul.f32 %v13266_v56, %v4864_v60  ;;  %v5077_v4 = vmax.f32 %v5045_v55, 0.0  ;;  %9766 = vmatprep.subr.bf16.mxu0 %v9765_v43  ;;  %v5778_v55 = vld [vmem:[#allocation9 + $0x460] sm:$0xff] }
 0x6af   : > { %v4643_v30 = vpop.f32.mrb[138].mxu0 }
 0x6b0   : > { %v4869_v33 = vadd.f32 %v13047_v42, %v4643_v30  ;;  %v4645_v34 = vpop.f32.mrb[139].mxu0  ;;  %8715 = vmatmul.mubr.f32.gmra.mrb[98].mxu0 %v5077_v4  ;;  %v5046_v24 = vadd.f32 %v13275_v48, %v5010_v7  ;;  %v5779_v7 = vld [vmem:[#allocation9 + $0x468] sm:$0xff] }
 0x6b1   : > { %9768 = vmatpush3.bf16.msra.mxu0 %v9765_v43  ;;  %v9777_v43 = vpack.c.bf16 %v5777_v63, %v5776_v14  ;;  %v5780_v34 = vld [vmem:[#allocation9 + $0x470] sm:$0xff] }
 0x6b2   : > { %v5011_v57 = vmul.f32 %v13266_v56, %v4869_v33  ;;  %v5078_v9 = vmax.f32 %v5046_v24, 0.0  ;;  %9770 = vmatprep.subr.bf16.mxu0 %v9769_v6  ;;  %v5781_v24 = vld [vmem:[#allocation9 + $0x478] sm:$0xff] }
 0x6b3   : > { %v4648_v49 = vpop.f32.mrb[140].mxu0 }
 0x6b4   : > { %v4874_v12 = vadd.f32 %v13054_v26, %v4648_v49  ;;  %v4650_v61 = vpop.f32.mrb[141].mxu0  ;;  %8717 = vmatprep.mubr.f32.mxu0 %v5078_v9  ;;  %v5047_v23 = vadd.f32 %v13275_v48, %v5011_v57 }
 0x6b5   : > { %9772 = vmatpush3.bf16.msra.mxu0 %v9769_v6  ;;  %v9781_v6 = vpack.c.bf16 %v5779_v7, %v5778_v55 }
 0x6b6   : > { %v5012_v42 = vmul.f32 %v13266_v56, %v4874_v12  ;;  %v5079_v60 = vmax.f32 %v5047_v23, 0.0  ;;  %9774 = vmatprep.subr.bf16.mxu0 %v9773_v27 }
 0x6b7   : > { %v4653_v1 = vpop.f32.mrb[142].mxu0 }
 0x6b8   : > { %v4879_v4 = vadd.f32 %v13052_v53, %v4653_v1  ;;  %v4655_v30 = vpop.f32.mrb[143].mxu0  ;;  %8718 = vmatmul.mubr.f32.gmra.mrb[100].mxu0 %v5079_v60  ;;  %v5048_v40 = vadd.f32 %v13275_v48, %v5012_v42 }
 0x6b9   : > { %9776 = vmatpush3.bf16.msra.mxu0 %v9773_v27  ;;  %v9785_v27 = vpack.c.bf16 %v5781_v24, %v5780_v34 }
 0x6ba   : > { %v5013_v26 = vmul.f32 %v13266_v56, %v4879_v4  ;;  %v5080_v45 = vmax.f32 %v5048_v40, 0.0  ;;  %9778 = vmatprep.subr.bf16.mxu0 %v9777_v43 }
 0x6bb   : > { %v4658_v33 = vpop.f32.mrb[144].mxu0 }
 0x6bc   : > { %v4884_v57 = vadd.f32 %v13058_v18, %v4658_v33  ;;  %v4660_v9 = vpop.f32.mrb[145].mxu0  ;;  %8720 = vmatprep.mubr.f32.mxu0 %v5080_v45  ;;  %v5049_v49 = vadd.f32 %v13275_v48, %v5013_v26 }
 0x6bd   : > { %9780 = vmatpush3.bf16.msra.mxu0 %v9777_v43 }
 0x6be   : > { %v5014_v53 = vmul.f32 %v13266_v56, %v4884_v57  ;;  %v5081_v14 = vmax.f32 %v5049_v49, 0.0  ;;  %9782 = vmatprep.subr.bf16.mxu0 %v9781_v6 }
 0x6bf   : > { %v4663_v63 = vpop.f32.mrb[146].mxu0 }
 0x6c0   : > { %v4889_v12 = vadd.f32 %v13056_v36, %v4663_v63  ;;  %v4665_v61 = vpop.f32.mrb[147].mxu0  ;;  %8721 = vmatmul.mubr.f32.gmra.mrb[102].mxu0 %v5081_v14  ;;  %v5050_v23 = vadd.f32 %v13275_v48, %v5014_v53 }
 0x6c1   : > { %9784 = vmatpush3.bf16.msra.mxu0 %v9781_v6 }
 0x6c2   : > { %v5015_v18 = vmul.f32 %v13266_v56, %v4889_v12  ;;  %v5082_v42 = vmax.f32 %v5050_v23, 0.0  ;;  %9786 = vmatprep.subr.bf16.mxu0 %v9785_v27 }
 0x6c3   : > { %v4668_v60 = vpop.f32.mrb[148].mxu0 }
 0x6c4   : > { %v4894_v43 = vadd.f32 %v13062_v25, %v4668_v60  ;;  %v4670_v1 = vpop.f32.mrb[149].mxu0  ;;  %8723 = vmatprep.mubr.f32.mxu0 %v5082_v42  ;;  %v5051_v55 = vadd.f32 %v13275_v48, %v5015_v18 }
 0x6c5   : > { %9788 = vmatpush3.bf16.msra.mxu0 %v9785_v27 }
 0x6c6   : > { %v5016_v7 = vmul.f32 %v13266_v56, %v4894_v43  ;;  %v5083_v36 = vmax.f32 %v5051_v55, 0.0 }
 0x6c7   : > { %v4673_v4 = vpop.f32.mrb[150].mxu0 }
 0x6c8   : > { %v4899_v30 = vadd.f32 %v13060_v54, %v4673_v4  ;;  %v4675_v40 = vpop.f32.mrb[151].mxu0  ;;  %8724 = vmatmul.mubr.f32.gmra.mrb[104].mxu0 %v5083_v36  ;;  %v5052_v26 = vadd.f32 %v13275_v48, %v5016_v7 }
 0x6ca   : > { %v5017_v45 = vmul.f32 %v13266_v56, %v4899_v30  ;;  %v5084_v6 = vmax.f32 %v5052_v26, 0.0 }
 0x6cb   : > { %v4678_v33 = vpop.f32.mrb[152].mxu0 }
 0x6cc   : > { %v4904_v25 = vadd.f32 %v13066_v20, %v4678_v33  ;;  %v4680_v34 = vpop.f32.mrb[153].mxu0  ;;  %8726 = vmatprep.mubr.f32.mxu0 %v5084_v6  ;;  %v5053_v24 = vadd.f32 %v13275_v48, %v5017_v45 }
 0x6ce   : > { %v5018_v57 = vmul.f32 %v13266_v56, %v4904_v25  ;;  %v5085_v9 = vmax.f32 %v5053_v24, 0.0  ;;  %v7822_v25 = vld [vmem:[%s13741_s6 + $0x180] sm:$0xff] }
 0x6cf   : > { %v4683_v49 = vpop.f32.mrb[154].mxu0 }
 0x6d0   : > { %v4909_v54 = vadd.f32 %v13064_v46, %v4683_v49  ;;  %v4685_v53 = vpop.f32.mrb[155].mxu0  ;;  %8727 = vmatmul.mubr.f32.gmra.mrb[106].mxu0 %v5085_v9  ;;  %v5054_v14 = vadd.f32 %v13275_v48, %v5018_v57 }
 0x6d2   : > { %v5019_v27 = vmul.f32 %v13266_v56, %v4909_v54  ;;  %v5086_v63 = vmax.f32 %v5054_v14, 0.0 }
 0x6d3   : > { %v4688_v12 = vpop.f32.mrb[156].mxu0 }
 0x6d4   : > { %v4914_v20 = vadd.f32 %v13070_v22, %v4688_v12  ;;  %v4690_v61 = vpop.f32.mrb[157].mxu0  ;;  %8729 = vmatprep.mubr.f32.mxu0 %v5086_v63  ;;  %v5055_v23 = vadd.f32 %v13275_v48, %v5019_v27 }
 0x6d6   : > { %v5020_v18 = vmul.f32 %v13266_v56, %v4914_v20  ;;  %v5087_v42 = vmax.f32 %v5055_v23, 0.0 }
 0x6d7   : > { %v4693_v60 = vpop.f32.mrb[158].mxu0 }
 0x6d8   : > { %v4919_v46 = vadd.f32 %v13068_v39, %v4693_v60  ;;  %v4695_v43 = vpop.f32.mrb[159].mxu0  ;;  %8730 = vmatmul.mubr.f32.gmra.mrb[108].mxu0 %v5087_v42  ;;  %v5056_v1 = vadd.f32 %v13275_v48, %v5020_v18 }
 0x6da   : > { %v5021_v55 = vmul.f32 %v13266_v56, %v4919_v46  ;;  %v5088_v7 = vmax.f32 %v5056_v1, 0.0 }
 0x6db   : > { %v4698_v36 = vpop.f32.mrb[160].mxu0 }
 0x6dc   : > { %v4924_v22 = vadd.f32 %v13074_v13, %v4698_v36  ;;  %v4700_v4 = vpop.f32.mrb[161].mxu0  ;;  %8732 = vmatprep.mubr.f32.mxu0 %v5088_v7  ;;  %v5057_v30 = vadd.f32 %v13275_v48, %v5021_v55  ;;  %v7823_v13 = vld [vmem:[%s13741_s6 + $0x188] sm:$0xff] }
 0x6dd   : > { %v13334_v34 = vpack.c.bf16 %v7823_v13, %v7822_v25 }
 0x6de   : > { %v5022_v40 = vmul.f32 %v13266_v56, %v4924_v22  ;;  %v5089_v26 = vmax.f32 %v5057_v30, 0.0 }
 0x6df   : > { %v4703_v45 = vpop.f32.mrb[162].mxu0  ;;  %9790 = vmatprep.subr.bf16.mxu0 %v13334_v34 }
 0x6e0   : > { %v4929_v39 = vadd.f32 %v13072_v37, %v4703_v45  ;;  %v4705_v6 = vpop.f32.mrb[163].mxu0  ;;  %8733 = vmatmul.mubr.f32.gmra.mrb[110].mxu0 %v5089_v26  ;;  %v5058_v33 = vadd.f32 %v13275_v48, %v5022_v40 }
 0x6e2   : > { %v5023_v24 = vmul.f32 %v13266_v56, %v4929_v39  ;;  %v5090_v57 = vmax.f32 %v5058_v33, 0.0 }
 0x6e3   : > { %v4708_v9 = vpop.f32.mrb[164].mxu0 }
 0x6e4   : > { %v4934_v37 = vadd.f32 %v13078_v44, %v4708_v9  ;;  %v4710_v49 = vpop.f32.mrb[165].mxu0  ;;  %8735 = vmatprep.mubr.f32.mxu0 %v5090_v57  ;;  %v5059_v54 = vadd.f32 %v13275_v48, %v5023_v24 }
 0x6e6   : > { %v5024_v53 = vmul.f32 %v13266_v56, %v4934_v37  ;;  %v5091_v14 = vmax.f32 %v5059_v54, 0.0 }
 0x6e7   : > { %v4713_v27 = vpop.f32.mrb[166].mxu0 }
 0x6e8   : > { %v4939_v63 = vadd.f32 %v13076_v8, %v4713_v27  ;;  %v4715_v12 = vpop.f32.mrb[167].mxu0  ;;  %8736 = vmatmul.mubr.f32.gmra.mrb[112].mxu0 %v5091_v14  ;;  %v5060_v20 = vadd.f32 %v13275_v48, %v5024_v53 }
 0x6ea   : > { %v5025_v61 = vmul.f32 %v13266_v56, %v4939_v63  ;;  %v5092_v23 = vmax.f32 %v5060_v20, 0.0 }
 0x6eb   : > { %v4718_v18 = vpop.f32.mrb[168].mxu0 }
 0x6ec   : > { %v4944_v44 = vadd.f32 %v13082_v15, %v4718_v18  ;;  %v4720_v42 = vpop.f32.mrb[169].mxu0  ;;  %8738 = vmatprep.mubr.f32.mxu0 %v5092_v23  ;;  %v5061_v60 = vadd.f32 %v13275_v48, %v5025_v61 }
 0x6ee   : > { %v5026_v46 = vmul.f32 %v13266_v56, %v4944_v44  ;;  %v5093_v43 = vmax.f32 %v5061_v60, 0.0 }
 0x6ef   : > { %v4723_v1 = vpop.f32.mrb[170].mxu0 }
 0x6f0   : > { %v4949_v8 = vadd.f32 %v13080_v41, %v4723_v1  ;;  %v4725_v55 = vpop.f32.mrb[171].mxu0  ;;  %8739 = vmatmul.mubr.f32.gmra.mrb[114].mxu0 %v5093_v43  ;;  %v5062_v7 = vadd.f32 %v13275_v48, %v5026_v46 }
 0x6f2   : > { %v5027_v36 = vmul.f32 %v13266_v56, %v4949_v8  ;;  %v5094_v22 = vmax.f32 %v5062_v7, 0.0 }
 0x6f3   : > { %v4728_v4 = vpop.f32.mrb[172].mxu0 }
 0x6f4   : > { %v4954_v15 = vadd.f32 %v13087_v59, %v4728_v4  ;;  %v4730_v30 = vpop.f32.mrb[173].mxu0  ;;  %8741 = vmatprep.mubr.f32.mxu0 %v5094_v22  ;;  %v5063_v40 = vadd.f32 %v13275_v48, %v5027_v36 }
 0x6f6   : > { %v5028_v26 = vmul.f32 %v13266_v56, %v4954_v15  ;;  %v5095_v45 = vmax.f32 %v5063_v40, 0.0 }
 0x6f7   : > { %v4733_v39 = vpop.f32.mrb[174].mxu0 }
 0x6f8   : > { %v4959_v41 = vadd.f32 %v13085_v62, %v4733_v39  ;;  %v4735_v6 = vpop.f32.mrb[175].mxu0  ;;  %8742 = vmatmul.mubr.f32.gmra.mrb[116].mxu0 %v5095_v45  ;;  %v5064_v33 = vadd.f32 %v13275_v48, %v5028_v26 }
 0x6fa   : > { %v5029_v25 = vmul.f32 %v13266_v56, %v4959_v41  ;;  %v5096_v13 = vmax.f32 %v5064_v33, 0.0 }
 0x6fb   : > { %v4738_v24 = vpop.f32.mrb[176].mxu0 }
 0x6fc   : > { %v4964_v59 = vadd.f32 %v13092_v29, %v4738_v24  ;;  %v4740_v57 = vpop.f32.mrb[177].mxu0  ;;  %8744 = vmatprep.mubr.f32.mxu0 %v5096_v13  ;;  %v5065_v9 = vadd.f32 %v13275_v48, %v5029_v25 }
 0x6fe   : > { %v5030_v37 = vmul.f32 %v13266_v56, %v4964_v59  ;;  %v5097_v49 = vmax.f32 %v5065_v9, 0.0  ;;  %v5606_v9 = vld [vmem:[#allocation2 + $0xaaa] sm:$0xff] }
 0x6ff   : > { %v4743_v54 = vpop.f32.mrb[178].mxu0 }
 0x700   : > { %v4969_v62 = vadd.f32 %v13090_v3, %v4743_v54  ;;  %v4745_v53 = vpop.f32.mrb[179].mxu0  ;;  %8745 = vmatmul.mubr.f32.gmra.mrb[118].mxu0 %v5097_v49  ;;  %v5066_v14 = vadd.f32 %v13275_v48, %v5030_v37  ;;  %v7824_v37 = vld [vmem:[%s13741_s6 + $0x190] sm:$0xff] }
 0x701   : > { %v5607_v49 = vld [vmem:[#allocation2 + $0xab2] sm:$0xff]  ;;  %v5608_v54 = vld [vmem:[#allocation2 + $0xaea] sm:$0xff] }
 0x702   : > { %v5031_v27 = vmul.f32 %v13266_v56, %v4969_v62  ;;  %v5098_v63 = vmax.f32 %v5066_v14, 0.0  ;;  %v5609_v53 = vld [vmem:[#allocation2 + $0xaf2] sm:$0xff]  ;;  %v5610_v14 = vld [vmem:[#allocation2 + $0xb2a] sm:$0xff] }
 0x703   : > { %v4748_v12 = vpop.f32.mrb[180].mxu0 }
 0x704   : > { %v4974_v29 = vadd.f32 %v13097_v51, %v4748_v12  ;;  %v4750_v20 = vpop.f32.mrb[181].mxu0  ;;  %8747 = vmatprep.mubr.f32.mxu0 %v5098_v63  ;;  %v5067_v61 = vadd.f32 %v13275_v48, %v5031_v27  ;;  %v7828_v63 = vld [vmem:[%s13741_s6 + $0x1b0] sm:$0xff]  ;;  %v7829_v12 = vld [vmem:[%s13741_s6 + $0x1b8] sm:$0xff] }
 0x705   : > { %v5612_v20 = vld [vmem:[#allocation2 + $0xb6a] sm:$0xff] }
 0x706   : > { %v5032_v23 = vmul.f32 %v13266_v56, %v4974_v29  ;;  %v5099_v18 = vmax.f32 %v5067_v61, 0.0  ;;  %v5611_v29 = vld [vmem:[#allocation2 + $0xb32] sm:$0xff]  ;;  %v9801_v61 = vpack.c.bf16 %v7829_v12, %v7828_v63  ;;  %v10749_v63 = vld [vmem:[#allocation2 + $0x6a0] sm:$0xff] }
 0x707   : > { %v4753_v44 = vpop.f32.mrb[182].mxu0 }
 0x708   : > { %v4979_v3 = vadd.f32 %v13095_v38, %v4753_v44  ;;  %v4755_v42 = vpop.f32.mrb[183].mxu0  ;;  %8748 = vmatmul.mubr.f32.gmra.mrb[120].mxu0 %v5099_v18  ;;  %v5068_v60 = vadd.f32 %v13275_v48, %v5032_v23  ;;  %v7831_v23 = vld [vmem:[%s13741_s6 + $0x1c8] sm:$0xff]  ;;  %v5613_v18 = vld [vmem:[#allocation2 + $0xb72] sm:$0xff] }
 0x709   : > { %v5614_v44 = vld [vmem:[#allocation2 + $0xbaa] sm:$0xff] }
 0x70a   : > { %v5033_v46 = vmul.f32 %v13266_v56, %v4979_v3  ;;  %v5100_v43 = vmax.f32 %v5068_v60, 0.0  ;;  %v7832_v42 = vld [vmem:[%s13741_s6 + $0x1d0] sm:$0xff]  ;;  %v7833_v60 = vld [vmem:[%s13741_s6 + $0x1d8] sm:$0xff] }
 0x70b   : > { %v4758_v1 = vpop.f32.mrb[184].mxu0 }
 0x70c   : > { %v4984_v51 = vadd.f32 %v13102_v50, %v4758_v1  ;;  %v4760_v8 = vpop.f32.mrb[185].mxu0  ;;  %8750 = vmatprep.mubr.f32.mxu0 %v5100_v43  ;;  %v5069_v55 = vadd.f32 %v13275_v48, %v5033_v46  ;;  %v5615_v46 = vld [vmem:[#allocation2 + $0xbb2] sm:$0xff]  ;;  %v5616_v43 = vld [vmem:[#allocation2 + $0xbea] sm:$0xff]  ;;  %v9809_v1 = vpack.c.bf16 %v7833_v60, %v7832_v42 }
 0x70d   : > { %v7835_v8 = vld [vmem:[%s13741_s6 + $0x1e8] sm:$0xff]  ;;  %v10754_v42 = vld [vmem:[#allocation2 + $0x758] sm:$0xff] }
 0x70e   : > { %v5034_v7 = vmul.f32 %v13266_v56, %v4984_v51  ;;  %v5101_v36 = vmax.f32 %v5069_v55, 0.0  ;;  %v7834_v51 = vld [vmem:[%s13741_s6 + $0x1e0] sm:$0xff]  ;;  %v5617_v55 = vld [vmem:[#allocation2 + $0xbf2] sm:$0xff] }
 0x70f   : > { %v4763_v22 = vpop.f32.mrb[186].mxu0 }
 0x710   : > { %v4989_v38 = vadd.f32 %v13100_v21, %v4763_v22  ;;  %v4765_v4 = vpop.f32.mrb[187].mxu0  ;;  %8751 = vmatmul.mubr.f32.gmra.mrb[122].mxu0 %v5101_v36  ;;  %v5070_v15 = vadd.f32 %v13275_v48, %v5034_v7  ;;  %v5618_v7 = vld [vmem:[#allocation2 + $0xc2a] sm:$0xff]  ;;  %v9813_v36 = vpack.c.bf16 %v7835_v8, %v7834_v51  ;;  %v5619_v22 = vld [vmem:[#allocation2 + $0xc32] sm:$0xff]  ;;  %v10757_v8 = vld [vmem:[#allocation2 + $0x7a0] sm:$0xff] }
 0x711   : > { %v5621_v4 = vld [vmem:[#allocation2 + $0xc72] sm:$0xff] }
 0x712   : > { %v5035_v30 = vmul.f32 %v13266_v56, %v4989_v38  ;;  %v5102_v40 = vmax.f32 %v5070_v15, 0.0  ;;  %v5620_v38 = vld [vmem:[#allocation2 + $0xc6a] sm:$0xff] }
 0x713   : > { %v4768_v26 = vpop.f32.mrb[188].mxu0  ;;  %v5622_v15 = vld [vmem:[#allocation2 + $0xcaa] sm:$0xff] }
 0x714   : > { %v4994_v50 = vadd.f32 %v13107_v17, %v4768_v26  ;;  %v4770_v45 = vpop.f32.mrb[189].mxu0  ;;  %8753 = vmatprep.mubr.f32.mxu0 %v5102_v40  ;;  %v5071_v39 = vadd.f32 %v13275_v48, %v5035_v30  ;;  %v5623_v30 = vld [vmem:[#allocation2 + $0xcb2] sm:$0xff]  ;;  %v5624_v40 = vld [vmem:[#allocation2 + $0xcea] sm:$0xff] }
 0x715   : > { %v5625_v26 = vld [vmem:[#allocation2 + $0xcf2] sm:$0xff] }
 0x716   : > { %v5036_v41 = vmul.f32 %v13266_v56, %v4994_v50  ;;  %v5103_v6 = vmax.f32 %v5071_v39, 0.0  ;;  %v5626_v50 = vld [vmem:[#allocation2 + $0xd2a] sm:$0xff]  ;;  %v5627_v45 = vld [vmem:[#allocation2 + $0xd32] sm:$0xff] }
 0x717   : > { %v4773_v33 = vpop.f32.mrb[190].mxu0  ;;  %v5628_v39 = vld [vmem:[#allocation2 + $0xd6a] sm:$0xff] }
 0x718   : > { %v4999_v21 = vadd.f32 %v13105_v10, %v4773_v33  ;;  %v4775_v25 = vpop.f32.mrb[191].mxu0  ;;  %8754 = vmatmul.mubr.f32.gmra.mrb[124].mxu0 %v5103_v6  ;;  %v5072_v13 = vadd.f32 %v13275_v48, %v5036_v41  ;;  %v7825_v10 = vld [vmem:[%s13741_s6 + $0x198] sm:$0xff]  ;;  %v5630_v6 = vld [vmem:[#allocation2 + $0xdaa] sm:$0xff] }
 0x719   : > { %v9793_v62 = vpack.c.bf16 %v7825_v10, %v7824_v37  ;;  %v5629_v41 = vld [vmem:[#allocation2 + $0xd72] sm:$0xff] }
 0x71a   : > { %v5037_v24 = vmul.f32 %v13266_v56, %v4999_v21  ;;  %v5104_v59 = vmax.f32 %v5072_v13, 0.0  ;;  %v7826_v56 = vld [vmem:[%s13741_s6 + $0x1a0] sm:$0xff]  ;;  %v5631_v33 = vld [vmem:[#allocation2 + $0xdb2] sm:$0xff]  ;;  %v5632_v21 = vld [vmem:[#allocation2 + $0xdea] sm:$0xff] }
 0x71b   : > { %v5633_v25 = vld [vmem:[#allocation2 + $0xdf2] sm:$0xff]  ;;  %v5634_v13 = vld [vmem:[#allocation2 + $0xe2a] sm:$0xff] }
 0x71c   : > { %8756 = vmatprep.mubr.f32.mxu0 %v5104_v59  ;;  %v5073_v17 = vadd.f32 %v13275_v48, %v5037_v24  ;;  %v7827_v48 = vld [vmem:[%s13741_s6 + $0x1a8] sm:$0xff]  ;;  %v5635_v24 = vld [vmem:[#allocation2 + $0xe32] sm:$0xff] }
 0x71d   : > { %v9797_v27 = vpack.c.bf16 %v7827_v48, %v7826_v56  ;;  %v5636_v59 = vld [vmem:[#allocation2 + $0xe6a] sm:$0xff]  ;;  %v10744_v10 = vld [vmem:[#allocation2 + $0x618] sm:$0xff]  ;;  %v10747_v48 = vld [vmem:[#allocation2 + $0x660] sm:$0xff] }
 0x71e   : > { %v5105_v57 = vmax.f32 %v5073_v17, 0.0  ;;  %v5637_v17 = vld [vmem:[#allocation2 + $0xe72] sm:$0xff] }
 0x720   : > { %8757 = vmatmul.mubr.f32.gmra.mrb[126].mxu0 %v5105_v57  ;;  %v7836_v57 = vld [vmem:[%s13741_s6 + $0x1f0] sm:$0xff] }
 0x721   : > { %8791 = vmatprep.mubr.f32.mxu0 %v5606_v9  ;;  %v7837_v9 = vld [vmem:[%s13741_s6 + $0x1f8] sm:$0xff] }
 0x722   : > { %v9817_v37 = vpack.c.bf16 %v7837_v9, %v7836_v57  ;;  %v10765_v57 = vld [vmem:[#allocation2 + $0x8a0] sm:$0xff] }
 0x724   : > { %8792 = vmatmul.mubr.f32.vlgmr.msra.gmra.mrb[192].mxu0 %v5607_v49  ;;  %v10745_v49 = vld [vmem:[#allocation2 + $0x620] sm:$0xff] }
 0x725   : > { %8794 = vmatprep.mubr.f32.mxu0 %v5608_v54  ;;  %9792 = vmatpush3.bf16.msra.mxu0 %v13334_v34  ;;  %v7830_v34 = vld [vmem:[%s13741_s6 + $0x1c0] sm:$0xff]  ;;  %v7285_v54 = vadd.f32 %v10745_v49, %v10744_v10 }
 0x726   : > { %9794 = vmatprep.subr.bf16.mxu0 %v9793_v62  ;;  %v9805_v3 = vpack.c.bf16 %v7831_v23, %v7830_v34  ;;  %v10752_v23 = vld [vmem:[#allocation2 + $0x718] sm:$0xff] }
 0x728   : > { %8795 = vmatmul.mubr.f32.gmra.mrb[194].mxu0 %v5609_v53 }
 0x729   : > { %8797 = vmatprep.mubr.f32.mxu0 %v5610_v14  ;;  %9796 = vmatpush3.bf16.msra.mxu0 %v9793_v62  ;;  %v10746_v62 = vld [vmem:[#allocation2 + $0x658] sm:$0xff] }
 0x72a   : > { %9798 = vmatprep.subr.bf16.mxu0 %v9797_v27  ;;  %v7286_v56 = vadd.f32 %v10746_v62, %v7285_v54  ;;  %v10748_v14 = vld [vmem:[#allocation2 + $0x698] sm:$0xff] }
 0x72c   : > { %8798 = vmatmul.mubr.f32.gmra.mrb[196].mxu0 %v5611_v29  ;;  %v7287_v53 = vadd.f32 %v10747_v48, %v7286_v56  ;;  %v10750_v29 = vld [vmem:[#allocation2 + $0x6d8] sm:$0xff]  ;;  %v7324_v56 = vld [vmem:[#allocation11] sm:$0xff] }
 0x72d   : > { %8800 = vmatprep.mubr.f32.mxu0 %v5612_v20  ;;  %9800 = vmatpush3.bf16.msra.mxu0 %v9797_v27 }
 0x72e   : > { %9802 = vmatprep.subr.bf16.mxu0 %v9801_v61  ;;  %v7288_v27 = vadd.f32 %v10748_v14, %v7287_v53  ;;  %v10766_v53 = vld [vmem:[#allocation2 + $0x8d8] sm:$0xff] }
 0x730   : > { %8801 = vmatmul.mubr.f32.gmra.mrb[198].mxu0 %v5613_v18  ;;  %v7289_v12 = vadd.f32 %v10749_v63, %v7288_v27 }
 0x731   : > { %8803 = vmatprep.mubr.f32.mxu0 %v5614_v44  ;;  %9804 = vmatpush3.bf16.msra.mxu0 %v9801_v61  ;;  %v10751_v61 = vld [vmem:[#allocation2 + $0x6e0] sm:$0xff] }
 0x732   : > { %9806 = vmatprep.subr.bf16.mxu0 %v9805_v3  ;;  %v7290_v20 = vadd.f32 %v10750_v29, %v7289_v12  ;;  %v10753_v44 = vld [vmem:[#allocation2 + $0x720] sm:$0xff] }
 0x734   : > { %8804 = vmatmul.mubr.f32.gmra.mrb[200].mxu0 %v5615_v46  ;;  %v7291_v34 = vadd.f32 %v10751_v61, %v7290_v20  ;;  %v10755_v46 = vld [vmem:[#allocation2 + $0x760] sm:$0xff] }
 0x735   : > { %8806 = vmatprep.mubr.f32.mxu0 %v5616_v43  ;;  %9808 = vmatpush3.bf16.msra.mxu0 %v9805_v3 }
 0x736   : > { %9810 = vmatprep.subr.bf16.mxu0 %v9809_v1  ;;  %v7292_v18 = vadd.f32 %v10752_v23, %v7291_v34  ;;  %v7326_v23 = vld [vmem:[#allocation11 + $0x10] sm:$0xff] }
 0x738   : > { %8807 = vmatmul.mubr.f32.gmra.mrb[202].mxu0 %v5617_v55  ;;  %v7293_v3 = vadd.f32 %v10753_v44, %v7292_v18  ;;  %v7327_v18 = vld [vmem:[#allocation11 + $0x18] sm:$0xff] }
 0x739   : > { %8809 = vmatprep.mubr.f32.mxu0 %v5618_v7  ;;  %9812 = vmatpush3.bf16.msra.mxu0 %v9809_v1  ;;  %v10756_v1 = vld [vmem:[#allocation2 + $0x798] sm:$0xff] }
 0x73a   : > { %9814 = vmatprep.subr.bf16.mxu0 %v9813_v36  ;;  %v7294_v60 = vadd.f32 %v10754_v42, %v7293_v3  ;;  %v10758_v7 = vld [vmem:[#allocation2 + $0x7d8] sm:$0xff]  ;;  %v10767_v3 = vld [vmem:[#allocation2 + $0x8e0] sm:$0xff] }
 0x73c   : > { %8810 = vmatmul.mubr.f32.gmra.mrb[204].mxu0 %v5619_v22  ;;  %v7295_v43 = vadd.f32 %v10755_v46, %v7294_v60  ;;  %v10759_v22 = vld [vmem:[#allocation2 + $0x7e0] sm:$0xff] }
 0x73d   : > { %8812 = vmatprep.mubr.f32.mxu0 %v5620_v38  ;;  %9816 = vmatpush3.bf16.msra.mxu0 %v9813_v36 }
 0x73e   : > { %9818 = vmatprep.subr.bf16.mxu0 %v9817_v37  ;;  %v7296_v51 = vadd.f32 %v10756_v1, %v7295_v43  ;;  %v9825_v1 = vpack.c.bf16 %v7327_v18, %v7326_v23 }
 0x740   : > { %8813 = vmatmul.mubr.f32.gmra.mrb[206].mxu0 %v5621_v4  ;;  %v7297_v55 = vadd.f32 %v10757_v8, %v7296_v51  ;;  %v10760_v4 = vld [vmem:[#allocation2 + $0x818] sm:$0xff] }
 0x741   : > { %8815 = vmatprep.mubr.f32.mxu0 %v5622_v15  ;;  %9820 = vmatpush3.bf16.msra.mxu0 %v9817_v37 }
 0x742   : > { %9821 = vmatprep.subr.bf16.mxu0 %v13815_v16  ;;  %v7298_v36 = vadd.f32 %v10758_v7, %v7297_v55  ;;  %v7328_v7 = vld [vmem:[#allocation11 + $0x20] sm:$0xff] }
 0x744   : > { %8816 = vmatmul.mubr.f32.gmra.mrb[208].mxu0 %v5623_v30  ;;  %v7299_v38 = vadd.f32 %v10759_v22, %v7298_v36  ;;  %v10761_v30 = vld [vmem:[#allocation2 + $0x820] sm:$0xff]  ;;  %v7329_v36 = vld [vmem:[#allocation11 + $0x28] sm:$0xff] }
 0x745   : > { %8818 = vmatprep.mubr.f32.mxu0 %v5624_v40 }
 0x746   : > { %v7300_v15 = vadd.f32 %v10760_v4, %v7299_v38  ;;  %v10768_v4 = vld [vmem:[#allocation2 + $0x918] sm:$0xff] }
 0x748   : > { %8819 = vmatmul.mubr.f32.gmra.mrb[210].mxu0 %v5625_v26  ;;  %v7301_v40 = vadd.f32 %v10761_v30, %v7300_v15  ;;  %v10762_v26 = vld [vmem:[#allocation2 + $0x858] sm:$0xff] }
 0x749   : > { %8821 = vmatprep.mubr.f32.mxu0 %v5626_v50 }
 0x74a   : > { %v7302_v50 = vadd.f32 %v10762_v26, %v7301_v40 }
 0x74c   : > { %8822 = vmatmul.mubr.f32.gmra.mrb[212].mxu0 %v5627_v45  ;;  %v10763_v45 = vld [vmem:[#allocation2 + $0x860] sm:$0xff] }
 0x74d   : > { %8824 = vmatprep.mubr.f32.mxu0 %v5628_v39  ;;  %v7303_v39 = vadd.f32 %v10763_v45, %v7302_v50  ;;  %v9828_v50 = vpack.c.bf16 %v7329_v36, %v7328_v7  ;;  %v13883_v36 = vld [vmem:[#allocation25_spill] sm:$0xff] }
 0x750   : > { %8825 = vmatmul.mubr.f32.gmra.mrb[214].mxu0 %v5629_v41  ;;  %v6909_v41 = vsub.s32 3, %v13877_v28 }
 0x751   : > { %8827 = vmatprep.mubr.f32.mxu0 %v5630_v6  ;;  %v10764_v6 = vld [vmem:[#allocation2 + $0x898] sm:$0xff] }
 0x754   : > { %8828 = vmatmul.mubr.f32.gmra.mrb[216].mxu0 %v5631_v33  ;;  %v7304_v33 = vadd.f32 %v10764_v6, %v7303_v39  ;;  %v7330_v6 = vld [vmem:[#allocation11 + $0x30] sm:$0xff] }
 0x755   : > { %8830 = vmatprep.mubr.f32.mxu0 %v5632_v21  ;;  %v13427_v21 = vrot.slane %v13263_v31, %v6909_v41 }
 0x756   : > { %v7305_v9 = vadd.f32 %v10765_v57, %v7304_v33  ;;  %v7331_v33 = vld [vmem:[#allocation11 + $0x38] sm:$0xff] }
 0x758   : > { %8831 = vmatmul.mubr.f32.gmra.mrb[218].mxu0 %v5633_v25 }
 0x759   : > { %8833 = vmatprep.mubr.f32.mxu0 %v5634_v13 }
 0x75c   : > { %8834 = vmatmul.mubr.f32.gmra.mrb[220].mxu0 %v5635_v24  ;;  %v13431_v24 = vrot.slane %v13272_v5, %v6909_v41 }
 0x75d   : > { %8836 = vmatprep.mubr.f32.mxu0 %v5636_v59 }
 0x760   : > { %8837 = vmatmul.mubr.f32.gmra.mrb[222].mxu0 %v5637_v17 }
 0x7f7   : > { %v8793_v25 = vpop.f32.mrb[192].mxu0 }
 0x7f8   : > { %v6754_v13 = vadd.f32 %v8793_v25, %v13124_v11  ;;  %v6748_v59 = vpop.f32.mrb[193].mxu0  ;;  %v7325_v11 = vld [vmem:[#allocation11 + $0x8] sm:$0xff]  ;;  %v13878_v25 = vld [vmem:[#allocation58_spill] sm:$0xff] }
 0x7f9   : > { %v6749_v17 = vadd.f32 %v6748_v59, %v13112_v58  ;;  %v7306_v58 = vadd.f32 %v10766_v53, %v7305_v9  ;;  %v9822_v29 = vpack.c.bf16 %v7325_v11, %v7324_v56  ;;  %v13880_v53 = vld [vmem:[#allocation23_spill] sm:$0xff] }
 0x7fa   : > { %v6912_v37 = vmul.f32 %v13427_v21, %v6754_v13 }
 0x7fb   : > { %v6911_v10 = vmul.f32 %v13427_v21, %v6749_v17  ;;  %v8796_v49 = vpop.f32.mrb[194].mxu0  ;;  %v7307_v42 = vadd.f32 %v10767_v3, %v7306_v58  ;;  %v10769_v17 = vld [vmem:[#allocation2 + $0x920] sm:$0xff]  ;;  %v7334_v3 = vld [vmem:[#allocation11 + $0x50] sm:$0xff] }
 0x7fc   : > { %v6948_v54 = vadd.f32 %v13431_v24, %v6912_v37  ;;  %v6764_v31 = vadd.f32 %v8796_v49, %v13145_v32  ;;  %v6758_v62 = vpop.f32.mrb[195].mxu0  ;;  %v9831_v49 = vpack.c.bf16 %v7331_v33, %v7330_v6 }
 0x7fd   : > { %v6759_v5 = vadd.f32 %v6758_v62, %v13136_v19  ;;  %v6947_v48 = vadd.f32 %v13431_v24, %v6911_v10  ;;  %v7308_v15 = vadd.f32 %v10768_v4, %v7307_v42  ;;  %v7335_v42 = vld [vmem:[#allocation11 + $0x58] sm:$0xff] }
 0x7fe   : > { %v6914_v14 = vmul.f32 %v13427_v21, %v6764_v31  ;;  %v6980_v20 = vmax.f32 %v6948_v54, 0.0  ;;  %v13879_v54 = vld [vmem:[#allocation52_spill] sm:$0xff]  ;;  %v9837_v7 = vpack.c.bf16 %v7335_v42, %v7334_v3  ;;  %v13889_v3 = vld [vmem:[#allocation31_spill] sm:$0xff] }
 0x7ff   : > { %v6913_v27 = vmul.f32 %v13427_v21, %v6759_v5  ;;  %v8799_v63 = vpop.f32.mrb[196].mxu0  ;;  %v6979_v12 = vmax.f32 %v6947_v48, 0.0  ;;  %v7309_v57 = vadd.f32 %v10769_v17, %v7308_v15  ;;  %v7332_v5 = vld [vmem:[#allocation11 + $0x40] sm:$0xff]  ;;  %v7333_v48 = vld [vmem:[#allocation11 + $0x48] sm:$0xff] }
 0x800   : > { %v6774_v61 = vadd.f32 %v8799_v63, %v13157_v2  ;;  %v6768_v32 = vpop.f32.mrb[197].mxu0  ;;  %v6950_v34 = vadd.f32 %v13431_v24, %v6914_v14 }
 0x801   : > { %v6769_v19 = vadd.f32 %v6768_v32, %v13154_v47  ;;  %8871 = vmatprep.mubr.f32.mxu0 %v6979_v12  ;;  %v6949_v44 = vadd.f32 %v13431_v24, %v6913_v27  ;;  %v10770_v27 = vld [vmem:[#allocation2 + $0x958] sm:$0xff]  ;;  %v9834_v32 = vpack.c.bf16 %v7333_v48, %v7332_v5 }
 0x802   : > { %v6916_v60 = vmul.f32 %v13427_v21, %v6774_v61  ;;  %8872 = vmatmul.mubr.f32.vlgmr.msra.gmra.mrb[96].mxu0 %v6980_v20  ;;  %v6982_v55 = vmax.f32 %v6950_v34, 0.0  ;;  %v7310_v63 = vadd.f32 %v10770_v27, %v7309_v57  ;;  %v13881_v34 = vld [vmem:[#allocation22_spill] sm:$0xff] }
 0x803   : > { %v6915_v46 = vmul.f32 %v13427_v21, %v6769_v19  ;;  %v8802_v43 = vpop.f32.mrb[198].mxu0  ;;  %9823 = vmatpush3.bf16.msra.mxu0 %v9822_v29  ;;  %v6981_v2 = vmax.f32 %v6949_v44, 0.0 }
 0x804   : > { %v6784_v51 = vadd.f32 %v8802_v43, %v13163_v0  ;;  %v6778_v8 = vpop.f32.mrb[199].mxu0  ;;  %v6952_v47 = vadd.f32 %v13431_v24, %v6916_v60  ;;  %9824 = vmatprep.subr.bf16.mxu0 %v13815_v16  ;;  %v13882_v60 = vld [vmem:[#allocation57_spill] sm:$0xff] }
 0x805   : > { %v6779_v22 = vadd.f32 %v6778_v8, %v13160_v35  ;;  %8874 = vmatprep.mubr.f32.mxu0 %v6981_v2  ;;  %v6951_v38 = vadd.f32 %v13431_v24, %v6915_v46  ;;  %v10771_v2 = vld [vmem:[#allocation2 + $0x960] sm:$0xff] }
 0x806   : > { %v6918_v30 = vmul.f32 %v13427_v21, %v6784_v51  ;;  %8875 = vmatmul.mubr.f32.gmra.mrb[98].mxu0 %v6982_v55  ;;  %v6984_v41 = vmax.f32 %v6952_v47, 0.0 }
 0x807   : > { %v6917_v0 = vmul.f32 %v13427_v21, %v6779_v22  ;;  %v8805_v40 = vpop.f32.mrb[200].mxu0  ;;  %v6983_v26 = vmax.f32 %v6951_v38, 0.0  ;;  %9826 = vmatpush3.bf16.msra.mxu0 %v9825_v1  ;;  %v7311_v1 = vadd.f32 %v10771_v2, %v7310_v63  ;;  %v13890_v2 = vld [vmem:[#allocation28_spill] sm:$0xff] }
 0x808   : > { %v6794_v45 = vadd.f32 %v8805_v40, %v13170_v52  ;;  %v6788_v39 = vpop.f32.mrb[201].mxu0  ;;  %v6954_v35 = vadd.f32 %v13431_v24, %v6918_v30  ;;  %9827 = vmatprep.subr.bf16.mxu0 %v13815_v16  ;;  %v7336_v30 = vld [vmem:[#allocation11 + $0x60] sm:$0xff] }
 0x809   : > { %v6789_v13 = vadd.f32 %v6788_v39, %v13878_v25  ;;  %8877 = vmatprep.mubr.f32.mxu0 %v6983_v26  ;;  %v6953_v59 = vadd.f32 %v13431_v24, %v6917_v0  ;;  %v7337_v0 = vld [vmem:[#allocation11 + $0x68] sm:$0xff]  ;;  %v13884_v40 = vld [vmem:[#allocation54_spill] sm:$0xff] }
 0x80a   : > { %v6920_v9 = vmul.f32 %v13427_v21, %v6794_v45  ;;  %8878 = vmatmul.mubr.f32.gmra.mrb[100].mxu0 %v6984_v41  ;;  %v6986_v56 = vmax.f32 %v6954_v35, 0.0  ;;  %v10772_v45 = vld [vmem:[#allocation2 + $0x998] sm:$0xff]  ;;  %v9840_v25 = vpack.c.bf16 %v7337_v0, %v7336_v30 }
 0x80b   : > { %v6919_v52 = vmul.f32 %v13427_v21, %v6789_v13  ;;  %v8808_v37 = vpop.f32.mrb[202].mxu0  ;;  %v6985_v10 = vmax.f32 %v6953_v59, 0.0  ;;  %9829 = vmatpush3.bf16.msra.mxu0 %v9828_v50  ;;  %v7312_v39 = vadd.f32 %v10772_v45, %v7311_v1  ;;  %v13885_v13 = vld [vmem:[#allocation27_spill] sm:$0xff] }
 0x80c   : > { %v6804_v31 = vadd.f32 %v8808_v37, %v13879_v54  ;;  %v6798_v62 = vpop.f32.mrb[203].mxu0  ;;  %v6956_v11 = vadd.f32 %v13431_v24, %v6920_v9  ;;  %9830 = vmatprep.subr.bf16.mxu0 %v13815_v16  ;;  %v7339_v37 = vld [vmem:[#allocation11 + $0x78] sm:$0xff] }
 0x80d   : > { %v6799_v58 = vadd.f32 %v6798_v62, %v13880_v53  ;;  %8880 = vmatprep.mubr.f32.mxu0 %v6985_v10  ;;  %v6955_v14 = vadd.f32 %v13431_v24, %v6919_v52  ;;  %v7338_v52 = vld [vmem:[#allocation11 + $0x70] sm:$0xff] }
 0x80e   : > { %v6922_v12 = vmul.f32 %v13427_v21, %v6804_v31  ;;  %8881 = vmatmul.mubr.f32.gmra.mrb[102].mxu0 %v6986_v56  ;;  %v6988_v19 = vmax.f32 %v6956_v11, 0.0  ;;  %v13886_v10 = vld [vmem:[#allocation24_spill] sm:$0xff]  ;;  %v10773_v31 = vld [vmem:[#allocation2 + $0x9a0] sm:$0xff]  ;;  %v9843_v53 = vpack.c.bf16 %v7339_v37, %v7338_v52 }
 0x80f   : > { %v6921_v29 = vmul.f32 %v13427_v21, %v6799_v58  ;;  %v8811_v20 = vpop.f32.mrb[204].mxu0  ;;  %v6987_v61 = vmax.f32 %v6955_v14, 0.0  ;;  %9832 = vmatpush3.bf16.msra.mxu0 %v9831_v49  ;;  %v7313_v62 = vadd.f32 %v10773_v31, %v7312_v39  ;;  %v13887_v58 = vld [vmem:[#allocation29_spill] sm:$0xff] }
 0x810   : > { %v6814_v23 = vadd.f32 %v8811_v20, %v13881_v34  ;;  %v6808_v18 = vpop.f32.mrb[205].mxu0  ;;  %v6958_v44 = vadd.f32 %v13431_v24, %v6922_v12  ;;  %9833 = vmatprep.subr.bf16.mxu0 %v13815_v16 }
 0x811   : > { %v6809_v46 = vadd.f32 %v6808_v18, %v13882_v60  ;;  %8883 = vmatprep.mubr.f32.mxu0 %v6987_v61  ;;  %v6957_v43 = vadd.f32 %v13431_v24, %v6921_v29  ;;  %v13888_v29 = vld [vmem:[#allocation26_spill] sm:$0xff] }
 0x812   : > { %v6924_v51 = vmul.f32 %v13427_v21, %v6814_v23  ;;  %8884 = vmatmul.mubr.f32.gmra.mrb[104].mxu0 %v6988_v19  ;;  %v6990_v4 = vmax.f32 %v6958_v44, 0.0 }
 0x813   : > { %v6923_v8 = vmul.f32 %v13427_v21, %v6809_v46  ;;  %v8814_v55 = vpop.f32.mrb[206].mxu0  ;;  %v6989_v47 = vmax.f32 %v6957_v43, 0.0  ;;  %9835 = vmatpush3.bf16.msra.mxu0 %v9834_v32  ;;  %v10774_v32 = vld [vmem:[#allocation2 + $0x9d8] sm:$0xff] }
 0x814   : > { %v6824_v22 = vadd.f32 %v8814_v55, %v13883_v36  ;;  %v6818_v38 = vpop.f32.mrb[207].mxu0  ;;  %v6960_v15 = vadd.f32 %v13431_v24, %v6924_v51  ;;  %9836 = vmatprep.subr.bf16.mxu0 %v13815_v16  ;;  %v7314_v34 = vadd.f32 %v10774_v32, %v7313_v62  ;;  %v13895_v62 = vld [vmem:[#allocation37_spill] sm:$0xff] }
 0x815   : > { %v6819_v26 = vadd.f32 %v6818_v38, %v13884_v40  ;;  %8886 = vmatprep.mubr.f32.mxu0 %v6989_v47  ;;  %v6959_v50 = vadd.f32 %v13431_v24, %v6923_v8  ;;  %v10775_v8 = vld [vmem:[#allocation2 + $0x9e0] sm:$0xff]  ;;  %v13891_v38 = vld [vmem:[#allocation33_spill] sm:$0xff] }
 0x816   : > { %v6926_v41 = vmul.f32 %v13427_v21, %v6824_v22  ;;  %8887 = vmatmul.mubr.f32.gmra.mrb[106].mxu0 %v6990_v4  ;;  %v6992_v57 = vmax.f32 %v6960_v15, 0.0  ;;  %v7315_v55 = vadd.f32 %v10775_v8, %v7314_v34  ;;  %v13892_v40 = vld [vmem:[#allocation30_spill] sm:$0xff] }
 0x817   : > { %v6925_v35 = vmul.f32 %v13427_v21, %v6819_v26  ;;  %v8817_v6 = vpop.f32.mrb[208].mxu0  ;;  %v6991_v33 = vmax.f32 %v6959_v50, 0.0  ;;  %9838 = vmatpush3.bf16.msra.mxu0 %v9837_v7 }
 0x818   : > { %v6834_v59 = vadd.f32 %v8817_v6, %v13885_v13  ;;  %v6828_v17 = vpop.f32.mrb[209].mxu0  ;;  %v6962_v9 = vadd.f32 %v13431_v24, %v6926_v41  ;;  %9839 = vmatprep.subr.bf16.mxu0 %v13815_v16  ;;  %v7316_v45 = vrot.slane %v7315_v55, 4 }
 0x819   : > { %v6829_v49 = vadd.f32 %v6828_v17, %v13886_v10  ;;  %8889 = vmatprep.mubr.f32.mxu0 %v6991_v33  ;;  %v6961_v54 = vadd.f32 %v13431_v24, %v6925_v35  ;;  %v13893_v33 = vld [vmem:[#allocation35_spill] sm:$0xff] }
 0x81a   : > { %v6928_v56 = vmul.f32 %v13427_v21, %v6834_v59  ;;  %8890 = vmatmul.mubr.f32.gmra.mrb[108].mxu0 %v6992_v57  ;;  %v6994_v63 = vmax.f32 %v6962_v9, 0.0  ;;  %v13894_v57 = vld [vmem:[#allocation32_spill] sm:$0xff]  ;;  %v7317_v37 = vadd.f32 %v7316_v45, %v7315_v55 }
 0x81b   : > { %v6927_v11 = vmul.f32 %v13427_v21, %v6829_v49  ;;  %v8820_v5 = vpop.f32.mrb[210].mxu0  ;;  %v6993_v48 = vmax.f32 %v6961_v54, 0.0  ;;  %9841 = vmatpush3.bf16.msra.mxu0 %v9840_v25 }
 0x81c   : > { %v6844_v14 = vadd.f32 %v8820_v5, %v13887_v58  ;;  %v6838_v27 = vpop.f32.mrb[211].mxu0  ;;  %v6964_v12 = vadd.f32 %v13431_v24, %v6928_v56  ;;  %9842 = vmatprep.subr.bf16.mxu0 %v13815_v16 }
 0x81d   : > { %v6839_v20 = vadd.f32 %v6838_v27, %v13888_v29  ;;  %8892 = vmatprep.mubr.f32.mxu0 %v6993_v48  ;;  %v6963_v61 = vadd.f32 %v13431_v24, %v6927_v11  ;;  %v7318_v27 = vrot.slane %v7317_v37, 2 }
 0x81e   : > { %v6930_v23 = vmul.f32 %v13427_v21, %v6844_v14  ;;  %8893 = vmatmul.mubr.f32.gmra.mrb[110].mxu0 %v6994_v63  ;;  %v6996_v46 = vmax.f32 %v6964_v12, 0.0 }
 0x81f   : > { %v6929_v18 = vmul.f32 %v13427_v21, %v6839_v20  ;;  %v8823_v19 = vpop.f32.mrb[212].mxu0  ;;  %v6995_v44 = vmax.f32 %v6963_v61, 0.0  ;;  %9844 = vmatpush3.bf16.msra.mxu0 %v9843_v53  ;;  %v13896_v53 = vld [vmem:[#allocation34_spill] sm:$0xff]  ;;  %v13897_v61 = vld [vmem:[#allocation39_spill] sm:$0xff] }
 0x820   : > { %v6854_v42 = vadd.f32 %v8823_v19, %v13889_v3  ;;  %v6848_v60 = vpop.f32.mrb[213].mxu0  ;;  %v6966_v43 = vadd.f32 %v13431_v24, %v6930_v23  ;;  %9845 = vmatprep.subr.bf16.mxu0 %v13815_v16  ;;  %v13898_v19 = vld [vmem:[#allocation36_spill] sm:$0xff] }
 0x821   : > { %v6849_v1 = vadd.f32 %v6848_v60, %v13890_v2  ;;  %8895 = vmatprep.mubr.f32.mxu0 %v6995_v44  ;;  %v6965_v51 = vadd.f32 %v13431_v24, %v6929_v18  ;;  %v7319_v60 = vadd.f32 %v7318_v27, %v7317_v37 }
 0x822   : > { %v6932_v47 = vmul.f32 %v13427_v21, %v6854_v42  ;;  %8896 = vmatmul.mubr.f32.gmra.mrb[112].mxu0 %v6996_v46  ;;  %v6998_v30 = vmax.f32 %v6966_v43, 0.0 }
 0x823   : > { %v6931_v7 = vmul.f32 %v13427_v21, %v6849_v1  ;;  %v8826_v36 = vpop.f32.mrb[214].mxu0  ;;  %v6997_v22 = vmax.f32 %v6965_v51, 0.0  ;;  %v13899_v1 = vld [vmem:[#allocation41_spill] sm:$0xff] }
 0x824   : > { %v6864_v4 = vadd.f32 %v8826_v36, %v13891_v38  ;;  %v6858_v15 = vpop.f32.mrb[215].mxu0  ;;  %v6968_v0 = vadd.f32 %v13431_v24, %v6932_v47 }
 0x825   : > { %v6859_v26 = vadd.f32 %v6858_v15, %v13892_v40  ;;  %8898 = vmatprep.mubr.f32.mxu0 %v6997_v22  ;;  %v6967_v50 = vadd.f32 %v13431_v24, %v6931_v7  ;;  %v13900_v7 = vld [vmem:[#allocation38_spill] sm:$0xff] }
 0x826   : > { %v6934_v39 = vmul.f32 %v13427_v21, %v6864_v4  ;;  %8899 = vmatmul.mubr.f32.gmra.mrb[114].mxu0 %v6998_v30  ;;  %v7000_v59 = vmax.f32 %v6968_v0, 0.0  ;;  %v7320_v4 = vrot.slane %v7319_v60, 1 }
 0x827   : > { %v6933_v41 = vmul.f32 %v13427_v21, %v6859_v26  ;;  %v8829_v35 = vpop.f32.mrb[216].mxu0  ;;  %v6999_v6 = vmax.f32 %v6967_v50, 0.0 }
 0x828   : > { %v6874_v25 = vadd.f32 %v8829_v35, %v13893_v33  ;;  %v6868_v13 = vpop.f32.mrb[217].mxu0  ;;  %v6970_v17 = vadd.f32 %v13431_v24, %v6934_v39  ;;  %v7321_v50 = vadd.f32 %v7320_v4, %v7319_v60  ;;  %v10776_v35 = vld [vmem:[#allocation2] sm:$0xff]  ;;  %v7840_v33 = vld [vmem:[%s13741_s6 + $0x210] sm:$0xff] }
 0x829   : > { %v6869_v9 = vadd.f32 %v6868_v13, %v13894_v57  ;;  %8901 = vmatprep.mubr.f32.mxu0 %v6999_v6  ;;  %v6969_v52 = vadd.f32 %v13431_v24, %v6933_v41 }
 0x82a   : > { %v6936_v10 = vmul.f32 %v13427_v21, %v6874_v25  ;;  %8902 = vmatmul.mubr.f32.gmra.mrb[116].mxu0 %v7000_v59  ;;  %v7002_v5 = vmax.f32 %v6970_v17, 0.0  ;;  %v7323_v41 = vmul.f32 0.00390625, %v7321_v50  ;;  %v7841_v25 = vld [vmem:[%s13741_s6 + $0x218] sm:$0xff]  ;;  %v7842_v59 = vld [vmem:[%s13741_s6 + $0x220] sm:$0xff]  ;;  %v7843_v17 = vld [vmem:[%s13741_s6 + $0x228] sm:$0xff] }
 0x82b   : > { %v6935_v49 = vmul.f32 %v13427_v21, %v6869_v9  ;;  %v8832_v54 = vpop.f32.mrb[218].mxu0  ;;  %v7001_v31 = vmax.f32 %v6969_v52, 0.0  ;;  %v9849_v13 = vpack.c.bf16 %v7841_v25, %v7840_v33  ;;  %v9852_v57 = vpack.c.bf16 %v7843_v17, %v7842_v59  ;;  %v7844_v9 = vld [vmem:[%s13741_s6 + $0x230] sm:$0xff]  ;;  %v7845_v52 = vld [vmem:[%s13741_s6 + $0x238] sm:$0xff]  ;;  %v10778_v50 = vld [vmem:[%s13743_s8] sm:$0x3f] }
 0x82c   : > { %v6884_v56 = vadd.f32 %v8832_v54, %v13895_v62  ;;  %v6878_v11 = vpop.f32.mrb[219].mxu0  ;;  %v6972_v48 = vadd.f32 %v13431_v24, %v6936_v10  ;;  %v9855_v37 = vpack.c.bf16 %v7845_v52, %v7844_v9  ;;  %v7846_v10 = vld [vmem:[%s13741_s6 + $0x240] sm:$0xff]  ;;  %v7849_v62 = vld [vmem:[%s13741_s6 + $0x258] sm:$0xff] }
 0x82d   : > { %v6879_v58 = vadd.f32 %v6878_v11, %v13896_v53  ;;  %8904 = vmatprep.mubr.f32.mxu0 %v7001_v31  ;;  %v6971_v14 = vadd.f32 %v13431_v24, %v6935_v49  ;;  %v7847_v49 = vld [vmem:[%s13741_s6 + $0x248] sm:$0xff]  ;;  %v7848_v31 = vld [vmem:[%s13741_s6 + $0x250] sm:$0xff]  ;;  %v7850_v11 = vld [vmem:[%s13741_s6 + $0x260] sm:$0xff] }
 0x82e   : > { %v6938_v63 = vmul.f32 %v13427_v21, %v6884_v56  ;;  %8905 = vmatmul.mubr.f32.gmra.mrb[118].mxu0 %v7002_v5  ;;  %v7004_v23 = vmax.f32 %v6972_v48, 0.0  ;;  %v9858_v54 = vpack.c.bf16 %v7847_v49, %v7846_v10  ;;  %v9861_v56 = vpack.c.bf16 %v7849_v62, %v7848_v31  ;;  %v7851_v5 = vld [vmem:[%s13741_s6 + $0x268] sm:$0xff]  ;;  %v7852_v53 = vld [vmem:[%s13741_s6 + $0x270] sm:$0xff] }
 0x82f   : > { %v6937_v12 = vmul.f32 %v13427_v21, %v6879_v58  ;;  %v8835_v29 = vpop.f32.mrb[220].mxu0  ;;  %v7003_v20 = vmax.f32 %v6971_v14, 0.0  ;;  %v9864_v48 = vpack.c.bf16 %v7851_v5, %v7850_v11  ;;  %v7853_v58 = vld [vmem:[%s13741_s6 + $0x278] sm:$0xff] }
 0x830   : > { %v6894_v32 = vadd.f32 %v8835_v29, %v13897_v61  ;;  %v6888_v34 = vpop.f32.mrb[221].mxu0  ;;  %v6974_v18 = vadd.f32 %v13431_v24, %v6938_v63  ;;  %v9867_v14 = vpack.c.bf16 %v7853_v58, %v7852_v53 }
 0x831   : > { %v6889_v44 = vadd.f32 %v6888_v34, %v13898_v19  ;;  %8907 = vmatprep.mubr.f32.mxu0 %v7003_v20  ;;  %v6973_v3 = vadd.f32 %v13431_v24, %v6937_v12 }
 0x832   : > { %v6940_v42 = vmul.f32 %v13427_v21, %v6894_v32  ;;  %8908 = vmatmul.mubr.f32.gmra.mrb[120].mxu0 %v7004_v23  ;;  %v7006_v55 = vmax.f32 %v6974_v18, 0.0 }
 0x833   : > { %v6939_v46 = vmul.f32 %v13427_v21, %v6889_v44  ;;  %v8838_v43 = vpop.f32.mrb[222].mxu0  ;;  %v7005_v2 = vmax.f32 %v6973_v3, 0.0 }
 0x834   : > { %v6904_v51 = vadd.f32 %v8838_v43, %v13899_v1  ;;  %v6898_v8 = vpop.f32.mrb[223].mxu0  ;;  %v6976_v47 = vadd.f32 %v13431_v24, %v6940_v42 }
 0x835   : > { %v6899_v36 = vadd.f32 %v6898_v8, %v13900_v7  ;;  %8910 = vmatprep.mubr.f32.mxu0 %v7005_v2  ;;  %v6975_v22 = vadd.f32 %v13431_v24, %v6939_v46 }
 0x836   : > { %v6942_v38 = vmul.f32 %v13427_v21, %v6904_v51  ;;  %8911 = vmatmul.mubr.f32.gmra.mrb[122].mxu0 %v7006_v55  ;;  %v7008_v0 = vmax.f32 %v6976_v47, 0.0 }
 0x837   : > { %v6941_v15 = vmul.f32 %v13427_v21, %v6899_v36  ;;  %v7007_v30 = vmax.f32 %v6975_v22, 0.0  ;;  %v7838_v21 = vld [vmem:[%s13741_s6 + $0x200] sm:$0xff] }
 0x838   : > { %v6978_v40 = vadd.f32 %v13431_v24, %v6942_v38 }
 0x839   : > { %8913 = vmatprep.mubr.f32.mxu0 %v7007_v30  ;;  %v6977_v26 = vadd.f32 %v13431_v24, %v6941_v15  ;;  %v7839_v24 = vld [vmem:[%s13741_s6 + $0x208] sm:$0xff] }
 0x83a   : > { %8914 = vmatmul.mubr.f32.gmra.mrb[124].mxu0 %v7008_v0  ;;  %v7010_v39 = vmax.f32 %v6978_v40, 0.0  ;;  %v9846_v6 = vpack.c.bf16 %v7839_v24, %v7838_v21  ;;  %v10777_v40 = vld [vmem:[%s13742_s7] sm:$0x3f] }
 0x83b   : > { %v7009_v45 = vmax.f32 %v6977_v26, 0.0  ;;  %v7411_v26 = vrot.slane %v10777_v40, 4 }
 0x83d   : > { %8916 = vmatprep.mubr.f32.mxu0 %v7009_v45  ;;  %v7415_v45 = vrot.slane %v10778_v50, 4 }
 0x83e   : > { %8917 = vmatmul.mubr.f32.gmra.mrb[126].mxu0 %v7010_v39 }
 0x83f   : > { %8951 = vmatprep.mubr.msk.f32.mxu0 %vm11004_vm1, %v10776_v35 }
 0x842   : > { %8952 = vmatmul.mubr.f32.vlgmr.msra.gmra.mrb[224].mxu0 %v7323_v41 }
 0x843   : > { %8986 = vmatprep.mubr.msk.f32.mxu0 %vm11004_vm1, %v10776_v35  ;;  %9847 = vmatpush3.bf16.msra.mxu0 %v9846_v6  ;;  %v7513_v6 = vsub.s32 5, %v13877_v28 }
 0x844   : > { %9848 = vmatprep.subr.bf16.mxu0 %v13815_v16 }
 0x845   : > { %v7514_v33 = vrot.slane %v10777_v40, %v7513_v6 }
 0x847   : > { %9850 = vmatpush3.bf16.msra.mxu0 %v9849_v13 }
 0x848   : > { %9851 = vmatprep.subr.bf16.mxu0 %v13815_v16 }
 0x84b   : > { %9853 = vmatpush3.bf16.msra.mxu0 %v9852_v57 }
 0x84c   : > { %9854 = vmatprep.subr.bf16.mxu0 %v13815_v16 }
 0x84f   : > { %9856 = vmatpush3.bf16.msra.mxu0 %v9855_v37 }
 0x850   : > { %9857 = vmatprep.subr.bf16.mxu0 %v13815_v16 }
 0x853   : > { %9859 = vmatpush3.bf16.msra.mxu0 %v9858_v54 }
 0x854   : > { %9860 = vmatprep.subr.bf16.mxu0 %v13815_v16 }
 0x857   : > { %9862 = vmatpush3.bf16.msra.mxu0 %v9861_v56 }
 0x858   : > { %9863 = vmatprep.subr.bf16.mxu0 %v13815_v16 }
 0x85b   : > { %9865 = vmatpush3.bf16.msra.mxu0 %v9864_v48 }
 0x85c   : > { %9866 = vmatprep.subr.bf16.mxu0 %v13815_v16 }
 0x85f   : > { %9868 = vmatpush3.bf16.msra.mxu0 %v9867_v14 }
 0x8d5   : > { %v8873_v27 = vpop.f32.mrb[96].mxu0 }
 0x8d6   : > { %v7094_v63 = vpop.f32.mrb[97].mxu0  ;;  %v7516_v25 = vmul.f32 %v8873_v27, %v7514_v33 }
 0x8d7   : > { %v7515_v13 = vmul.f32 %v7514_v33, %v7094_v63 }
 0x8d9   : > { %v8876_v12 = vpop.f32.mrb[98].mxu0 }
 0x8da   : > { %v7104_v29 = vpop.f32.mrb[99].mxu0  ;;  %v7518_v59 = vmul.f32 %v8876_v12, %v7514_v33 }
 0x8db   : > { %v7517_v17 = vmul.f32 %v7514_v33, %v7104_v29 }
 0x8dd   : > { %v8879_v20 = vpop.f32.mrb[100].mxu0 }
 0x8de   : > { %v7114_v61 = vpop.f32.mrb[101].mxu0  ;;  %v7520_v9 = vmul.f32 %v8879_v20, %v7514_v33 }
 0x8df   : > { %v7519_v52 = vmul.f32 %v7514_v33, %v7114_v61 }
 0x8e1   : > { %v8882_v32 = vpop.f32.mrb[102].mxu0 }
 0x8e2   : > { %v7124_v34 = vpop.f32.mrb[103].mxu0  ;;  %v7522_v37 = vmul.f32 %v8882_v32, %v7514_v33 }
 0x8e3   : > { %v7521_v54 = vmul.f32 %v7514_v33, %v7124_v34 }
 0x8e5   : > { %v8885_v23 = vpop.f32.mrb[104].mxu0 }
 0x8e6   : > { %v7134_v16 = vpop.f32.mrb[105].mxu0  ;;  %v7524_v31 = vmul.f32 %v8885_v23, %v7514_v33 }
 0x8e7   : > { %v7523_v62 = vmul.f32 %v7514_v33, %v7134_v16 }
 0x8e9   : > { %v8888_v18 = vpop.f32.mrb[106].mxu0 }
 0x8ea   : > { %v7144_v19 = vpop.f32.mrb[107].mxu0  ;;  %v7526_v56 = vmul.f32 %v8888_v18, %v7514_v33 }
 0x8eb   : > { %v7525_v11 = vmul.f32 %v7514_v33, %v7144_v19 }
 0x8ed   : > { %v8891_v44 = vpop.f32.mrb[108].mxu0 }
 0x8ee   : > { %v7154_v3 = vpop.f32.mrb[109].mxu0  ;;  %v7528_v5 = vmul.f32 %v8891_v44, %v7514_v33 }
 0x8ef   : > { %v7527_v48 = vmul.f32 %v7514_v33, %v7154_v3 }
 0x8f1   : > { %v8894_v42 = vpop.f32.mrb[110].mxu0 }
 0x8f2   : > { %v7164_v60 = vpop.f32.mrb[111].mxu0  ;;  %v7530_v28 = vmul.f32 %v8894_v42, %v7514_v33 }
 0x8f3   : > { %v7529_v58 = vmul.f32 %v7514_v33, %v7164_v60 }
 0x8f5   : > { %v8897_v46 = vpop.f32.mrb[112].mxu0 }
 0x8f6   : > { %v7174_v43 = vpop.f32.mrb[113].mxu0  ;;  %v7532_v14 = vmul.f32 %v8897_v46, %v7514_v33 }
 0x8f7   : > { %v7531_v27 = vmul.f32 %v7514_v33, %v7174_v43 }
 0x8f9   : > { %v8900_v2 = vpop.f32.mrb[114].mxu0 }
 0x8fa   : > { %v7184_v1 = vpop.f32.mrb[115].mxu0  ;;  %v7534_v63 = vmul.f32 %v8900_v2, %v7514_v33 }
 0x8fb   : > { %v7533_v12 = vmul.f32 %v7514_v33, %v7184_v1 }
 0x8fd   : > { %v8903_v51 = vpop.f32.mrb[116].mxu0 }
 0x8fe   : > { %v7194_v8 = vpop.f32.mrb[117].mxu0  ;;  %v7536_v29 = vmul.f32 %v8903_v51, %v7514_v33 }
 0x8ff   : > { %v7535_v61 = vmul.f32 %v7514_v33, %v7194_v8 }
 0x901   : > { %v8906_v55 = vpop.f32.mrb[118].mxu0 }
 0x902   : > { %v7204_v47 = vpop.f32.mrb[119].mxu0  ;;  %v7538_v32 = vmul.f32 %v8906_v55, %v7514_v33 }
 0x905   : > { %v8909_v7 = vpop.f32.mrb[120].mxu0 }
 0x906   : > { %v7214_v36 = vpop.f32.mrb[121].mxu0  ;;  %v7540_v34 = vmul.f32 %v8909_v7, %v7514_v33 }
 0x907   : > { %v7539_v23 = vmul.f32 %v7514_v33, %v7214_v36 }
 0x909   : > { %v8912_v22 = vpop.f32.mrb[122].mxu0 }
 0x90a   : > { %v7224_v38 = vpop.f32.mrb[123].mxu0  ;;  %v7542_v16 = vmul.f32 %v8912_v22, %v7514_v33 }
 0x90b   : > { %v7541_v18 = vmul.f32 %v7514_v33, %v7224_v38 }
 0x90d   : > { %v8915_v4 = vpop.f32.mrb[124].mxu0 }
 0x90e   : > { %v7234_v15 = vpop.f32.mrb[125].mxu0  ;;  %v7544_v44 = vmul.f32 %v8915_v4, %v7514_v33 }
 0x90f   : > { %v7543_v3 = vmul.f32 %v7514_v33, %v7234_v15 }
 0x911   : > { %v8918_v30 = vpop.f32.mrb[126].mxu0 }
 0x912   : > { %v7244_v0 = vpop.f32.mrb[127].mxu0 }
 0x913   : > { %v7545_v42 = vmul.f32 %v7514_v33, %v7244_v0 }
 0x915   : > { %v7406_v39 = vpop.f32.mrb[224].mxu0 }
 0x916   : > { %v7413_v41 = vmul.f32 %v7411_v26, %v7406_v39  ;;  %v8953_v35 = vpop.f32.mrb[225].mxu0  ;;  %v7537_v26 = vmul.f32 %v7514_v33, %v7204_v47 }
 0x918   : > { %v7417_v21 = vadd.f32 %v7415_v45, %v7413_v41 }
 0x91a   : > { %v7418_v24 = vmax.f32 %v7417_v21, 0.0 }
 0x91c   : > { %8987 = vmatmul.mubr.f32.vlgmr.msra.gmra.mrb[226].mxu0 %v7418_v24 }
 0x9ef   : > { %v7502_v57 = vpop.f32.mrb[226].mxu0 }
 0x9f0   : > { %v7507_v10 = vrot.slane %v7502_v57, 3  ;;  %v8988_v49 = vpop.f32.mrb[227].mxu0 }
 0x9f2   : > { %v7509_v53 = vmul.f32 %v10777_v40, %v7507_v10  ;;  %v7546_v40 = vmul.f32 %v8918_v30, %v7514_v33 }
 0x9f4   : > { %v7510_v20 = vadd.f32 %v10778_v50, %v7509_v53 }
 0x9f6   : > { %v7550_v19 = vrot.slane %v7510_v20, %v7513_v6 }
 0x9f8   : > { %v7551_v60 = vadd.f32 %v7550_v19, %v7515_v13  ;;  %v7552_v46 = vadd.f32 %v7550_v19, %v7516_v25  ;;  %v7553_v43 = vadd.f32 %v7550_v19, %v7517_v17  ;;  %v7554_v2 = vadd.f32 %v7550_v19, %v7518_v59 }
 0x9f9   : > { %v7555_v1 = vadd.f32 %v7550_v19, %v7519_v52  ;;  %v7556_v51 = vadd.f32 %v7550_v19, %v7520_v9  ;;  %v7557_v8 = vadd.f32 %v7550_v19, %v7521_v54  ;;  %v7558_v55 = vadd.f32 %v7550_v19, %v7522_v37 }
 0x9fa   : > { %v7559_v47 = vadd.f32 %v7550_v19, %v7523_v62  ;;  %v7560_v7 = vadd.f32 %v7550_v19, %v7524_v31  ;;  %v7561_v36 = vadd.f32 %v7550_v19, %v7525_v11  ;;  %v7562_v22 = vadd.f32 %v7550_v19, %v7526_v56 }
 0x9fb   : > { %v7563_v38 = vadd.f32 %v7550_v19, %v7527_v48  ;;  %v7564_v50 = vadd.f32 %v7550_v19, %v7528_v5  ;;  %v7565_v4 = vadd.f32 %v7550_v19, %v7529_v58  ;;  %v7566_v15 = vadd.f32 %v7550_v19, %v7530_v28 }
 0x9fc   : > { %v13601_v30 = vadd.f32 %v7550_v19, %v7531_v27  ;;  %v13603_v0 = vadd.f32 %v7550_v19, %v7532_v14  ;;  %v13605_v45 = vadd.f32 %v7550_v19, %v7533_v12  ;;  %v13607_v39 = vadd.f32 %v7550_v19, %v7534_v63 }
 0x9fd   : > { %v13609_v41 = vadd.f32 %v7550_v19, %v7535_v61  ;;  %v13611_v35 = vadd.f32 %v7550_v19, %v7536_v29  ;;  %v13613_v21 = vadd.f32 %v7550_v19, %v7537_v26  ;;  %v13615_v24 = vadd.f32 %v7550_v19, %v7538_v32 }
 0x9fe   : > { %v13617_v6 = vadd.f32 %v7550_v19, %v7539_v23  ;;  %v13619_v33 = vadd.f32 %v7550_v19, %v7540_v34  ;;  %v13621_v25 = vadd.f32 %v7550_v19, %v7541_v18  ;;  %v13623_v13 = vadd.f32 %v7550_v19, %v7542_v16 }
 0x9ff   : > { %v13625_v59 = vadd.f32 %v7550_v19, %v7543_v3  ;;  %v13627_v17 = vadd.f32 %v7550_v19, %v7544_v44  ;;  %v13629_v57 = vadd.f32 %v7550_v19, %v7545_v42  ;;  %v13631_v9 = vadd.f32 %v7550_v19, %v7546_v40 }
 0xa00   : > { %v7583_v52 = vmax.f32 %v7551_v60, 0.0  ;;  %v7584_v37 = vmax.f32 %v7552_v46, 0.0  ;;  %v7585_v10 = vmax.f32 %v7553_v43, 0.0  ;;  %v7586_v49 = vmax.f32 %v7554_v2, 0.0 }
 0xa01   : > { %v7587_v54 = vmax.f32 %v7555_v1, 0.0  ;;  %v7588_v31 = vmax.f32 %v7556_v51, 0.0  ;;  %v7589_v62 = vmax.f32 %v7557_v8, 0.0  ;;  %v7590_v56 = vmax.f32 %v7558_v55, 0.0 }
 0xa02   : > { %v7591_v11 = vmax.f32 %v7559_v47, 0.0  ;;  %v7592_v5 = vmax.f32 %v7560_v7, 0.0  ;;  %v7593_v48 = vmax.f32 %v7561_v36, 0.0  ;;  %v7594_v53 = vmax.f32 %v7562_v22, 0.0  ;;  %7615 = vst [vmem:[%s13633_s28] sm:$0xff] %v7583_v52  ;;  %7616 = vst [vmem:[%s13633_s28 + $0x8] sm:$0xff] %v7584_v37 }
 0xa03   : > { %7617 = vst [vmem:[%s13633_s28 + $0x10] sm:$0xff] %v7585_v10  ;;  %7618 = vst [vmem:[%s13633_s28 + $0x18] sm:$0xff] %v7586_v49  ;;  %v7595_v28 = vmax.f32 %v7563_v38, 0.0  ;;  %v7596_v58 = vmax.f32 %v7564_v50, 0.0  ;;  %v7597_v14 = vmax.f32 %v7565_v4, 0.0  ;;  %v7598_v27 = vmax.f32 %v7566_v15, 0.0 }
 0xa04   : > { %7619 = vst [vmem:[%s13633_s28 + $0x20] sm:$0xff] %v7587_v54  ;;  %7620 = vst [vmem:[%s13633_s28 + $0x28] sm:$0xff] %v7588_v31  ;;  %v7599_v63 = vmax.f32 %v13601_v30, 0.0  ;;  %v7600_v12 = vmax.f32 %v13603_v0, 0.0  ;;  %v7601_v29 = vmax.f32 %v13605_v45, 0.0  ;;  %v7602_v20 = vmax.f32 %v13607_v39, 0.0 }
 0xa05   : > { %7621 = vst [vmem:[%s13633_s28 + $0x30] sm:$0xff] %v7589_v62  ;;  %7622 = vst [vmem:[%s13633_s28 + $0x38] sm:$0xff] %v7590_v56  ;;  %v7603_v61 = vmax.f32 %v13609_v41, 0.0  ;;  %v7604_v32 = vmax.f32 %v13611_v35, 0.0  ;;  %v7605_v26 = vmax.f32 %v13613_v21, 0.0  ;;  %v7606_v34 = vmax.f32 %v13615_v24, 0.0 }
 0xa06   : > { %7623 = vst [vmem:[%s13633_s28 + $0x40] sm:$0xff] %v7591_v11  ;;  %7624 = vst [vmem:[%s13633_s28 + $0x48] sm:$0xff] %v7592_v5  ;;  %v7607_v23 = vmax.f32 %v13617_v6, 0.0  ;;  %v7608_v16 = vmax.f32 %v13619_v33, 0.0  ;;  %v7609_v18 = vmax.f32 %v13621_v25, 0.0  ;;  %v7610_v19 = vmax.f32 %v13623_v13, 0.0 }
 0xa07   : > { %7625 = vst [vmem:[%s13633_s28 + $0x50] sm:$0xff] %v7593_v48  ;;  %7626 = vst [vmem:[%s13633_s28 + $0x58] sm:$0xff] %v7594_v53  ;;  %v7611_v44 = vmax.f32 %v13625_v59, 0.0  ;;  %v7612_v3 = vmax.f32 %v13627_v17, 0.0  ;;  %v7613_v40 = vmax.f32 %v13629_v57, 0.0  ;;  %v7614_v42 = vmax.f32 %v13631_v9, 0.0 }
 0xa08   : > { %7627 = vst [vmem:[%s13633_s28 + $0x60] sm:$0xff] %v7595_v28  ;;  %7628 = vst [vmem:[%s13633_s28 + $0x68] sm:$0xff] %v7596_v58 }
 0xa09   : > { %7629 = vst [vmem:[%s13633_s28 + $0x70] sm:$0xff] %v7597_v14  ;;  %7630 = vst [vmem:[%s13633_s28 + $0x78] sm:$0xff] %v7598_v27 }
 0xa0a   : > { %7631 = vst [vmem:[%s13633_s28 + $0x80] sm:$0xff] %v7599_v63  ;;  %7632 = vst [vmem:[%s13633_s28 + $0x88] sm:$0xff] %v7600_v12 }
 0xa0b   : > { %7633 = vst [vmem:[%s13633_s28 + $0x90] sm:$0xff] %v7601_v29  ;;  %7634 = vst [vmem:[%s13633_s28 + $0x98] sm:$0xff] %v7602_v20 }
 0xa0c   : > { %7635 = vst [vmem:[%s13633_s28 + $0xa0] sm:$0xff] %v7603_v61  ;;  %7636 = vst [vmem:[%s13633_s28 + $0xa8] sm:$0xff] %v7604_v32 }
 0xa0d   : > { %7637 = vst [vmem:[%s13633_s28 + $0xb0] sm:$0xff] %v7605_v26  ;;  %7638 = vst [vmem:[%s13633_s28 + $0xb8] sm:$0xff] %v7606_v34 }
 0xa0e   : > { %7639 = vst [vmem:[%s13633_s28 + $0xc0] sm:$0xff] %v7607_v23  ;;  %7640 = vst [vmem:[%s13633_s28 + $0xc8] sm:$0xff] %v7608_v16 }
 0xa0f   : > { %7641 = vst [vmem:[%s13633_s28 + $0xd0] sm:$0xff] %v7609_v18  ;;  %7642 = vst [vmem:[%s13633_s28 + $0xd8] sm:$0xff] %v7610_v19 }
 0xa10   : > { %7643 = vst [vmem:[%s13633_s28 + $0xe0] sm:$0xff] %v7611_v44  ;;  %7644 = vst [vmem:[%s13633_s28 + $0xe8] sm:$0xff] %v7612_v3 }
 0xa11   : > { %7645 = vst [vmem:[%s13633_s28 + $0xf0] sm:$0xff] %v7613_v40  ;;  %7646 = vst [vmem:[%s13633_s28 + $0xf8] sm:$0xff] %v7614_v42 }
 0xa12   : > { %10932 = shalt.err (!%p10929_p0)
}
 0xa13   : > { %s10933_s20 = scalar_lea.hbm %s13672_s14, 4096  ;;  %s10937_s27 = scalar_lea.hbm %s13744_s9, 8192 }
 0xa14   : > { %p10934_p10 = scmp.ne.s32.totalorder %s13672_s14, %s10933_s20  ;;  %p10938_p4 = scmp.lt.u32.totalorder %s13672_s14, %s13744_s9 }
 0xa15   : > { %p10939_p12 = scmp.lt.u32.totalorder %s10937_s27, %s10933_s20  ;;  %p10941_p8 = scmp.lt.u32.totalorder %s10933_s20, %s13672_s14 }
 0xa16   : > { %p10935_p2 = pnand %p10934_p10, %p13901_p11 }
 0xa17   : > { %p10940_p7 = por %p10939_p12, %p10938_p4 }
 0xa18   : > { %p10936_p3 = pneg %p10935_p2 }
 0xa19   : > { %p10942_p13 = por %p10941_p8, %p10940_p7 }
 0xa1b   : > { %p10943_p1 = pnand %p10942_p13, %p10936_p3 }
 0xa1d   : > { %10946 = shalt.err (!%p10943_p1)
}
 0xa1e   : > { %s11006_s26 = smov 128   ;;  %s11007_s15 = smov 8  }
 0xa1f   : > { %10577 = dma.vmem_to_hbm [thread:$0]  (%p13901_p11), %s13674_s21, 4096, %s13672_s14, %s13694_s16, %s11006_s26, %s11006_s26, %s11007_s15  }
 0xa20 PF: > { %s13902_s28 = sld [smem:[#allocation17_spill]]  ;;  %s13903_s18 = sld [smem:[#allocation21_spill]] }
 0xa21   : > { %p10609_p6 = scmp.ge.s32.totalorder %s10993_s12, 2 }
 0xa26   : > { %s7676_s13 = sand.u32 1, %s13902_s28   ;;  %p13904_p9 = scmp.ne.s32.totalorder %s13903_s18, 0 }
 0xa27   : > { %s7677_s24 = scalar_lea.sflag [#allocation5], %s7676_s13 }
 0xa28   : > { %p10596_p5 = pnand %p10609_p6, %p13904_p9 }
 0xa2a   : > { %10976 = dma.done.wait (!%p10596_p5), %s7677_s24, 4096  }
 0xa2b   : > { %10978 = vsyncadd (!%p10596_p5), %s7677_s24, 4294963200  ;;  %s13905_s12 = sld [smem:[#allocation19_spill]]  ;;  %s13906_s17 = sld [smem:[#allocation18_spill]] }
 0xa2c   : > { %s13907_s11 = sld [smem:[#allocation20_spill]]  ;;  %s13908_s30 = smov %s10985_s10 }
 0xa31   : > { %p22_p0 = scmp.ge.s32.totalorder %s13905_s12, 4   ;;  %s13909_s10 = smov %s13906_s17 }
 0xa33   :  { %24 = sbr.rel (!%p22_p0) target bundleno = 8 (0x8), region = 123 }
 0xa3a   :  { %7682 = vsyncpa [#allocation4], 1 }
 0xa3b   :  { %7684 = vsyncpa [#allocation4 + $0x1], 1 }
 0xa3c   :  { %7685 = vsyncpa [#allocation7], 1 }
 0xa3d   :  { %7686 = vsyncpa [#allocation10], 1 }
 0xa3e   :  { %7687 = vsyncpa [#allocation5], 1 }
 0xa3f   :  { %7689 = vsyncpa [#allocation5 + $0x1], 1 }

</bundles_post_ra>
